<compile_context>
chip_gen: v7x
topology: tpu7x:2x2x1
jax: 0.10.0
libtpu: 0.0.40
codegen_flags: <defaults>
</compile_context>

<pallas_src>
import functools

import numpy as np
import jax
import jax.numpy as jnp
from jax import lax
from jax.experimental import pallas as pl
from jax.experimental.pallas import tpu as pltpu


# ----------------------------------------------------------------------------
# helpers
# ----------------------------------------------------------------------------
def _round_up(x, m):
    return (x + m - 1) // m * m


def _vmem_limit_bytes():
    # Generation-aware scoped-VMEM limit: v7x has 64 MiB/TC, v5e/v6e have 128 MiB.
    try:
        cap = int(pltpu.get_tpu_info().vmem_capacity_bytes)
    except Exception:
        cap = 64 * 1024 * 1024
    return max(32 * 1024 * 1024, min(int(cap * 0.6), 80 * 1024 * 1024))


_VMEM_LIMIT = _vmem_limit_bytes()


# ----------------------------------------------------------------------------
# Pallas kernel 1: direct "shifted-slab" convolution + bias + fused activation
# ----------------------------------------------------------------------------
def _conv_kernel(x_ref, w_ref, b_ref, o_ref, *, offs, l_acc, activation):
    """x_ref: (1, L_slab, C) bf16 flattened padded rows of one image strip.
       w_ref: (kh*kw, C, OC) bf16 per-tap weights (VMEM-resident, constant index_map).
       b_ref: (1, OC) f32 bias.
       o_ref: (1, l_acc, OC) output rows in padded-width layout (row = h*Wp + w)."""
    oc = o_ref.shape[-1]
    acc = jnp.zeros((l_acc, oc), jnp.float32)
    for k, off in enumerate(offs):                       # kh*kw static taps
        a = x_ref[0, pl.ds(off, l_acc), :]               # shifted window, no HBM im2col copy
        acc = acc + jnp.dot(a, w_ref[k], preferred_element_type=jnp.float32)
    y = acc + b_ref[...]
    if activation == "relu":
        y = jnp.maximum(y, 0.0)
    o_ref[0] = y.astype(o_ref.dtype)


def _conv_vmem_estimate(t, wp, c, oc, kh, kw, out_bytes):
    slab = (t + kh) * wp * c * 2                  # bf16 slab (double buffered)
    outb = t * wp * oc * out_bytes
    acc = t * wp * oc * 4
    wgt = kh * kw * c * oc * 2
    return 2 * slab + 2 * outb + wgt + 3 * acc + 2 * t * wp * c * 2


def _pick_strip_height(h, wp, c, oc, kh, kw, out_bytes):
    budget = int(_VMEM_LIMIT * 0.7)
    t = h
    while t > 8 and _conv_vmem_estimate(t, wp, c, oc, kh, kw, out_bytes) > budget:
        t = -(-t // 2)
    return t


def conv2d_same(x, w_taps, bias, *, act="none", out_dtype=jnp.bfloat16):
    """Odd-kernel, stride-1, 'same'-padded Conv2d on an NHWC tensor.

    x:      (N, H, W, C)   any float dtype (cast to bf16 for the MXU)
    w_taps: (kh*kw, C, OC) bf16, pre-transposed from torch (OC, C, kh, kw)
    bias:   (1, OC)        f32
    """
    n, h, w, c = x.shape
    kk, c2, oc = w_taps.shape
    assert c2 == c
    k = int(round(kk ** 0.5))
    assert k * k == kk and k % 2 == 1, "only square odd kernels (VGG 3x3 / 1x1) supported"
    # TODO(synk): strided / dilated convolutions are not lowered by this kernel.
    ph = pw = k // 2
    wp = w + 2 * pw

    xb = x.astype(jnp.bfloat16)
    # +1 extra zero row at the bottom so every shifted slab window stays in bounds.
    xp = jnp.pad(xb, ((0, 0), (ph, ph + 1), (pw, pw), (0, 0)))

    out_bytes = np.dtype(out_dtype).itemsize
    th = _pick_strip_height(h, wp, c, oc, k, k, out_bytes)
    offs = tuple(di * wp + dj for di in range(k) for dj in range(k))

    strips = []
    h0 = 0
    while h0 < h:
        t = min(th, h - h0)
        rows = t + 2 * ph + 1
        slab = xp[:, h0:h0 + rows, :, :].reshape(n, rows * wp, c)
        l_acc = t * wp
        out = pl.pallas_call(
            functools.partial(_conv_kernel, offs=offs, l_acc=l_acc, activation=act),
            out_shape=jax.ShapeDtypeStruct((n, l_acc, oc), out_dtype),
            grid=(n,),
            in_specs=[
                pl.BlockSpec((1, rows * wp, c), lambda i: (i, 0, 0)),
                pl.BlockSpec((kk, c, oc), lambda i: (0, 0, 0)),    # weights: constant block
                pl.BlockSpec((1, oc), lambda i: (0, 0)),           # -> DMA'd once, resident
            ],
            out_specs=pl.BlockSpec((1, l_acc, oc), lambda i: (i, 0, 0)),
            compiler_params=pltpu.CompilerParams(
                dimension_semantics=("parallel",),
                vmem_limit_bytes=_VMEM_LIMIT),
        )(slab, w_taps, bias)
        # rows h*wp + w with w < W are the valid outputs; drop the padded-width columns.
        strips.append(out.reshape(n, t, wp, oc)[:, :, :w, :])
        h0 += t
    return strips[0] if len(strips) == 1 else jnp.concatenate(strips, axis=1)


# ----------------------------------------------------------------------------
# Pallas kernel 2: single-pass MaxPool2d(2) on NHWC
# ----------------------------------------------------------------------------
def _maxpool_kernel(x_ref, o_ref):
    c = o_ref.shape[-1]
    xb = x_ref[0]                                  # (th, 2, Wout, 2*C)
    m = jnp.maximum(xb[:, 0], xb[:, 1])            # max over the H pair
    o_ref[0] = jnp.maximum(m[:, :, :c], m[:, :, c:])   # max over the W pair (lane halves)


def maxpool2x2(x):
    """MaxPool2d(kernel=2, stride=2), single pass over the NHWC activation."""
    n, h, w, c = x.shape
    he, we = (h // 2) * 2, (w // 2) * 2
    if (he, we) != (h, w):                         # PyTorch floor mode: drop trailing row/col
        x = x[:, :he, :we, :]
    ho, wo = he // 2, we // 2
    xr = x.reshape(n, ho, 2, wo, 2 * c)            # free reshape: W pair folded into lanes
    itemsize = np.dtype(x.dtype).itemsize
    th = ho
    while th % 2 == 0 and 3 * th * 2 * wo * 2 * c * itemsize > _VMEM_LIMIT // 4:
        th //= 2
    return pl.pallas_call(
        _maxpool_kernel,
        out_shape=jax.ShapeDtypeStruct((n, ho, wo, c), x.dtype),
        grid=(n, ho // th),
        in_specs=[pl.BlockSpec((1, th, 2, wo, 2 * c), lambda i, j: (i, j, 0, 0, 0))],
        out_specs=pl.BlockSpec((1, th, wo, c), lambda i, j: (i, j, 0, 0)),
        compiler_params=pltpu.CompilerParams(
            dimension_semantics=("parallel", "parallel"),
            vmem_limit_bytes=_VMEM_LIMIT),
    )(xr)


# ----------------------------------------------------------------------------
# Pallas kernel 3: standalone ReLU (only used when a conv's own output is collected)
# ----------------------------------------------------------------------------
_EW_LANE = 512
_EW_ROWS = 256


def _relu_kernel(x_ref, o_ref):
    o_ref[...] = jnp.maximum(x_ref[...], 0)


def relu(x):
    shp, dt = x.shape, x.dtype
    total = int(np.prod(shp))
    rows = _round_up(max(-(-total // _EW_LANE), 8), 8)
    tr = min(_EW_ROWS, rows)
    rows = _round_up(rows, tr)
    flat = x.reshape(-1)
    if rows * _EW_LANE != total:
        flat = jnp.pad(flat, (0, rows * _EW_LANE - total))
    out = pl.pallas_call(
        _relu_kernel,
        out_shape=jax.ShapeDtypeStruct((rows, _EW_LANE), dt),
        grid=(rows // tr,),
        in_specs=[pl.BlockSpec((tr, _EW_LANE), lambda i: (i, 0))],
        out_specs=pl.BlockSpec((tr, _EW_LANE), lambda i: (i, 0)),
        compiler_params=pltpu.CompilerParams(
            dimension_semantics=("parallel",),
            vmem_limit_bytes=_VMEM_LIMIT),
    )(flat.reshape(rows, _EW_LANE))
    return out.reshape(-1)[:total].reshape(shp)


# ----------------------------------------------------------------------------
# _PerceptualNetwork.forward equivalent
# ----------------------------------------------------------------------------
def perceptual_forward(params, x, *, layer_types, layer_name_mapping, layers,
                       feature_dtype=jnp.float32):
    """params: list aligned with layer_types; conv entries hold the pre-transformed
       {"w": (kh*kw, C, OC) bf16, "b": (1, OC) f32}.  x: (N, C, H, W) NCHW like torch.
       Returns {name: NCHW feature_dtype array} for the requested layers."""
    output = {}
    h = jnp.transpose(x, (0, 2, 3, 1))             # run the whole network channels-last
    i, n_layers = 0, len(layer_types)
    while i < n_layers:
        lt = layer_types[i]
        if (lt == "conv" and i + 1 < n_layers and layer_types[i + 1] == "relu"
                and layer_name_mapping.get(i) not in layers):
            # conv output itself not collected -> fuse the ReLU into the matmul epilogue
            p = params[i]
            collected = layer_name_mapping.get(i + 1) in layers
            h = conv2d_same(h, p["w"], p["b"], act="relu",
                            out_dtype=feature_dtype if collected else jnp.bfloat16)
            i += 1                                  # we are now sitting at the ReLU's index
        elif lt == "conv":
            p = params[i]
            collected = layer_name_mapping.get(i) in layers
            h = conv2d_same(h, p["w"], p["b"], act="none",
                            out_dtype=feature_dtype if collected else jnp.bfloat16)
            # TODO(synk): when both a conv and its ReLU are collected, a dual-output epilogue
            # would avoid the separate ReLU pass below.
        elif lt == "relu":
            h = relu(h)
        elif lt == "maxpool":
            h = maxpool2x2(h)
        else:
            raise ValueError(f"unknown layer type {lt}")
        name = layer_name_mapping.get(i)
        if name in layers:
            output[name] = jnp.transpose(h, (0, 3, 1, 2)).astype(feature_dtype)
        i += 1
    return output


# ----------------------------------------------------------------------------
# Deterministic small VGG-style feature network (stands in for the nn.Sequential)
# ----------------------------------------------------------------------------
def _init_conv(key, oc, ic, k=3):
    k1, k2 = jax.random.split(key)
    w = jax.random.normal(k1, (oc, ic, k, k), jnp.float32) * np.sqrt(2.0 / (ic * k * k))
    b = jax.random.normal(k2, (oc,), jnp.float32) * 0.01
    return {"w": w, "b": b}


def build_network(key, in_ch=3):
    cfg = [("conv", in_ch, 16), ("relu",), ("conv", 16, 16), ("relu",), ("maxpool",),
           ("conv", 16, 32), ("relu",), ("conv", 32, 32), ("relu",), ("maxpool",),
           ("conv", 32, 64), ("relu",)]
    layer_types = tuple(c[0] for c in cfg)
    n_conv = sum(1 for c in cfg if c[0] == "conv")
    keys = jax.random.split(key, n_conv)
    params, ki = [], 0
    for c in cfg:
        if c[0] == "conv":
            params.append(_init_conv(keys[ki], c[2], c[1], 3))
            ki += 1
        else:
            params.append(None)
    layer_name_mapping = {1: "relu_1_1", 3: "relu_1_2", 6: "relu_2_1",
                          8: "relu_2_2", 11: "relu_3_1"}
    layer_names = ("relu_1_1", "relu_2_1", "relu_3_1")
    return layer_types, params, layer_name_mapping, layer_names


def prepare_params(raw_params, layer_types):
    """One-time transform into the kernel's layout/dtype (not redone per forward call)."""
    prepared = []
    for p, lt in zip(raw_params, layer_types):
        if lt == "conv":
            oc, ic, kh, kw = p["w"].shape
            w_taps = jnp.transpose(p["w"], (2, 3, 1, 0)).reshape(kh * kw, ic, oc)
            prepared.append({"w": w_taps.astype(jnp.bfloat16),
                             "b": p["b"].reshape(1, oc).astype(jnp.float32)})
        else:
            prepared.append(None)
    return prepared


# ----------------------------------------------------------------------------
# Pure-XLA reference (mirrors the kernel's bf16 storage points) for validation
# ----------------------------------------------------------------------------
def reference_forward(raw_params, x, *, layer_types, layer_name_mapping, layers):
    output, h = {}, x
    n_layers = len(layer_types)
    for i, lt in enumerate(layer_types):
        if lt == "conv":
            p = raw_params[i]
            wb = p["w"].astype(jnp.bfloat16).astype(jnp.float32)
            hb = h.astype(jnp.bfloat16).astype(jnp.float32)
            h = lax.conv_general_dilated(hb, wb, window_strides=(1, 1), padding="SAME",
                                         dimension_numbers=("NCHW", "OIHW", "NCHW"))
            h = h + p["b"].reshape(1, -1, 1, 1)
            fused = (i + 1 < n_layers and layer_types[i + 1] == "relu"
                     and layer_name_mapping.get(i) not in layers)
            collected = (layer_name_mapping.get(i) in layers
                         or (fused and layer_name_mapping.get(i + 1) in layers))
            if not collected:                      # kernel stores bf16 between layers
                h = h.astype(jnp.bfloat16).astype(jnp.float32)
        elif lt == "relu":
            h = jnp.maximum(h, 0.0)
        elif lt == "maxpool":
            nn_, cc_, hh_, ww_ = h.shape
            h = h[:, :, :hh_ // 2 * 2, :ww_ // 2 * 2]
            h = h.reshape(nn_, cc_, hh_ // 2, 2, ww_ // 2, 2).max(axis=(3, 5))
        name = layer_name_mapping.get(i)
        if name in layers:
            output[name] = h
    return output


# ----------------------------------------------------------------------------
if __name__ == "__main__":
    key = jax.random.PRNGKey(0)
    kp, kx = jax.random.split(key)

    B, C, H, W = 2, 3, 16, 16
    layer_types, raw_params, mapping, names = build_network(kp, in_ch=C)
    params = prepare_params(raw_params, layer_types)
    x = jax.random.uniform(kx, (B, C, H, W), jnp.float32)

    fwd = jax.jit(functools.partial(perceptual_forward,
                                    layer_types=layer_types,
                                    layer_name_mapping=mapping,
                                    layers=names))
    feats = fwd(params, x)
    jax.block_until_ready(feats)

    assert set(feats.keys()) == set(names)
    assert feats["relu_1_1"].shape == (B, 16, H, W)
    assert feats["relu_2_1"].shape == (B, 32, H // 2, W // 2)
    assert feats["relu_3_1"].shape == (B, 64, H // 4, W // 4)

    ref = jax.jit(functools.partial(reference_forward,
                                    layer_types=layer_types,
                                    layer_name_mapping=mapping,
                                    layers=names))(raw_params, x)
    jax.block_until_ready(ref)

    for name in names:
        got = np.asarray(feats[name])
        want = np.asarray(ref[name])
        assert np.isfinite(got).all()
        assert (got >= 0.0).all()                  # collected features are post-ReLU
        np.testing.assert_allclose(got, want, rtol=2e-2, atol=2e-2)

    print("KERNEL_OK")
</pallas_src>

<mosaic_0001>
module attributes {stable_mosaic.version = 11 : i64} {
  func.func @_conv_kernel(%arg0: i32, %arg1: memref<1x342x3xbf16, #tpu.memory_space<vmem>>, %arg2: memref<9x3x16xbf16, #tpu.memory_space<vmem>>, %arg3: memref<1x16xf32, #tpu.memory_space<vmem>>, %arg4: memref<1x288x16xf32, #tpu.memory_space<vmem>>) attributes {dimension_semantics = [#tpu.dimension_semantics<parallel>], iteration_bounds = array<i64: 2>, scalar_prefetch = 0 : i64, scratch_operands = 0 : i64, tpu.core_type = #tpu.core_type<tc>, window_params = [{transform_indices = @transform_0, window_bounds = array<i64: 1, 342, 3>}, {pipeline_mode = #tpu.pipeline_mode<synchronous>, transform_indices = @transform_1, window_bounds = array<i64: 9, 3, 16>}, {pipeline_mode = #tpu.pipeline_mode<synchronous>, transform_indices = @transform_2, window_bounds = array<i64: 1, 16>}, {transform_indices = @transform_3, window_bounds = array<i64: 1, 288, 16>}]} {
    %cst = arith.constant 0.000000e+00 : f32
    %0 = vector.broadcast %cst : f32 to vector<288x16xf32>
    %c0 = arith.constant 0 : index
    %c0_0 = arith.constant 0 : index
    %c0_1 = arith.constant 0 : index
    %1 = vector.load %arg1[%c0, %c0_0, %c0_1] : memref<1x342x3xbf16, #tpu.memory_space<vmem>>, vector<1x288x3xbf16>
    %2 = vector.shape_cast %1 : vector<1x288x3xbf16> to vector<288x3xbf16>
    %c0_2 = arith.constant 0 : index
    %c0_3 = arith.constant 0 : index
    %c0_4 = arith.constant 0 : index
    %3 = vector.load %arg2[%c0_2, %c0_3, %c0_4] : memref<9x3x16xbf16, #tpu.memory_space<vmem>>, vector<1x3x16xbf16>
    %4 = vector.shape_cast %3 : vector<1x3x16xbf16> to vector<3x16xbf16>
    %cst_5 = arith.constant dense<0.000000e+00> : vector<288x16xf32>
    %5 = tpu.matmul %2, %4, %cst_5 {dimension_numbers = #tpu.dot_dimension_numbers<[1], [0], [0], [1], [0, 0, 1, 1], [], []>} : vector<288x3xbf16>, vector<3x16xbf16>, vector<288x16xf32> -> vector<288x16xf32>
    %6 = arith.addf %0, %5 : vector<288x16xf32>
    %c0_6 = arith.constant 0 : index
    %c1 = arith.constant 1 : index
    %c0_7 = arith.constant 0 : index
    %7 = vector.load %arg1[%c0_6, %c1, %c0_7] : memref<1x342x3xbf16, #tpu.memory_space<vmem>>, vector<1x288x3xbf16>
    %8 = vector.shape_cast %7 : vector<1x288x3xbf16> to vector<288x3xbf16>
    %c1_8 = arith.constant 1 : index
    %c0_9 = arith.constant 0 : index
    %c0_10 = arith.constant 0 : index
    %9 = vector.load %arg2[%c1_8, %c0_9, %c0_10] : memref<9x3x16xbf16, #tpu.memory_space<vmem>>, vector<1x3x16xbf16>
    %10 = vector.shape_cast %9 : vector<1x3x16xbf16> to vector<3x16xbf16>
    %cst_11 = arith.constant dense<0.000000e+00> : vector<288x16xf32>
    %11 = tpu.matmul %8, %10, %cst_11 {dimension_numbers = #tpu.dot_dimension_numbers<[1], [0], [0], [1], [0, 0, 1, 1], [], []>} : vector<288x3xbf16>, vector<3x16xbf16>, vector<288x16xf32> -> vector<288x16xf32>
    %12 = arith.addf %6, %11 : vector<288x16xf32>
    %c0_12 = arith.constant 0 : index
    %c2 = arith.constant 2 : index
    %c0_13 = arith.constant 0 : index
    %13 = vector.load %arg1[%c0_12, %c2, %c0_13] : memref<1x342x3xbf16, #tpu.memory_space<vmem>>, vector<1x288x3xbf16>
    %14 = vector.shape_cast %13 : vector<1x288x3xbf16> to vector<288x3xbf16>
    %c2_14 = arith.constant 2 : index
    %c0_15 = arith.constant 0 : index
    %c0_16 = arith.constant 0 : index
    %15 = vector.load %arg2[%c2_14, %c0_15, %c0_16] : memref<9x3x16xbf16, #tpu.memory_space<vmem>>, vector<1x3x16xbf16>
    %16 = vector.shape_cast %15 : vector<1x3x16xbf16> to vector<3x16xbf16>
    %cst_17 = arith.constant dense<0.000000e+00> : vector<288x16xf32>
    %17 = tpu.matmul %14, %16, %cst_17 {dimension_numbers = #tpu.dot_dimension_numbers<[1], [0], [0], [1], [0, 0, 1, 1], [], []>} : vector<288x3xbf16>, vector<3x16xbf16>, vector<288x16xf32> -> vector<288x16xf32>
    %18 = arith.addf %12, %17 : vector<288x16xf32>
    %c0_18 = arith.constant 0 : index
    %c18 = arith.constant 18 : index
    %c0_19 = arith.constant 0 : index
    %19 = vector.load %arg1[%c0_18, %c18, %c0_19] : memref<1x342x3xbf16, #tpu.memory_space<vmem>>, vector<1x288x3xbf16>
    %20 = vector.shape_cast %19 : vector<1x288x3xbf16> to vector<288x3xbf16>
    %c3 = arith.constant 3 : index
    %c0_20 = arith.constant 0 : index
    %c0_21 = arith.constant 0 : index
    %21 = vector.load %arg2[%c3, %c0_20, %c0_21] : memref<9x3x16xbf16, #tpu.memory_space<vmem>>, vector<1x3x16xbf16>
    %22 = vector.shape_cast %21 : vector<1x3x16xbf16> to vector<3x16xbf16>
    %cst_22 = arith.constant dense<0.000000e+00> : vector<288x16xf32>
    %23 = tpu.matmul %20, %22, %cst_22 {dimension_numbers = #tpu.dot_dimension_numbers<[1], [0], [0], [1], [0, 0, 1, 1], [], []>} : vector<288x3xbf16>, vector<3x16xbf16>, vector<288x16xf32> -> vector<288x16xf32>
    %24 = arith.addf %18, %23 : vector<288x16xf32>
    %c0_23 = arith.constant 0 : index
    %c19 = arith.constant 19 : index
    %c0_24 = arith.constant 0 : index
    %25 = vector.load %arg1[%c0_23, %c19, %c0_24] : memref<1x342x3xbf16, #tpu.memory_space<vmem>>, vector<1x288x3xbf16>
    %26 = vector.shape_cast %25 : vector<1x288x3xbf16> to vector<288x3xbf16>
    %c4 = arith.constant 4 : index
    %c0_25 = arith.constant 0 : index
    %c0_26 = arith.constant 0 : index
    %27 = vector.load %arg2[%c4, %c0_25, %c0_26] : memref<9x3x16xbf16, #tpu.memory_space<vmem>>, vector<1x3x16xbf16>
    %28 = vector.shape_cast %27 : vector<1x3x16xbf16> to vector<3x16xbf16>
    %cst_27 = arith.constant dense<0.000000e+00> : vector<288x16xf32>
    %29 = tpu.matmul %26, %28, %cst_27 {dimension_numbers = #tpu.dot_dimension_numbers<[1], [0], [0], [1], [0, 0, 1, 1], [], []>} : vector<288x3xbf16>, vector<3x16xbf16>, vector<288x16xf32> -> vector<288x16xf32>
    %30 = arith.addf %24, %29 : vector<288x16xf32>
    %c0_28 = arith.constant 0 : index
    %c20 = arith.constant 20 : index
    %c0_29 = arith.constant 0 : index
    %31 = vector.load %arg1[%c0_28, %c20, %c0_29] : memref<1x342x3xbf16, #tpu.memory_space<vmem>>, vector<1x288x3xbf16>
    %32 = vector.shape_cast %31 : vector<1x288x3xbf16> to vector<288x3xbf16>
    %c5 = arith.constant 5 : index
    %c0_30 = arith.constant 0 : index
    %c0_31 = arith.constant 0 : index
    %33 = vector.load %arg2[%c5, %c0_30, %c0_31] : memref<9x3x16xbf16, #tpu.memory_space<vmem>>, vector<1x3x16xbf16>
    %34 = vector.shape_cast %33 : vector<1x3x16xbf16> to vector<3x16xbf16>
    %cst_32 = arith.constant dense<0.000000e+00> : vector<288x16xf32>
    %35 = tpu.matmul %32, %34, %cst_32 {dimension_numbers = #tpu.dot_dimension_numbers<[1], [0], [0], [1], [0, 0, 1, 1], [], []>} : vector<288x3xbf16>, vector<3x16xbf16>, vector<288x16xf32> -> vector<288x16xf32>
    %36 = arith.addf %30, %35 : vector<288x16xf32>
    %c0_33 = arith.constant 0 : index
    %c36 = arith.constant 36 : index
    %c0_34 = arith.constant 0 : index
    %37 = vector.load %arg1[%c0_33, %c36, %c0_34] : memref<1x342x3xbf16, #tpu.memory_space<vmem>>, vector<1x288x3xbf16>
    %38 = vector.shape_cast %37 : vector<1x288x3xbf16> to vector<288x3xbf16>
    %c6 = arith.constant 6 : index
    %c0_35 = arith.constant 0 : index
    %c0_36 = arith.constant 0 : index
    %39 = vector.load %arg2[%c6, %c0_35, %c0_36] : memref<9x3x16xbf16, #tpu.memory_space<vmem>>, vector<1x3x16xbf16>
    %40 = vector.shape_cast %39 : vector<1x3x16xbf16> to vector<3x16xbf16>
    %cst_37 = arith.constant dense<0.000000e+00> : vector<288x16xf32>
    %41 = tpu.matmul %38, %40, %cst_37 {dimension_numbers = #tpu.dot_dimension_numbers<[1], [0], [0], [1], [0, 0, 1, 1], [], []>} : vector<288x3xbf16>, vector<3x16xbf16>, vector<288x16xf32> -> vector<288x16xf32>
    %42 = arith.addf %36, %41 : vector<288x16xf32>
    %c0_38 = arith.constant 0 : index
    %c37 = arith.constant 37 : index
    %c0_39 = arith.constant 0 : index
    %43 = vector.load %arg1[%c0_38, %c37, %c0_39] : memref<1x342x3xbf16, #tpu.memory_space<vmem>>, vector<1x288x3xbf16>
    %44 = vector.shape_cast %43 : vector<1x288x3xbf16> to vector<288x3xbf16>
    %c7 = arith.constant 7 : index
    %c0_40 = arith.constant 0 : index
    %c0_41 = arith.constant 0 : index
    %45 = vector.load %arg2[%c7, %c0_40, %c0_41] : memref<9x3x16xbf16, #tpu.memory_space<vmem>>, vector<1x3x16xbf16>
    %46 = vector.shape_cast %45 : vector<1x3x16xbf16> to vector<3x16xbf16>
    %cst_42 = arith.constant dense<0.000000e+00> : vector<288x16xf32>
    %47 = tpu.matmul %44, %46, %cst_42 {dimension_numbers = #tpu.dot_dimension_numbers<[1], [0], [0], [1], [0, 0, 1, 1], [], []>} : vector<288x3xbf16>, vector<3x16xbf16>, vector<288x16xf32> -> vector<288x16xf32>
    %48 = arith.addf %42, %47 : vector<288x16xf32>
    %c0_43 = arith.constant 0 : index
    %c38 = arith.constant 38 : index
    %c0_44 = arith.constant 0 : index
    %49 = vector.load %arg1[%c0_43, %c38, %c0_44] : memref<1x342x3xbf16, #tpu.memory_space<vmem>>, vector<1x288x3xbf16>
    %50 = vector.shape_cast %49 : vector<1x288x3xbf16> to vector<288x3xbf16>
    %c8 = arith.constant 8 : index
    %c0_45 = arith.constant 0 : index
    %c0_46 = arith.constant 0 : index
    %51 = vector.load %arg2[%c8, %c0_45, %c0_46] : memref<9x3x16xbf16, #tpu.memory_space<vmem>>, vector<1x3x16xbf16>
    %52 = vector.shape_cast %51 : vector<1x3x16xbf16> to vector<3x16xbf16>
    %cst_47 = arith.constant dense<0.000000e+00> : vector<288x16xf32>
    %53 = tpu.matmul %50, %52, %cst_47 {dimension_numbers = #tpu.dot_dimension_numbers<[1], [0], [0], [1], [0, 0, 1, 1], [], []>} : vector<288x3xbf16>, vector<3x16xbf16>, vector<288x16xf32> -> vector<288x16xf32>
    %54 = arith.addf %48, %53 : vector<288x16xf32>
    %c0_48 = arith.constant 0 : index
    %c0_49 = arith.constant 0 : index
    %55 = vector.load %arg3[%c0_48, %c0_49] : memref<1x16xf32, #tpu.memory_space<vmem>>, vector<1x16xf32>
    %56 = vector.broadcast %55 : vector<1x16xf32> to vector<288x16xf32>
    %57 = arith.addf %54, %56 : vector<288x16xf32>
    %cst_50 = arith.constant 0.000000e+00 : f32
    %58 = vector.broadcast %cst_50 : f32 to vector<288x16xf32>
    %59 = arith.maximumf %57, %58 : vector<288x16xf32>
    %c0_51 = arith.constant 0 : index
    %c0_52 = arith.constant 0 : index
    %c0_53 = arith.constant 0 : index
    %60 = vector.load %arg4[%c0_51, %c0_52, %c0_53] : memref<1x288x16xf32, #tpu.memory_space<vmem>>, vector<1x288x16xf32>
    %61 = vector.shape_cast %60 : vector<1x288x16xf32> to vector<288x16xf32>
    %62 = vector.shape_cast %59 : vector<288x16xf32> to vector<1x288x16xf32>
    tpu.vector_store %arg4[%c0_51, %c0_52, %c0_53], %62 {strides = array<i32>} : memref<1x288x16xf32, #tpu.memory_space<vmem>>, vector<1x288x16xf32>,
    return
  }
  func.func @transform_0(%arg0: i32) -> (i32, i32, i32) {
    %c0_i32 = arith.constant 0 : i32
    %c0_i32_0 = arith.constant 0 : i32
    %c0_i32_1 = arith.constant 0 : i32
    return %arg0, %c0_i32, %c0_i32_0 : i32, i32, i32
  }
  func.func @transform_1(%arg0: i32) -> (i32, i32, i32) {
    %c0_i32 = arith.constant 0 : i32
    %c0_i32_0 = arith.constant 0 : i32
    %c0_i32_1 = arith.constant 0 : i32
    %c0_i32_2 = arith.constant 0 : i32
    return %c0_i32, %c0_i32_0, %c0_i32_1 : i32, i32, i32
  }
  func.func @transform_2(%arg0: i32) -> (i32, i32) {
    %c0_i32 = arith.constant 0 : i32
    %c0_i32_0 = arith.constant 0 : i32
    %c0_i32_1 = arith.constant 0 : i32
    return %c0_i32, %c0_i32_0 : i32, i32
  }
  func.func @transform_3(%arg0: i32) -> (i32, i32, i32) {
    %c0_i32 = arith.constant 0 : i32
    %c0_i32_0 = arith.constant 0 : i32
    %c0_i32_1 = arith.constant 0 : i32
    return %arg0, %c0_i32, %c0_i32_0 : i32, i32, i32
  }
}

module attributes {stable_mosaic.version = 11 : i64} {
  func.func @_conv_kernel(%arg0: i32, %arg1: memref<1x342x16xbf16, #tpu.memory_space<vmem>>, %arg2: memref<9x16x16xbf16, #tpu.memory_space<vmem>>, %arg3: memref<1x16xf32, #tpu.memory_space<vmem>>, %arg4: memref<1x288x16xbf16, #tpu.memory_space<vmem>>) attributes {dimension_semantics = [#tpu.dimension_semantics<parallel>], iteration_bounds = array<i64: 2>, scalar_prefetch = 0 : i64, scratch_operands = 0 : i64, tpu.core_type = #tpu.core_type<tc>, window_params = [{transform_indices = @transform_0, window_bounds = array<i64: 1, 342, 16>}, {pipeline_mode = #tpu.pipeline_mode<synchronous>, transform_indices = @transform_1, window_bounds = array<i64: 9, 16, 16>}, {pipeline_mode = #tpu.pipeline_mode<synchronous>, transform_indices = @transform_2, window_bounds = array<i64: 1, 16>}, {transform_indices = @transform_3, window_bounds = array<i64: 1, 288, 16>}]} {
    %cst = arith.constant 0.000000e+00 : f32
    %0 = vector.broadcast %cst : f32 to vector<288x16xf32>
    %c0 = arith.constant 0 : index
    %c0_0 = arith.constant 0 : index
    %c0_1 = arith.constant 0 : index
    %1 = vector.load %arg1[%c0, %c0_0, %c0_1] : memref<1x342x16xbf16, #tpu.memory_space<vmem>>, vector<1x288x16xbf16>
    %2 = vector.shape_cast %1 : vector<1x288x16xbf16> to vector<288x16xbf16>
    %c0_2 = arith.constant 0 : index
    %c0_3 = arith.constant 0 : index
    %c0_4 = arith.constant 0 : index
    %3 = vector.load %arg2[%c0_2, %c0_3, %c0_4] : memref<9x16x16xbf16, #tpu.memory_space<vmem>>, vector<1x16x16xbf16>
    %4 = vector.shape_cast %3 : vector<1x16x16xbf16> to vector<16x16xbf16>
    %cst_5 = arith.constant dense<0.000000e+00> : vector<288x16xf32>
    %5 = tpu.matmul %2, %4, %cst_5 {dimension_numbers = #tpu.dot_dimension_numbers<[1], [0], [0], [1], [0, 0, 1, 1], [], []>} : vector<288x16xbf16>, vector<16x16xbf16>, vector<288x16xf32> -> vector<288x16xf32>
    %6 = arith.addf %0, %5 : vector<288x16xf32>
    %c0_6 = arith.constant 0 : index
    %c1 = arith.constant 1 : index
    %c0_7 = arith.constant 0 : index
    %7 = vector.load %arg1[%c0_6, %c1, %c0_7] : memref<1x342x16xbf16, #tpu.memory_space<vmem>>, vector<1x288x16xbf16>
    %8 = vector.shape_cast %7 : vector<1x288x16xbf16> to vector<288x16xbf16>
    %c1_8 = arith.constant 1 : index
    %c0_9 = arith.constant 0 : index
    %c0_10 = arith.constant 0 : index
    %9 = vector.load %arg2[%c1_8, %c0_9, %c0_10] : memref<9x16x16xbf16, #tpu.memory_space<vmem>>, vector<1x16x16xbf16>
    %10 = vector.shape_cast %9 : vector<1x16x16xbf16> to vector<16x16xbf16>
    %cst_11 = arith.constant dense<0.000000e+00> : vector<288x16xf32>
    %11 = tpu.matmul %8, %10, %cst_11 {dimension_numbers = #tpu.dot_dimension_numbers<[1], [0], [0], [1], [0, 0, 1, 1], [], []>} : vector<288x16xbf16>, vector<16x16xbf16>, vector<288x16xf32> -> vector<288x16xf32>
    %12 = arith.addf %6, %11 : vector<288x16xf32>
    %c0_12 = arith.constant 0 : index
    %c2 = arith.constant 2 : index
    %c0_13 = arith.constant 0 : index
    %13 = vector.load %arg1[%c0_12, %c2, %c0_13] : memref<1x342x16xbf16, #tpu.memory_space<vmem>>, vector<1x288x16xbf16>
    %14 = vector.shape_cast %13 : vector<1x288x16xbf16> to vector<288x16xbf16>
    %c2_14 = arith.constant 2 : index
    %c0_15 = arith.constant 0 : index
    %c0_16 = arith.constant 0 : index
    %15 = vector.load %arg2[%c2_14, %c0_15, %c0_16] : memref<9x16x16xbf16, #tpu.memory_space<vmem>>, vector<1x16x16xbf16>
    %16 = vector.shape_cast %15 : vector<1x16x16xbf16> to vector<16x16xbf16>
    %cst_17 = arith.constant dense<0.000000e+00> : vector<288x16xf32>
    %17 = tpu.matmul %14, %16, %cst_17 {dimension_numbers = #tpu.dot_dimension_numbers<[1], [0], [0], [1], [0, 0, 1, 1], [], []>} : vector<288x16xbf16>, vector<16x16xbf16>, vector<288x16xf32> -> vector<288x16xf32>
    %18 = arith.addf %12, %17 : vector<288x16xf32>
    %c0_18 = arith.constant 0 : index
    %c18 = arith.constant 18 : index
    %c0_19 = arith.constant 0 : index
    %19 = vector.load %arg1[%c0_18, %c18, %c0_19] : memref<1x342x16xbf16, #tpu.memory_space<vmem>>, vector<1x288x16xbf16>
    %20 = vector.shape_cast %19 : vector<1x288x16xbf16> to vector<288x16xbf16>
    %c3 = arith.constant 3 : index
    %c0_20 = arith.constant 0 : index
    %c0_21 = arith.constant 0 : index
    %21 = vector.load %arg2[%c3, %c0_20, %c0_21] : memref<9x16x16xbf16, #tpu.memory_space<vmem>>, vector<1x16x16xbf16>
    %22 = vector.shape_cast %21 : vector<1x16x16xbf16> to vector<16x16xbf16>
    %cst_22 = arith.constant dense<0.000000e+00> : vector<288x16xf32>
    %23 = tpu.matmul %20, %22, %cst_22 {dimension_numbers = #tpu.dot_dimension_numbers<[1], [0], [0], [1], [0, 0, 1, 1], [], []>} : vector<288x16xbf16>, vector<16x16xbf16>, vector<288x16xf32> -> vector<288x16xf32>
    %24 = arith.addf %18, %23 : vector<288x16xf32>
    %c0_23 = arith.constant 0 : index
    %c19 = arith.constant 19 : index
    %c0_24 = arith.constant 0 : index
    %25 = vector.load %arg1[%c0_23, %c19, %c0_24] : memref<1x342x16xbf16, #tpu.memory_space<vmem>>, vector<1x288x16xbf16>
    %26 = vector.shape_cast %25 : vector<1x288x16xbf16> to vector<288x16xbf16>
    %c4 = arith.constant 4 : index
    %c0_25 = arith.constant 0 : index
    %c0_26 = arith.constant 0 : index
    %27 = vector.load %arg2[%c4, %c0_25, %c0_26] : memref<9x16x16xbf16, #tpu.memory_space<vmem>>, vector<1x16x16xbf16>
    %28 = vector.shape_cast %27 : vector<1x16x16xbf16> to vector<16x16xbf16>
    %cst_27 = arith.constant dense<0.000000e+00> : vector<288x16xf32>
    %29 = tpu.matmul %26, %28, %cst_27 {dimension_numbers = #tpu.dot_dimension_numbers<[1], [0], [0], [1], [0, 0, 1, 1], [], []>} : vector<288x16xbf16>, vector<16x16xbf16>, vector<288x16xf32> -> vector<288x16xf32>
    %30 = arith.addf %24, %29 : vector<288x16xf32>
    %c0_28 = arith.constant 0 : index
    %c20 = arith.constant 20 : index
    %c0_29 = arith.constant 0 : index
    %31 = vector.load %arg1[%c0_28, %c20, %c0_29] : memref<1x342x16xbf16, #tpu.memory_space<vmem>>, vector<1x288x16xbf16>
    %32 = vector.shape_cast %31 : vector<1x288x16xbf16> to vector<288x16xbf16>
    %c5 = arith.constant 5 : index
    %c0_30 = arith.constant 0 : index
    %c0_31 = arith.constant 0 : index
    %33 = vector.load %arg2[%c5, %c0_30, %c0_31] : memref<9x16x16xbf16, #tpu.memory_space<vmem>>, vector<1x16x16xbf16>
    %34 = vector.shape_cast %33 : vector<1x16x16xbf16> to vector<16x16xbf16>
    %cst_32 = arith.constant dense<0.000000e+00> : vector<288x16xf32>
    %35 = tpu.matmul %32, %34, %cst_32 {dimension_numbers = #tpu.dot_dimension_numbers<[1], [0], [0], [1], [0, 0, 1, 1], [], []>} : vector<288x16xbf16>, vector<16x16xbf16>, vector<288x16xf32> -> vector<288x16xf32>
    %36 = arith.addf %30, %35 : vector<288x16xf32>
    %c0_33 = arith.constant 0 : index
    %c36 = arith.constant 36 : index
    %c0_34 = arith.constant 0 : index
    %37 = vector.load %arg1[%c0_33, %c36, %c0_34] : memref<1x342x16xbf16, #tpu.memory_space<vmem>>, vector<1x288x16xbf16>
    %38 = vector.shape_cast %37 : vector<1x288x16xbf16> to vector<288x16xbf16>
    %c6 = arith.constant 6 : index
    %c0_35 = arith.constant 0 : index
    %c0_36 = arith.constant 0 : index
    %39 = vector.load %arg2[%c6, %c0_35, %c0_36] : memref<9x16x16xbf16, #tpu.memory_space<vmem>>, vector<1x16x16xbf16>
    %40 = vector.shape_cast %39 : vector<1x16x16xbf16> to vector<16x16xbf16>
    %cst_37 = arith.constant dense<0.000000e+00> : vector<288x16xf32>
    %41 = tpu.matmul %38, %40, %cst_37 {dimension_numbers = #tpu.dot_dimension_numbers<[1], [0], [0], [1], [0, 0, 1, 1], [], []>} : vector<288x16xbf16>, vector<16x16xbf16>, vector<288x16xf32> -> vector<288x16xf32>
    %42 = arith.addf %36, %41 : vector<288x16xf32>
    %c0_38 = arith.constant 0 : index
    %c37 = arith.constant 37 : index
    %c0_39 = arith.constant 0 : index
    %43 = vector.load %arg1[%c0_38, %c37, %c0_39] : memref<1x342x16xbf16, #tpu.memory_space<vmem>>, vector<1x288x16xbf16>
    %44 = vector.shape_cast %43 : vector<1x288x16xbf16> to vector<288x16xbf16>
    %c7 = arith.constant 7 : index
    %c0_40 = arith.constant 0 : index
    %c0_41 = arith.constant 0 : index
    %45 = vector.load %arg2[%c7, %c0_40, %c0_41] : memref<9x16x16xbf16, #tpu.memory_space<vmem>>, vector<1x16x16xbf16>
    %46 = vector.shape_cast %45 : vector<1x16x16xbf16> to vector<16x16xbf16>
    %cst_42 = arith.constant dense<0.000000e+00> : vector<288x16xf32>
    %47 = tpu.matmul %44, %46, %cst_42 {dimension_numbers = #tpu.dot_dimension_numbers<[1], [0], [0], [1], [0, 0, 1, 1], [], []>} : vector<288x16xbf16>, vector<16x16xbf16>, vector<288x16xf32> -> vector<288x16xf32>
    %48 = arith.addf %42, %47 : vector<288x16xf32>
    %c0_43 = arith.constant 0 : index
    %c38 = arith.constant 38 : index
    %c0_44 = arith.constant 0 : index
    %49 = vector.load %arg1[%c0_43, %c38, %c0_44] : memref<1x342x16xbf16, #tpu.memory_space<vmem>>, vector<1x288x16xbf16>
    %50 = vector.shape_cast %49 : vector<1x288x16xbf16> to vector<288x16xbf16>
    %c8 = arith.constant 8 : index
    %c0_45 = arith.constant 0 : index
    %c0_46 = arith.constant 0 : index
    %51 = vector.load %arg2[%c8, %c0_45, %c0_46] : memref<9x16x16xbf16, #tpu.memory_space<vmem>>, vector<1x16x16xbf16>
    %52 = vector.shape_cast %51 : vector<1x16x16xbf16> to vector<16x16xbf16>
    %cst_47 = arith.constant dense<0.000000e+00> : vector<288x16xf32>
    %53 = tpu.matmul %50, %52, %cst_47 {dimension_numbers = #tpu.dot_dimension_numbers<[1], [0], [0], [1], [0, 0, 1, 1], [], []>} : vector<288x16xbf16>, vector<16x16xbf16>, vector<288x16xf32> -> vector<288x16xf32>
    %54 = arith.addf %48, %53 : vector<288x16xf32>
    %c0_48 = arith.constant 0 : index
    %c0_49 = arith.constant 0 : index
    %55 = vector.load %arg3[%c0_48, %c0_49] : memref<1x16xf32, #tpu.memory_space<vmem>>, vector<1x16xf32>
    %56 = vector.broadcast %55 : vector<1x16xf32> to vector<288x16xf32>
    %57 = arith.addf %54, %56 : vector<288x16xf32>
    %cst_50 = arith.constant 0.000000e+00 : f32
    %58 = vector.broadcast %cst_50 : f32 to vector<288x16xf32>
    %59 = arith.maximumf %57, %58 : vector<288x16xf32>
    %60 = arith.truncf %59 : vector<288x16xf32> to vector<288x16xbf16>
    %c0_51 = arith.constant 0 : index
    %c0_52 = arith.constant 0 : index
    %c0_53 = arith.constant 0 : index
    %61 = vector.load %arg4[%c0_51, %c0_52, %c0_53] : memref<1x288x16xbf16, #tpu.memory_space<vmem>>, vector<1x288x16xbf16>
    %62 = vector.shape_cast %61 : vector<1x288x16xbf16> to vector<288x16xbf16>
    %63 = vector.shape_cast %60 : vector<288x16xbf16> to vector<1x288x16xbf16>
    tpu.vector_store %arg4[%c0_51, %c0_52, %c0_53], %63 {strides = array<i32>} : memref<1x288x16xbf16, #tpu.memory_space<vmem>>, vector<1x288x16xbf16>,
    return
  }
  func.func @transform_0(%arg0: i32) -> (i32, i32, i32) {
    %c0_i32 = arith.constant 0 : i32
    %c0_i32_0 = arith.constant 0 : i32
    %c0_i32_1 = arith.constant 0 : i32
    return %arg0, %c0_i32, %c0_i32_0 : i32, i32, i32
  }
  func.func @transform_1(%arg0: i32) -> (i32, i32, i32) {
    %c0_i32 = arith.constant 0 : i32
    %c0_i32_0 = arith.constant 0 : i32
    %c0_i32_1 = arith.constant 0 : i32
    %c0_i32_2 = arith.constant 0 : i32
    return %c0_i32, %c0_i32_0, %c0_i32_1 : i32, i32, i32
  }
  func.func @transform_2(%arg0: i32) -> (i32, i32) {
    %c0_i32 = arith.constant 0 : i32
    %c0_i32_0 = arith.constant 0 : i32
    %c0_i32_1 = arith.constant 0 : i32
    return %c0_i32, %c0_i32_0 : i32, i32
  }
  func.func @transform_3(%arg0: i32) -> (i32, i32, i32) {
    %c0_i32 = arith.constant 0 : i32
    %c0_i32_0 = arith.constant 0 : i32
    %c0_i32_1 = arith.constant 0 : i32
    return %arg0, %c0_i32, %c0_i32_0 : i32, i32, i32
  }
}

module attributes {stable_mosaic.version = 11 : i64} {
  func.func @_maxpool_kernel(%arg0: i32, %arg1: i32, %arg2: memref<1x8x2x8x32xbf16, #tpu.memory_space<vmem>>, %arg3: memref<1x8x8x16xbf16, #tpu.memory_space<vmem>>) attributes {dimension_semantics = [#tpu.dimension_semantics<parallel>, #tpu.dimension_semantics<parallel>], iteration_bounds = array<i64: 2, 1>, scalar_prefetch = 0 : i64, scratch_operands = 0 : i64, tpu.core_type = #tpu.core_type<tc>, window_params = [{transform_indices = @transform_0, window_bounds = array<i64: 1, 8, 2, 8, 32>}, {transform_indices = @transform_1, window_bounds = array<i64: 1, 8, 8, 16>}]} {
    %c0 = arith.constant 0 : index
    %c0_0 = arith.constant 0 : index
    %c0_1 = arith.constant 0 : index
    %c0_2 = arith.constant 0 : index
    %c0_3 = arith.constant 0 : index
    %0 = vector.load %arg2[%c0, %c0_0, %c0_1, %c0_2, %c0_3] : memref<1x8x2x8x32xbf16, #tpu.memory_space<vmem>>, vector<1x8x2x8x32xbf16>
    %1 = vector.shape_cast %0 : vector<1x8x2x8x32xbf16> to vector<8x2x8x32xbf16>
    %2 = vector.extract_strided_slice %1 {offsets = [0, 0, 0, 0], sizes = [8, 1, 8, 32], strides = [1, 1, 1, 1]} : vector<8x2x8x32xbf16> to vector<8x1x8x32xbf16>
    %3 = vector.shape_cast %2 : vector<8x1x8x32xbf16> to vector<8x8x32xbf16>
    %4 = vector.extract_strided_slice %1 {offsets = [0, 1, 0, 0], sizes = [8, 1, 8, 32], strides = [1, 1, 1, 1]} : vector<8x2x8x32xbf16> to vector<8x1x8x32xbf16>
    %5 = vector.shape_cast %4 : vector<8x1x8x32xbf16> to vector<8x8x32xbf16>
    %6 = arith.maximumf %3, %5 : vector<8x8x32xbf16>
    %7 = vector.extract_strided_slice %6 {offsets = [0, 0, 0], sizes = [8, 8, 16], strides = [1, 1, 1]} : vector<8x8x32xbf16> to vector<8x8x16xbf16>
    %8 = vector.extract_strided_slice %6 {offsets = [0, 0, 16], sizes = [8, 8, 16], strides = [1, 1, 1]} : vector<8x8x32xbf16> to vector<8x8x16xbf16>
    %9 = arith.maximumf %7, %8 : vector<8x8x16xbf16>
    %c0_4 = arith.constant 0 : index
    %c0_5 = arith.constant 0 : index
    %c0_6 = arith.constant 0 : index
    %c0_7 = arith.constant 0 : index
    %10 = vector.load %arg3[%c0_4, %c0_5, %c0_6, %c0_7] : memref<1x8x8x16xbf16, #tpu.memory_space<vmem>>, vector<1x8x8x16xbf16>
    %11 = vector.shape_cast %10 : vector<1x8x8x16xbf16> to vector<8x8x16xbf16>
    %12 = vector.shape_cast %9 : vector<8x8x16xbf16> to vector<1x8x8x16xbf16>
    tpu.vector_store %arg3[%c0_4, %c0_5, %c0_6, %c0_7], %12 {strides = array<i32>} : memref<1x8x8x16xbf16, #tpu.memory_space<vmem>>, vector<1x8x8x16xbf16>,
    return
  }
  func.func @transform_0(%arg0: i32, %arg1: i32) -> (i32, i32, i32, i32, i32) {
    %c0_i32 = arith.constant 0 : i32
    %c0_i32_0 = arith.constant 0 : i32
    %c0_i32_1 = arith.constant 0 : i32
    %c0_i32_2 = arith.constant 0 : i32
    return %arg0, %arg1, %c0_i32, %c0_i32_0, %c0_i32_1 : i32, i32, i32, i32, i32
  }
  func.func @transform_1(%arg0: i32, %arg1: i32) -> (i32, i32, i32, i32) {
    %c0_i32 = arith.constant 0 : i32
    %c0_i32_0 = arith.constant 0 : i32
    %c0_i32_1 = arith.constant 0 : i32
    return %arg0, %arg1, %c0_i32, %c0_i32_0 : i32, i32, i32, i32
  }
}

module attributes {stable_mosaic.version = 11 : i64} {
  func.func @_conv_kernel(%arg0: i32, %arg1: memref<1x110x16xbf16, #tpu.memory_space<vmem>>, %arg2: memref<9x16x32xbf16, #tpu.memory_space<vmem>>, %arg3: memref<1x32xf32, #tpu.memory_space<vmem>>, %arg4: memref<1x80x32xf32, #tpu.memory_space<vmem>>) attributes {dimension_semantics = [#tpu.dimension_semantics<parallel>], iteration_bounds = array<i64: 2>, scalar_prefetch = 0 : i64, scratch_operands = 0 : i64, tpu.core_type = #tpu.core_type<tc>, window_params = [{transform_indices = @transform_0, window_bounds = array<i64: 1, 110, 16>}, {pipeline_mode = #tpu.pipeline_mode<synchronous>, transform_indices = @transform_1, window_bounds = array<i64: 9, 16, 32>}, {pipeline_mode = #tpu.pipeline_mode<synchronous>, transform_indices = @transform_2, window_bounds = array<i64: 1, 32>}, {transform_indices = @transform_3, window_bounds = array<i64: 1, 80, 32>}]} {
    %cst = arith.constant 0.000000e+00 : f32
    %0 = vector.broadcast %cst : f32 to vector<80x32xf32>
    %c0 = arith.constant 0 : index
    %c0_0 = arith.constant 0 : index
    %c0_1 = arith.constant 0 : index
    %1 = vector.load %arg1[%c0, %c0_0, %c0_1] : memref<1x110x16xbf16, #tpu.memory_space<vmem>>, vector<1x80x16xbf16>
    %2 = vector.shape_cast %1 : vector<1x80x16xbf16> to vector<80x16xbf16>
    %c0_2 = arith.constant 0 : index
    %c0_3 = arith.constant 0 : index
    %c0_4 = arith.constant 0 : index
    %3 = vector.load %arg2[%c0_2, %c0_3, %c0_4] : memref<9x16x32xbf16, #tpu.memory_space<vmem>>, vector<1x16x32xbf16>
    %4 = vector.shape_cast %3 : vector<1x16x32xbf16> to vector<16x32xbf16>
    %cst_5 = arith.constant dense<0.000000e+00> : vector<80x32xf32>
    %5 = tpu.matmul %2, %4, %cst_5 {dimension_numbers = #tpu.dot_dimension_numbers<[1], [0], [0], [1], [0, 0, 1, 1], [], []>} : vector<80x16xbf16>, vector<16x32xbf16>, vector<80x32xf32> -> vector<80x32xf32>
    %6 = arith.addf %0, %5 : vector<80x32xf32>
    %c0_6 = arith.constant 0 : index
    %c1 = arith.constant 1 : index
    %c0_7 = arith.constant 0 : index
    %7 = vector.load %arg1[%c0_6, %c1, %c0_7] : memref<1x110x16xbf16, #tpu.memory_space<vmem>>, vector<1x80x16xbf16>
    %8 = vector.shape_cast %7 : vector<1x80x16xbf16> to vector<80x16xbf16>
    %c1_8 = arith.constant 1 : index
    %c0_9 = arith.constant 0 : index
    %c0_10 = arith.constant 0 : index
    %9 = vector.load %arg2[%c1_8, %c0_9, %c0_10] : memref<9x16x32xbf16, #tpu.memory_space<vmem>>, vector<1x16x32xbf16>
    %10 = vector.shape_cast %9 : vector<1x16x32xbf16> to vector<16x32xbf16>
    %cst_11 = arith.constant dense<0.000000e+00> : vector<80x32xf32>
    %11 = tpu.matmul %8, %10, %cst_11 {dimension_numbers = #tpu.dot_dimension_numbers<[1], [0], [0], [1], [0, 0, 1, 1], [], []>} : vector<80x16xbf16>, vector<16x32xbf16>, vector<80x32xf32> -> vector<80x32xf32>
    %12 = arith.addf %6, %11 : vector<80x32xf32>
    %c0_12 = arith.constant 0 : index
    %c2 = arith.constant 2 : index
    %c0_13 = arith.constant 0 : index
    %13 = vector.load %arg1[%c0_12, %c2, %c0_13] : memref<1x110x16xbf16, #tpu.memory_space<vmem>>, vector<1x80x16xbf16>
    %14 = vector.shape_cast %13 : vector<1x80x16xbf16> to vector<80x16xbf16>
    %c2_14 = arith.constant 2 : index
    %c0_15 = arith.constant 0 : index
    %c0_16 = arith.constant 0 : index
    %15 = vector.load %arg2[%c2_14, %c0_15, %c0_16] : memref<9x16x32xbf16, #tpu.memory_space<vmem>>, vector<1x16x32xbf16>
    %16 = vector.shape_cast %15 : vector<1x16x32xbf16> to vector<16x32xbf16>
    %cst_17 = arith.constant dense<0.000000e+00> : vector<80x32xf32>
    %17 = tpu.matmul %14, %16, %cst_17 {dimension_numbers = #tpu.dot_dimension_numbers<[1], [0], [0], [1], [0, 0, 1, 1], [], []>} : vector<80x16xbf16>, vector<16x32xbf16>, vector<80x32xf32> -> vector<80x32xf32>
    %18 = arith.addf %12, %17 : vector<80x32xf32>
    %c0_18 = arith.constant 0 : index
    %c10 = arith.constant 10 : index
    %c0_19 = arith.constant 0 : index
    %19 = vector.load %arg1[%c0_18, %c10, %c0_19] : memref<1x110x16xbf16, #tpu.memory_space<vmem>>, vector<1x80x16xbf16>
    %20 = vector.shape_cast %19 : vector<1x80x16xbf16> to vector<80x16xbf16>
    %c3 = arith.constant 3 : index
    %c0_20 = arith.constant 0 : index
    %c0_21 = arith.constant 0 : index
    %21 = vector.load %arg2[%c3, %c0_20, %c0_21] : memref<9x16x32xbf16, #tpu.memory_space<vmem>>, vector<1x16x32xbf16>
    %22 = vector.shape_cast %21 : vector<1x16x32xbf16> to vector<16x32xbf16>
    %cst_22 = arith.constant dense<0.000000e+00> : vector<80x32xf32>
    %23 = tpu.matmul %20, %22, %cst_22 {dimension_numbers = #tpu.dot_dimension_numbers<[1], [0], [0], [1], [0, 0, 1, 1], [], []>} : vector<80x16xbf16>, vector<16x32xbf16>, vector<80x32xf32> -> vector<80x32xf32>
    %24 = arith.addf %18, %23 : vector<80x32xf32>
    %c0_23 = arith.constant 0 : index
    %c11 = arith.constant 11 : index
    %c0_24 = arith.constant 0 : index
    %25 = vector.load %arg1[%c0_23, %c11, %c0_24] : memref<1x110x16xbf16, #tpu.memory_space<vmem>>, vector<1x80x16xbf16>
    %26 = vector.shape_cast %25 : vector<1x80x16xbf16> to vector<80x16xbf16>
    %c4 = arith.constant 4 : index
    %c0_25 = arith.constant 0 : index
    %c0_26 = arith.constant 0 : index
    %27 = vector.load %arg2[%c4, %c0_25, %c0_26] : memref<9x16x32xbf16, #tpu.memory_space<vmem>>, vector<1x16x32xbf16>
    %28 = vector.shape_cast %27 : vector<1x16x32xbf16> to vector<16x32xbf16>
    %cst_27 = arith.constant dense<0.000000e+00> : vector<80x32xf32>
    %29 = tpu.matmul %26, %28, %cst_27 {dimension_numbers = #tpu.dot_dimension_numbers<[1], [0], [0], [1], [0, 0, 1, 1], [], []>} : vector<80x16xbf16>, vector<16x32xbf16>, vector<80x32xf32> -> vector<80x32xf32>
    %30 = arith.addf %24, %29 : vector<80x32xf32>
    %c0_28 = arith.constant 0 : index
    %c12 = arith.constant 12 : index
    %c0_29 = arith.constant 0 : index
    %31 = vector.load %arg1[%c0_28, %c12, %c0_29] : memref<1x110x16xbf16, #tpu.memory_space<vmem>>, vector<1x80x16xbf16>
    %32 = vector.shape_cast %31 : vector<1x80x16xbf16> to vector<80x16xbf16>
    %c5 = arith.constant 5 : index
    %c0_30 = arith.constant 0 : index
    %c0_31 = arith.constant 0 : index
    %33 = vector.load %arg2[%c5, %c0_30, %c0_31] : memref<9x16x32xbf16, #tpu.memory_space<vmem>>, vector<1x16x32xbf16>
    %34 = vector.shape_cast %33 : vector<1x16x32xbf16> to vector<16x32xbf16>
    %cst_32 = arith.constant dense<0.000000e+00> : vector<80x32xf32>
    %35 = tpu.matmul %32, %34, %cst_32 {dimension_numbers = #tpu.dot_dimension_numbers<[1], [0], [0], [1], [0, 0, 1, 1], [], []>} : vector<80x16xbf16>, vector<16x32xbf16>, vector<80x32xf32> -> vector<80x32xf32>
    %36 = arith.addf %30, %35 : vector<80x32xf32>
    %c0_33 = arith.constant 0 : index
    %c20 = arith.constant 20 : index
    %c0_34 = arith.constant 0 : index
    %37 = vector.load %arg1[%c0_33, %c20, %c0_34] : memref<1x110x16xbf16, #tpu.memory_space<vmem>>, vector<1x80x16xbf16>
    %38 = vector.shape_cast %37 : vector<1x80x16xbf16> to vector<80x16xbf16>
    %c6 = arith.constant 6 : index
    %c0_35 = arith.constant 0 : index
    %c0_36 = arith.constant 0 : index
    %39 = vector.load %arg2[%c6, %c0_35, %c0_36] : memref<9x16x32xbf16, #tpu.memory_space<vmem>>, vector<1x16x32xbf16>
    %40 = vector.shape_cast %39 : vector<1x16x32xbf16> to vector<16x32xbf16>
    %cst_37 = arith.constant dense<0.000000e+00> : vector<80x32xf32>
    %41 = tpu.matmul %38, %40, %cst_37 {dimension_numbers = #tpu.dot_dimension_numbers<[1], [0], [0], [1], [0, 0, 1, 1], [], []>} : vector<80x16xbf16>, vector<16x32xbf16>, vector<80x32xf32> -> vector<80x32xf32>
    %42 = arith.addf %36, %41 : vector<80x32xf32>
    %c0_38 = arith.constant 0 : index
    %c21 = arith.constant 21 : index
    %c0_39 = arith.constant 0 : index
    %43 = vector.load %arg1[%c0_38, %c21, %c0_39] : memref<1x110x16xbf16, #tpu.memory_space<vmem>>, vector<1x80x16xbf16>
    %44 = vector.shape_cast %43 : vector<1x80x16xbf16> to vector<80x16xbf16>
    %c7 = arith.constant 7 : index
    %c0_40 = arith.constant 0 : index
    %c0_41 = arith.constant 0 : index
    %45 = vector.load %arg2[%c7, %c0_40, %c0_41] : memref<9x16x32xbf16, #tpu.memory_space<vmem>>, vector<1x16x32xbf16>
    %46 = vector.shape_cast %45 : vector<1x16x32xbf16> to vector<16x32xbf16>
    %cst_42 = arith.constant dense<0.000000e+00> : vector<80x32xf32>
    %47 = tpu.matmul %44, %46, %cst_42 {dimension_numbers = #tpu.dot_dimension_numbers<[1], [0], [0], [1], [0, 0, 1, 1], [], []>} : vector<80x16xbf16>, vector<16x32xbf16>, vector<80x32xf32> -> vector<80x32xf32>
    %48 = arith.addf %42, %47 : vector<80x32xf32>
    %c0_43 = arith.constant 0 : index
    %c22 = arith.constant 22 : index
    %c0_44 = arith.constant 0 : index
    %49 = vector.load %arg1[%c0_43, %c22, %c0_44] : memref<1x110x16xbf16, #tpu.memory_space<vmem>>, vector<1x80x16xbf16>
    %50 = vector.shape_cast %49 : vector<1x80x16xbf16> to vector<80x16xbf16>
    %c8 = arith.constant 8 : index
    %c0_45 = arith.constant 0 : index
    %c0_46 = arith.constant 0 : index
    %51 = vector.load %arg2[%c8, %c0_45, %c0_46] : memref<9x16x32xbf16, #tpu.memory_space<vmem>>, vector<1x16x32xbf16>
    %52 = vector.shape_cast %51 : vector<1x16x32xbf16> to vector<16x32xbf16>
    %cst_47 = arith.constant dense<0.000000e+00> : vector<80x32xf32>
    %53 = tpu.matmul %50, %52, %cst_47 {dimension_numbers = #tpu.dot_dimension_numbers<[1], [0], [0], [1], [0, 0, 1, 1], [], []>} : vector<80x16xbf16>, vector<16x32xbf16>, vector<80x32xf32> -> vector<80x32xf32>
    %54 = arith.addf %48, %53 : vector<80x32xf32>
    %c0_48 = arith.constant 0 : index
    %c0_49 = arith.constant 0 : index
    %55 = vector.load %arg3[%c0_48, %c0_49] : memref<1x32xf32, #tpu.memory_space<vmem>>, vector<1x32xf32>
    %56 = vector.broadcast %55 : vector<1x32xf32> to vector<80x32xf32>
    %57 = arith.addf %54, %56 : vector<80x32xf32>
    %cst_50 = arith.constant 0.000000e+00 : f32
    %58 = vector.broadcast %cst_50 : f32 to vector<80x32xf32>
    %59 = arith.maximumf %57, %58 : vector<80x32xf32>
    %c0_51 = arith.constant 0 : index
    %c0_52 = arith.constant 0 : index
    %c0_53 = arith.constant 0 : index
    %60 = vector.load %arg4[%c0_51, %c0_52, %c0_53] : memref<1x80x32xf32, #tpu.memory_space<vmem>>, vector<1x80x32xf32>
    %61 = vector.shape_cast %60 : vector<1x80x32xf32> to vector<80x32xf32>
    %62 = vector.shape_cast %59 : vector<80x32xf32> to vector<1x80x32xf32>
    tpu.vector_store %arg4[%c0_51, %c0_52, %c0_53], %62 {strides = array<i32>} : memref<1x80x32xf32, #tpu.memory_space<vmem>>, vector<1x80x32xf32>,
    return
  }
  func.func @transform_0(%arg0: i32) -> (i32, i32, i32) {
    %c0_i32 = arith.constant 0 : i32
    %c0_i32_0 = arith.constant 0 : i32
    %c0_i32_1 = arith.constant 0 : i32
    return %arg0, %c0_i32, %c0_i32_0 : i32, i32, i32
  }
  func.func @transform_1(%arg0: i32) -> (i32, i32, i32) {
    %c0_i32 = arith.constant 0 : i32
    %c0_i32_0 = arith.constant 0 : i32
    %c0_i32_1 = arith.constant 0 : i32
    %c0_i32_2 = arith.constant 0 : i32
    return %c0_i32, %c0_i32_0, %c0_i32_1 : i32, i32, i32
  }
  func.func @transform_2(%arg0: i32) -> (i32, i32) {
    %c0_i32 = arith.constant 0 : i32
    %c0_i32_0 = arith.constant 0 : i32
    %c0_i32_1 = arith.constant 0 : i32
    return %c0_i32, %c0_i32_0 : i32, i32
  }
  func.func @transform_3(%arg0: i32) -> (i32, i32, i32) {
    %c0_i32 = arith.constant 0 : i32
    %c0_i32_0 = arith.constant 0 : i32
    %c0_i32_1 = arith.constant 0 : i32
    return %arg0, %c0_i32, %c0_i32_0 : i32, i32, i32
  }
}

module attributes {stable_mosaic.version = 11 : i64} {
  func.func @_conv_kernel(%arg0: i32, %arg1: memref<1x110x32xbf16, #tpu.memory_space<vmem>>, %arg2: memref<9x32x32xbf16, #tpu.memory_space<vmem>>, %arg3: memref<1x32xf32, #tpu.memory_space<vmem>>, %arg4: memref<1x80x32xbf16, #tpu.memory_space<vmem>>) attributes {dimension_semantics = [#tpu.dimension_semantics<parallel>], iteration_bounds = array<i64: 2>, scalar_prefetch = 0 : i64, scratch_operands = 0 : i64, tpu.core_type = #tpu.core_type<tc>, window_params = [{transform_indices = @transform_0, window_bounds = array<i64: 1, 110, 32>}, {pipeline_mode = #tpu.pipeline_mode<synchronous>, transform_indices = @transform_1, window_bounds = array<i64: 9, 32, 32>}, {pipeline_mode = #tpu.pipeline_mode<synchronous>, transform_indices = @transform_2, window_bounds = array<i64: 1, 32>}, {transform_indices = @transform_3, window_bounds = array<i64: 1, 80, 32>}]} {
    %cst = arith.constant 0.000000e+00 : f32
    %0 = vector.broadcast %cst : f32 to vector<80x32xf32>
    %c0 = arith.constant 0 : index
    %c0_0 = arith.constant 0 : index
    %c0_1 = arith.constant 0 : index
    %1 = vector.load %arg1[%c0, %c0_0, %c0_1] : memref<1x110x32xbf16, #tpu.memory_space<vmem>>, vector<1x80x32xbf16>
    %2 = vector.shape_cast %1 : vector<1x80x32xbf16> to vector<80x32xbf16>
    %c0_2 = arith.constant 0 : index
    %c0_3 = arith.constant 0 : index
    %c0_4 = arith.constant 0 : index
    %3 = vector.load %arg2[%c0_2, %c0_3, %c0_4] : memref<9x32x32xbf16, #tpu.memory_space<vmem>>, vector<1x32x32xbf16>
    %4 = vector.shape_cast %3 : vector<1x32x32xbf16> to vector<32x32xbf16>
    %cst_5 = arith.constant dense<0.000000e+00> : vector<80x32xf32>
    %5 = tpu.matmul %2, %4, %cst_5 {dimension_numbers = #tpu.dot_dimension_numbers<[1], [0], [0], [1], [0, 0, 1, 1], [], []>} : vector<80x32xbf16>, vector<32x32xbf16>, vector<80x32xf32> -> vector<80x32xf32>
    %6 = arith.addf %0, %5 : vector<80x32xf32>
    %c0_6 = arith.constant 0 : index
    %c1 = arith.constant 1 : index
    %c0_7 = arith.constant 0 : index
    %7 = vector.load %arg1[%c0_6, %c1, %c0_7] : memref<1x110x32xbf16, #tpu.memory_space<vmem>>, vector<1x80x32xbf16>
    %8 = vector.shape_cast %7 : vector<1x80x32xbf16> to vector<80x32xbf16>
    %c1_8 = arith.constant 1 : index
    %c0_9 = arith.constant 0 : index
    %c0_10 = arith.constant 0 : index
    %9 = vector.load %arg2[%c1_8, %c0_9, %c0_10] : memref<9x32x32xbf16, #tpu.memory_space<vmem>>, vector<1x32x32xbf16>
    %10 = vector.shape_cast %9 : vector<1x32x32xbf16> to vector<32x32xbf16>
    %cst_11 = arith.constant dense<0.000000e+00> : vector<80x32xf32>
    %11 = tpu.matmul %8, %10, %cst_11 {dimension_numbers = #tpu.dot_dimension_numbers<[1], [0], [0], [1], [0, 0, 1, 1], [], []>} : vector<80x32xbf16>, vector<32x32xbf16>, vector<80x32xf32> -> vector<80x32xf32>
    %12 = arith.addf %6, %11 : vector<80x32xf32>
    %c0_12 = arith.constant 0 : index
    %c2 = arith.constant 2 : index
    %c0_13 = arith.constant 0 : index
    %13 = vector.load %arg1[%c0_12, %c2, %c0_13] : memref<1x110x32xbf16, #tpu.memory_space<vmem>>, vector<1x80x32xbf16>
    %14 = vector.shape_cast %13 : vector<1x80x32xbf16> to vector<80x32xbf16>
    %c2_14 = arith.constant 2 : index
    %c0_15 = arith.constant 0 : index
    %c0_16 = arith.constant 0 : index
    %15 = vector.load %arg2[%c2_14, %c0_15, %c0_16] : memref<9x32x32xbf16, #tpu.memory_space<vmem>>, vector<1x32x32xbf16>
    %16 = vector.shape_cast %15 : vector<1x32x32xbf16> to vector<32x32xbf16>
    %cst_17 = arith.constant dense<0.000000e+00> : vector<80x32xf32>
    %17 = tpu.matmul %14, %16, %cst_17 {dimension_numbers = #tpu.dot_dimension_numbers<[1], [0], [0], [1], [0, 0, 1, 1], [], []>} : vector<80x32xbf16>, vector<32x32xbf16>, vector<80x32xf32> -> vector<80x32xf32>
    %18 = arith.addf %12, %17 : vector<80x32xf32>
    %c0_18 = arith.constant 0 : index
    %c10 = arith.constant 10 : index
    %c0_19 = arith.constant 0 : index
    %19 = vector.load %arg1[%c0_18, %c10, %c0_19] : memref<1x110x32xbf16, #tpu.memory_space<vmem>>, vector<1x80x32xbf16>
    %20 = vector.shape_cast %19 : vector<1x80x32xbf16> to vector<80x32xbf16>
    %c3 = arith.constant 3 : index
    %c0_20 = arith.constant 0 : index
    %c0_21 = arith.constant 0 : index
    %21 = vector.load %arg2[%c3, %c0_20, %c0_21] : memref<9x32x32xbf16, #tpu.memory_space<vmem>>, vector<1x32x32xbf16>
    %22 = vector.shape_cast %21 : vector<1x32x32xbf16> to vector<32x32xbf16>
    %cst_22 = arith.constant dense<0.000000e+00> : vector<80x32xf32>
    %23 = tpu.matmul %20, %22, %cst_22 {dimension_numbers = #tpu.dot_dimension_numbers<[1], [0], [0], [1], [0, 0, 1, 1], [], []>} : vector<80x32xbf16>, vector<32x32xbf16>, vector<80x32xf32> -> vector<80x32xf32>
    %24 = arith.addf %18, %23 : vector<80x32xf32>
    %c0_23 = arith.constant 0 : index
    %c11 = arith.constant 11 : index
    %c0_24 = arith.constant 0 : index
    %25 = vector.load %arg1[%c0_23, %c11, %c0_24] : memref<1x110x32xbf16, #tpu.memory_space<vmem>>, vector<1x80x32xbf16>
    %26 = vector.shape_cast %25 : vector<1x80x32xbf16> to vector<80x32xbf16>
    %c4 = arith.constant 4 : index
    %c0_25 = arith.constant 0 : index
    %c0_26 = arith.constant 0 : index
    %27 = vector.load %arg2[%c4, %c0_25, %c0_26] : memref<9x32x32xbf16, #tpu.memory_space<vmem>>, vector<1x32x32xbf16>
    %28 = vector.shape_cast %27 : vector<1x32x32xbf16> to vector<32x32xbf16>
    %cst_27 = arith.constant dense<0.000000e+00> : vector<80x32xf32>
    %29 = tpu.matmul %26, %28, %cst_27 {dimension_numbers = #tpu.dot_dimension_numbers<[1], [0], [0], [1], [0, 0, 1, 1], [], []>} : vector<80x32xbf16>, vector<32x32xbf16>, vector<80x32xf32> -> vector<80x32xf32>
    %30 = arith.addf %24, %29 : vector<80x32xf32>
    %c0_28 = arith.constant 0 : index
    %c12 = arith.constant 12 : index
    %c0_29 = arith.constant 0 : index
    %31 = vector.load %arg1[%c0_28, %c12, %c0_29] : memref<1x110x32xbf16, #tpu.memory_space<vmem>>, vector<1x80x32xbf16>
    %32 = vector.shape_cast %31 : vector<1x80x32xbf16> to vector<80x32xbf16>
    %c5 = arith.constant 5 : index
    %c0_30 = arith.constant 0 : index
    %c0_31 = arith.constant 0 : index
    %33 = vector.load %arg2[%c5, %c0_30, %c0_31] : memref<9x32x32xbf16, #tpu.memory_space<vmem>>, vector<1x32x32xbf16>
    %34 = vector.shape_cast %33 : vector<1x32x32xbf16> to vector<32x32xbf16>
    %cst_32 = arith.constant dense<0.000000e+00> : vector<80x32xf32>
    %35 = tpu.matmul %32, %34, %cst_32 {dimension_numbers = #tpu.dot_dimension_numbers<[1], [0], [0], [1], [0, 0, 1, 1], [], []>} : vector<80x32xbf16>, vector<32x32xbf16>, vector<80x32xf32> -> vector<80x32xf32>
    %36 = arith.addf %30, %35 : vector<80x32xf32>
    %c0_33 = arith.constant 0 : index
    %c20 = arith.constant 20 : index
    %c0_34 = arith.constant 0 : index
    %37 = vector.load %arg1[%c0_33, %c20, %c0_34] : memref<1x110x32xbf16, #tpu.memory_space<vmem>>, vector<1x80x32xbf16>
    %38 = vector.shape_cast %37 : vector<1x80x32xbf16> to vector<80x32xbf16>
    %c6 = arith.constant 6 : index
    %c0_35 = arith.constant 0 : index
    %c0_36 = arith.constant 0 : index
    %39 = vector.load %arg2[%c6, %c0_35, %c0_36] : memref<9x32x32xbf16, #tpu.memory_space<vmem>>, vector<1x32x32xbf16>
    %40 = vector.shape_cast %39 : vector<1x32x32xbf16> to vector<32x32xbf16>
    %cst_37 = arith.constant dense<0.000000e+00> : vector<80x32xf32>
    %41 = tpu.matmul %38, %40, %cst_37 {dimension_numbers = #tpu.dot_dimension_numbers<[1], [0], [0], [1], [0, 0, 1, 1], [], []>} : vector<80x32xbf16>, vector<32x32xbf16>, vector<80x32xf32> -> vector<80x32xf32>
    %42 = arith.addf %36, %41 : vector<80x32xf32>
    %c0_38 = arith.constant 0 : index
    %c21 = arith.constant 21 : index
    %c0_39 = arith.constant 0 : index
    %43 = vector.load %arg1[%c0_38, %c21, %c0_39] : memref<1x110x32xbf16, #tpu.memory_space<vmem>>, vector<1x80x32xbf16>
    %44 = vector.shape_cast %43 : vector<1x80x32xbf16> to vector<80x32xbf16>
    %c7 = arith.constant 7 : index
    %c0_40 = arith.constant 0 : index
    %c0_41 = arith.constant 0 : index
    %45 = vector.load %arg2[%c7, %c0_40, %c0_41] : memref<9x32x32xbf16, #tpu.memory_space<vmem>>, vector<1x32x32xbf16>
    %46 = vector.shape_cast %45 : vector<1x32x32xbf16> to vector<32x32xbf16>
    %cst_42 = arith.constant dense<0.000000e+00> : vector<80x32xf32>
    %47 = tpu.matmul %44, %46, %cst_42 {dimension_numbers = #tpu.dot_dimension_numbers<[1], [0], [0], [1], [0, 0, 1, 1], [], []>} : vector<80x32xbf16>, vector<32x32xbf16>, vector<80x32xf32> -> vector<80x32xf32>
    %48 = arith.addf %42, %47 : vector<80x32xf32>
    %c0_43 = arith.constant 0 : index
    %c22 = arith.constant 22 : index
    %c0_44 = arith.constant 0 : index
    %49 = vector.load %arg1[%c0_43, %c22, %c0_44] : memref<1x110x32xbf16, #tpu.memory_space<vmem>>, vector<1x80x32xbf16>
    %50 = vector.shape_cast %49 : vector<1x80x32xbf16> to vector<80x32xbf16>
    %c8 = arith.constant 8 : index
    %c0_45 = arith.constant 0 : index
    %c0_46 = arith.constant 0 : index
    %51 = vector.load %arg2[%c8, %c0_45, %c0_46] : memref<9x32x32xbf16, #tpu.memory_space<vmem>>, vector<1x32x32xbf16>
    %52 = vector.shape_cast %51 : vector<1x32x32xbf16> to vector<32x32xbf16>
    %cst_47 = arith.constant dense<0.000000e+00> : vector<80x32xf32>
    %53 = tpu.matmul %50, %52, %cst_47 {dimension_numbers = #tpu.dot_dimension_numbers<[1], [0], [0], [1], [0, 0, 1, 1], [], []>} : vector<80x32xbf16>, vector<32x32xbf16>, vector<80x32xf32> -> vector<80x32xf32>
    %54 = arith.addf %48, %53 : vector<80x32xf32>
    %c0_48 = arith.constant 0 : index
    %c0_49 = arith.constant 0 : index
    %55 = vector.load %arg3[%c0_48, %c0_49] : memref<1x32xf32, #tpu.memory_space<vmem>>, vector<1x32xf32>
    %56 = vector.broadcast %55 : vector<1x32xf32> to vector<80x32xf32>
    %57 = arith.addf %54, %56 : vector<80x32xf32>
    %cst_50 = arith.constant 0.000000e+00 : f32
    %58 = vector.broadcast %cst_50 : f32 to vector<80x32xf32>
    %59 = arith.maximumf %57, %58 : vector<80x32xf32>
    %60 = arith.truncf %59 : vector<80x32xf32> to vector<80x32xbf16>
    %c0_51 = arith.constant 0 : index
    %c0_52 = arith.constant 0 : index
    %c0_53 = arith.constant 0 : index
    %61 = vector.load %arg4[%c0_51, %c0_52, %c0_53] : memref<1x80x32xbf16, #tpu.memory_space<vmem>>, vector<1x80x32xbf16>
    %62 = vector.shape_cast %61 : vector<1x80x32xbf16> to vector<80x32xbf16>
    %63 = vector.shape_cast %60 : vector<80x32xbf16> to vector<1x80x32xbf16>
    tpu.vector_store %arg4[%c0_51, %c0_52, %c0_53], %63 {strides = array<i32>} : memref<1x80x32xbf16, #tpu.memory_space<vmem>>, vector<1x80x32xbf16>,
    return
  }
  func.func @transform_0(%arg0: i32) -> (i32, i32, i32) {
    %c0_i32 = arith.constant 0 : i32
    %c0_i32_0 = arith.constant 0 : i32
    %c0_i32_1 = arith.constant 0 : i32
    return %arg0, %c0_i32, %c0_i32_0 : i32, i32, i32
  }
  func.func @transform_1(%arg0: i32) -> (i32, i32, i32) {
    %c0_i32 = arith.constant 0 : i32
    %c0_i32_0 = arith.constant 0 : i32
    %c0_i32_1 = arith.constant 0 : i32
    %c0_i32_2 = arith.constant 0 : i32
    return %c0_i32, %c0_i32_0, %c0_i32_1 : i32, i32, i32
  }
  func.func @transform_2(%arg0: i32) -> (i32, i32) {
    %c0_i32 = arith.constant 0 : i32
    %c0_i32_0 = arith.constant 0 : i32
    %c0_i32_1 = arith.constant 0 : i32
    return %c0_i32, %c0_i32_0 : i32, i32
  }
  func.func @transform_3(%arg0: i32) -> (i32, i32, i32) {
    %c0_i32 = arith.constant 0 : i32
    %c0_i32_0 = arith.constant 0 : i32
    %c0_i32_1 = arith.constant 0 : i32
    return %arg0, %c0_i32, %c0_i32_0 : i32, i32, i32
  }
}

module attributes {stable_mosaic.version = 11 : i64} {
  func.func @_maxpool_kernel(%arg0: i32, %arg1: i32, %arg2: memref<1x4x2x4x64xbf16, #tpu.memory_space<vmem>>, %arg3: memref<1x4x4x32xbf16, #tpu.memory_space<vmem>>) attributes {dimension_semantics = [#tpu.dimension_semantics<parallel>, #tpu.dimension_semantics<parallel>], iteration_bounds = array<i64: 2, 1>, scalar_prefetch = 0 : i64, scratch_operands = 0 : i64, tpu.core_type = #tpu.core_type<tc>, window_params = [{transform_indices = @transform_0, window_bounds = array<i64: 1, 4, 2, 4, 64>}, {transform_indices = @transform_1, window_bounds = array<i64: 1, 4, 4, 32>}]} {
    %c0 = arith.constant 0 : index
    %c0_0 = arith.constant 0 : index
    %c0_1 = arith.constant 0 : index
    %c0_2 = arith.constant 0 : index
    %c0_3 = arith.constant 0 : index
    %0 = vector.load %arg2[%c0, %c0_0, %c0_1, %c0_2, %c0_3] : memref<1x4x2x4x64xbf16, #tpu.memory_space<vmem>>, vector<1x4x2x4x64xbf16>
    %1 = vector.shape_cast %0 : vector<1x4x2x4x64xbf16> to vector<4x2x4x64xbf16>
    %2 = vector.extract_strided_slice %1 {offsets = [0, 0, 0, 0], sizes = [4, 1, 4, 64], strides = [1, 1, 1, 1]} : vector<4x2x4x64xbf16> to vector<4x1x4x64xbf16>
    %3 = vector.shape_cast %2 : vector<4x1x4x64xbf16> to vector<4x4x64xbf16>
    %4 = vector.extract_strided_slice %1 {offsets = [0, 1, 0, 0], sizes = [4, 1, 4, 64], strides = [1, 1, 1, 1]} : vector<4x2x4x64xbf16> to vector<4x1x4x64xbf16>
    %5 = vector.shape_cast %4 : vector<4x1x4x64xbf16> to vector<4x4x64xbf16>
    %6 = arith.maximumf %3, %5 : vector<4x4x64xbf16>
    %7 = vector.extract_strided_slice %6 {offsets = [0, 0, 0], sizes = [4, 4, 32], strides = [1, 1, 1]} : vector<4x4x64xbf16> to vector<4x4x32xbf16>
    %8 = vector.extract_strided_slice %6 {offsets = [0, 0, 32], sizes = [4, 4, 32], strides = [1, 1, 1]} : vector<4x4x64xbf16> to vector<4x4x32xbf16>
    %9 = arith.maximumf %7, %8 : vector<4x4x32xbf16>
    %c0_4 = arith.constant 0 : index
    %c0_5 = arith.constant 0 : index
    %c0_6 = arith.constant 0 : index
    %c0_7 = arith.constant 0 : index
    %10 = vector.load %arg3[%c0_4, %c0_5, %c0_6, %c0_7] : memref<1x4x4x32xbf16, #tpu.memory_space<vmem>>, vector<1x4x4x32xbf16>
    %11 = vector.shape_cast %10 : vector<1x4x4x32xbf16> to vector<4x4x32xbf16>
    %12 = vector.shape_cast %9 : vector<4x4x32xbf16> to vector<1x4x4x32xbf16>
    tpu.vector_store %arg3[%c0_4, %c0_5, %c0_6, %c0_7], %12 {strides = array<i32>} : memref<1x4x4x32xbf16, #tpu.memory_space<vmem>>, vector<1x4x4x32xbf16>,
    return
  }
  func.func @transform_0(%arg0: i32, %arg1: i32) -> (i32, i32, i32, i32, i32) {
    %c0_i32 = arith.constant 0 : i32
    %c0_i32_0 = arith.constant 0 : i32
    %c0_i32_1 = arith.constant 0 : i32
    %c0_i32_2 = arith.constant 0 : i32
    return %arg0, %arg1, %c0_i32, %c0_i32_0, %c0_i32_1 : i32, i32, i32, i32, i32
  }
  func.func @transform_1(%arg0: i32, %arg1: i32) -> (i32, i32, i32, i32) {
    %c0_i32 = arith.constant 0 : i32
    %c0_i32_0 = arith.constant 0 : i32
    %c0_i32_1 = arith.constant 0 : i32
    return %arg0, %arg1, %c0_i32, %c0_i32_0 : i32, i32, i32, i32
  }
}

module attributes {stable_mosaic.version = 11 : i64} {
  func.func @_conv_kernel(%arg0: i32, %arg1: memref<1x42x32xbf16, #tpu.memory_space<vmem>>, %arg2: memref<9x32x64xbf16, #tpu.memory_space<vmem>>, %arg3: memref<1x64xf32, #tpu.memory_space<vmem>>, %arg4: memref<1x24x64xf32, #tpu.memory_space<vmem>>) attributes {dimension_semantics = [#tpu.dimension_semantics<parallel>], iteration_bounds = array<i64: 2>, scalar_prefetch = 0 : i64, scratch_operands = 0 : i64, tpu.core_type = #tpu.core_type<tc>, window_params = [{transform_indices = @transform_0, window_bounds = array<i64: 1, 42, 32>}, {pipeline_mode = #tpu.pipeline_mode<synchronous>, transform_indices = @transform_1, window_bounds = array<i64: 9, 32, 64>}, {pipeline_mode = #tpu.pipeline_mode<synchronous>, transform_indices = @transform_2, window_bounds = array<i64: 1, 64>}, {transform_indices = @transform_3, window_bounds = array<i64: 1, 24, 64>}]} {
    %cst = arith.constant 0.000000e+00 : f32
    %0 = vector.broadcast %cst : f32 to vector<24x64xf32>
    %c0 = arith.constant 0 : index
    %c0_0 = arith.constant 0 : index
    %c0_1 = arith.constant 0 : index
    %1 = vector.load %arg1[%c0, %c0_0, %c0_1] : memref<1x42x32xbf16, #tpu.memory_space<vmem>>, vector<1x24x32xbf16>
    %2 = vector.shape_cast %1 : vector<1x24x32xbf16> to vector<24x32xbf16>
    %c0_2 = arith.constant 0 : index
    %c0_3 = arith.constant 0 : index
    %c0_4 = arith.constant 0 : index
    %3 = vector.load %arg2[%c0_2, %c0_3, %c0_4] : memref<9x32x64xbf16, #tpu.memory_space<vmem>>, vector<1x32x64xbf16>
    %4 = vector.shape_cast %3 : vector<1x32x64xbf16> to vector<32x64xbf16>
    %cst_5 = arith.constant dense<0.000000e+00> : vector<24x64xf32>
    %5 = tpu.matmul %2, %4, %cst_5 {dimension_numbers = #tpu.dot_dimension_numbers<[1], [0], [0], [1], [0, 0, 1, 1], [], []>} : vector<24x32xbf16>, vector<32x64xbf16>, vector<24x64xf32> -> vector<24x64xf32>
    %6 = arith.addf %0, %5 : vector<24x64xf32>
    %c0_6 = arith.constant 0 : index
    %c1 = arith.constant 1 : index
    %c0_7 = arith.constant 0 : index
    %7 = vector.load %arg1[%c0_6, %c1, %c0_7] : memref<1x42x32xbf16, #tpu.memory_space<vmem>>, vector<1x24x32xbf16>
    %8 = vector.shape_cast %7 : vector<1x24x32xbf16> to vector<24x32xbf16>
    %c1_8 = arith.constant 1 : index
    %c0_9 = arith.constant 0 : index
    %c0_10 = arith.constant 0 : index
    %9 = vector.load %arg2[%c1_8, %c0_9, %c0_10] : memref<9x32x64xbf16, #tpu.memory_space<vmem>>, vector<1x32x64xbf16>
    %10 = vector.shape_cast %9 : vector<1x32x64xbf16> to vector<32x64xbf16>
    %cst_11 = arith.constant dense<0.000000e+00> : vector<24x64xf32>
    %11 = tpu.matmul %8, %10, %cst_11 {dimension_numbers = #tpu.dot_dimension_numbers<[1], [0], [0], [1], [0, 0, 1, 1], [], []>} : vector<24x32xbf16>, vector<32x64xbf16>, vector<24x64xf32> -> vector<24x64xf32>
    %12 = arith.addf %6, %11 : vector<24x64xf32>
    %c0_12 = arith.constant 0 : index
    %c2 = arith.constant 2 : index
    %c0_13 = arith.constant 0 : index
    %13 = vector.load %arg1[%c0_12, %c2, %c0_13] : memref<1x42x32xbf16, #tpu.memory_space<vmem>>, vector<1x24x32xbf16>
    %14 = vector.shape_cast %13 : vector<1x24x32xbf16> to vector<24x32xbf16>
    %c2_14 = arith.constant 2 : index
    %c0_15 = arith.constant 0 : index
    %c0_16 = arith.constant 0 : index
    %15 = vector.load %arg2[%c2_14, %c0_15, %c0_16] : memref<9x32x64xbf16, #tpu.memory_space<vmem>>, vector<1x32x64xbf16>
    %16 = vector.shape_cast %15 : vector<1x32x64xbf16> to vector<32x64xbf16>
    %cst_17 = arith.constant dense<0.000000e+00> : vector<24x64xf32>
    %17 = tpu.matmul %14, %16, %cst_17 {dimension_numbers = #tpu.dot_dimension_numbers<[1], [0], [0], [1], [0, 0, 1, 1], [], []>} : vector<24x32xbf16>, vector<32x64xbf16>, vector<24x64xf32> -> vector<24x64xf32>
    %18 = arith.addf %12, %17 : vector<24x64xf32>
    %c0_18 = arith.constant 0 : index
    %c6 = arith.constant 6 : index
    %c0_19 = arith.constant 0 : index
    %19 = vector.load %arg1[%c0_18, %c6, %c0_19] : memref<1x42x32xbf16, #tpu.memory_space<vmem>>, vector<1x24x32xbf16>
    %20 = vector.shape_cast %19 : vector<1x24x32xbf16> to vector<24x32xbf16>
    %c3 = arith.constant 3 : index
    %c0_20 = arith.constant 0 : index
    %c0_21 = arith.constant 0 : index
    %21 = vector.load %arg2[%c3, %c0_20, %c0_21] : memref<9x32x64xbf16, #tpu.memory_space<vmem>>, vector<1x32x64xbf16>
    %22 = vector.shape_cast %21 : vector<1x32x64xbf16> to vector<32x64xbf16>
    %cst_22 = arith.constant dense<0.000000e+00> : vector<24x64xf32>
    %23 = tpu.matmul %20, %22, %cst_22 {dimension_numbers = #tpu.dot_dimension_numbers<[1], [0], [0], [1], [0, 0, 1, 1], [], []>} : vector<24x32xbf16>, vector<32x64xbf16>, vector<24x64xf32> -> vector<24x64xf32>
    %24 = arith.addf %18, %23 : vector<24x64xf32>
    %c0_23 = arith.constant 0 : index
    %c7 = arith.constant 7 : index
    %c0_24 = arith.constant 0 : index
    %25 = vector.load %arg1[%c0_23, %c7, %c0_24] : memref<1x42x32xbf16, #tpu.memory_space<vmem>>, vector<1x24x32xbf16>
    %26 = vector.shape_cast %25 : vector<1x24x32xbf16> to vector<24x32xbf16>
    %c4 = arith.constant 4 : index
    %c0_25 = arith.constant 0 : index
    %c0_26 = arith.constant 0 : index
    %27 = vector.load %arg2[%c4, %c0_25, %c0_26] : memref<9x32x64xbf16, #tpu.memory_space<vmem>>, vector<1x32x64xbf16>
    %28 = vector.shape_cast %27 : vector<1x32x64xbf16> to vector<32x64xbf16>
    %cst_27 = arith.constant dense<0.000000e+00> : vector<24x64xf32>
    %29 = tpu.matmul %26, %28, %cst_27 {dimension_numbers = #tpu.dot_dimension_numbers<[1], [0], [0], [1], [0, 0, 1, 1], [], []>} : vector<24x32xbf16>, vector<32x64xbf16>, vector<24x64xf32> -> vector<24x64xf32>
    %30 = arith.addf %24, %29 : vector<24x64xf32>
    %c0_28 = arith.constant 0 : index
    %c8 = arith.constant 8 : index
    %c0_29 = arith.constant 0 : index
    %31 = vector.load %arg1[%c0_28, %c8, %c0_29] : memref<1x42x32xbf16, #tpu.memory_space<vmem>>, vector<1x24x32xbf16>
    %32 = vector.shape_cast %31 : vector<1x24x32xbf16> to vector<24x32xbf16>
    %c5 = arith.constant 5 : index
    %c0_30 = arith.constant 0 : index
    %c0_31 = arith.constant 0 : index
    %33 = vector.load %arg2[%c5, %c0_30, %c0_31] : memref<9x32x64xbf16, #tpu.memory_space<vmem>>, vector<1x32x64xbf16>
    %34 = vector.shape_cast %33 : vector<1x32x64xbf16> to vector<32x64xbf16>
    %cst_32 = arith.constant dense<0.000000e+00> : vector<24x64xf32>
    %35 = tpu.matmul %32, %34, %cst_32 {dimension_numbers = #tpu.dot_dimension_numbers<[1], [0], [0], [1], [0, 0, 1, 1], [], []>} : vector<24x32xbf16>, vector<32x64xbf16>, vector<24x64xf32> -> vector<24x64xf32>
    %36 = arith.addf %30, %35 : vector<24x64xf32>
    %c0_33 = arith.constant 0 : index
    %c12 = arith.constant 12 : index
    %c0_34 = arith.constant 0 : index
    %37 = vector.load %arg1[%c0_33, %c12, %c0_34] : memref<1x42x32xbf16, #tpu.memory_space<vmem>>, vector<1x24x32xbf16>
    %38 = vector.shape_cast %37 : vector<1x24x32xbf16> to vector<24x32xbf16>
    %c6_35 = arith.constant 6 : index
    %c0_36 = arith.constant 0 : index
    %c0_37 = arith.constant 0 : index
    %39 = vector.load %arg2[%c6_35, %c0_36, %c0_37] : memref<9x32x64xbf16, #tpu.memory_space<vmem>>, vector<1x32x64xbf16>
    %40 = vector.shape_cast %39 : vector<1x32x64xbf16> to vector<32x64xbf16>
    %cst_38 = arith.constant dense<0.000000e+00> : vector<24x64xf32>
    %41 = tpu.matmul %38, %40, %cst_38 {dimension_numbers = #tpu.dot_dimension_numbers<[1], [0], [0], [1], [0, 0, 1, 1], [], []>} : vector<24x32xbf16>, vector<32x64xbf16>, vector<24x64xf32> -> vector<24x64xf32>
    %42 = arith.addf %36, %41 : vector<24x64xf32>
    %c0_39 = arith.constant 0 : index
    %c13 = arith.constant 13 : index
    %c0_40 = arith.constant 0 : index
    %43 = vector.load %arg1[%c0_39, %c13, %c0_40] : memref<1x42x32xbf16, #tpu.memory_space<vmem>>, vector<1x24x32xbf16>
    %44 = vector.shape_cast %43 : vector<1x24x32xbf16> to vector<24x32xbf16>
    %c7_41 = arith.constant 7 : index
    %c0_42 = arith.constant 0 : index
    %c0_43 = arith.constant 0 : index
    %45 = vector.load %arg2[%c7_41, %c0_42, %c0_43] : memref<9x32x64xbf16, #tpu.memory_space<vmem>>, vector<1x32x64xbf16>
    %46 = vector.shape_cast %45 : vector<1x32x64xbf16> to vector<32x64xbf16>
    %cst_44 = arith.constant dense<0.000000e+00> : vector<24x64xf32>
    %47 = tpu.matmul %44, %46, %cst_44 {dimension_numbers = #tpu.dot_dimension_numbers<[1], [0], [0], [1], [0, 0, 1, 1], [], []>} : vector<24x32xbf16>, vector<32x64xbf16>, vector<24x64xf32> -> vector<24x64xf32>
    %48 = arith.addf %42, %47 : vector<24x64xf32>
    %c0_45 = arith.constant 0 : index
    %c14 = arith.constant 14 : index
    %c0_46 = arith.constant 0 : index
    %49 = vector.load %arg1[%c0_45, %c14, %c0_46] : memref<1x42x32xbf16, #tpu.memory_space<vmem>>, vector<1x24x32xbf16>
    %50 = vector.shape_cast %49 : vector<1x24x32xbf16> to vector<24x32xbf16>
    %c8_47 = arith.constant 8 : index
    %c0_48 = arith.constant 0 : index
    %c0_49 = arith.constant 0 : index
    %51 = vector.load %arg2[%c8_47, %c0_48, %c0_49] : memref<9x32x64xbf16, #tpu.memory_space<vmem>>, vector<1x32x64xbf16>
    %52 = vector.shape_cast %51 : vector<1x32x64xbf16> to vector<32x64xbf16>
    %cst_50 = arith.constant dense<0.000000e+00> : vector<24x64xf32>
    %53 = tpu.matmul %50, %52, %cst_50 {dimension_numbers = #tpu.dot_dimension_numbers<[1], [0], [0], [1], [0, 0, 1, 1], [], []>} : vector<24x32xbf16>, vector<32x64xbf16>, vector<24x64xf32> -> vector<24x64xf32>
    %54 = arith.addf %48, %53 : vector<24x64xf32>
    %c0_51 = arith.constant 0 : index
    %c0_52 = arith.constant 0 : index
    %55 = vector.load %arg3[%c0_51, %c0_52] : memref<1x64xf32, #tpu.memory_space<vmem>>, vector<1x64xf32>
    %56 = vector.broadcast %55 : vector<1x64xf32> to vector<24x64xf32>
    %57 = arith.addf %54, %56 : vector<24x64xf32>
    %cst_53 = arith.constant 0.000000e+00 : f32
    %58 = vector.broadcast %cst_53 : f32 to vector<24x64xf32>
    %59 = arith.maximumf %57, %58 : vector<24x64xf32>
    %c0_54 = arith.constant 0 : index
    %c0_55 = arith.constant 0 : index
    %c0_56 = arith.constant 0 : index
    %60 = vector.load %arg4[%c0_54, %c0_55, %c0_56] : memref<1x24x64xf32, #tpu.memory_space<vmem>>, vector<1x24x64xf32>
    %61 = vector.shape_cast %60 : vector<1x24x64xf32> to vector<24x64xf32>
    %62 = vector.shape_cast %59 : vector<24x64xf32> to vector<1x24x64xf32>
    tpu.vector_store %arg4[%c0_54, %c0_55, %c0_56], %62 {strides = array<i32>} : memref<1x24x64xf32, #tpu.memory_space<vmem>>, vector<1x24x64xf32>,
    return
  }
  func.func @transform_0(%arg0: i32) -> (i32, i32, i32) {
    %c0_i32 = arith.constant 0 : i32
    %c0_i32_0 = arith.constant 0 : i32
    %c0_i32_1 = arith.constant 0 : i32
    return %arg0, %c0_i32, %c0_i32_0 : i32, i32, i32
  }
  func.func @transform_1(%arg0: i32) -> (i32, i32, i32) {
    %c0_i32 = arith.constant 0 : i32
    %c0_i32_0 = arith.constant 0 : i32
    %c0_i32_1 = arith.constant 0 : i32
    %c0_i32_2 = arith.constant 0 : i32
    return %c0_i32, %c0_i32_0, %c0_i32_1 : i32, i32, i32
  }
  func.func @transform_2(%arg0: i32) -> (i32, i32) {
    %c0_i32 = arith.constant 0 : i32
    %c0_i32_0 = arith.constant 0 : i32
    %c0_i32_1 = arith.constant 0 : i32
    return %c0_i32, %c0_i32_0 : i32, i32
  }
  func.func @transform_3(%arg0: i32) -> (i32, i32, i32) {
    %c0_i32 = arith.constant 0 : i32
    %c0_i32_0 = arith.constant 0 : i32
    %c0_i32_1 = arith.constant 0 : i32
    return %arg0, %c0_i32, %c0_i32_0 : i32, i32, i32
  }
}

</mosaic_0001>

<bundles_post_ra>
// kernel: perceptual_forward.9
= control target key start
LH: loop header
LB: loop body
LE: loop exit
PB: predicated region body
PF: predicated region fallthrough
CT: control target
= control target key end

     0   :  { %s395_s6 = smov 0   ;;  %s397_s7 = smov 0   ;;  %s440_s0 = inlined_call_operand.vmem [shape: bf16[2,8,2,8,32], index: 0, kind: input, shape index: {}]   ;;  %s441_s1 = inlined_call_operand.vmem [shape: bf16[2,8,8,16], index: 1, kind: output, shape index: {}]  }
   0x1   :  { %s399_s8 = smov 0  }
   0x2 LB: > { %s23_s9 = sadd.s32 1, %s378_s7  ;;  %p326_p0 = scmp.ge.s32.totalorder %s382_s8, 1  ;;  %s382_s8 = sphi %s399_s8, %s11_s8   ;;  %s378_s7 = sphi %s397_s7, %s443_s7   ;;  %s374_s6 = sphi %s395_s6, %s442_s6  }
   0x3   : > { %p25_p1 = scmp.ge.s32.totalorder %s23_s9, 2  ;;  %p109_p2 = scmp.lt.s32.totalorder %s382_s8, 3 }
   0x5   : > { %s445_s9 = smov (%p25_p1, %s23_s9), 0  ;;  %p110_p3 = pnand %p326_p0, %p109_p2 }
   0x6   : > { %p139_p4 = scmp.lt.s32.totalorder (!%p110_p3), %s374_s6, 1  ;;  %s384_s14 = smov (!%p110_p3), 112   ;;  %vm223_vm0 = vcmask (!%p110_p3), 125952  }
   0x7   : > { %113 = sbr.rel (%p110_p3) target bundleno = 151 (0x97), region = 24 }
   0xe   : > { %s447_s6 = smov (!%p139_p4, %s374_s6), 1 }
   0xf   : > { %s333_s10 = sshll.u32 %s447_s6, 6  ;;  %s334_s15 = sshll.u32 %s447_s6, 5 }
  0x10   : > { %s147_s13 = scalar_lea.vmem %s440_s0, %s333_s10  ;;  %s157_s18 = scalar_lea.vmem %s441_s1, %s334_s15 }
  0x11   : > { %v163_v0 = vld [vmem:[%s147_s13 + $0x10] sm:$0xf]  ;;  %v164_v1 = vld [vmem:[%s147_s13 + $0x14] sm:$0xf]  ;;  %v159_v2 = vld [vmem:[%s147_s13] sm:$0xf] }
  0x12   : > { %v177_v3 = vmax.bf16 %v164_v1, %v163_v0  ;;  %v160_v4 = vld [vmem:[%s147_s13 + $0x4] sm:$0xf]  ;;  %v165_v5 = vld [vmem:[%s147_s13 + $0x18] sm:$0xf]  ;;  %v166_v6 = vld [vmem:[%s147_s13 + $0x1c] sm:$0xf] }
  0x13   : > { %v175_v7 = vmax.bf16 %v160_v4, %v159_v2  ;;  %v161_v8 = vld [vmem:[%s147_s13 + $0x8] sm:$0xf]  ;;  %v162_v9 = vld [vmem:[%s147_s13 + $0xc] sm:$0xf]  ;;  %v178_v10 = vmax.bf16 %v166_v6, %v165_v5  ;;  %v167_v14 = vld [vmem:[%s147_s13 + $0x20] sm:$0xf] }
  0x14   : > { %195 = vrot.lane.b32.xlu1 %v177_v3, %s384_s14  ;;  %v176_v11 = vmax.bf16 %v162_v9, %v161_v8  ;;  %v169_v12 = vld [vmem:[%s147_s13 + $0x28] sm:$0xf]  ;;  %v170_v13 = vld [vmem:[%s147_s13 + $0x2c] sm:$0xf]  ;;  %v168_v15 = vld [vmem:[%s147_s13 + $0x24] sm:$0xf] }
  0x15   : > { %191 = vrot.lane.b32.xlu0 %v175_v7, %s384_s14  ;;  %v180_v16 = vmax.bf16 %v170_v13, %v169_v12  ;;  %v179_v17 = vmax.bf16 %v168_v15, %v167_v14  ;;  %v173_v18 = vld [vmem:[%s147_s13 + $0x38] sm:$0xf]  ;;  %v174_v19 = vld [vmem:[%s147_s13 + $0x3c] sm:$0xf]  ;;  %v171_v20 = vld [vmem:[%s147_s13 + $0x30] sm:$0xf] }
  0x16   : > { %v172_v21 = vld [vmem:[%s147_s13 + $0x34] sm:$0xf]  ;;  %v182_v22 = vmax.bf16 %v174_v19, %v173_v18 }
  0x17   : > { %v181_v23 = vmax.bf16 %v172_v21, %v171_v20 }
  0x18   : > { %197 = vrot.lane.b32.xlu1 %v178_v10, %s384_s14 }
  0x19   : > { %193 = vrot.lane.b32.xlu0 %v176_v11, %s384_s14 }
  0x1c   : > { %201 = vrot.lane.b32.xlu1 %v180_v16, %s384_s14 }
  0x1d   : > { %199 = vrot.lane.b32.xlu0 %v179_v17, %s384_s14 }
  0x20   : > { %205 = vrot.lane.b32.xlu1 %v182_v22, %s384_s14 }
  0x21   : > { %203 = vrot.lane.b32.xlu0 %v181_v23, %s384_s14 }
  0x86   : > { %v196_v24 = vpop.permute.xlu1 %195 }
  0x87   : > { %v217_v25 = vmax.bf16 %v196_v24, %v177_v3  ;;  %v192_v26 = vpop.permute.xlu0 %191 }
  0x88   : > { %v215_v27 = vmax.bf16 %v192_v26, %v175_v7 }
  0x89   : > { %226 = vst.msk [vmem:[%s157_s18 + $0x8] sm:$0xf] %vm223_vm0, %v217_v25 }
  0x8a   : > { %224 = vst.msk [vmem:[%s157_s18] sm:$0xf] %vm223_vm0, %v215_v27  ;;  %v198_v28 = vpop.permute.xlu1 %197 }
  0x8b   : > { %v218_v29 = vmax.bf16 %v198_v28, %v178_v10  ;;  %v194_v30 = vpop.permute.xlu0 %193 }
  0x8c   : > { %v216_v31 = vmax.bf16 %v194_v30, %v176_v11 }
  0x8d   : > { %227 = vst.msk [vmem:[%s157_s18 + $0xc] sm:$0xf] %vm223_vm0, %v218_v29 }
  0x8e   : > { %225 = vst.msk [vmem:[%s157_s18 + $0x4] sm:$0xf] %vm223_vm0, %v216_v31  ;;  %v202_v32 = vpop.permute.xlu1 %201 }
  0x8f   : > { %v220_v33 = vmax.bf16 %v202_v32, %v180_v16  ;;  %v200_v34 = vpop.permute.xlu0 %199 }
  0x90   : > { %v219_v35 = vmax.bf16 %v200_v34, %v179_v17 }
  0x91   : > { %229 = vst.msk [vmem:[%s157_s18 + $0x14] sm:$0xf] %vm223_vm0, %v220_v33 }
  0x92   : > { %228 = vst.msk [vmem:[%s157_s18 + $0x10] sm:$0xf] %vm223_vm0, %v219_v35  ;;  %v206_v36 = vpop.permute.xlu1 %205 }
  0x93   : > { %v222_v37 = vmax.bf16 %v206_v36, %v182_v22  ;;  %v204_v38 = vpop.permute.xlu0 %203 }
  0x94   : > { %v221_v39 = vmax.bf16 %v204_v38, %v181_v23 }
  0x95   : > { %231 = vst.msk [vmem:[%s157_s18 + $0x1c] sm:$0xf] %vm223_vm0, %v222_v37 }
  0x96   : > { %230 = vst.msk [vmem:[%s157_s18 + $0x18] sm:$0xf] %vm223_vm0, %v221_v39 }
  0x97 PF: > { %s11_s8 = sadd.s32 1, %s382_s8   ;;  %s442_s6 = smov %s378_s7 }
  0x98   : > { %p8_p5 = scmp.ge.s32.totalorder %s11_s8, 4   ;;  %s443_s7 = smov %s445_s9 }
  0x9a   :  { %10 = sbr.rel (!%p8_p5) target bundleno = 2 (0x2), region = 54 }

// kernel: perceptual_forward.7
= control target key start
LH: loop header
LB: loop body
LE: loop exit
PB: predicated region body
PF: predicated region fallthrough
CT: control target
= control target key end

     0   :  { %s4951_s12 = smov 0   ;;  %s5907_s0 = inlined_call_operand.vmem [shape: bf16[2,342,3], index: 0, kind: input, shape index: {}]   ;;  %s5908_s1 = inlined_call_operand.vmem [shape: bf16[9,3,16], index: 1, kind: input, shape index: {}]   ;;  %s5909_s2 = inlined_call_operand.vmem [shape: f32[1,16], index: 2, kind: input, shape index: {}]   ;;  %s5910_s3 = inlined_call_operand.vmem [shape: f32[2,288,16], index: 3, kind: output, shape index: {}]  }
   0x1 LB: > { %s3794_s13 = sadd.s32 4294967295, %s4928_s12   ;;  %p3798_p0 = scmp.ge.s32.totalorder %s4928_s12, 1  ;;  %s4928_s12 = sphi %s4951_s12, %s13_s12  }
   0x2   : > { %p137_p1 = scmp.lt.s32.totalorder %s4928_s12, 3 }
   0x4   : > { %p138_p2 = pnand %p3798_p0, %p137_p1 }
   0x5   : > { %vm509_vm0 = vcmask (!%p138_p2), 1040384   ;;  %vm510_vm1 = vcmask (!%p138_p2), 1041408   ;;  %v3915_v0 = vld [vmem:[%s5908_s1 + $0x8] sm:$0x3] (!%p138_p2)  ;;  %p161_p3 = scmp.lt.s32.totalorder (!%p138_p2), %s3794_s13, 1  ;;  %v4930_v1 = vmov (!%p138_p2), 65535  }
   0x6   : > { %141 = sbr.rel (%p138_p2) target bundleno = 573 (0x23d), region = 32  ;;  %v511_v2 = vsel (!%p138_p2), %vm509_vm0, 4294967295, %v4930_v1  ;;  %v3801_v3 = vld [vmem:[%s5908_s1 + $0x2] sm:$0x3] (!%p138_p2)  ;;  %v3935_v5 = vld [vmem:[%s5908_s1 + $0xa] sm:$0x3] (!%p138_p2) }
   0x7   : > { %v4965_v4 = vsel (!%p138_p2), %vm510_vm1, %v511_v2, 0  ;;  %v208_v9 = vld [vmem:[%s5908_s1] sm:$0x3] (!%p138_p2)  ;;  %vm305_vm2 = vsmask.f32 (!%p138_p2), 7424  ;;  %vm454_vm3 = vcmask (!%p138_p2), 23552  }
   0x8   : > { %v4973_v6 = vand.u32 (!%p138_p2), %v3915_v0, %v4965_v4  ;;  %v514_v7 = vand.u32 (!%p138_p2), %v3801_v3, %v4965_v4  ;;  %v4977_v8 = vand.u32 (!%p138_p2), %v3935_v5, %v4965_v4  ;;  %v4984_v10 = vand.u32 (!%p138_p2), %v4965_v4, %v208_v9  ;;  %v3955_v11 = vld [vmem:[%s5908_s1 + $0xc] sm:$0x3] (!%p138_p2)  ;;  %v3857_v17 = vld [vmem:[%s5908_s1 + $0x4] sm:$0x3] (!%p138_p2) }
   0x9   : > { %vm1668_vm4 = vsmask.f32 (!%p138_p2), 6400  ;;  %v5029_v26 = vand.u32 (!%p138_p2), %v3955_v11, %v4965_v4  ;;  %v5040_v35 = vand.u32 (!%p138_p2), %v3857_v17, %v4965_v4  ;;  %vm2115_vm5 = vcmask (!%p138_p2), 1045504  }
   0xa   : > { %4359 = vmatprep.subr.bf16.mxu0 (!%p138_p2), %v4973_v6  ;;  %4207 = vmatprep.subr.bf16.mxu1 (!%p138_p2), %v514_v7  ;;  %vm915_vm6 = vcmask (!%p138_p2), 1046528   ;;  %vm2868_vm7 = vsmask.f32 (!%p138_p2), 5376  ;;  %vm3315_vm8 = vcmask (!%p138_p2), 1044480   ;;  %vm3702_vm9 = vcmask (!%p138_p2), 130048  }
   0xb   : > { %4360 = vmatpush3.bf16.msra.mxu0 (!%p138_p2), %v4973_v6  ;;  %4208 = vmatpush3.bf16.msra.mxu1 (!%p138_p2), %v514_v7 }
   0xc   : > { %4397 = vmatprep.subr.bf16.mxu0 (!%p138_p2), %v4977_v8  ;;  %4245 = vmatprep.subr.bf16.mxu1 (!%p138_p2), %v4984_v10 }
   0xd   : > { %s5912_s13 = smov (!%p161_p3, %s3794_s13), 1 }
   0xe   : > { %s4839_s22 = smul.u32 172, %s5912_s13 }
   0xf   : > { %s4840_s9 = smul.u32 288, %s5912_s13 }
  0x10   : > { %s4991_s25 = scalar_lea.vmem %s5907_s0, %s4839_s22 }
  0x11   : > { %v172_v12 = vld [vmem:[%s4991_s25] sm:$0xf]  ;;  %v4998_v13 = vld [vmem:[%s4991_s25 + $0x4] sm:$0xf]  ;;  %v5006_v15 = vld [vmem:[%s4991_s25 + $0x8] sm:$0xff]   ;;  %s5787_s16 = scalar_lea.vmem %s5910_s3, %s4840_s9 }
  0x12   : > { %v5003_v14 = vcombine.low %v172_v12, %v4998_v13  ;;  %v1223_v16 = vld [vmem:[%s4991_s25 + $0x8] sm:$0xe]  ;;  %v5013_v18 = vld [vmem:[%s4991_s25 + $0xc] sm:$0xf]  ;;  %v314_v21 = vshll.u32 %v5006_v15, 16  ;;  %v318_v22 = vshrl.u32 %v5006_v15, 16 }
  0x13   : > { %v5020_v23 = vld [vmem:[%s4991_s25 + $0x10] sm:$0xff]   ;;  %v5026_v25 = vcombine.low %v1223_v16, %v5013_v18  ;;  %v5037_v34 = vld [vmem:[%s4991_s25 + $0x18] sm:$0xff]   ;;  %v5046_v41 = vld [vmem:[%s4991_s25 + $0x20] sm:$0xff]  }
  0x14   : > { %v307_v19 = vshrl.u32 %v5003_v14, 16  ;;  %v309_v20 = vshll.u32 %v5003_v14, 16  ;;  %v5023_v24 = vld [vmem:[%s4991_s25 + $0x10] sm:$0xff]   ;;  %v316_v28 = vrot.slane %v314_v21, 1  ;;  %v1678_v29 = vshrl.u32 %v5020_v23, 16  ;;  %v5043_v40 = vld [vmem:[%s4991_s25 + $0x18] sm:$0xff]  }
  0x15   : > { %v1681_v30 = vshll.u32 %v5020_v23, 16  ;;  %v1670_v31 = vshrl.u32 %v5026_v25, 16  ;;  %v1673_v32 = vshll.u32 %v5026_v25, 16  ;;  %v322_v33 = vshll.u32 %v5023_v24, 16  ;;  %v5056_v54 = vld [vmem:[%s4991_s25 + $0x20] sm:$0xff]   ;;  %v5059_v55 = vld [vmem:[%s4991_s25 + $0x28] sm:$0xff]  }
  0x16   : > { %v311_v27 = vrot.slane %v309_v20, 1  ;;  %v320_v37 = vor.u32 %v318_v22, %v316_v28  ;;  %v1680_v38 = vrot.slane %v1678_v29, 1  ;;  %v1687_v45 = vshrl.u32 %v5037_v34, 16  ;;  %v5065_v60 = vld [vmem:[%s4991_s25 + $0x28] sm:$0xff]   ;;  %v5072_v1 = vld [vmem:[%s4991_s25 + $0x30] sm:$0xff]  }
  0x17   : > { %v1683_v39 = vrot.slane %v1681_v30, 2  ;;  %v1672_v42 = vrot.slane %v1670_v31, 1  ;;  %v1675_v43 = vrot.slane %v1673_v32, 2  ;;  %v324_v44 = vrot.slane %v322_v33, 1  ;;  %v5077_v9 = vld [vmem:[%s4991_s25 + $0x30] sm:$0xff]   ;;  %v5090_v30 = vld [vmem:[%s4991_s25 + $0x38] sm:$0xff]  }
  0x18   : > { %v312_v36 = vor.u32 %v311_v27, %v307_v19  ;;  %v1690_v48 = vshll.u32 %v5037_v34, 16  ;;  %v326_v49 = vshrl.u32 %v5023_v24, 16  ;;  %v1689_v52 = vrot.slane %v1687_v45, 1 }
  0x19   : > { %v1684_v47 = vor.u32 %v1683_v39, %v1680_v38  ;;  %v1676_v50 = vor.u32 %v1675_v43, %v1672_v42  ;;  %v325_v51 = vsel %vm305_vm2, %v320_v37, %v324_v44  ;;  %v330_v53 = vshll.u32 %v5043_v40, 16  ;;  %v5099_v43 = vld [vmem:[%s4991_s25 + $0x38] sm:$0xff]  }
  0x1a   : > { %v317_v46 = vsel %vm305_vm2, %v312_v36, %v316_v28  ;;  %v1692_v56 = vrot.slane %v1690_v48, 2  ;;  %v328_v57 = vor.u32 %v326_v49, %v324_v44  ;;  %v1696_v58 = vshrl.u32 %v5046_v41, 16 }
  0x1b   : > { %4209 = vmatprep.mubr.msk.bf16.mxu1 %vm454_vm3, %v317_v46  ;;  %v1699_v59 = vshll.u32 %v5046_v41, 16  ;;  %v1685_v61 = vsel %vm1668_vm4, %v1676_v50, %v1684_v47  ;;  %v332_v62 = vrot.slane %v330_v53, 1  ;;  %v334_v63 = vshrl.u32 %v5043_v40, 16 }
  0x1c   : > { %4210 = vmatmul.mubr.msk.bf16.vlgmr.msra.gmra.mrb[0].mxu1 %vm454_vm3, %v325_v51  ;;  %v338_v0 = vshll.u32 %v5056_v54, 16  ;;  %4361 = vmatprep.mubr.msk.bf16.mxu0 %vm454_vm3, %v1685_v61  ;;  %v1693_v2 = vor.u32 %v1692_v56, %v1689_v52  ;;  %v1698_v3 = vrot.slane %v1696_v58, 1  ;;  %v1705_v7 = vshrl.u32 %v5059_v55, 16  ;;  %v5109_v51 = vld [vmem:[%s4991_s25 + $0x40] sm:$0xff]  }
  0x1d   : > { %4246 = vmatpush3.bf16.msra.mxu1 %v4984_v10  ;;  %v1701_v5 = vrot.slane %v1699_v59, 2  ;;  %v333_v11 = vsel %vm305_vm2, %v328_v57, %v332_v62  ;;  %v336_v12 = vor.u32 %v334_v63, %v332_v62  ;;  %v1708_v10 = vshll.u32 %v5059_v55, 16  ;;  %v5114_v58 = vld [vmem:[%s4991_s25 + $0x40] sm:$0xff]  }
  0x1e   : > { %4283 = vmatprep.subr.bf16.mxu1 %v5040_v35  ;;  %v340_v16 = vrot.slane %v338_v0, 1  ;;  %v1694_v17 = vsel %vm1668_vm4, %v1684_v47, %v1693_v2  ;;  %4213 = vmatprep.mubr.msk.bf16.mxu1 %vm454_vm3, %v333_v11  ;;  %v1707_v20 = vrot.slane %v1705_v7, 1  ;;  %v342_v21 = vshrl.u32 %v5056_v54, 16  ;;  %v5122_v7 = vld [vmem:[%s4991_s25 + $0x48] sm:$0xff]  }
  0x1f   : > { %v1702_v19 = vor.u32 %v1701_v5, %v1698_v3  ;;  %4362 = vmatmul.mubr.msk.bf16.vlgmr.msra.gmra.mrb[0].mxu0 %vm454_vm3, %v1694_v17  ;;  %v1710_v27 = vrot.slane %v1708_v10, 2  ;;  %v346_v28 = vshll.u32 %v5065_v60, 16  ;;  %v1714_v29 = vshrl.u32 %v5072_v1, 16  ;;  %v5125_v11 = vld [vmem:[%s4991_s25 + $0x48] sm:$0xff]  }
  0x20   : > { %v341_v22 = vsel %vm305_vm2, %v336_v12, %v340_v16  ;;  %4398 = vmatpush3.bf16.msra.mxu0 %v4977_v8  ;;  %v344_v32 = vor.u32 %v342_v21, %v340_v16  ;;  %v1717_v33 = vshll.u32 %v5072_v1, 16  ;;  %v350_v36 = vshrl.u32 %v5065_v60, 16  ;;  %v5134_v21 = vld [vmem:[%s4991_s25 + $0x50] sm:$0xff]  }
  0x21   : > { %v1703_v31 = vsel %vm1668_vm4, %v1693_v2, %v1702_v19  ;;  %v1711_v37 = vor.u32 %v1710_v27, %v1707_v20  ;;  %v348_v38 = vrot.slane %v346_v28, 1  ;;  %v1716_v39 = vrot.slane %v1714_v29, 1  ;;  %4435 = vmatprep.subr.bf16.mxu0 %v5029_v26 }
  0x22   : > { %4365 = vmatprep.mubr.msk.bf16.mxu0 %vm454_vm3, %v1703_v31  ;;  %v354_v42 = vshll.u32 %v5077_v9, 16  ;;  %v1719_v8 = vrot.slane %v1717_v33, 2  ;;  %v1723_v44 = vshrl.u32 %v5090_v30, 16  ;;  %v1726_v45 = vshll.u32 %v5090_v30, 16  ;;  %v5142_v33 = vld [vmem:[%s4991_s25 + $0x50] sm:$0xff]  }
  0x23   : > { %v358_v46 = vshrl.u32 %v5077_v9, 16  ;;  %v1712_v47 = vsel %vm1668_vm4, %v1702_v19, %v1711_v37  ;;  %v349_v48 = vsel %vm305_vm2, %v344_v32, %v348_v38  ;;  %v352_v49 = vor.u32 %v350_v36, %v348_v38  ;;  %v5147_v38 = vld [vmem:[%s4991_s25 + $0x58] sm:$0xff]  }
  0x24   : > { %4214 = vmatmul.mubr.msk.bf16.gmra.mrb[4].mxu1 %vm454_vm3, %v341_v22  ;;  %v356_v50 = vrot.slane %v354_v42, 1  ;;  %v1720_v52 = vor.u32 %v1719_v8, %v1716_v39  ;;  %v1725_v53 = vrot.slane %v1723_v44, 1  ;;  %v1728_v56 = vrot.slane %v1726_v45, 2 }
  0x25   : > { %4217 = vmatprep.mubr.msk.bf16.mxu1 %vm454_vm3, %v349_v48  ;;  %v362_v57 = vshll.u32 %v5099_v43, 16  ;;  %v1732_v62 = vshrl.u32 %v5109_v51, 16  ;;  %v1735_v63 = vshll.u32 %v5109_v51, 16  ;;  %v366_v5 = vshrl.u32 %v5099_v43, 16 }
  0x26   : > { %v357_v59 = vsel %vm305_vm2, %v352_v49, %v356_v50  ;;  %v360_v61 = vor.u32 %v358_v46, %v356_v50  ;;  %v1721_v0 = vsel %vm1668_vm4, %v1711_v37, %v1720_v52  ;;  %v1729_v2 = vor.u32 %v1728_v56, %v1725_v53  ;;  %v5152_v49 = vld [vmem:[%s4991_s25 + $0x58] sm:$0xff]  }
  0x27   : > { %v364_v3 = vrot.slane %v362_v57, 1  ;;  %4366 = vmatmul.mubr.msk.bf16.gmra.mrb[4].mxu0 %vm454_vm3, %v1712_v47  ;;  %v1734_v12 = vrot.slane %v1732_v62, 1  ;;  %v1737_v16 = vrot.slane %v1735_v63, 2  ;;  %v370_v10 = vshll.u32 %v5114_v58, 16 }
  0x28   : > { %v374_v17 = vshrl.u32 %v5114_v58, 16  ;;  %4369 = vmatprep.mubr.msk.bf16.mxu0 %vm454_vm3, %v1721_v0  ;;  %v1741_v20 = vshrl.u32 %v5122_v7, 16  ;;  %v1744_v27 = vshll.u32 %v5122_v7, 16  ;;  %v378_v28 = vshll.u32 %v5125_v11, 16 }
  0x29   : > { %v365_v19 = vsel %vm305_vm2, %v360_v61, %v364_v3  ;;  %v1738_v22 = vor.u32 %v1737_v16, %v1734_v12  ;;  %v372_v29 = vrot.slane %v370_v10, 1  ;;  %v1750_v31 = vshrl.u32 %v5134_v21, 16 }
  0x2a   : > { %v1753_v32 = vshll.u32 %v5134_v21, 16  ;;  %v1730_v36 = vsel %vm1668_vm4, %v1720_v52, %v1729_v2  ;;  %v368_v37 = vor.u32 %v366_v5, %v364_v3  ;;  %v1743_v39 = vrot.slane %v1741_v20, 1  ;;  %v5166_v3 = vld [vmem:[%s4991_s25 + $0x60] sm:$0xff]   ;;  %v5171_v20 = vld [vmem:[%s4991_s25 + $0x68] sm:$0xff]  }
  0x2b   : > { %v1746_v42 = vrot.slane %v1744_v27, 2  ;;  %v376_v8 = vor.u32 %v374_v17, %v372_v29  ;;  %v380_v44 = vrot.slane %v378_v28, 1  ;;  %v1739_v45 = vsel %vm1668_vm4, %v1729_v2, %v1738_v22  ;;  %v2109_v2 = vld [vmem:[%s4991_s25 + $0x8] sm:$0xc] }
  0x2c   : > { %4218 = vmatmul.mubr.msk.bf16.gmra.mrb[8].mxu1 %vm454_vm3, %v357_v59  ;;  %v1752_v46 = vrot.slane %v1750_v31, 1  ;;  %v1755_v47 = vrot.slane %v1753_v32, 2  ;;  %v386_v48 = vshll.u32 %v5142_v33, 16  ;;  %v373_v50 = vsel %vm305_vm2, %v368_v37, %v372_v29 }
  0x2d   : > { %4221 = vmatprep.mubr.msk.bf16.mxu1 %vm454_vm3, %v365_v19  ;;  %v382_v52 = vshrl.u32 %v5125_v11, 16  ;;  %v1759_v53 = vshrl.u32 %v5147_v38, 16  ;;  %v1762_v56 = vshll.u32 %v5147_v38, 16  ;;  %v1747_v57 = vor.u32 %v1746_v42, %v1743_v39 }
  0x2e   : > { %v381_v59 = vsel %vm305_vm2, %v376_v8, %v380_v44  ;;  %v390_v61 = vshrl.u32 %v5142_v33, 16  ;;  %v394_v62 = vshll.u32 %v5152_v49, 16  ;;  %v1756_v63 = vor.u32 %v1755_v47, %v1752_v46 }
  0x2f   : > { %4370 = vmatmul.mubr.msk.bf16.gmra.mrb[8].mxu0 %vm454_vm3, %v1730_v36  ;;  %v388_v0 = vrot.slane %v386_v48, 1  ;;  %v384_v5 = vor.u32 %v382_v52, %v380_v44  ;;  %v1761_v12 = vrot.slane %v1759_v53, 1  ;;  %v1764_v16 = vrot.slane %v1762_v56, 2  ;;  %v5188_v44 = vld [vmem:[%s4991_s25 + $0x70] sm:$0xff]  }
  0x30   : > { %4373 = vmatprep.mubr.msk.bf16.mxu0 %vm454_vm3, %v1739_v45  ;;  %v1748_v10 = vsel %vm1668_vm4, %v1738_v22, %v1747_v57  ;;  %v396_v19 = vrot.slane %v394_v62, 1  ;;  %v1757_v27 = vsel %vm1668_vm4, %v1747_v57, %v1756_v63  ;;  %v3936_v28 = vcombine.low %v2109_v2, %v5013_v18  ;;  %v5209_v2 = vld [vmem:[%s4991_s25 + $0x80] sm:$0xff]  }
  0x31   : > { %v392_v17 = vor.u32 %v390_v61, %v388_v0  ;;  %v402_v29 = vshll.u32 %v5166_v3, 16  ;;  %v389_v31 = vsel %vm305_vm2, %v384_v5, %v388_v0  ;;  %v398_v32 = vshrl.u32 %v5152_v49, 16 }
  0x32   : > { %v5180_v22 = vor.u32 %v1764_v16, %v1761_v12  ;;  %v406_v37 = vshrl.u32 %v5166_v3, 16  ;;  %v410_v39 = vshll.u32 %v5171_v20, 16  ;;  %v2116_v18 = vrot.slane %v3936_v28, 2 }
  0x33   : > { %v397_v36 = vsel %vm305_vm2, %v392_v17, %v396_v19  ;;  %v2117_v42 = vrot.slane %v5020_v23, 2  ;;  %v404_v8 = vrot.slane %v402_v29, 1  ;;  %v400_v45 = vor.u32 %v398_v32, %v396_v19  ;;  %v5217_v17 = vld [vmem:[%s4991_s25 + $0x88] sm:$0xff]  }
  0x34   : > { %4222 = vmatmul.mubr.msk.bf16.gmra.mrb[12].mxu1 %vm454_vm3, %v373_v50  ;;  %v1766_v46 = vsel %vm1668_vm4, %v1756_v63, %v5180_v22  ;;  %v412_v48 = vrot.slane %v410_v39, 1  ;;  %v5194_v50 = vld [vmem:[%s4991_s25 + $0x78] sm:$0xff]   ;;  %v418_v23 = vshll.u32 %v5188_v44, 16  ;;  %v2119_v56 = vrot.slane %v5037_v34, 2  ;;  %v3993_v34 = vld [vmem:[%s5908_s1 + $0xe] sm:$0x3] }
  0x35   : > { %4225 = vmatprep.mubr.msk.bf16.mxu1 %vm454_vm3, %v381_v59  ;;  %v408_v47 = vor.u32 %v406_v37, %v404_v8  ;;  %v2118_v52 = vsel %vm2115_vm5, %v2116_v18, %v2117_v42  ;;  %v405_v53 = vsel %vm305_vm2, %v400_v45, %v404_v8  ;;  %v414_v57 = vshrl.u32 %v5171_v20, 16 }
  0x36   : > { %v422_v61 = vshrl.u32 %v5188_v44, 16  ;;  %v426_v62 = vshll.u32 %v5194_v50, 16  ;;  %v2121_v63 = vrot.slane %v5046_v41, 2  ;;  %v420_v0 = vrot.slane %v418_v23, 1 }
  0x37   : > { %4374 = vmatmul.mubr.msk.bf16.gmra.mrb[12].mxu0 %vm454_vm3, %v1748_v10  ;;  %v413_v59 = vsel %vm305_vm2, %v408_v47, %v412_v48  ;;  %v416_v5 = vor.u32 %v414_v57, %v412_v48  ;;  %v2120_v12 = vsel %vm2115_vm5, %v2117_v42, %v2119_v56  ;;  %v5221_v19 = vand.u32 %v3993_v34, %v4965_v4  ;;  %v5238_v42 = vld [vmem:[%s4991_s25 + $0x90] ss:$0 sps:$4 sm:$0x11]   ;;  %v5265_v34 = vld [vmem:[%s4991_s25 + $0x60] sm:$0xff]  }
  0x38   : > { %4377 = vmatprep.mubr.msk.bf16.mxu0 %vm454_vm3, %v1757_v27  ;;  %v424_v16 = vor.u32 %v422_v61, %v420_v0  ;;  %v428_v10 = vrot.slane %v426_v62, 1  ;;  %v2122_v41 = vsel %vm2115_vm5, %v2119_v56, %v2121_v63  ;;  %v434_v27 = vshll.u32 %v5209_v2, 16 }
  0x39   : > { %v421_v28 = vsel %vm305_vm2, %v416_v5, %v420_v0  ;;  %v2123_v29 = vrot.slane %v5059_v55, 2  ;;  %v442_v37 = vshll.u32 %v5217_v17, 16  ;;  %v2125_v39 = vrot.slane %v5072_v1, 2  ;;  %v3877_v5 = vld [vmem:[%s5908_s1 + $0x6] sm:$0x3] }
  0x3a   : > { %v429_v32 = vsel %vm305_vm2, %v424_v16, %v428_v10  ;;  %v436_v18 = vrot.slane %v434_v27, 1  ;;  %v446_v47 = vshrl.u32 %v5217_v17, 16  ;;  %v450_v48 = vshll.u32 %v5238_v42, 16  ;;  %v5284_v16 = vld [vmem:[%s4991_s25 + $0x68] sm:$0xff]  }
  0x3b   : > { %v444_v45 = vrot.slane %v442_v37, 1 }
  0x3c   : > { %4226 = vmatmul.mubr.msk.bf16.gmra.mrb[16].mxu1 %vm454_vm3, %v389_v31  ;;  %v430_v31 = vshrl.u32 %v5194_v50, 16  ;;  %v452_v57 = vrot.slane %v450_v48, 1 }
  0x3d   : > { %4229 = vmatprep.mubr.msk.bf16.mxu1 %vm454_vm3, %v397_v36  ;;  %v438_v36 = vshrl.u32 %v5209_v2, 16  ;;  %v448_v56 = vor.u32 %v446_v47, %v444_v45  ;;  %v5337_v47 = vld [vmem:[%s4991_s25 + $0x98] ss:$0 sps:$4 sm:$0x33]  }
  0x3e   : > { %v432_v55 = vor.u32 %v430_v31, %v428_v10  ;;  %v5289_v10 = vld [vmem:[%s4991_s25 + $0x70] sm:$0xff]   ;;  %v5305_v31 = vld [vmem:[%s4991_s25 + $0x80] sm:$0xff]  }
  0x3f   : > { %4378 = vmatmul.mubr.msk.bf16.gmra.mrb[16].mxu0 %vm454_vm3, %v1766_v46  ;;  %v440_v8 = vor.u32 %v438_v36, %v436_v18  ;;  %v2126_v46 = vsel %vm2115_vm5, %v2123_v29, %v2125_v39  ;;  %v453_v62 = vsel %vm305_vm2, %v448_v56, %v452_v57  ;;  %v2141_v27 = vrot.slane %v5289_v10, 2 }
  0x40   : > { %4399 = vmatprep.mubr.msk.bf16.mxu0 %vm454_vm3, %v2118_v52  ;;  %v437_v1 = vsel %vm305_vm2, %v432_v55, %v436_v18  ;;  %v2127_v52 = vrot.slane %v5090_v30, 2  ;;  %v2131_v30 = vrot.slane %v5122_v7, 2  ;;  %v2135_v7 = vrot.slane %v5147_v38, 2  ;;  %v5321_v55 = vld [vmem:[%s4991_s25 + $0x90] sm:$0xff]  }
  0x41   : > { %v445_v23 = vsel %vm305_vm2, %v440_v8, %v444_v45  ;;  %v2145_v36 = vrot.slane %v5305_v31, 2  ;;  %v2149_v8 = vrot.slane %v5321_v55, 2  ;;  %v2423_v45 = vld [vmem:[%s4991_s25 + $0x10] sm:$0xc] }
  0x44   : > { %4230 = vmatmul.mubr.msk.bf16.gmra.mrb[20].mxu1 %vm454_vm3, %v405_v53  ;;  %v2129_v53 = vrot.slane %v5109_v51, 2  ;;  %v2133_v51 = vrot.slane %v5134_v21, 2  ;;  %v5274_v21 = vand.u32 %v3877_v5, %v4965_v4 }
  0x45   : > { %4233 = vmatprep.mubr.msk.bf16.mxu1 %vm454_vm3, %v413_v59  ;;  %v2128_v59 = vsel %vm2115_vm5, %v2125_v39, %v2127_v52  ;;  %v5317_v39 = vld [vmem:[%s4991_s25 + $0x88] sm:$0xff]  }
  0x46   : > { %v2130_v61 = vsel %vm2115_vm5, %v2127_v52, %v2129_v53  ;;  %v2134_v0 = vsel %vm2115_vm5, %v2131_v30, %v2133_v51 }
  0x47   : > { %4400 = vmatmul.mubr.msk.bf16.vlgmr.msra.gmra.mrb[0].mxu0 %vm454_vm3, %v2120_v12  ;;  %v2136_v12 = vsel %vm2115_vm5, %v2133_v51, %v2135_v7 }
  0x48   : > { %4436 = vmatpush3.bf16.msra.mxu0 %v5029_v26  ;;  %4403 = vmatprep.mubr.msk.bf16.mxu0 %vm454_vm3, %v2122_v41  ;;  %v2124_v26 = vsel %vm2115_vm5, %v2121_v63, %v2123_v29  ;;  %v2132_v63 = vsel %vm2115_vm5, %v2129_v53, %v2131_v30  ;;  %v2139_v41 = vrot.slane %v5284_v16, 2  ;;  %v2151_v53 = vrot.slane %v5337_v47, 2  ;;  %v5361_v30 = vld [vmem:[%s4991_s25 + $0x28] sm:$0xff]  }
  0x49   : > { %4473 = vmatprep.subr.bf16.mxu0 %v5221_v19 }
  0x4a   : > { %v2142_v29 = vsel %vm2115_vm5, %v2139_v41, %v2141_v27 }
  0x4c   : > { %4234 = vmatmul.mubr.msk.bf16.gmra.mrb[24].mxu1 %vm454_vm3, %v421_v28  ;;  %v5301_v28 = vld [vmem:[%s4991_s25 + $0x78] sm:$0xff]  }
  0x4d   : > { %4237 = vmatprep.mubr.msk.bf16.mxu1 %vm454_vm3, %v429_v32  ;;  %v2143_v32 = vrot.slane %v5301_v28, 2 }
  0x4f   : > { %4404 = vmatmul.mubr.msk.bf16.gmra.mrb[4].mxu0 %vm454_vm3, %v2124_v26  ;;  %v2144_v37 = vsel %vm2115_vm5, %v2141_v27, %v2143_v32  ;;  %v2146_v18 = vsel %vm2115_vm5, %v2143_v32, %v2145_v36  ;;  %v2147_v26 = vrot.slane %v5317_v39, 2  ;;  %v909_v32 = vld [vmem:[%s4991_s25] sm:$0xe] }
  0x50   : > { %4407 = vmatprep.mubr.msk.bf16.mxu0 %vm454_vm3, %v2126_v46  ;;  %v5331_v46 = vld [vmem:[%s4991_s25 + $0x14] sm:$0xf] }
  0x51   : > { %v2150_v48 = vsel %vm2115_vm5, %v2147_v26, %v2149_v8  ;;  %v5341_v52 = vcombine.low %v2423_v45, %v5331_v46 }
  0x53   : > { %v2555_v56 = vrot.slane %v5341_v52, 2 }
  0x54   : > { %4238 = vmatmul.mubr.msk.bf16.gmra.mrb[28].mxu1 %vm454_vm3, %v437_v1  ;;  %v2148_v1 = vsel %vm2115_vm5, %v2145_v36, %v2147_v26 }
  0x55   : > { %4241 = vmatprep.mubr.msk.bf16.mxu1 %vm454_vm3, %v445_v23  ;;  %v5344_v23 = vld [vmem:[%s4991_s25 + $0x18] sm:$0xff]  }
  0x56   : > { %v2556_v57 = vrot.slane %v5344_v23, 2 }
  0x57   : > { %4408 = vmatmul.mubr.msk.bf16.gmra.mrb[8].mxu0 %vm454_vm3, %v2128_v59  ;;  %v2152_v59 = vsel %vm2115_vm5, %v2149_v8, %v2151_v53  ;;  %v5415_v8 = vld [vmem:[%s4991_s25 + $0x50] sm:$0xff]  }
  0x58   : > { %4411 = vmatprep.mubr.msk.bf16.mxu0 %vm454_vm3, %v2130_v61  ;;  %v5357_v61 = vld [vmem:[%s4991_s25 + $0x20] sm:$0xff]   ;;  %v2570_v53 = vrot.slane %v5415_v8, 2 }
  0x59   : > { %v2558_v51 = vrot.slane %v5357_v61, 2 }
  0x5b   : > { %v2559_v5 = vsel %vm2115_vm5, %v2556_v57, %v2558_v51 }
  0x5c   : > { %4242 = vmatmul.mubr.msk.bf16.gmra.mrb[32].mxu1 %vm454_vm3, %v453_v62  ;;  %v2557_v62 = vsel %vm2115_vm5, %v2555_v56, %v2556_v57 }
  0x5d   : > { %4247 = vmatprep.mubr.msk.bf16.mxu1 %vm454_vm3, %v5003_v14  ;;  %v2137_v14 = vrot.slane %v5265_v34, 2 }
  0x5f   : > { %4412 = vmatmul.mubr.msk.bf16.gmra.mrb[12].mxu0 %vm454_vm3, %v2132_v63  ;;  %v2138_v38 = vsel %vm2115_vm5, %v2135_v7, %v2137_v14  ;;  %v2560_v63 = vrot.slane %v5361_v30, 2  ;;  %v5376_v7 = vld [vmem:[%s4991_s25 + $0x30] sm:$0xff]  }
  0x60   : > { %4415 = vmatprep.mubr.msk.bf16.mxu0 %vm454_vm3, %v2134_v0  ;;  %v4013_v0 = vld [vmem:[%s5908_s1 + $0x10] sm:$0x3] }
  0x64   : > { %4248 = vmatmul.mubr.msk.bf16.vlgmr.msra.gmra.mrb[0].mxu1 %vm454_vm3, %v5006_v15 }
  0x65   : > { %4251 = vmatprep.mubr.msk.bf16.mxu1 %vm454_vm3, %v5023_v24  ;;  %4284 = vmatpush3.bf16.msra.mxu1 %v5040_v35  ;;  %v2140_v35 = vsel %vm2115_vm5, %v2137_v14, %v2139_v41  ;;  %v2561_v14 = vsel %vm2115_vm5, %v2558_v51, %v2560_v63  ;;  %v2562_v41 = vrot.slane %v5376_v7, 2  ;;  %v921_v51 = vrot.slane %v5043_v40, 1 }
  0x66   : > { %4321 = vmatprep.subr.bf16.mxu1 %v5274_v21 }
  0x67   : > { %4416 = vmatmul.mubr.msk.bf16.gmra.mrb[16].mxu0 %vm454_vm3, %v2136_v12  ;;  %v5380_v12 = vld [vmem:[%s4991_s25 + $0x38] sm:$0xff]  }
  0x68   : > { %4419 = vmatprep.mubr.msk.bf16.mxu0 %vm454_vm3, %v2138_v38  ;;  %v5383_v38 = vand.u32 %v4013_v0, %v4965_v4  ;;  %v2564_v27 = vrot.slane %v5380_v12, 2  ;;  %v2563_v4 = vsel %vm2115_vm5, %v2560_v63, %v2562_v41  ;;  %v5438_v0 = vld [vmem:[%s4991_s25 + $0x68] sm:$0xff]  }
  0x6c   : > { %4252 = vmatmul.mubr.msk.bf16.gmra.mrb[4].mxu1 %vm454_vm3, %v5043_v40  ;;  %v923_v40 = vrot.slane %v5056_v54, 1 }
  0x6d   : > { %4255 = vmatprep.mubr.msk.bf16.mxu1 %vm454_vm3, %v5056_v54 }
  0x6e   : > { %v924_v54 = vsel %vm915_vm6, %v921_v51, %v923_v40 }
  0x6f   : > { %4420 = vmatmul.mubr.msk.bf16.gmra.mrb[20].mxu0 %vm454_vm3, %v2140_v35  ;;  %v5397_v35 = vld [vmem:[%s4991_s25 + $0x40] sm:$0xff]  }
  0x70   : > { %4423 = vmatprep.mubr.msk.bf16.mxu0 %vm454_vm3, %v2142_v29  ;;  %v5401_v29 = vld [vmem:[%s4991_s25 + $0x48] sm:$0xff]   ;;  %v2566_v36 = vrot.slane %v5397_v35, 2 }
  0x72   : > { %v2567_v26 = vsel %vm2115_vm5, %v2564_v27, %v2566_v36 }
  0x74   : > { %4256 = vmatmul.mubr.msk.bf16.gmra.mrb[8].mxu1 %vm454_vm3, %v5065_v60 }
  0x75   : > { %4259 = vmatprep.mubr.msk.bf16.mxu1 %vm454_vm3, %v5077_v9 }
  0x77   : > { %4424 = vmatmul.mubr.msk.bf16.gmra.mrb[24].mxu0 %vm454_vm3, %v2144_v37  ;;  %v3858_v37 = vcombine.low %v909_v32, %v4998_v13  ;;  %v5420_v13 = vld [vmem:[%s4991_s25 + $0x58] sm:$0xff]  }
  0x78   : > { %4427 = vmatprep.mubr.msk.bf16.mxu0 %vm454_vm3, %v2146_v18  ;;  %v2568_v18 = vrot.slane %v5401_v29, 2  ;;  %v2572_v57 = vrot.slane %v5420_v13, 2 }
  0x79   : > { %v916_v45 = vrot.slane %v3858_v37, 1 }
  0x7a   : > { %v2573_v63 = vsel %vm2115_vm5, %v2570_v53, %v2572_v57 }
  0x7c   : > { %4260 = vmatmul.mubr.msk.bf16.gmra.mrb[12].mxu1 %vm454_vm3, %v5099_v43 }
  0x7d   : > { %4263 = vmatprep.mubr.msk.bf16.mxu1 %vm454_vm3, %v5114_v58 }
  0x7f   : > { %4428 = vmatmul.mubr.msk.bf16.gmra.mrb[28].mxu0 %vm454_vm3, %v2148_v1  ;;  %v917_v1 = vrot.slane %v5006_v15, 1  ;;  %v919_v15 = vrot.slane %v5023_v24, 1 }
  0x80   : > { %4431 = vmatprep.mubr.msk.bf16.mxu0 %vm454_vm3, %v2150_v48  ;;  %v2569_v48 = vsel %vm2115_vm5, %v2566_v36, %v2568_v18  ;;  %v5458_v36 = vld [vmem:[%s4991_s25 + $0x78] sm:$0xff]  }
  0x81   : > { %v918_v56 = vsel %vm915_vm6, %v916_v45, %v917_v1  ;;  %v5471_v45 = vld [vmem:[%s4991_s25 + $0x80] sm:$0xff]  }
  0x84   : > { %4264 = vmatmul.mubr.msk.bf16.gmra.mrb[16].mxu1 %vm454_vm3, %v5125_v11 }
  0x85   : > { %4267 = vmatprep.mubr.msk.bf16.mxu1 %vm454_vm3, %v5142_v33 }
  0x87   : > { %4432 = vmatmul.mubr.msk.bf16.gmra.mrb[32].mxu0 %vm454_vm3, %v2152_v59  ;;  %v2571_v59 = vsel %vm2115_vm5, %v2568_v18, %v2570_v53  ;;  %v2580_v18 = vrot.slane %v5458_v36, 2  ;;  %v5476_v53 = vld [vmem:[%s4991_s25 + $0x88] sm:$0xff]  }
  0x88   : > { %4437 = vmatprep.mubr.msk.bf16.mxu0 %vm454_vm3, %v2557_v62  ;;  %v5433_v62 = vld [vmem:[%s4991_s25 + $0x60] sm:$0xff]  }
  0x89   : > { %v2574_v24 = vrot.slane %v5433_v62, 2 }
  0x8c   : > { %4268 = vmatmul.mubr.msk.bf16.gmra.mrb[20].mxu1 %vm454_vm3, %v5152_v49 }
  0x8d   : > { %4271 = vmatprep.mubr.msk.bf16.mxu1 %vm454_vm3, %v5166_v3 }
  0x8f   : > { %4438 = vmatmul.mubr.msk.bf16.vlgmr.msra.gmra.mrb[0].mxu0 %vm454_vm3, %v2559_v5  ;;  %v920_v5 = vsel %vm915_vm6, %v917_v1, %v919_v15  ;;  %v929_v1 = vrot.slane %v5099_v43, 1  ;;  %v931_v43 = vrot.slane %v5114_v58, 1 }
  0x90   : > { %4474 = vmatpush3.bf16.msra.mxu0 %v5221_v19  ;;  %4441 = vmatprep.mubr.msk.bf16.mxu0 %vm454_vm3, %v2561_v14  ;;  %v2565_v19 = vsel %vm2115_vm5, %v2562_v41, %v2564_v27  ;;  %v922_v14 = vsel %vm915_vm6, %v919_v15, %v921_v51  ;;  %v2576_v41 = vrot.slane %v5438_v0, 2  ;;  %v2575_v27 = vsel %vm2115_vm5, %v2572_v57, %v2574_v24  ;;  %v5489_v51 = vld [vmem:[%s4991_s25 + $0x90] sm:$0xff]  }
  0x91   : > { %4511 = vmatprep.subr.bf16.mxu0 %v5383_v38  ;;  %v2584_v15 = vrot.slane %v5476_v53, 2 }
  0x92   : > { %v2577_v32 = vsel %vm2115_vm5, %v2574_v24, %v2576_v41 }
  0x94   : > { %4272 = vmatmul.mubr.msk.bf16.gmra.mrb[24].mxu1 %vm454_vm3, %v5171_v20 }
  0x95   : > { %4275 = vmatprep.mubr.msk.bf16.mxu1 %vm454_vm3, %v5188_v44 }
  0x97   : > { %4442 = vmatmul.mubr.msk.bf16.gmra.mrb[4].mxu0 %vm454_vm3, %v2563_v4  ;;  %v5452_v4 = vld [vmem:[%s4991_s25 + $0x70] sm:$0xff]  }
  0x98   : > { %4445 = vmatprep.mubr.msk.bf16.mxu0 %vm454_vm3, %v2565_v19  ;;  %v925_v19 = vrot.slane %v5065_v60, 1  ;;  %v927_v60 = vrot.slane %v5077_v9, 1  ;;  %v2582_v9 = vrot.slane %v5471_v45, 2 }
  0x9a   : > { %v926_v37 = vsel %vm915_vm6, %v923_v40, %v925_v19  ;;  %v930_v57 = vsel %vm915_vm6, %v927_v60, %v929_v1  ;;  %v2585_v24 = vsel %vm2115_vm5, %v2582_v9, %v2584_v15 }
  0x9c   : > { %4276 = vmatmul.mubr.msk.bf16.gmra.mrb[28].mxu1 %vm454_vm3, %v5194_v50 }
  0x9d   : > { %4279 = vmatprep.mubr.msk.bf16.mxu1 %vm454_vm3, %v5209_v2 }
  0x9f   : > { %4446 = vmatmul.mubr.msk.bf16.gmra.mrb[8].mxu0 %vm454_vm3, %v2567_v26 }
  0xa0   : > { %4449 = vmatprep.mubr.msk.bf16.mxu0 %vm454_vm3, %v2569_v48 }
  0xa4   : > { %4280 = vmatmul.mubr.msk.bf16.gmra.mrb[32].mxu1 %vm454_vm3, %v5217_v17 }
  0xa5   : > { %4285 = vmatprep.mubr.msk.bf16.mxu1 %vm454_vm3, %v918_v56  ;;  %v928_v56 = vsel %vm915_vm6, %v925_v19, %v927_v60  ;;  %v2878_v19 = vshrl.u32 %v5344_v23, 16  ;;  %v937_v60 = vrot.slane %v5152_v49, 1  ;;  %v2896_v49 = vshrl.u32 %v5361_v30, 16 }
  0xa7   : > { %4450 = vmatmul.mubr.msk.bf16.gmra.mrb[12].mxu0 %vm454_vm3, %v2571_v59  ;;  %v2583_v59 = vsel %vm2115_vm5, %v2580_v18, %v2582_v9 }
  0xa8   : > { %4453 = vmatprep.mubr.msk.bf16.mxu0 %vm454_vm3, %v2573_v63  ;;  %v933_v63 = vrot.slane %v5125_v11, 1  ;;  %v2873_v11 = vshll.u32 %v5341_v52, 16 }
  0xaa   : > { %v934_v58 = vsel %vm915_vm6, %v931_v43, %v933_v63 }
  0xac   : > { %4286 = vmatmul.mubr.msk.bf16.vlgmr.msra.gmra.mrb[0].mxu1 %vm454_vm3, %v920_v5  ;;  %v5493_v5 = vld [vmem:[%s4991_s25 + $0x98] sm:$0xff]  }
  0xad   : > { %4289 = vmatprep.mubr.msk.bf16.mxu1 %vm454_vm3, %v922_v14  ;;  %4322 = vmatpush3.bf16.msra.mxu1 %v5274_v21  ;;  %v2578_v21 = vrot.slane %v5452_v4, 2  ;;  %v932_v14 = vsel %vm915_vm6, %v929_v1, %v931_v43  ;;  %v2588_v40 = vrot.slane %v5493_v5, 2  ;;  %v2875_v1 = vrot.slane %v2873_v11, 3 }
  0xae   : > { %4549 = vmatprep.subr.bf16.mxu1 %v4973_v6 }
  0xaf   : > { %4454 = vmatmul.mubr.msk.bf16.gmra.mrb[16].mxu0 %vm454_vm3, %v2575_v27  ;;  %v2579_v26 = vsel %vm2115_vm5, %v2576_v41, %v2578_v21  ;;  %v2581_v48 = vsel %vm2115_vm5, %v2578_v21, %v2580_v18  ;;  %v2586_v41 = vrot.slane %v5489_v51, 2  ;;  %v2870_v27 = vshrl.u32 %v5341_v52, 16  ;;  %v4908_v18 = vld [vmem:[%s4991_s25 + $0xa0] ss:$0 sps:$4 sm:$0x33]  }
  0xb0   : > { %4457 = vmatprep.mubr.msk.bf16.mxu0 %vm454_vm3, %v2577_v32  ;;  %v2881_v32 = vshll.u32 %v5344_v23, 16  ;;  %v2880_v52 = vrot.slane %v2878_v19, 2  ;;  %v2590_v9 = vrot.slane %v4908_v18, 2  ;;  %v2898_v19 = vrot.slane %v2896_v49, 2 }
  0xb1   : > { %v2587_v21 = vsel %vm2115_vm5, %v2584_v15, %v2586_v41  ;;  %v2890_v15 = vshll.u32 %v5357_v61, 16  ;;  %v2926_v49 = vshll.u32 %v5397_v35, 16 }
  0xb4   : > { %4290 = vmatmul.mubr.msk.bf16.gmra.mrb[4].mxu1 %vm454_vm3, %v924_v54  ;;  %v935_v54 = vrot.slane %v5142_v33, 1 }
  0xb5   : > { %4293 = vmatprep.mubr.msk.bf16.mxu1 %vm454_vm3, %v926_v37  ;;  %v2589_v37 = vsel %vm2115_vm5, %v2586_v41, %v2588_v40 }
  0xb6   : > { %v938_v33 = vsel %vm915_vm6, %v935_v54, %v937_v60 }
  0xb7   : > { %4458 = vmatmul.mubr.msk.bf16.gmra.mrb[20].mxu0 %vm454_vm3, %v2579_v26  ;;  %v2872_v26 = vrot.slane %v2870_v27, 2  ;;  %v941_v27 = vrot.slane %v5171_v20, 1  ;;  %v2914_v20 = vshrl.u32 %v5380_v12, 16 }
  0xb8   : > { %4461 = vmatprep.mubr.msk.bf16.mxu0 %vm454_vm3, %v2581_v48  ;;  %v2883_v48 = vrot.slane %v2881_v32, 3 }
  0xb9   : > { %v2876_v43 = vor.u32 %v2875_v1, %v2872_v26  ;;  %v2917_v26 = vshll.u32 %v5380_v12, 16 }
  0xbc   : > { %4294 = vmatmul.mubr.msk.bf16.gmra.mrb[8].mxu1 %vm454_vm3, %v928_v56  ;;  %v936_v56 = vsel %vm915_vm6, %v933_v63, %v935_v54  ;;  %v939_v63 = vrot.slane %v5166_v3, 1  ;;  %v2905_v3 = vshrl.u32 %v5376_v7, 16 }
  0xbd   : > { %4297 = vmatprep.mubr.msk.bf16.mxu1 %vm454_vm3, %v930_v57  ;;  %v2887_v57 = vshrl.u32 %v5357_v61, 16 }
  0xbe   : > { %v940_v54 = vsel %vm915_vm6, %v937_v60, %v939_v63  ;;  %v943_v60 = vrot.slane %v5188_v44, 1 }
  0xbf   : > { %4462 = vmatmul.mubr.msk.bf16.gmra.mrb[24].mxu0 %vm454_vm3, %v2583_v59  ;;  %v2884_v59 = vor.u32 %v2883_v48, %v2880_v52  ;;  %v2889_v41 = vrot.slane %v2887_v57, 2  ;;  %v2907_v52 = vrot.slane %v2905_v3, 2  ;;  %v2919_v57 = vrot.slane %v2917_v26, 3 }
  0xc0   : > { %4465 = vmatprep.mubr.msk.bf16.mxu0 %vm454_vm3, %v2585_v24  ;;  %v2899_v24 = vshll.u32 %v5361_v30, 16  ;;  %v2944_v3 = vshll.u32 %v5415_v8, 16 }
  0xc1   : > { %v2885_v11 = vsel %vm2868_vm7, %v2876_v43, %v2884_v59 }
  0xc2   : > { %v2901_v32 = vrot.slane %v2899_v24, 3  ;;  %v2932_v24 = vshrl.u32 %v5401_v29, 16 }
  0xc4   : > { %4298 = vmatmul.mubr.msk.bf16.gmra.mrb[12].mxu1 %vm454_vm3, %v932_v14  ;;  %v2591_v14 = vsel %vm2115_vm5, %v2588_v40, %v2590_v9  ;;  %v2908_v40 = vshll.u32 %v5376_v7, 16  ;;  %v2902_v18 = vor.u32 %v2901_v32, %v2898_v19  ;;  %v2934_v19 = vrot.slane %v2932_v24, 2  ;;  %v4913_v24 = vld [vmem:[%s4991_s25 + $0x18] sm:$0xff]  }
  0xc5   : > { %4301 = vmatprep.mubr.msk.bf16.mxu1 %vm454_vm3, %v934_v58  ;;  %v2892_v58 = vrot.slane %v2890_v15, 3  ;;  %v944_v15 = vsel %vm915_vm6, %v941_v27, %v943_v60 }
  0xc6   : > { %v2910_v48 = vrot.slane %v2908_v40, 3 }
  0xc7   : > { %4466 = vmatmul.mubr.msk.bf16.gmra.mrb[28].mxu0 %vm454_vm3, %v2587_v21  ;;  %v2893_v21 = vor.u32 %v2892_v58, %v2889_v41  ;;  %v2928_v58 = vrot.slane %v2926_v49, 3  ;;  %v2968_v49 = vshrl.u32 %v5438_v0, 16 }
  0xc8   : > { %4469 = vmatprep.mubr.msk.bf16.mxu0 %vm454_vm3, %v2589_v37  ;;  %v942_v37 = vsel %vm915_vm6, %v939_v63, %v941_v27  ;;  %v2911_v43 = vor.u32 %v2910_v48, %v2907_v52  ;;  %v2935_v63 = vshll.u32 %v5401_v29, 16  ;;  %v949_v27 = vrot.slane %v5217_v17, 1  ;;  %v4912_v48 = vld [vmem:[%s4991_s25 + $0x10] sm:$0xff]  }
  0xc9   : > { %v2894_v1 = vsel %vm2868_vm7, %v2884_v59, %v2893_v21  ;;  %v2903_v9 = vsel %vm2868_vm7, %v2893_v21, %v2902_v18  ;;  %v2923_v59 = vshrl.u32 %v5397_v35, 16  ;;  %v2941_v21 = vshrl.u32 %v5415_v8, 16 }
  0xca   : > { %v2937_v32 = vrot.slane %v2935_v63, 3  ;;  %v2950_v17 = vshrl.u32 %v5420_v13, 16  ;;  %v1355_v52 = vrot.slane %v5026_v25, 1  ;;  %v2962_v25 = vshll.u32 %v5433_v62, 16 }
  0xcb   : > { %v2925_v41 = vrot.slane %v2923_v59, 2  ;;  %v2943_v26 = vrot.slane %v2941_v21, 2  ;;  %v1358_v63 = vrot.slane %v4913_v24, 1 }
  0xcc   : > { %4302 = vmatmul.mubr.msk.bf16.gmra.mrb[16].mxu1 %vm454_vm3, %v936_v56  ;;  %v945_v56 = vrot.slane %v5194_v50, 1  ;;  %v2938_v40 = vor.u32 %v2937_v32, %v2934_v19  ;;  %v2970_v19 = vrot.slane %v2968_v49, 2  ;;  %v3007_v49 = vshll.u32 %v5476_v53, 16 }
  0xcd   : > { %4305 = vmatprep.mubr.msk.bf16.mxu1 %vm454_vm3, %v938_v33  ;;  %v2916_v33 = vrot.slane %v2914_v20, 2  ;;  %v951_v20 = vrot.slane %v5238_v42, 1 }
  0xce   : > { %v946_v44 = vsel %vm915_vm6, %v943_v60, %v945_v56 }
  0xcf   : > { %4470 = vmatmul.mubr.msk.bf16.gmra.mrb[32].mxu0 %vm454_vm3, %v2591_v14  ;;  %v2920_v50 = vor.u32 %v2919_v57, %v2916_v33  ;;  %v2912_v14 = vsel %vm2868_vm7, %v2902_v18, %v2911_v43  ;;  %v2953_v18 = vshll.u32 %v5420_v13, 16  ;;  %v2952_v33 = vrot.slane %v2950_v17, 2 }
  0xd0   : > { %4475 = vmatprep.mubr.msk.bf16.mxu0 %vm454_vm3, %v2885_v11  ;;  %v2986_v17 = vshrl.u32 %v5458_v36, 16 }
  0xd1   : > { %v2921_v11 = vsel %vm2868_vm7, %v2911_v43, %v2920_v50  ;;  %v2955_v57 = vrot.slane %v2953_v18, 3  ;;  %v2989_v18 = vshll.u32 %v5458_v36, 16 }
  0xd3   : > { %v2956_v59 = vor.u32 %v2955_v57, %v2952_v33  ;;  %v2988_v33 = vrot.slane %v2986_v17, 2  ;;  %v2991_v57 = vrot.slane %v2989_v18, 3  ;;  %v3025_v17 = vshll.u32 %v5493_v5, 16  ;;  %v4919_v18 = vld [vmem:[%s4991_s25 + $0x48] sm:$0xff]  }
  0xd4   : > { %4306 = vmatmul.mubr.msk.bf16.gmra.mrb[20].mxu1 %vm454_vm3, %v940_v54 }
  0xd5   : > { %4309 = vmatprep.mubr.msk.bf16.mxu1 %vm454_vm3, %v942_v37 }
  0xd7   : > { %4476 = vmatmul.mubr.msk.bf16.vlgmr.msra.gmra.mrb[0].mxu0 %vm454_vm3, %v2894_v1  ;;  %v2946_v1 = vrot.slane %v2944_v3, 3  ;;  %v2980_v3 = vshll.u32 %v5452_v4, 16 }
  0xd8   : > { %4512 = vmatpush3.bf16.msra.mxu0 %v5383_v38  ;;  %4479 = vmatprep.mubr.msk.bf16.mxu0 %vm454_vm3, %v2903_v9  ;;  %v947_v38 = vrot.slane %v5209_v2, 1  ;;  %v2929_v2 = vor.u32 %v2928_v58, %v2925_v41  ;;  %v2964_v41 = vrot.slane %v2962_v25, 3  ;;  %v4914_v58 = vld [vmem:[%s4991_s25 + $0x20] sm:$0xff]   ;;  %v2992_v25 = vor.u32 %v2991_v57, %v2988_v33 }
  0xd9   : > { %v2947_v42 = vor.u32 %v2946_v1, %v2943_v26  ;;  %v3027_v57 = vrot.slane %v3025_v17, 3  ;;  %v3321_v17 = vrot.slane %v5361_v30, 3  ;;  %v3323_v30 = vrot.slane %v5376_v7, 3 }
  0xda   : > { %v948_v54 = vsel %vm915_vm6, %v945_v56, %v947_v38  ;;  %v950_v37 = vsel %vm915_vm6, %v947_v38, %v949_v27  ;;  %v2930_v60 = vsel %vm2868_vm7, %v2920_v50, %v2929_v2  ;;  %v1356_v56 = vrot.slane %v4912_v48, 1  ;;  %v4916_v48 = vld [vmem:[%s4991_s25 + $0x30] sm:$0xff]  }
  0xdb   : > { %v2939_v9 = vsel %vm2868_vm7, %v2929_v2, %v2938_v40  ;;  %v2971_v50 = vshll.u32 %v5438_v0, 16  ;;  %v2948_v38 = vsel %vm2868_vm7, %v2938_v40, %v2947_v42 }
  0xdc   : > { %4310 = vmatmul.mubr.msk.bf16.gmra.mrb[24].mxu1 %vm454_vm3, %v944_v15  ;;  %v952_v15 = vsel %vm915_vm6, %v949_v27, %v951_v20  ;;  %v1357_v43 = vsel %vm915_vm6, %v1355_v52, %v1356_v56  ;;  %v1360_v27 = vrot.slane %v4914_v58, 1  ;;  %v4915_v20 = vld [vmem:[%s4991_s25 + $0x28] sm:$0xff]   ;;  %v2982_v52 = vrot.slane %v2980_v3, 3 }
  0xdd   : > { %4313 = vmatprep.mubr.msk.bf16.mxu1 %vm454_vm3, %v946_v44  ;;  %v2959_v44 = vshrl.u32 %v5433_v62, 16  ;;  %v2973_v32 = vrot.slane %v2971_v50, 3  ;;  %v1362_v26 = vrot.slane %v4915_v20, 1  ;;  %v4917_v50 = vld [vmem:[%s4991_s25 + $0x38] sm:$0xff]   ;;  %v1370_v20 = vrot.slane %v4919_v18, 1 }
  0xde   : > { %v1361_v2 = vsel %vm915_vm6, %v1358_v63, %v1360_v27  ;;  %v1366_v24 = vrot.slane %v4917_v50, 1  ;;  %v1382_v18 = vrot.slane %v5301_v28, 1 }
  0xdf   : > { %4480 = vmatmul.mubr.msk.bf16.gmra.mrb[4].mxu0 %vm454_vm3, %v2912_v14  ;;  %v2961_v14 = vrot.slane %v2959_v44, 2  ;;  %v2974_v40 = vor.u32 %v2973_v32, %v2970_v19  ;;  %v2998_v44 = vshll.u32 %v5471_v45, 16  ;;  %v3009_v19 = vrot.slane %v3007_v49, 3  ;;  %v4921_v49 = vld [vmem:[%s4991_s25 + $0x58] sm:$0xff]  }
  0xe0   : > { %4483 = vmatprep.mubr.msk.bf16.mxu0 %vm454_vm3, %v2921_v11  ;;  %v2957_v11 = vsel %vm2868_vm7, %v2947_v42, %v2956_v59  ;;  %v1374_v50 = vrot.slane %v4921_v49, 1  ;;  %v1777_v49 = vshrl.u32 %v5284_v16, 16 }
  0xe1   : > { %v2965_v21 = vor.u32 %v2964_v41, %v2961_v14  ;;  %v3000_v14 = vrot.slane %v2998_v44, 3  ;;  %v4918_v41 = vld [vmem:[%s4991_s25 + $0x40] sm:$0xff]  }
  0xe2   : > { %v1368_v58 = vrot.slane %v4918_v41, 1 }
  0xe4   : > { %4314 = vmatmul.mubr.msk.bf16.gmra.mrb[28].mxu1 %vm454_vm3, %v948_v54  ;;  %v1359_v54 = vsel %vm915_vm6, %v1356_v56, %v1358_v63  ;;  %v1364_v56 = vrot.slane %v4916_v48, 1 }
  0xe5   : > { %4317 = vmatprep.mubr.msk.bf16.mxu1 %vm454_vm3, %v950_v37  ;;  %v2977_v37 = vshrl.u32 %v5452_v4, 16 }
  0xe6   : > { %v1367_v32 = vsel %vm915_vm6, %v1364_v56, %v1366_v24 }
  0xe7   : > { %4484 = vmatmul.mubr.msk.bf16.gmra.mrb[8].mxu0 %vm454_vm3, %v2930_v60  ;;  %v2966_v60 = vsel %vm2868_vm7, %v2956_v59, %v2965_v21  ;;  %v2979_v1 = vrot.slane %v2977_v37, 2  ;;  %v3004_v59 = vshrl.u32 %v5476_v53, 16  ;;  %v3016_v37 = vshll.u32 %v5489_v51, 16 }
  0xe8   : > { %4487 = vmatprep.mubr.msk.bf16.mxu0 %vm454_vm3, %v2939_v9  ;;  %v2975_v9 = vsel %vm2868_vm7, %v2965_v21, %v2974_v40  ;;  %v1369_v21 = vsel %vm915_vm6, %v1366_v24, %v1368_v58 }
  0xe9   : > { %v2983_v42 = vor.u32 %v2982_v52, %v2979_v1  ;;  %v3018_v1 = vrot.slane %v3016_v37, 3  ;;  %v4920_v52 = vld [vmem:[%s4991_s25 + $0x50] sm:$0xff]  }
  0xea   : > { %v1372_v48 = vrot.slane %v4920_v52, 1  ;;  %v3325_v52 = vrot.slane %v5380_v12, 3 }
  0xeb   : > { %v2984_v63 = vsel %vm2868_vm7, %v2974_v40, %v2983_v42  ;;  %v3022_v40 = vshrl.u32 %v5493_v5, 16 }
  0xec   : > { %4318 = vmatmul.mubr.msk.bf16.gmra.mrb[32].mxu1 %vm454_vm3, %v952_v15  ;;  %v1363_v15 = vsel %vm915_vm6, %v1360_v27, %v1362_v26  ;;  %v2993_v27 = vsel %vm2868_vm7, %v2983_v42, %v2992_v25  ;;  %v3326_v7 = vsel %vm3315_vm8, %v3323_v30, %v3325_v52 }
  0xed   : > { %4323 = vmatprep.mubr.msk.bf16.mxu1 %vm454_vm3, %v1357_v43  ;;  %v2995_v43 = vshrl.u32 %v5471_v45, 16  ;;  %v3024_v33 = vrot.slane %v3022_v40, 2 }
  0xef   : > { %4488 = vmatmul.mubr.msk.bf16.gmra.mrb[12].mxu0 %vm454_vm3, %v2948_v38  ;;  %v2997_v38 = vrot.slane %v2995_v43, 2 }
  0xf0   : > { %4491 = vmatprep.mubr.msk.bf16.mxu0 %vm454_vm3, %v2957_v11  ;;  %v3006_v11 = vrot.slane %v3004_v59, 2  ;;  %v3309_v59 = vld [vmem:[%s4991_s25 + $0x10] sm:$0x8] }
  0xf2   : > { %v3010_v3 = vor.u32 %v3009_v19, %v3006_v11 }
  0xf4   : > { %4324 = vmatmul.mubr.msk.bf16.vlgmr.msra.gmra.mrb[0].mxu1 %vm454_vm3, %v1359_v54  ;;  %v3001_v54 = vor.u32 %v3000_v14, %v2997_v38  ;;  %v1376_v14 = vrot.slane %v5265_v34, 1 }
  0xf5   : > { %4327 = vmatprep.mubr.msk.bf16.mxu1 %vm454_vm3, %v1361_v2  ;;  %4550 = vmatpush3.bf16.msra.mxu1 %v4973_v6  ;;  %v1365_v6 = vsel %vm915_vm6, %v1362_v26, %v1364_v56  ;;  %v3013_v2 = vshrl.u32 %v5489_v51, 16  ;;  %v5628_v56 = vld [vmem:[%s4991_s25 + $0xa0] ss:$0 sps:$4 sm:$0x77]  }
  0xf6   : > { %v3002_v26 = vsel %vm2868_vm7, %v2992_v25, %v3001_v54  ;;  %v3031_v43 = vshrl.u32 %v5628_v56, 16  ;;  %v3034_v44 = vshll.u32 %v5628_v56, 16  ;;  %v3028_v25 = vor.u32 %v3027_v57, %v3024_v33 }
  0xf7   : > { %4492 = vmatmul.mubr.msk.bf16.gmra.mrb[16].mxu0 %vm454_vm3, %v2966_v60  ;;  %v3015_v60 = vrot.slane %v3013_v2, 2  ;;  %v1377_v19 = vsel %vm915_vm6, %v1374_v50, %v1376_v14  ;;  %v1380_v2 = vrot.slane %v5289_v10, 1  ;;  %v1388_v33 = vrot.slane %v5321_v55, 1 }
  0xf8   : > { %4495 = vmatprep.mubr.msk.bf16.mxu0 %vm454_vm3, %v2975_v9  ;;  %v3011_v9 = vsel %vm2868_vm7, %v3001_v54, %v3010_v3  ;;  %v3036_v38 = vrot.slane %v3034_v44, 3  ;;  %v3317_v54 = vrot.slane %v5344_v23, 3  ;;  %v3319_v23 = vrot.slane %v5357_v61, 3 }
  0xf9   : > { %v3019_v42 = vor.u32 %v3018_v1, %v3015_v60  ;;  %v1383_v61 = vsel %vm915_vm6, %v1380_v2, %v1382_v18  ;;  %v1768_v57 = vshrl.u32 %v5265_v34, 16 }
  0xfa   : > { %v3322_v60 = vsel %vm3315_vm8, %v3319_v23, %v3321_v17 }
  0xfb   : > { %v3020_v24 = vsel %vm2868_vm7, %v3010_v3, %v3019_v42  ;;  %v3029_v41 = vsel %vm2868_vm7, %v3019_v42, %v3028_v25  ;;  %v4911_v42 = vld [vmem:[%s4991_s25 + $0x98] ss:$0 sps:$4 sm:$0x11]   ;;  %v1770_v44 = vrot.slane %v1768_v57, 1 }
  0xfc   : > { %4328 = vmatmul.mubr.msk.bf16.gmra.mrb[4].mxu1 %vm454_vm3, %v1363_v15  ;;  %v1371_v15 = vsel %vm915_vm6, %v1368_v58, %v1370_v20  ;;  %v4014_v58 = vcombine.low %v3309_v59, %v5331_v46  ;;  %v3329_v59 = vrot.slane %v5401_v29, 3 }
  0xfd   : > { %4331 = vmatprep.mubr.msk.bf16.mxu1 %vm454_vm3, %v1365_v6  ;;  %v1373_v6 = vsel %vm915_vm6, %v1370_v20, %v1372_v48  ;;  %v3320_v20 = vsel %vm3315_vm8, %v3317_v54, %v3319_v23 }
  0xff   : > { %4496 = vmatmul.mubr.msk.bf16.gmra.mrb[20].mxu0 %vm454_vm3, %v2984_v63  ;;  %v3033_v63 = vrot.slane %v3031_v43, 2 }
 0x100   : > { %4499 = vmatprep.mubr.msk.bf16.mxu0 %vm454_vm3, %v2993_v27  ;;  %v1375_v27 = vsel %vm915_vm6, %v1372_v48, %v1374_v50  ;;  %v1386_v48 = vrot.slane %v5317_v39, 1  ;;  %v1780_v50 = vshll.u32 %v5284_v16, 16 }
 0x101   : > { %v3037_v11 = vor.u32 %v3036_v38, %v3033_v63  ;;  %v1789_v38 = vshll.u32 %v5289_v10, 16 }
 0x102   : > { %v1389_v43 = vsel %vm915_vm6, %v1386_v48, %v1388_v33 }
 0x103   : > { %v3038_v46 = vsel %vm2868_vm7, %v3028_v25, %v3037_v11 }
 0x104   : > { %4332 = vmatmul.mubr.msk.bf16.gmra.mrb[8].mxu1 %vm454_vm3, %v1367_v32  ;;  %v3316_v32 = vrot.slane %v4014_v58, 3  ;;  %v1782_v58 = vrot.slane %v1780_v50, 2 }
 0x105   : > { %4335 = vmatprep.mubr.msk.bf16.mxu1 %vm454_vm3, %v1369_v21  ;;  %v1378_v21 = vrot.slane %v5284_v16, 1 }
 0x106   : > { %v3318_v37 = vsel %vm3315_vm8, %v3316_v32, %v3317_v54  ;;  %v3333_v32 = vrot.slane %v5420_v13, 3  ;;  %v1795_v54 = vshrl.u32 %v5301_v28, 16 }
 0x107   : > { %4500 = vmatmul.mubr.msk.bf16.gmra.mrb[24].mxu0 %vm454_vm3, %v3002_v26  ;;  %v1379_v3 = vsel %vm915_vm6, %v1376_v14, %v1378_v21  ;;  %v1381_v40 = vsel %vm915_vm6, %v1378_v21, %v1380_v2  ;;  %v1384_v26 = vrot.slane %v5305_v31, 1  ;;  %v1798_v21 = vshll.u32 %v5301_v28, 16 }
 0x108   : > { %4503 = vmatprep.mubr.msk.bf16.mxu0 %vm454_vm3, %v3011_v9  ;;  %v3324_v9 = vsel %vm3315_vm8, %v3321_v17, %v3323_v30 }
 0x109   : > { %v1385_v1 = vsel %vm915_vm6, %v1382_v18, %v1384_v26  ;;  %v1387_v12 = vsel %vm915_vm6, %v1384_v26, %v1386_v48  ;;  %v1800_v23 = vrot.slane %v1798_v21, 2  ;;  %v1813_v26 = vshrl.u32 %v5317_v39, 16 }
 0x10b   : > { %v1815_v48 = vrot.slane %v1813_v26, 1 }
 0x10c   : > { %4336 = vmatmul.mubr.msk.bf16.gmra.mrb[12].mxu1 %vm454_vm3, %v1371_v15  ;;  %v1771_v15 = vshll.u32 %v5265_v34, 16  ;;  %v1390_v34 = vrot.slane %v4911_v42, 1  ;;  %v1834_v42 = vshll.u32 %v5337_v47, 16 }
 0x10d   : > { %4339 = vmatprep.mubr.msk.bf16.mxu1 %vm454_vm3, %v1373_v6  ;;  %v3327_v6 = vrot.slane %v5397_v35, 3  ;;  %v1786_v35 = vshrl.u32 %v5289_v10, 16 }
 0x10e   : > { %v1773_v25 = vrot.slane %v1771_v15, 2  ;;  %v1391_v29 = vsel %vm915_vm6, %v1388_v33, %v1390_v34  ;;  %v3339_v33 = vrot.slane %v5452_v4, 3 }
 0x10f   : > { %4504 = vmatmul.mubr.msk.bf16.gmra.mrb[28].mxu0 %vm454_vm3, %v3020_v24  ;;  %v3328_v24 = vsel %vm3315_vm8, %v3325_v52, %v3327_v6  ;;  %v3330_v14 = vsel %vm3315_vm8, %v3327_v6, %v3329_v59  ;;  %v1788_v11 = vrot.slane %v1786_v35, 1  ;;  %v3349_v35 = vrot.slane %v5493_v5, 3 }
 0x110   : > { %4507 = vmatprep.mubr.msk.bf16.mxu0 %vm454_vm3, %v3029_v41  ;;  %v1774_v63 = vor.u32 %v1773_v25, %v1770_v44  ;;  %v1779_v41 = vrot.slane %v1777_v49, 1  ;;  %v3345_v49 = vrot.slane %v5476_v53, 3 }
 0x112   : > { %v1775_v16 = vsel %vm1668_vm4, %v5180_v22, %v1774_v63  ;;  %v1783_v10 = vor.u32 %v1782_v58, %v1779_v41  ;;  %v1807_v22 = vshll.u32 %v5305_v31, 16 }
 0x114   : > { %4340 = vmatmul.mubr.msk.bf16.gmra.mrb[16].mxu1 %vm454_vm3, %v1375_v27  ;;  %v3331_v27 = vrot.slane %v5415_v8, 3  ;;  %v1804_v8 = vshrl.u32 %v5305_v31, 16  ;;  %v1784_v13 = vsel %vm1668_vm4, %v1774_v63, %v1783_v10  ;;  %v1809_v18 = vrot.slane %v1807_v22, 2 }
 0x115   : > { %4343 = vmatprep.mubr.msk.bf16.mxu1 %vm454_vm3, %v1377_v19  ;;  %v1791_v19 = vrot.slane %v1789_v38, 2 }
 0x116   : > { %v1806_v17 = vrot.slane %v1804_v8, 1 }
 0x117   : > { %4508 = vmatmul.mubr.msk.bf16.gmra.mrb[32].mxu0 %vm454_vm3, %v3038_v46  ;;  %v3332_v46 = vsel %vm3315_vm8, %v3329_v59, %v3331_v27  ;;  %v1792_v2 = vor.u32 %v1791_v19, %v1788_v11  ;;  %v3343_v59 = vrot.slane %v5471_v45, 3  ;;  %v3347_v45 = vrot.slane %v5489_v51, 3 }
 0x118   : > { %4513 = vmatprep.mubr.msk.bf16.mxu0 %vm454_vm3, %v3318_v37  ;;  %v3334_v37 = vsel %vm3315_vm8, %v3331_v27, %v3333_v32  ;;  %v1810_v30 = vor.u32 %v1809_v18, %v1806_v17 }
 0x119   : > { %v1793_v28 = vsel %vm1668_vm4, %v1783_v10, %v1792_v2  ;;  %v3348_v53 = vsel %vm3315_vm8, %v3345_v49, %v3347_v45  ;;  %v3350_v38 = vsel %vm3315_vm8, %v3347_v45, %v3349_v35 }
 0x11c   : > { %4344 = vmatmul.mubr.msk.bf16.gmra.mrb[20].mxu1 %vm454_vm3, %v1379_v3  ;;  %v1797_v3 = vrot.slane %v1795_v54, 1 }
 0x11d   : > { %4347 = vmatprep.mubr.msk.bf16.mxu1 %vm454_vm3, %v1381_v40  ;;  %v3335_v40 = vrot.slane %v5433_v62, 3  ;;  %v1822_v62 = vshrl.u32 %v5321_v55, 16 }
 0x11e   : > { %v1801_v31 = vor.u32 %v1800_v23, %v1797_v3 }
 0x11f   : > { %4514 = vmatmul.mubr.msk.bf16.vlgmr.msra.gmra.mrb[0].mxu0 %vm454_vm3, %v3320_v20  ;;  %v3337_v20 = vrot.slane %v5438_v0, 3  ;;  %v1824_v57 = vrot.slane %v1822_v62, 1 }
 0x120   : > { %4517 = vmatprep.mubr.msk.bf16.mxu0 %vm454_vm3, %v3322_v60  ;;  %v1816_v60 = vshll.u32 %v5317_v39, 16  ;;  %v1802_v0 = vsel %vm1668_vm4, %v1792_v2, %v1801_v31  ;;  %v1811_v39 = vsel %vm1668_vm4, %v1801_v31, %v1810_v30 }
 0x121   : > { %v3338_v52 = vsel %vm3315_vm8, %v3335_v40, %v3337_v20  ;;  %v3340_v6 = vsel %vm3315_vm8, %v3337_v20, %v3339_v33 }
 0x124   : > { %4348 = vmatmul.mubr.msk.bf16.gmra.mrb[24].mxu1 %vm454_vm3, %v1383_v61  ;;  %v3336_v61 = vsel %vm3315_vm8, %v3333_v32, %v3335_v40  ;;  %v5781_v40 = vld [vmem:[%s5909_s2] ss:$0 sm:$0xff] }
 0x125   : > { %4351 = vmatprep.mubr.msk.bf16.mxu1 %vm454_vm3, %v1385_v1  ;;  %v1825_v1 = vshll.u32 %v5321_v55, 16 }
 0x127   : > { %4518 = vmatmul.mubr.msk.bf16.gmra.mrb[4].mxu0 %vm454_vm3, %v3324_v9  ;;  %v1818_v9 = vrot.slane %v1816_v60, 2  ;;  %v1827_v15 = vrot.slane %v1825_v1, 2 }
 0x128   : > { %4521 = vmatprep.mubr.msk.bf16.mxu0 %vm454_vm3, %v3326_v7  ;;  %v3341_v7 = vrot.slane %v5458_v36, 3  ;;  %v1836_v36 = vrot.slane %v1834_v42, 2 }
 0x129   : > { %v1819_v55 = vor.u32 %v1818_v9, %v1815_v48 }
 0x12a   : > { %v3342_v4 = vsel %vm3315_vm8, %v3339_v33, %v3341_v7  ;;  %v3344_v50 = vsel %vm3315_vm8, %v3341_v7, %v3343_v59 }
 0x12b   : > { %v1820_v44 = vsel %vm1668_vm4, %v1810_v30, %v1819_v55 }
 0x12c   : > { %4352 = vmatmul.mubr.msk.bf16.gmra.mrb[28].mxu1 %vm454_vm3, %v1387_v12  ;;  %v1831_v12 = vshrl.u32 %v5337_v47, 16 }
 0x12d   : > { %4355 = vmatprep.mubr.msk.bf16.mxu1 %vm454_vm3, %v1389_v43  ;;  %v1828_v43 = vor.u32 %v1827_v15, %v1824_v57 }
 0x12e   : > { %v1833_v25 = vrot.slane %v1831_v12, 1 }
 0x12f   : > { %4522 = vmatmul.mubr.msk.bf16.gmra.mrb[8].mxu0 %vm454_vm3, %v3328_v24  ;;  %v1829_v34 = vsel %vm1668_vm4, %v1819_v55, %v1828_v43  ;;  %v3346_v24 = vsel %vm3315_vm8, %v3343_v59, %v3345_v49 }
 0x130   : > { %4525 = vmatprep.mubr.msk.bf16.mxu0 %vm454_vm3, %v3330_v14  ;;  %v1837_v47 = vor.u32 %v1836_v36, %v1833_v25  ;;  %v3351_v14 = vrot.slane %v5628_v56, 3 }
 0x132   : > { %v1838_v63 = vsel %vm1668_vm4, %v1828_v43, %v1837_v47 }
 0x134   : > { %4356 = vmatmul.mubr.msk.bf16.gmra.mrb[32].mxu1 %vm454_vm3, %v1391_v29  ;;  %v3352_v29 = vsel %vm3315_vm8, %v3349_v35, %v3351_v14 }
 0x135   : > { %4381 = vmatprep.mubr.msk.bf16.mxu1 %vm454_vm3, %v1775_v16 }
 0x137   : > { %4526 = vmatmul.mubr.msk.bf16.gmra.mrb[12].mxu0 %vm454_vm3, %v3332_v46 }
 0x138   : > { %4529 = vmatprep.mubr.msk.bf16.mxu0 %vm454_vm3, %v3334_v37 }
 0x13c   : > { %4382 = vmatmul.mubr.msk.bf16.vlgmr.msra.gmra.mrb[20].mxu1 %vm454_vm3, %v1784_v13 }
 0x13d   : > { %4385 = vmatprep.mubr.msk.bf16.mxu1 %vm454_vm3, %v1793_v28 }
 0x13f   : > { %4530 = vmatmul.mubr.msk.bf16.gmra.mrb[16].mxu0 %vm454_vm3, %v3336_v61 }
 0x140   : > { %4533 = vmatprep.mubr.msk.bf16.mxu0 %vm454_vm3, %v3338_v52 }
 0x144   : > { %4386 = vmatmul.mubr.msk.bf16.gmra.mrb[24].mxu1 %vm454_vm3, %v1802_v0 }
 0x145   : > { %4389 = vmatprep.mubr.msk.bf16.mxu1 %vm454_vm3, %v1811_v39 }
 0x147   : > { %4534 = vmatmul.mubr.msk.bf16.gmra.mrb[20].mxu0 %vm454_vm3, %v3340_v6 }
 0x148   : > { %4537 = vmatprep.mubr.msk.bf16.mxu0 %vm454_vm3, %v3342_v4 }
 0x14c   : > { %4390 = vmatmul.mubr.msk.bf16.gmra.mrb[28].mxu1 %vm454_vm3, %v1820_v44 }
 0x14d   : > { %4393 = vmatprep.mubr.msk.bf16.mxu1 %vm454_vm3, %v1829_v34 }
 0x14f   : > { %4538 = vmatmul.mubr.msk.bf16.gmra.mrb[24].mxu0 %vm454_vm3, %v3344_v50 }
 0x150   : > { %4541 = vmatprep.mubr.msk.bf16.mxu0 %vm454_vm3, %v3346_v24 }
 0x154   : > { %4394 = vmatmul.mubr.msk.bf16.gmra.mrb[32].mxu1 %vm454_vm3, %v1838_v63 }
 0x157   : > { %4542 = vmatmul.mubr.msk.bf16.gmra.mrb[28].mxu0 %vm454_vm3, %v3348_v53 }
 0x158   : > { %4545 = vmatprep.mubr.msk.bf16.mxu0 %vm454_vm3, %v3350_v38 }
 0x15f   : > { %4546 = vmatmul.mubr.msk.bf16.gmra.mrb[32].mxu0 %vm454_vm3, %v3352_v29 }
 0x1c7   : > { %v4325_v41 = vpop.f32.mrb[0].mxu1 }
 0x1c8   : > { %v1483_v51 = vpop.f32.mrb[1].mxu1 }
 0x1c9   : > { %v4326_v58 = vpop.f32.mrb[2].mxu1 }
 0x1ca   : > { %v1486_v5 = vpop.f32.mrb[3].mxu1 }
 0x1cf   : > { %v4329_v27 = vpop.f32.mrb[4].mxu1 }
 0x1d0   : > { %v1499_v16 = vpop.f32.mrb[5].mxu1 }
 0x1d1   : > { %v4330_v11 = vpop.f32.mrb[6].mxu1 }
 0x1d2   : > { %v1502_v19 = vpop.f32.mrb[7].mxu1 }
 0x1d7   : > { %v4333_v32 = vpop.f32.mrb[8].mxu1 }
 0x1d8   : > { %v1515_v10 = vpop.f32.mrb[9].mxu1 }
 0x1d9   : > { %v4334_v54 = vpop.f32.mrb[10].mxu1 }
 0x1da   : > { %v1518_v21 = vpop.f32.mrb[11].mxu1 }
 0x1df   : > { %v5761_v46 = vpop.f32.mrb[12].mxu1 }
 0x1e0   : > { %v5763_v56 = vpop.f32.mrb[13].mxu1 }
 0x1e1   : > { %v5765_v2 = vpop.f32.mrb[14].mxu1 }
 0x1e2   : > { %v5767_v8 = vpop.f32.mrb[15].mxu1 }
 0x1e7   : > { %v5769_v22 = vpop.f32.mrb[16].mxu1 }
 0x1e8   : > { %v5771_v37 = vpop.f32.mrb[17].mxu1 }
 0x1e9   : > { %v5773_v13 = vpop.f32.mrb[18].mxu1 }
 0x1ea   : > { %v5775_v3 = vpop.f32.mrb[19].mxu1 }
 0x1f2   : > { %v4515_v23 = vpop.f32.mrb[0].mxu0 }
 0x1f3   : > { %v4551_v28 = vadd.f32 %v4515_v23, %v4325_v41  ;;  %v3444_v17 = vpop.f32.mrb[1].mxu0 }
 0x1f4   : > { %v4552_v18 = vadd.f32 %v3444_v17, %v1483_v51  ;;  %v4516_v20 = vpop.f32.mrb[2].mxu0 }
 0x1f5   : > { %v3632_v31 = vadd.f32 %v4551_v28, %v5781_v40  ;;  %v4553_v26 = vadd.f32 %v4516_v20, %v4326_v58  ;;  %v3447_v60 = vpop.f32.mrb[3].mxu0 }
 0x1f6   : > { %v3630_v61 = vadd.f32 %v4552_v18, %v5781_v40  ;;  %v4554_v30 = vadd.f32 %v3447_v60, %v1486_v5 }
 0x1f7   : > { %v3668_v62 = vmax.f32 %v3632_v31, 0.0  ;;  %v3633_v1 = vadd.f32 %v4553_v26, %v5781_v40 }
 0x1f8   : > { %v3666_v52 = vmax.f32 %v3630_v61, 0.0  ;;  %v3631_v0 = vadd.f32 %v4554_v30, %v5781_v40 }
 0x1f9   : > { %3705 = vst.msk [vmem:[%s5787_s16 + $0x10] sm:$0xff] %vm3702_vm9, %v3668_v62  ;;  %v3669_v48 = vmax.f32 %v3633_v1, 0.0 }
 0x1fa   : > { %3703 = vst.msk [vmem:[%s5787_s16] sm:$0xff] %vm3702_vm9, %v3666_v52  ;;  %v3667_v9 = vmax.f32 %v3631_v0, 0.0  ;;  %v4519_v33 = vpop.f32.mrb[4].mxu0 }
 0x1fb   : > { %3706 = vst.msk [vmem:[%s5787_s16 + $0x18] sm:$0xff] %vm3702_vm9, %v3669_v48  ;;  %v4555_v39 = vadd.f32 %v4519_v33, %v4329_v27  ;;  %v3460_v57 = vpop.f32.mrb[5].mxu0 }
 0x1fc   : > { %3704 = vst.msk [vmem:[%s5787_s16 + $0x8] sm:$0xff] %vm3702_vm9, %v3667_v9  ;;  %v4556_v15 = vadd.f32 %v3460_v57, %v1499_v16  ;;  %v4520_v7 = vpop.f32.mrb[6].mxu0 }
 0x1fd   : > { %v3636_v55 = vadd.f32 %v4555_v39, %v5781_v40  ;;  %v4557_v12 = vadd.f32 %v4520_v7, %v4330_v11  ;;  %v3463_v42 = vpop.f32.mrb[7].mxu0 }
 0x1fe   : > { %v3634_v6 = vadd.f32 %v4556_v15, %v5781_v40  ;;  %v4558_v43 = vadd.f32 %v3463_v42, %v1502_v19 }
 0x1ff   : > { %v3672_v4 = vmax.f32 %v3636_v55, 0.0  ;;  %v3637_v44 = vadd.f32 %v4557_v12, %v5781_v40 }
 0x200   : > { %v3670_v25 = vmax.f32 %v3634_v6, 0.0  ;;  %v3635_v36 = vadd.f32 %v4558_v43, %v5781_v40 }
 0x201   : > { %3709 = vst.msk [vmem:[%s5787_s16 + $0x30] sm:$0xff] %vm3702_vm9, %v3672_v4  ;;  %v3673_v59 = vmax.f32 %v3637_v44, 0.0 }
 0x202   : > { %3707 = vst.msk [vmem:[%s5787_s16 + $0x20] sm:$0xff] %vm3702_vm9, %v3670_v25  ;;  %v3671_v34 = vmax.f32 %v3635_v36, 0.0  ;;  %v4523_v49 = vpop.f32.mrb[8].mxu0 }
 0x203   : > { %3710 = vst.msk [vmem:[%s5787_s16 + $0x38] sm:$0xff] %vm3702_vm9, %v3673_v59  ;;  %v4559_v47 = vadd.f32 %v4523_v49, %v4333_v32  ;;  %v3476_v50 = vpop.f32.mrb[9].mxu0 }
 0x204   : > { %3708 = vst.msk [vmem:[%s5787_s16 + $0x28] sm:$0xff] %vm3702_vm9, %v3671_v34  ;;  %v4560_v24 = vadd.f32 %v3476_v50, %v1515_v10  ;;  %v4524_v63 = vpop.f32.mrb[10].mxu0 }
 0x205   : > { %v3640_v45 = vadd.f32 %v4559_v47, %v5781_v40  ;;  %v4561_v35 = vadd.f32 %v4524_v63, %v4334_v54  ;;  %v3479_v53 = vpop.f32.mrb[11].mxu0 }
 0x206   : > { %v3638_v38 = vadd.f32 %v4560_v24, %v5781_v40  ;;  %v4562_v14 = vadd.f32 %v3479_v53, %v1518_v21 }
 0x207   : > { %v3676_v29 = vmax.f32 %v3640_v45, 0.0  ;;  %v3641_v41 = vadd.f32 %v4561_v35, %v5781_v40 }
 0x208   : > { %v3674_v51 = vmax.f32 %v3638_v38, 0.0  ;;  %v3639_v58 = vadd.f32 %v4562_v14, %v5781_v40 }
 0x209   : > { %3713 = vst.msk [vmem:[%s5787_s16 + $0x50] sm:$0xff] %vm3702_vm9, %v3676_v29  ;;  %v3677_v5 = vmax.f32 %v3641_v41, 0.0 }
 0x20a   : > { %3711 = vst.msk [vmem:[%s5787_s16 + $0x40] sm:$0xff] %vm3702_vm9, %v3674_v51  ;;  %v3675_v27 = vmax.f32 %v3639_v58, 0.0  ;;  %v4527_v16 = vpop.f32.mrb[12].mxu0 }
 0x20b   : > { %3714 = vst.msk [vmem:[%s5787_s16 + $0x58] sm:$0xff] %vm3702_vm9, %v3677_v5  ;;  %v4563_v11 = vadd.f32 %v4527_v16, %v5761_v46  ;;  %v3492_v19 = vpop.f32.mrb[13].mxu0 }
 0x20c   : > { %3712 = vst.msk [vmem:[%s5787_s16 + $0x48] sm:$0xff] %vm3702_vm9, %v3675_v27  ;;  %v4564_v32 = vadd.f32 %v3492_v19, %v5763_v56  ;;  %v4528_v10 = vpop.f32.mrb[14].mxu0 }
 0x20d   : > { %v3644_v54 = vadd.f32 %v4563_v11, %v5781_v40  ;;  %v4565_v21 = vadd.f32 %v4528_v10, %v5765_v2  ;;  %v3495_v23 = vpop.f32.mrb[15].mxu0 }
 0x20e   : > { %v3642_v17 = vadd.f32 %v4564_v32, %v5781_v40  ;;  %v4566_v18 = vadd.f32 %v3495_v23, %v5767_v8 }
 0x20f   : > { %v4383_v28 = vpop.f32.mrb[20].mxu1  ;;  %v3680_v20 = vmax.f32 %v3644_v54, 0.0  ;;  %v3645_v31 = vadd.f32 %v4565_v21, %v5781_v40 }
 0x210   : > { %v2010_v46 = vpop.f32.mrb[21].mxu1  ;;  %v3678_v56 = vmax.f32 %v3642_v17, 0.0  ;;  %v3643_v60 = vadd.f32 %v4566_v18, %v5781_v40 }
 0x211   : > { %v4384_v26 = vpop.f32.mrb[22].mxu1  ;;  %3717 = vst.msk [vmem:[%s5787_s16 + $0x70] sm:$0xff] %vm3702_vm9, %v3680_v20  ;;  %v3681_v2 = vmax.f32 %v3645_v31, 0.0 }
 0x212   : > { %v2013_v61 = vpop.f32.mrb[23].mxu1  ;;  %3715 = vst.msk [vmem:[%s5787_s16 + $0x60] sm:$0xff] %vm3702_vm9, %v3678_v56  ;;  %v3679_v30 = vmax.f32 %v3643_v60, 0.0  ;;  %v4531_v62 = vpop.f32.mrb[16].mxu0 }
 0x213   : > { %3718 = vst.msk [vmem:[%s5787_s16 + $0x78] sm:$0xff] %vm3702_vm9, %v3681_v2  ;;  %v4567_v8 = vadd.f32 %v4531_v62, %v5769_v22  ;;  %v3508_v1 = vpop.f32.mrb[17].mxu0 }
 0x214   : > { %3716 = vst.msk [vmem:[%s5787_s16 + $0x68] sm:$0xff] %vm3702_vm9, %v3679_v30  ;;  %v4568_v52 = vadd.f32 %v3508_v1, %v5771_v37  ;;  %v4532_v0 = vpop.f32.mrb[18].mxu0 }
 0x215   : > { %v3648_v48 = vadd.f32 %v4567_v8, %v5781_v40  ;;  %v4569_v9 = vadd.f32 %v4532_v0, %v5773_v13  ;;  %v3511_v33 = vpop.f32.mrb[19].mxu0 }
 0x216   : > { %v3646_v57 = vadd.f32 %v4568_v52, %v5781_v40  ;;  %v4570_v15 = vadd.f32 %v3511_v33, %v5775_v3 }
 0x217   : > { %v4387_v39 = vpop.f32.mrb[24].mxu1  ;;  %v3684_v7 = vmax.f32 %v3648_v48, 0.0  ;;  %v3649_v55 = vadd.f32 %v4569_v9, %v5781_v40 }
 0x218   : > { %v2026_v22 = vpop.f32.mrb[25].mxu1  ;;  %v3682_v37 = vmax.f32 %v3646_v57, 0.0  ;;  %v3647_v42 = vadd.f32 %v4570_v15, %v5781_v40 }
 0x219   : > { %v4388_v12 = vpop.f32.mrb[26].mxu1  ;;  %3721 = vst.msk [vmem:[%s5787_s16 + $0x90] sm:$0xff] %vm3702_vm9, %v3684_v7  ;;  %v3685_v13 = vmax.f32 %v3649_v55, 0.0 }
 0x21a   : > { %v2029_v6 = vpop.f32.mrb[27].mxu1  ;;  %3719 = vst.msk [vmem:[%s5787_s16 + $0x80] sm:$0xff] %vm3702_vm9, %v3682_v37  ;;  %v3683_v43 = vmax.f32 %v3647_v42, 0.0  ;;  %v4535_v4 = vpop.f32.mrb[20].mxu0 }
 0x21b   : > { %3722 = vst.msk [vmem:[%s5787_s16 + $0x98] sm:$0xff] %vm3702_vm9, %v3685_v13  ;;  %v4571_v3 = vadd.f32 %v4535_v4, %v4383_v28  ;;  %v3524_v44 = vpop.f32.mrb[21].mxu0 }
 0x21c   : > { %3720 = vst.msk [vmem:[%s5787_s16 + $0x88] sm:$0xff] %vm3702_vm9, %v3683_v43  ;;  %v4572_v25 = vadd.f32 %v3524_v44, %v2010_v46  ;;  %v4536_v36 = vpop.f32.mrb[22].mxu0 }
 0x21d   : > { %v3652_v59 = vadd.f32 %v4571_v3, %v5781_v40  ;;  %v4573_v34 = vadd.f32 %v4536_v36, %v4384_v26  ;;  %v3527_v49 = vpop.f32.mrb[23].mxu0 }
 0x21e   : > { %v3650_v50 = vadd.f32 %v4572_v25, %v5781_v40  ;;  %v4574_v24 = vadd.f32 %v3527_v49, %v2013_v61 }
 0x21f   : > { %v4391_v47 = vpop.f32.mrb[28].mxu1  ;;  %v3688_v45 = vmax.f32 %v3652_v59, 0.0  ;;  %v3653_v35 = vadd.f32 %v4573_v34, %v5781_v40 }
 0x220   : > { %v2042_v63 = vpop.f32.mrb[29].mxu1  ;;  %v3686_v38 = vmax.f32 %v3650_v50, 0.0  ;;  %v3651_v14 = vadd.f32 %v4574_v24, %v5781_v40 }
 0x221   : > { %v4392_v53 = vpop.f32.mrb[30].mxu1  ;;  %3725 = vst.msk [vmem:[%s5787_s16 + $0xb0] sm:$0xff] %vm3702_vm9, %v3688_v45  ;;  %v3689_v41 = vmax.f32 %v3653_v35, 0.0 }
 0x222   : > { %v2045_v29 = vpop.f32.mrb[31].mxu1  ;;  %3723 = vst.msk [vmem:[%s5787_s16 + $0xa0] sm:$0xff] %vm3702_vm9, %v3686_v38  ;;  %v3687_v51 = vmax.f32 %v3651_v14, 0.0  ;;  %v4539_v58 = vpop.f32.mrb[24].mxu0 }
 0x223   : > { %3726 = vst.msk [vmem:[%s5787_s16 + $0xb8] sm:$0xff] %vm3702_vm9, %v3689_v41  ;;  %v4575_v5 = vadd.f32 %v4539_v58, %v4387_v39  ;;  %v3540_v27 = vpop.f32.mrb[25].mxu0 }
 0x224   : > { %3724 = vst.msk [vmem:[%s5787_s16 + $0xa8] sm:$0xff] %vm3702_vm9, %v3687_v51  ;;  %v4576_v16 = vadd.f32 %v3540_v27, %v2026_v22  ;;  %v4540_v11 = vpop.f32.mrb[26].mxu0 }
 0x225   : > { %v3656_v19 = vadd.f32 %v4575_v5, %v5781_v40  ;;  %v4577_v32 = vadd.f32 %v4540_v11, %v4388_v12  ;;  %v3543_v10 = vpop.f32.mrb[27].mxu0 }
 0x226   : > { %v3654_v21 = vadd.f32 %v4576_v16, %v5781_v40  ;;  %v4578_v23 = vadd.f32 %v3543_v10, %v2029_v6 }
 0x227   : > { %v4395_v54 = vpop.f32.mrb[32].mxu1  ;;  %v3692_v17 = vmax.f32 %v3656_v19, 0.0  ;;  %v3657_v18 = vadd.f32 %v4577_v32, %v5781_v40 }
 0x228   : > { %v2058_v28 = vpop.f32.mrb[33].mxu1  ;;  %v3690_v20 = vmax.f32 %v3654_v21, 0.0  ;;  %v3655_v31 = vadd.f32 %v4578_v23, %v5781_v40 }
 0x229   : > { %v4396_v46 = vpop.f32.mrb[34].mxu1  ;;  %3729 = vst.msk [vmem:[%s5787_s16 + $0xd0] sm:$0xff] %vm3702_vm9, %v3692_v17  ;;  %v3693_v56 = vmax.f32 %v3657_v18, 0.0 }
 0x22a   : > { %v2061_v26 = vpop.f32.mrb[35].mxu1  ;;  %3727 = vst.msk [vmem:[%s5787_s16 + $0xc0] sm:$0xff] %vm3702_vm9, %v3690_v20  ;;  %v3691_v60 = vmax.f32 %v3655_v31, 0.0  ;;  %v4543_v61 = vpop.f32.mrb[28].mxu0 }
 0x22b   : > { %3730 = vst.msk [vmem:[%s5787_s16 + $0xd8] sm:$0xff] %vm3702_vm9, %v3693_v56  ;;  %v4579_v2 = vadd.f32 %v4543_v61, %v4391_v47  ;;  %v3556_v30 = vpop.f32.mrb[29].mxu0 }
 0x22c   : > { %3728 = vst.msk [vmem:[%s5787_s16 + $0xc8] sm:$0xff] %vm3702_vm9, %v3691_v60  ;;  %v4580_v62 = vadd.f32 %v3556_v30, %v2042_v63  ;;  %v4544_v8 = vpop.f32.mrb[30].mxu0 }
 0x22d   : > { %v3660_v1 = vadd.f32 %v4579_v2, %v5781_v40  ;;  %v4581_v52 = vadd.f32 %v4544_v8, %v4392_v53  ;;  %v3559_v0 = vpop.f32.mrb[31].mxu0 }
 0x22e   : > { %v3658_v48 = vadd.f32 %v4580_v62, %v5781_v40  ;;  %v4582_v9 = vadd.f32 %v3559_v0, %v2045_v29 }
 0x22f   : > { %v3696_v33 = vmax.f32 %v3660_v1, 0.0  ;;  %v3661_v39 = vadd.f32 %v4581_v52, %v5781_v40 }
 0x230   : > { %v3694_v57 = vmax.f32 %v3658_v48, 0.0  ;;  %v3659_v15 = vadd.f32 %v4582_v9, %v5781_v40 }
 0x231   : > { %3733 = vst.msk [vmem:[%s5787_s16 + $0xf0] sm:$0xff] %vm3702_vm9, %v3696_v33  ;;  %v3697_v22 = vmax.f32 %v3661_v39, 0.0 }
 0x232   : > { %3731 = vst.msk [vmem:[%s5787_s16 + $0xe0] sm:$0xff] %vm3702_vm9, %v3694_v57  ;;  %v3695_v7 = vmax.f32 %v3659_v15, 0.0  ;;  %v4547_v55 = vpop.f32.mrb[32].mxu0 }
 0x233   : > { %3734 = vst.msk [vmem:[%s5787_s16 + $0xf8] sm:$0xff] %vm3702_vm9, %v3697_v22  ;;  %v4583_v12 = vadd.f32 %v4547_v55, %v4395_v54  ;;  %v3572_v37 = vpop.f32.mrb[33].mxu0 }
 0x234   : > { %3732 = vst.msk [vmem:[%s5787_s16 + $0xe8] sm:$0xff] %vm3702_vm9, %v3695_v7  ;;  %v4584_v42 = vadd.f32 %v3572_v37, %v2058_v28  ;;  %v4548_v6 = vpop.f32.mrb[34].mxu0 }
 0x235   : > { %v3664_v13 = vadd.f32 %v4583_v12, %v5781_v40  ;;  %v4585_v43 = vadd.f32 %v4548_v6, %v4396_v46  ;;  %v3575_v4 = vpop.f32.mrb[35].mxu0 }
 0x236   : > { %v3662_v3 = vadd.f32 %v4584_v42, %v5781_v40  ;;  %v4586_v44 = vadd.f32 %v3575_v4, %v2061_v26 }
 0x237   : > { %v3700_v25 = vmax.f32 %v3664_v13, 0.0  ;;  %v3665_v36 = vadd.f32 %v4585_v43, %v5781_v40 }
 0x238   : > { %v3698_v59 = vmax.f32 %v3662_v3, 0.0  ;;  %v3663_v34 = vadd.f32 %v4586_v44, %v5781_v40 }
 0x239   : > { %3737 = vst.msk [vmem:[%s5787_s16 + $0x110] sm:$0xff] %vm3702_vm9, %v3700_v25  ;;  %v3701_v49 = vmax.f32 %v3665_v36, 0.0 }
 0x23a   : > { %3735 = vst.msk [vmem:[%s5787_s16 + $0x100] sm:$0xff] %vm3702_vm9, %v3698_v59  ;;  %v3699_v47 = vmax.f32 %v3663_v34, 0.0 }
 0x23b   : > { %3738 = vst.msk [vmem:[%s5787_s16 + $0x118] sm:$0xff] %vm3702_vm9, %v3701_v49 }
 0x23c   : > { %3736 = vst.msk [vmem:[%s5787_s16 + $0x108] sm:$0xff] %vm3702_vm9, %v3699_v47 }
 0x23d PF: > { %s13_s12 = sadd.s32 1, %s4928_s12  }
 0x23e   : > { %p10_p4 = scmp.ge.s32.totalorder %s13_s12, 4  }
 0x240   :  { %12 = sbr.rel (!%p10_p4) target bundleno = 1 (0x1), region = 70 }

// kernel: perceptual_forward.8
= control target key start
LH: loop header
LB: loop body
LE: loop exit
PB: predicated region body
PF: predicated region fallthrough
CT: control target
= control target key end

     0   :  { %s5224_s12 = smov 0   ;;  %s6175_s0 = inlined_call_operand.vmem [shape: bf16[2,342,16], index: 0, kind: input, shape index: {}]   ;;  %s6176_s1 = inlined_call_operand.vmem [shape: bf16[9,16,16], index: 1, kind: input, shape index: {}]   ;;  %s6177_s2 = inlined_call_operand.vmem [shape: f32[1,16], index: 2, kind: input, shape index: {}]   ;;  %s6178_s3 = inlined_call_operand.vmem [shape: bf16[2,288,16], index: 3, kind: output, shape index: {}]  }
   0x1 LB: > { %s3970_s13 = sadd.s32 4294967295, %s5202_s12   ;;  %p3974_p0 = scmp.ge.s32.totalorder %s5202_s12, 1  ;;  %s5202_s12 = sphi %s5224_s12, %s13_s12  }
   0x2   : > { %p137_p1 = scmp.lt.s32.totalorder %s5202_s12, 3 }
   0x4   : > { %p138_p2 = pnand %p3974_p0, %p137_p1 }
   0x5   : > { %v5114_v0 = vld [vmem:[%s6176_s1 + $0x20] sm:$0xff] (!%p138_p2)   ;;  %p161_p3 = scmp.lt.s32.totalorder (!%p138_p2), %s3970_s13, 1  ;;  %v5115_v1 = vld [vmem:[%s6176_s1 + $0x8] sm:$0xff] (!%p138_p2)   ;;  %vm307_vm0 = vsmask.f32 (!%p138_p2), 7424  ;;  %vm462_vm1 = vcmask (!%p138_p2), 130048  }
   0x6   : > { %141 = sbr.rel (%p138_p2) target bundleno = 575 (0x23f), region = 32  ;;  %4624 = vmatprep.subr.bf16.mxu0 (!%p138_p2), %v5114_v0  ;;  %v5243_v2 = vld [vmem:[%s6176_s1 + $0x28] sm:$0xff] (!%p138_p2)   ;;  %4472 = vmatprep.subr.bf16.mxu1 (!%p138_p2), %v5115_v1  ;;  %v5124_v3 = vld [vmem:[%s6176_s1] sm:$0xff] (!%p138_p2)   ;;  %vm1681_vm2 = vsmask.f32 (!%p138_p2), 6400  ;;  %v5299_v31 = vld [vmem:[%s6176_s1 + $0x10] sm:$0xff] (!%p138_p2)  }
   0x7   : > { %4625 = vmatpush3.bf16.msra.mxu0 (!%p138_p2), %v5114_v0  ;;  %4473 = vmatpush3.bf16.msra.mxu1 (!%p138_p2), %v5115_v1  ;;  %v5329_v56 = vld [vmem:[%s6176_s1 + $0x30] sm:$0xff] (!%p138_p2)   ;;  %vm2132_vm3 = vcmask (!%p138_p2), 1045504   ;;  %vm920_vm4 = vcmask (!%p138_p2), 1046528   ;;  %vm2893_vm5 = vsmask.f32 (!%p138_p2), 5376  ;;  %vm3344_vm6 = vcmask (!%p138_p2), 1044480  }
   0x8   : > { %4662 = vmatprep.subr.bf16.mxu0 (!%p138_p2), %v5243_v2  ;;  %4510 = vmatprep.subr.bf16.mxu1 (!%p138_p2), %v5124_v3  ;;  %vm3878_vm7 = vcmask (!%p138_p2), 125952  }
   0xd   : > { %s6180_s13 = smov (!%p161_p3, %s3970_s13), 1 }
   0xe   : > { %s5104_s20 = smul.u32 172, %s6180_s13 }
   0xf   : > { %s5105_s15 = smul.u32 144, %s6180_s13 }
  0x10   : > { %s5253_s25 = scalar_lea.vmem %s6175_s0, %s5104_s20 }
  0x11   : > { %v172_v4 = vld [vmem:[%s5253_s25] sm:$0xf]  ;;  %v5257_v5 = vld [vmem:[%s5253_s25 + $0x4] sm:$0xf]  ;;  %v5263_v7 = vld [vmem:[%s5253_s25 + $0x8] sm:$0xff]   ;;  %s6054_s18 = scalar_lea.vmem %s6178_s3, %s5105_s15 }
  0x12   : > { %v5260_v6 = vcombine.low %v172_v4, %v5257_v5  ;;  %v1231_v8 = vld [vmem:[%s5253_s25 + $0x8] sm:$0xe]  ;;  %v5267_v9 = vld [vmem:[%s5253_s25 + $0xc] sm:$0xf]  ;;  %v316_v12 = vshll.u32 %v5263_v7, 16  ;;  %v320_v13 = vshrl.u32 %v5263_v7, 16 }
  0x13   : > { %v5274_v14 = vld [vmem:[%s5253_s25 + $0x10] sm:$0xff]   ;;  %v5280_v16 = vcombine.low %v1231_v8, %v5267_v9  ;;  %v5288_v24 = vld [vmem:[%s5253_s25 + $0x18] sm:$0xff]   ;;  %v5294_v30 = vld [vmem:[%s5253_s25 + $0x20] sm:$0xff]  }
  0x14   : > { %v309_v10 = vshrl.u32 %v5260_v6, 16  ;;  %v311_v11 = vshll.u32 %v5260_v6, 16  ;;  %v5277_v15 = vld [vmem:[%s5253_s25 + $0x10] sm:$0xff]   ;;  %v318_v18 = vrot.slane %v316_v12, 1  ;;  %v1691_v19 = vshrl.u32 %v5274_v14, 16  ;;  %v5291_v29 = vld [vmem:[%s5253_s25 + $0x18] sm:$0xff]  }
  0x15   : > { %v1694_v20 = vshll.u32 %v5274_v14, 16  ;;  %v1683_v21 = vshrl.u32 %v5280_v16, 16  ;;  %v1686_v22 = vshll.u32 %v5280_v16, 16  ;;  %v324_v23 = vshll.u32 %v5277_v15, 16  ;;  %v5309_v44 = vld [vmem:[%s5253_s25 + $0x20] sm:$0xff]   ;;  %v5312_v45 = vld [vmem:[%s5253_s25 + $0x28] sm:$0xff]  }
  0x16   : > { %v313_v17 = vrot.slane %v311_v11, 1  ;;  %v322_v26 = vor.u32 %v320_v13, %v318_v18  ;;  %v1693_v27 = vrot.slane %v1691_v19, 1  ;;  %v1700_v35 = vshrl.u32 %v5288_v24, 16  ;;  %v5318_v50 = vld [vmem:[%s5253_s25 + $0x28] sm:$0xff]   ;;  %v5324_v55 = vld [vmem:[%s5253_s25 + $0x30] sm:$0xff]  }
  0x17   : > { %v1696_v28 = vrot.slane %v1694_v20, 2  ;;  %v1685_v32 = vrot.slane %v1683_v21, 1  ;;  %v1688_v33 = vrot.slane %v1686_v22, 2  ;;  %v326_v34 = vrot.slane %v324_v23, 1  ;;  %v5334_v61 = vld [vmem:[%s5253_s25 + $0x30] sm:$0xff]  }
  0x18   : > { %v314_v25 = vor.u32 %v313_v17, %v309_v10  ;;  %v1703_v38 = vshll.u32 %v5288_v24, 16  ;;  %v328_v39 = vshrl.u32 %v5277_v15, 16  ;;  %v1702_v42 = vrot.slane %v1700_v35, 1 }
  0x19   : > { %v1697_v37 = vor.u32 %v1696_v28, %v1693_v27  ;;  %v1689_v40 = vor.u32 %v1688_v33, %v1685_v32  ;;  %v327_v41 = vsel %vm307_vm0, %v322_v26, %v326_v34  ;;  %v332_v43 = vshll.u32 %v5291_v29, 16  ;;  %v5356_v28 = vld [vmem:[%s5253_s25 + $0x38] sm:$0xff]  }
  0x1a   : > { %v319_v36 = vsel %vm307_vm0, %v314_v25, %v318_v18  ;;  %v1705_v46 = vrot.slane %v1703_v38, 2  ;;  %v330_v47 = vor.u32 %v328_v39, %v326_v34  ;;  %v1709_v48 = vshrl.u32 %v5294_v30, 16  ;;  %v5347_v18 = vld [vmem:[%s5253_s25 + $0x38] sm:$0xff]   ;;  %v5366_v39 = vld [vmem:[%s5253_s25 + $0x40] sm:$0xff]  }
  0x1b   : > { %4474 = vmatprep.mubr.msk.bf16.mxu1 %vm462_vm1, %v319_v36  ;;  %v1712_v49 = vshll.u32 %v5294_v30, 16  ;;  %v1698_v51 = vsel %vm1681_vm2, %v1689_v40, %v1697_v37  ;;  %v334_v52 = vrot.slane %v332_v43, 1  ;;  %v336_v53 = vshrl.u32 %v5291_v29, 16 }
  0x1c   : > { %4475 = vmatmul.mubr.msk.bf16.vlgmr.msra.gmra.mrb[0].mxu1 %vm462_vm1, %v327_v41  ;;  %v340_v54 = vshll.u32 %v5309_v44, 16  ;;  %4626 = vmatprep.mubr.msk.bf16.mxu0 %vm462_vm1, %v1698_v51  ;;  %v1706_v57 = vor.u32 %v1705_v46, %v1702_v42  ;;  %v1711_v58 = vrot.slane %v1709_v48, 1  ;;  %v1718_v60 = vshrl.u32 %v5312_v45, 16  ;;  %v5371_v46 = vld [vmem:[%s5253_s25 + $0x40] sm:$0xff]  }
  0x1d   : > { %4511 = vmatpush3.bf16.msra.mxu1 %v5124_v3  ;;  %v1714_v59 = vrot.slane %v1712_v49, 2  ;;  %v335_v62 = vsel %vm307_vm0, %v330_v47, %v334_v52  ;;  %v338_v63 = vor.u32 %v336_v53, %v334_v52  ;;  %v1721_v1 = vshll.u32 %v5312_v45, 16 }
  0x1e   : > { %4548 = vmatprep.subr.bf16.mxu1 %v5299_v31  ;;  %v342_v0 = vrot.slane %v340_v54, 1  ;;  %v1707_v3 = vsel %vm1681_vm2, %v1697_v37, %v1706_v57  ;;  %4478 = vmatprep.mubr.msk.bf16.mxu1 %vm462_vm1, %v335_v62  ;;  %v1720_v8 = vrot.slane %v1718_v60, 1  ;;  %v344_v10 = vshrl.u32 %v5309_v44, 16 }
  0x1f   : > { %v1715_v4 = vor.u32 %v1714_v59, %v1711_v58  ;;  %4627 = vmatmul.mubr.msk.bf16.vlgmr.msra.gmra.mrb[0].mxu0 %vm462_vm1, %v1707_v3  ;;  %v1723_v12 = vrot.slane %v1721_v1, 2  ;;  %v348_v13 = vshll.u32 %v5318_v50, 16  ;;  %v1727_v17 = vshrl.u32 %v5324_v55, 16  ;;  %v5379_v58 = vld [vmem:[%s5253_s25 + $0x48] sm:$0xff]  }
  0x20   : > { %v343_v11 = vsel %vm307_vm0, %v338_v63, %v342_v0  ;;  %4663 = vmatpush3.bf16.msra.mxu0 %v5243_v2  ;;  %v346_v20 = vor.u32 %v344_v10, %v342_v0  ;;  %v1730_v21 = vshll.u32 %v5324_v55, 16  ;;  %v352_v22 = vshrl.u32 %v5318_v50, 16  ;;  %v5382_v59 = vld [vmem:[%s5253_s25 + $0x48] sm:$0xff]  }
  0x21   : > { %v1716_v19 = vsel %vm1681_vm2, %v1706_v57, %v1715_v4  ;;  %v1724_v23 = vor.u32 %v1723_v12, %v1720_v8  ;;  %v350_v25 = vrot.slane %v348_v13, 1  ;;  %v1729_v26 = vrot.slane %v1727_v17, 1  ;;  %4700 = vmatprep.subr.bf16.mxu0 %v5329_v56 }
  0x22   : > { %4630 = vmatprep.mubr.msk.bf16.mxu0 %vm462_vm1, %v1716_v19  ;;  %v356_v27 = vshll.u32 %v5334_v61, 16  ;;  %v1732_v2 = vrot.slane %v1730_v21, 2  ;;  %v1736_v32 = vshrl.u32 %v5347_v18, 16  ;;  %v1739_v33 = vshll.u32 %v5347_v18, 16  ;;  %v5399_v19 = vld [vmem:[%s5253_s25 + $0x50] sm:$0xff]  }
  0x23   : > { %v360_v34 = vshrl.u32 %v5334_v61, 16  ;;  %v1725_v35 = vsel %vm1681_vm2, %v1715_v4, %v1724_v23  ;;  %v351_v36 = vsel %vm307_vm0, %v346_v20, %v350_v25  ;;  %v354_v37 = vor.u32 %v352_v22, %v350_v25  ;;  %v5391_v4 = vld [vmem:[%s5253_s25 + $0x50] sm:$0xff]   ;;  %v5404_v22 = vld [vmem:[%s5253_s25 + $0x58] sm:$0xff]  }
  0x24   : > { %4479 = vmatmul.mubr.msk.bf16.gmra.mrb[4].mxu1 %vm462_vm1, %v343_v11  ;;  %v358_v38 = vrot.slane %v356_v27, 1  ;;  %v1733_v40 = vor.u32 %v1732_v2, %v1729_v26  ;;  %v1738_v41 = vrot.slane %v1736_v32, 1  ;;  %v1741_v42 = vrot.slane %v1739_v33, 2 }
  0x25   : > { %4482 = vmatprep.mubr.msk.bf16.mxu1 %vm462_vm1, %v351_v36  ;;  %v364_v43 = vshll.u32 %v5356_v28, 16  ;;  %v1745_v49 = vshrl.u32 %v5366_v39, 16  ;;  %v1748_v51 = vshll.u32 %v5366_v39, 16  ;;  %v368_v57 = vshrl.u32 %v5356_v28, 16 }
  0x26   : > { %v359_v47 = vsel %vm307_vm0, %v354_v37, %v358_v38  ;;  %v362_v48 = vor.u32 %v360_v34, %v358_v38  ;;  %v1734_v52 = vsel %vm1681_vm2, %v1724_v23, %v1733_v40  ;;  %v1742_v53 = vor.u32 %v1741_v42, %v1738_v41 }
  0x27   : > { %v366_v54 = vrot.slane %v364_v43, 1  ;;  %4631 = vmatmul.mubr.msk.bf16.gmra.mrb[4].mxu0 %vm462_vm1, %v1725_v35  ;;  %v1747_v60 = vrot.slane %v1745_v49, 1  ;;  %v1750_v62 = vrot.slane %v1748_v51, 2  ;;  %v372_v63 = vshll.u32 %v5371_v46, 16  ;;  %v5409_v35 = vld [vmem:[%s5253_s25 + $0x58] sm:$0xff]  }
  0x28   : > { %v376_v0 = vshrl.u32 %v5371_v46, 16  ;;  %4634 = vmatprep.mubr.msk.bf16.mxu0 %vm462_vm1, %v1734_v52  ;;  %v1754_v3 = vshrl.u32 %v5379_v58, 16  ;;  %v1757_v10 = vshll.u32 %v5379_v58, 16  ;;  %v380_v11 = vshll.u32 %v5382_v59, 16  ;;  %v2125_v51 = vld [vmem:[%s5253_s25 + $0x8] sm:$0xc] }
  0x29   : > { %v367_v1 = vsel %vm307_vm0, %v362_v48, %v366_v54  ;;  %v1751_v8 = vor.u32 %v1750_v62, %v1747_v60  ;;  %v374_v12 = vrot.slane %v372_v63, 1  ;;  %v1763_v13 = vshrl.u32 %v5391_v4, 16  ;;  %v5423_v52 = vld [vmem:[%s5253_s25 + $0x60] sm:$0xff]  }
  0x2a   : > { %v1766_v17 = vshll.u32 %v5391_v4, 16  ;;  %v1743_v20 = vsel %vm1681_vm2, %v1733_v40, %v1742_v53  ;;  %v370_v21 = vor.u32 %v368_v57, %v366_v54  ;;  %v1756_v23 = vrot.slane %v1754_v3, 1 }
  0x2b   : > { %v1759_v25 = vrot.slane %v1757_v10, 2  ;;  %v378_v26 = vor.u32 %v376_v0, %v374_v12  ;;  %v382_v27 = vrot.slane %v380_v11, 1  ;;  %v1752_v2 = vsel %vm1681_vm2, %v1742_v53, %v1751_v8  ;;  %v5428_v0 = vld [vmem:[%s5253_s25 + $0x68] sm:$0xff]  }
  0x2c   : > { %4483 = vmatmul.mubr.msk.bf16.gmra.mrb[8].mxu1 %vm462_vm1, %v359_v47  ;;  %v1765_v32 = vrot.slane %v1763_v13, 1  ;;  %v1768_v33 = vrot.slane %v1766_v17, 2  ;;  %v388_v34 = vshll.u32 %v5399_v19, 16  ;;  %v375_v36 = vsel %vm307_vm0, %v370_v21, %v374_v12 }
  0x2d   : > { %4486 = vmatprep.mubr.msk.bf16.mxu1 %vm462_vm1, %v367_v1  ;;  %v384_v37 = vshrl.u32 %v5382_v59, 16  ;;  %v1772_v38 = vshrl.u32 %v5404_v22, 16  ;;  %v1775_v40 = vshll.u32 %v5404_v22, 16  ;;  %v1760_v41 = vor.u32 %v1759_v25, %v1756_v23  ;;  %v5445_v25 = vld [vmem:[%s5253_s25 + $0x70] sm:$0xff]  }
  0x2e   : > { %v383_v42 = vsel %vm307_vm0, %v378_v26, %v382_v27  ;;  %v392_v43 = vshrl.u32 %v5399_v19, 16  ;;  %v396_v47 = vshll.u32 %v5409_v35, 16  ;;  %v1769_v48 = vor.u32 %v1768_v33, %v1765_v32  ;;  %v5451_v33 = vld [vmem:[%s5253_s25 + $0x78] sm:$0xff]  }
  0x2f   : > { %4635 = vmatmul.mubr.msk.bf16.gmra.mrb[8].mxu0 %vm462_vm1, %v1743_v20  ;;  %v390_v49 = vrot.slane %v388_v34, 1  ;;  %v386_v53 = vor.u32 %v384_v37, %v382_v27  ;;  %v1774_v54 = vrot.slane %v1772_v38, 1  ;;  %v1777_v57 = vrot.slane %v1775_v40, 2 }
  0x30   : > { %4638 = vmatprep.mubr.msk.bf16.mxu0 %vm462_vm1, %v1752_v2  ;;  %v1761_v60 = vsel %vm1681_vm2, %v1751_v8, %v1760_v41  ;;  %v398_v63 = vrot.slane %v396_v47, 1  ;;  %v1770_v1 = vsel %vm1681_vm2, %v1760_v41, %v1769_v48  ;;  %v4122_v3 = vcombine.low %v2125_v51, %v5267_v9 }
  0x31   : > { %v394_v62 = vor.u32 %v392_v43, %v390_v49  ;;  %v404_v10 = vshll.u32 %v5423_v52, 16  ;;  %v391_v11 = vsel %vm307_vm0, %v386_v53, %v390_v49  ;;  %v400_v12 = vshrl.u32 %v5409_v35, 16 }
  0x32   : > { %v5437_v8 = vor.u32 %v1777_v57, %v1774_v54  ;;  %v408_v17 = vshrl.u32 %v5423_v52, 16  ;;  %v412_v20 = vshll.u32 %v5428_v0, 16  ;;  %v2133_v9 = vrot.slane %v4122_v3, 2  ;;  %v5471_v54 = vld [vmem:[%s5253_s25 + $0x88] sm:$0xff]  }
  0x33   : > { %v399_v13 = vsel %vm307_vm0, %v394_v62, %v398_v63  ;;  %v2134_v21 = vrot.slane %v5274_v14, 2  ;;  %v406_v23 = vrot.slane %v404_v10, 1  ;;  %v402_v26 = vor.u32 %v400_v12, %v398_v63 }
  0x34   : > { %4487 = vmatmul.mubr.msk.bf16.gmra.mrb[12].mxu1 %vm462_vm1, %v375_v36  ;;  %v1779_v27 = vsel %vm1681_vm2, %v1769_v48, %v5437_v8  ;;  %v414_v32 = vrot.slane %v412_v20, 1  ;;  %v420_v14 = vshll.u32 %v5445_v25, 16  ;;  %v2136_v37 = vrot.slane %v5288_v24, 2  ;;  %v5466_v48 = vld [vmem:[%s5253_s25 + $0x80] sm:$0xff]  }
  0x35   : > { %4490 = vmatprep.mubr.msk.bf16.mxu1 %vm462_vm1, %v383_v42  ;;  %v410_v2 = vor.u32 %v408_v17, %v406_v23  ;;  %v2135_v34 = vsel %vm2132_vm3, %v2133_v9, %v2134_v21  ;;  %v407_v36 = vsel %vm307_vm0, %v402_v26, %v406_v23  ;;  %v416_v38 = vshrl.u32 %v5428_v0, 16  ;;  %v5494_v17 = vld [vmem:[%s5253_s25 + $0x90] ss:$0 sps:$4 sm:$0x11]  }
  0x36   : > { %v424_v41 = vshrl.u32 %v5445_v25, 16  ;;  %v428_v42 = vshll.u32 %v5451_v33, 16  ;;  %v2138_v43 = vrot.slane %v5294_v30, 2  ;;  %v422_v47 = vrot.slane %v420_v14, 1  ;;  %v5477_v30 = vld [vmem:[%s6176_s1 + $0x38] sm:$0xff]  }
  0x37   : > { %4639 = vmatmul.mubr.msk.bf16.gmra.mrb[12].mxu0 %vm462_vm1, %v1761_v60  ;;  %v415_v40 = vsel %vm307_vm0, %v410_v2, %v414_v32  ;;  %v418_v24 = vor.u32 %v416_v38, %v414_v32  ;;  %v2137_v49 = vsel %vm2132_vm3, %v2134_v21, %v2136_v37  ;;  %v436_v60 = vshll.u32 %v5466_v48, 16 }
  0x38   : > { %4642 = vmatprep.mubr.msk.bf16.mxu0 %vm462_vm1, %v1770_v1  ;;  %v426_v51 = vor.u32 %v424_v41, %v422_v47  ;;  %v430_v53 = vrot.slane %v428_v42, 1  ;;  %v2139_v57 = vsel %vm2132_vm3, %v2136_v37, %v2138_v43  ;;  %v2140_v63 = vrot.slane %v5312_v45, 2  ;;  %v5521_v42 = vld [vmem:[%s5253_s25 + $0x60] sm:$0xff]  }
  0x39   : > { %v423_v62 = vsel %vm307_vm0, %v418_v24, %v422_v47  ;;  %v432_v1 = vshrl.u32 %v5451_v33, 16  ;;  %v440_v10 = vshrl.u32 %v5466_v48, 16  ;;  %v2142_v12 = vrot.slane %v5324_v55, 2  ;;  %v5544_v24 = vld [vmem:[%s5253_s25 + $0x70] sm:$0xff]  }
  0x3a   : > { %v431_v3 = vsel %vm307_vm0, %v426_v51, %v430_v53  ;;  %v448_v23 = vshrl.u32 %v5471_v54, 16  ;;  %v452_v26 = vshll.u32 %v5494_v17, 16  ;;  %v2146_v32 = vrot.slane %v5366_v39, 2 }
  0x3b   : > { %v434_v45 = vor.u32 %v432_v1, %v430_v53  ;;  %v2143_v21 = vsel %vm2132_vm3, %v2140_v63, %v2142_v12  ;;  %v2150_v39 = vrot.slane %v5391_v4, 2  ;;  %v5529_v4 = vld [vmem:[%s6176_s1 + $0x18] sm:$0xff]   ;;  %v2158_v51 = vrot.slane %v5544_v24, 2 }
  0x3c   : > { %4491 = vmatmul.mubr.msk.bf16.gmra.mrb[16].mxu1 %vm462_vm1, %v391_v11  ;;  %v444_v11 = vshll.u32 %v5471_v54, 16  ;;  %v454_v14 = vrot.slane %v452_v26, 1  ;;  %v5556_v53 = vld [vmem:[%s5253_s25 + $0x78] sm:$0xff]  }
  0x3d   : > { %4494 = vmatprep.mubr.msk.bf16.mxu1 %vm462_vm1, %v399_v13  ;;  %v438_v13 = vrot.slane %v436_v60, 1  ;;  %v5560_v60 = vld [vmem:[%s5253_s25 + $0x80] sm:$0xff]  }
  0x3e   : > { %v446_v9 = vrot.slane %v444_v11, 1  ;;  %v5576_v11 = vld [vmem:[%s5253_s25 + $0x90] sm:$0xff]  }
  0x3f   : > { %4643 = vmatmul.mubr.msk.bf16.gmra.mrb[16].mxu0 %vm462_vm1, %v1779_v27  ;;  %v442_v20 = vor.u32 %v440_v10, %v438_v13  ;;  %v439_v55 = vsel %vm307_vm0, %v434_v45, %v438_v13  ;;  %v2144_v27 = vrot.slane %v5347_v18, 2  ;;  %v2148_v18 = vrot.slane %v5379_v58, 2  ;;  %v2443_v45 = vld [vmem:[%s5253_s25 + $0x10] sm:$0xc] }
  0x40   : > { %4664 = vmatprep.mubr.msk.bf16.mxu0 %vm462_vm1, %v2135_v34  ;;  %v450_v34 = vor.u32 %v448_v23, %v446_v9  ;;  %v2152_v58 = vrot.slane %v5404_v22, 2  ;;  %v5539_v22 = vld [vmem:[%s5253_s25 + $0x68] sm:$0xff]   ;;  %v2166_v13 = vrot.slane %v5576_v11, 2  ;;  %v5599_v23 = vld [vmem:[%s5253_s25 + $0x18] sm:$0xff]  }
  0x41   : > { %v447_v2 = vsel %vm307_vm0, %v442_v20, %v446_v9  ;;  %v2147_v37 = vsel %vm2132_vm3, %v2144_v27, %v2146_v32  ;;  %v2151_v41 = vsel %vm2132_vm3, %v2148_v18, %v2150_v39  ;;  %v5592_v9 = vld [vmem:[%s5253_s25 + $0x98] ss:$0 sps:$4 sm:$0x33]  }
  0x42   : > { %v455_v38 = vsel %vm307_vm0, %v450_v34, %v454_v14  ;;  %v2168_v26 = vrot.slane %v5592_v9, 2  ;;  %v5612_v34 = vld [vmem:[%s5253_s25 + $0x20] sm:$0xff]  }
  0x44   : > { %4495 = vmatmul.mubr.msk.bf16.gmra.mrb[20].mxu1 %vm462_vm1, %v407_v36  ;;  %v2145_v36 = vsel %vm2132_vm3, %v2142_v12, %v2144_v27 }
  0x45   : > { %4498 = vmatprep.mubr.msk.bf16.mxu1 %vm462_vm1, %v415_v40  ;;  %v2149_v40 = vsel %vm2132_vm3, %v2146_v32, %v2148_v18  ;;  %v2169_v32 = vsel %vm2132_vm3, %v2166_v13, %v2168_v26 }
  0x47   : > { %4665 = vmatmul.mubr.msk.bf16.vlgmr.msra.gmra.mrb[0].mxu0 %vm462_vm1, %v2137_v49  ;;  %v2156_v49 = vrot.slane %v5539_v22, 2 }
  0x48   : > { %4701 = vmatpush3.bf16.msra.mxu0 %v5329_v56  ;;  %4668 = vmatprep.mubr.msk.bf16.mxu0 %vm462_vm1, %v2139_v57  ;;  %v2141_v56 = vsel %vm2132_vm3, %v2138_v43, %v2140_v63  ;;  %v2153_v43 = vsel %vm2132_vm3, %v2150_v39, %v2152_v58  ;;  %v2162_v63 = vrot.slane %v5560_v60, 2  ;;  %v5628_v39 = vld [vmem:[%s5253_s25 + $0x30] sm:$0xff]  }
  0x49   : > { %4738 = vmatprep.subr.bf16.mxu0 %v5477_v30  ;;  %v2159_v57 = vsel %vm2132_vm3, %v2156_v49, %v2158_v51 }
  0x4c   : > { %4499 = vmatmul.mubr.msk.bf16.gmra.mrb[24].mxu1 %vm462_vm1, %v423_v62  ;;  %v2160_v62 = vrot.slane %v5556_v53, 2 }
  0x4d   : > { %4502 = vmatprep.mubr.msk.bf16.mxu1 %vm462_vm1, %v431_v3  ;;  %v5572_v3 = vld [vmem:[%s5253_s25 + $0x88] sm:$0xff]  }
  0x4e   : > { %v2161_v1 = vsel %vm2132_vm3, %v2158_v51, %v2160_v62  ;;  %v2163_v10 = vsel %vm2132_vm3, %v2160_v62, %v2162_v63  ;;  %v2164_v12 = vrot.slane %v5572_v3, 2  ;;  %v5655_v51 = vld [vmem:[%s5253_s25 + $0x48] sm:$0xff]  }
  0x4f   : > { %4669 = vmatmul.mubr.msk.bf16.gmra.mrb[4].mxu0 %vm462_vm1, %v2141_v56  ;;  %v5586_v56 = vld [vmem:[%s5253_s25 + $0x14] sm:$0xf] }
  0x50   : > { %4672 = vmatprep.mubr.msk.bf16.mxu0 %vm462_vm1, %v2143_v21  ;;  %v2165_v20 = vsel %vm2132_vm3, %v2162_v63, %v2164_v12  ;;  %v2167_v21 = vsel %vm2132_vm3, %v2164_v12, %v2166_v13  ;;  %v2589_v63 = vrot.slane %v5655_v51, 2  ;;  %v922_v13 = vrot.slane %v5263_v7, 1 }
  0x54   : > { %4503 = vmatmul.mubr.msk.bf16.gmra.mrb[28].mxu1 %vm462_vm1, %v439_v55  ;;  %v5596_v55 = vcombine.low %v2443_v45, %v5586_v56 }
  0x55   : > { %4506 = vmatprep.mubr.msk.bf16.mxu1 %vm462_vm1, %v447_v2  ;;  %v2577_v2 = vrot.slane %v5599_v23, 2 }
  0x56   : > { %v2576_v27 = vrot.slane %v5596_v55, 2 }
  0x57   : > { %4673 = vmatmul.mubr.msk.bf16.gmra.mrb[8].mxu0 %vm462_vm1, %v2145_v36  ;;  %v5616_v36 = vld [vmem:[%s5253_s25 + $0x28] sm:$0xff]  }
  0x58   : > { %4676 = vmatprep.mubr.msk.bf16.mxu0 %vm462_vm1, %v2147_v37  ;;  %v2578_v14 = vsel %vm2132_vm3, %v2576_v27, %v2577_v2  ;;  %v2579_v37 = vrot.slane %v5612_v34, 2 }
  0x5a   : > { %v2580_v18 = vsel %vm2132_vm3, %v2577_v2, %v2579_v37  ;;  %v5687_v2 = vld [vmem:[%s5253_s25 + $0x60] sm:$0xff]  }
  0x5c   : > { %4507 = vmatmul.mubr.msk.bf16.gmra.mrb[32].mxu1 %vm462_vm1, %v455_v38  ;;  %v2581_v38 = vrot.slane %v5616_v36, 2 }
  0x5d   : > { %4512 = vmatprep.mubr.msk.bf16.mxu1 %vm462_vm1, %v5260_v6  ;;  %v2154_v6 = vrot.slane %v5521_v42, 2 }
  0x5f   : > { %4677 = vmatmul.mubr.msk.bf16.gmra.mrb[12].mxu0 %vm462_vm1, %v2149_v40  ;;  %v2155_v47 = vsel %vm2132_vm3, %v2152_v58, %v2154_v6  ;;  %v2582_v40 = vsel %vm2132_vm3, %v2579_v37, %v2581_v38  ;;  %v5637_v58 = vld [vmem:[%s6176_s1 + $0x40] sm:$0xff]   ;;  %v5692_v37 = vld [vmem:[%s5253_s25 + $0x68] sm:$0xff]  }
  0x60   : > { %4680 = vmatprep.mubr.msk.bf16.mxu0 %vm462_vm1, %v2151_v41  ;;  %v5632_v41 = vld [vmem:[%s5253_s25 + $0x38] sm:$0xff]  }
  0x64   : > { %4513 = vmatmul.mubr.msk.bf16.vlgmr.msra.gmra.mrb[0].mxu1 %vm462_vm1, %v5263_v7  ;;  %v924_v7 = vrot.slane %v5277_v15, 1 }
  0x65   : > { %4516 = vmatprep.mubr.msk.bf16.mxu1 %vm462_vm1, %v5277_v15  ;;  %4549 = vmatpush3.bf16.msra.mxu1 %v5299_v31  ;;  %v2157_v31 = vsel %vm2132_vm3, %v2154_v6, %v2156_v49  ;;  %v2583_v6 = vrot.slane %v5628_v39, 2  ;;  %v5651_v49 = vld [vmem:[%s5253_s25 + $0x40] sm:$0xff]   ;;  %v2595_v15 = vrot.slane %v5687_v2, 2 }
  0x66   : > { %4586 = vmatprep.subr.bf16.mxu1 %v5529_v4 }
  0x67   : > { %4681 = vmatmul.mubr.msk.bf16.gmra.mrb[16].mxu0 %vm462_vm1, %v2153_v43  ;;  %v2585_v43 = vrot.slane %v5632_v41, 2 }
  0x68   : > { %4684 = vmatprep.mubr.msk.bf16.mxu0 %vm462_vm1, %v2155_v47  ;;  %v2584_v47 = vsel %vm2132_vm3, %v2581_v38, %v2583_v6  ;;  %v925_v38 = vsel %vm920_vm4, %v922_v13, %v924_v7 }
  0x6c   : > { %4517 = vmatmul.mubr.msk.bf16.gmra.mrb[4].mxu1 %vm462_vm1, %v5291_v29 }
  0x6d   : > { %4520 = vmatprep.mubr.msk.bf16.mxu1 %vm462_vm1, %v5309_v44 }
  0x6f   : > { %4685 = vmatmul.mubr.msk.bf16.gmra.mrb[20].mxu0 %vm462_vm1, %v2157_v31  ;;  %v913_v31 = vld [vmem:[%s5253_s25] sm:$0xe] }
  0x70   : > { %4688 = vmatprep.mubr.msk.bf16.mxu0 %vm462_vm1, %v2159_v57  ;;  %v2587_v57 = vrot.slane %v5651_v49, 2  ;;  %v4038_v62 = vcombine.low %v913_v31, %v5257_v5  ;;  %v5674_v5 = vld [vmem:[%s5253_s25 + $0x58] sm:$0xff]  }
  0x71   : > { %v2593_v26 = vrot.slane %v5674_v5, 2 }
  0x72   : > { %v921_v12 = vrot.slane %v4038_v62, 1  ;;  %v2590_v45 = vsel %vm2132_vm3, %v2587_v57, %v2589_v63 }
  0x74   : > { %4521 = vmatmul.mubr.msk.bf16.gmra.mrb[8].mxu1 %vm462_vm1, %v5318_v50 }
  0x75   : > { %4524 = vmatprep.mubr.msk.bf16.mxu1 %vm462_vm1, %v5334_v61 }
  0x77   : > { %4689 = vmatmul.mubr.msk.bf16.gmra.mrb[24].mxu0 %vm462_vm1, %v2161_v1  ;;  %v2588_v1 = vsel %vm2132_vm3, %v2585_v43, %v2587_v57 }
  0x78   : > { %4692 = vmatprep.mubr.msk.bf16.mxu0 %vm462_vm1, %v2163_v10  ;;  %v5669_v10 = vld [vmem:[%s5253_s25 + $0x50] sm:$0xff]  }
  0x7c   : > { %4525 = vmatmul.mubr.msk.bf16.gmra.mrb[12].mxu1 %vm462_vm1, %v5356_v28 }
  0x7d   : > { %4528 = vmatprep.mubr.msk.bf16.mxu1 %vm462_vm1, %v5371_v46 }
  0x7f   : > { %4693 = vmatmul.mubr.msk.bf16.gmra.mrb[28].mxu0 %vm462_vm1, %v2165_v20  ;;  %v2591_v20 = vrot.slane %v5669_v10, 2 }
  0x80   : > { %4696 = vmatprep.mubr.msk.bf16.mxu0 %vm462_vm1, %v2167_v21  ;;  %v923_v21 = vsel %vm920_vm4, %v921_v12, %v922_v13  ;;  %v5730_v12 = vld [vmem:[%s5253_s25 + $0x80] sm:$0xff]   ;;  %v934_v13 = vrot.slane %v5356_v28, 1  ;;  %v936_v28 = vrot.slane %v5371_v46, 1 }
  0x81   : > { %v2592_v27 = vsel %vm2132_vm3, %v2589_v63, %v2591_v20  ;;  %v932_v63 = vrot.slane %v5334_v61, 1  ;;  %v2603_v61 = vrot.slane %v5730_v12, 2 }
  0x84   : > { %4529 = vmatmul.mubr.msk.bf16.gmra.mrb[16].mxu1 %vm462_vm1, %v5382_v59 }
  0x85   : > { %4532 = vmatprep.mubr.msk.bf16.mxu1 %vm462_vm1, %v5399_v19 }
  0x87   : > { %4697 = vmatmul.mubr.msk.bf16.gmra.mrb[32].mxu0 %vm462_vm1, %v2169_v32  ;;  %v926_v32 = vrot.slane %v5291_v29, 1  ;;  %v928_v29 = vrot.slane %v5309_v44, 1  ;;  %v5717_v44 = vld [vmem:[%s5253_s25 + $0x78] sm:$0xff]  }
  0x88   : > { %4702 = vmatprep.mubr.msk.bf16.mxu0 %vm462_vm1, %v2578_v14  ;;  %v2594_v14 = vsel %vm2132_vm3, %v2591_v20, %v2593_v26  ;;  %v2601_v62 = vrot.slane %v5717_v44, 2  ;;  %v5735_v20 = vld [vmem:[%s5253_s25 + $0x88] sm:$0xff]  }
  0x8c   : > { %4533 = vmatmul.mubr.msk.bf16.gmra.mrb[20].mxu1 %vm462_vm1, %v5409_v35 }
  0x8d   : > { %4536 = vmatprep.mubr.msk.bf16.mxu1 %vm462_vm1, %v5423_v52 }
  0x8f   : > { %4703 = vmatmul.mubr.msk.bf16.vlgmr.msra.gmra.mrb[0].mxu0 %vm462_vm1, %v2580_v18  ;;  %v927_v18 = vsel %vm920_vm4, %v924_v7, %v926_v32  ;;  %v2605_v7 = vrot.slane %v5735_v20, 2 }
  0x90   : > { %4739 = vmatpush3.bf16.msra.mxu0 %v5477_v30  ;;  %4706 = vmatprep.mubr.msk.bf16.mxu0 %vm462_vm1, %v2582_v40  ;;  %v2586_v30 = vsel %vm2132_vm3, %v2583_v6, %v2585_v43  ;;  %v2597_v40 = vrot.slane %v5692_v37, 2  ;;  %v2596_v6 = vsel %vm2132_vm3, %v2593_v26, %v2595_v15  ;;  %v5706_v43 = vld [vmem:[%s5253_s25 + $0x70] sm:$0xff]   ;;  %v935_v26 = vsel %vm920_vm4, %v932_v63, %v934_v13 }
  0x91   : > { %4776 = vmatprep.subr.bf16.mxu0 %v5637_v58 }
  0x92   : > { %v2598_v31 = vsel %vm2132_vm3, %v2595_v15, %v2597_v40  ;;  %v2606_v15 = vsel %vm2132_vm3, %v2603_v61, %v2605_v7 }
  0x94   : > { %4537 = vmatmul.mubr.msk.bf16.gmra.mrb[24].mxu1 %vm462_vm1, %v5428_v0 }
  0x95   : > { %4540 = vmatprep.mubr.msk.bf16.mxu1 %vm462_vm1, %v5445_v25 }
  0x97   : > { %4707 = vmatmul.mubr.msk.bf16.gmra.mrb[4].mxu0 %vm462_vm1, %v2584_v47  ;;  %v930_v47 = vrot.slane %v5318_v50, 1  ;;  %v2599_v50 = vrot.slane %v5706_v43, 2 }
  0x98   : > { %4710 = vmatprep.mubr.msk.bf16.mxu0 %vm462_vm1, %v2586_v30  ;;  %v5712_v30 = vld [vmem:[%s6176_s1 + $0x20] sm:$0xff]  }
  0x99   : > { %v931_v57 = vsel %vm920_vm4, %v928_v29, %v930_v47 }
  0x9c   : > { %4541 = vmatmul.mubr.msk.bf16.gmra.mrb[28].mxu1 %vm462_vm1, %v5451_v33 }
  0x9d   : > { %4544 = vmatprep.mubr.msk.bf16.mxu1 %vm462_vm1, %v5466_v48 }
  0x9f   : > { %4711 = vmatmul.mubr.msk.bf16.gmra.mrb[8].mxu0 %vm462_vm1, %v2588_v1  ;;  %v2600_v1 = vsel %vm2132_vm3, %v2597_v40, %v2599_v50 }
  0xa0   : > { %4714 = vmatprep.mubr.msk.bf16.mxu0 %vm462_vm1, %v2590_v45  ;;  %v2602_v45 = vsel %vm2132_vm3, %v2599_v50, %v2601_v62 }
  0xa4   : > { %4545 = vmatmul.mubr.msk.bf16.gmra.mrb[32].mxu1 %vm462_vm1, %v5471_v54 }
  0xa5   : > { %4550 = vmatprep.mubr.msk.bf16.mxu1 %vm462_vm1, %v923_v21  ;;  %v933_v21 = vsel %vm920_vm4, %v930_v47, %v932_v63  ;;  %v2903_v47 = vshrl.u32 %v5599_v23, 16  ;;  %v942_v63 = vrot.slane %v5409_v35, 1  ;;  %v2921_v35 = vshrl.u32 %v5616_v36, 16 }
  0xa7   : > { %4715 = vmatmul.mubr.msk.bf16.gmra.mrb[12].mxu0 %vm462_vm1, %v2592_v27  ;;  %v2604_v27 = vsel %vm2132_vm3, %v2601_v62, %v2603_v61  ;;  %v5180_v62 = vld [vmem:[%s5253_s25 + $0xa0] ss:$0 sps:$4 sm:$0x33]  }
  0xa8   : > { %4718 = vmatprep.mubr.msk.bf16.mxu0 %vm462_vm1, %v2594_v14  ;;  %v938_v14 = vrot.slane %v5382_v59, 1  ;;  %v2898_v59 = vshll.u32 %v5596_v55, 16  ;;  %v2611_v61 = vrot.slane %v5180_v62, 2 }
  0xaa   : > { %v939_v46 = vsel %vm920_vm4, %v936_v28, %v938_v14 }
  0xac   : > { %4551 = vmatmul.mubr.msk.bf16.vlgmr.msra.gmra.mrb[0].mxu1 %vm462_vm1, %v925_v38  ;;  %v5752_v38 = vld [vmem:[%s5253_s25 + $0x98] sm:$0xff]  }
  0xad   : > { %4554 = vmatprep.mubr.msk.bf16.mxu1 %vm462_vm1, %v927_v18  ;;  %4587 = vmatpush3.bf16.msra.mxu1 %v5529_v4  ;;  %v929_v4 = vsel %vm920_vm4, %v926_v32, %v928_v29  ;;  %v5748_v32 = vld [vmem:[%s5253_s25 + $0x90] sm:$0xff]   ;;  %v937_v18 = vsel %vm920_vm4, %v934_v13, %v936_v28  ;;  %v2609_v29 = vrot.slane %v5752_v38, 2  ;;  %v2900_v13 = vrot.slane %v2898_v59, 3 }
  0xae   : > { %4814 = vmatprep.subr.bf16.mxu1 %v5712_v30  ;;  %v2607_v40 = vrot.slane %v5748_v32, 2 }
  0xaf   : > { %4719 = vmatmul.mubr.msk.bf16.gmra.mrb[16].mxu0 %vm462_vm1, %v2596_v6  ;;  %v2895_v6 = vshrl.u32 %v5596_v55, 16  ;;  %v2905_v55 = vrot.slane %v2903_v47, 2  ;;  %v2923_v47 = vrot.slane %v2921_v35, 2  ;;  %v2951_v35 = vshll.u32 %v5651_v49, 16 }
  0xb0   : > { %4722 = vmatprep.mubr.msk.bf16.mxu0 %vm462_vm1, %v2598_v31  ;;  %v2906_v31 = vshll.u32 %v5599_v23, 16  ;;  %v2608_v50 = vsel %vm2132_vm3, %v2605_v7, %v2607_v40  ;;  %v2915_v7 = vshll.u32 %v5612_v34, 16 }
  0xb4   : > { %4555 = vmatmul.mubr.msk.bf16.gmra.mrb[4].mxu1 %vm462_vm1, %v929_v4  ;;  %v940_v4 = vrot.slane %v5399_v19, 1 }
  0xb5   : > { %4558 = vmatprep.mubr.msk.bf16.mxu1 %vm462_vm1, %v931_v57  ;;  %v2610_v57 = vsel %vm2132_vm3, %v2607_v40, %v2609_v29 }
  0xb6   : > { %v943_v19 = vsel %vm920_vm4, %v940_v4, %v942_v63 }
  0xb7   : > { %4723 = vmatmul.mubr.msk.bf16.gmra.mrb[20].mxu0 %vm462_vm1, %v2600_v1  ;;  %v2897_v1 = vrot.slane %v2895_v6, 2  ;;  %v946_v6 = vrot.slane %v5428_v0, 1  ;;  %v2939_v0 = vshrl.u32 %v5632_v41, 16 }
  0xb8   : > { %4726 = vmatprep.mubr.msk.bf16.mxu0 %vm462_vm1, %v2602_v45  ;;  %v2908_v45 = vrot.slane %v2906_v31, 3 }
  0xb9   : > { %v2901_v28 = vor.u32 %v2900_v13, %v2897_v1  ;;  %v2942_v1 = vshll.u32 %v5632_v41, 16 }
  0xbc   : > { %4559 = vmatmul.mubr.msk.bf16.gmra.mrb[8].mxu1 %vm462_vm1, %v933_v21  ;;  %v941_v21 = vsel %vm920_vm4, %v938_v14, %v940_v4  ;;  %v944_v14 = vrot.slane %v5423_v52, 1  ;;  %v2930_v52 = vshrl.u32 %v5628_v39, 16 }
  0xbd   : > { %4562 = vmatprep.mubr.msk.bf16.mxu1 %vm462_vm1, %v935_v26  ;;  %v2912_v26 = vshrl.u32 %v5612_v34, 16 }
  0xbe   : > { %v945_v4 = vsel %vm920_vm4, %v942_v63, %v944_v14  ;;  %v948_v63 = vrot.slane %v5445_v25, 1 }
  0xbf   : > { %4727 = vmatmul.mubr.msk.bf16.gmra.mrb[24].mxu0 %vm462_vm1, %v2604_v27  ;;  %v2909_v27 = vor.u32 %v2908_v45, %v2905_v55  ;;  %v2914_v40 = vrot.slane %v2912_v26, 2  ;;  %v2932_v55 = vrot.slane %v2930_v52, 2  ;;  %v2944_v26 = vrot.slane %v2942_v1, 3 }
  0xc0   : > { %4730 = vmatprep.mubr.msk.bf16.mxu0 %vm462_vm1, %v2606_v15  ;;  %v2924_v15 = vshll.u32 %v5616_v36, 16  ;;  %v2969_v52 = vshll.u32 %v5669_v10, 16 }
  0xc1   : > { %v2910_v59 = vsel %vm2893_vm5, %v2901_v28, %v2909_v27 }
  0xc2   : > { %v2926_v31 = vrot.slane %v2924_v15, 3  ;;  %v2957_v15 = vshrl.u32 %v5655_v51, 16 }
  0xc4   : > { %4563 = vmatmul.mubr.msk.bf16.gmra.mrb[12].mxu1 %vm462_vm1, %v937_v18  ;;  %v2612_v18 = vsel %vm2132_vm3, %v2609_v29, %v2611_v61  ;;  %v2933_v29 = vshll.u32 %v5628_v39, 16  ;;  %v2927_v62 = vor.u32 %v2926_v31, %v2923_v47  ;;  %v2959_v47 = vrot.slane %v2957_v15, 2  ;;  %v5187_v15 = vld [vmem:[%s5253_s25 + $0x18] sm:$0xff]  }
  0xc5   : > { %4566 = vmatprep.mubr.msk.bf16.mxu1 %vm462_vm1, %v939_v46  ;;  %v2917_v46 = vrot.slane %v2915_v7, 3  ;;  %v949_v7 = vsel %vm920_vm4, %v946_v6, %v948_v63 }
  0xc6   : > { %v2935_v45 = vrot.slane %v2933_v29, 3 }
  0xc7   : > { %4731 = vmatmul.mubr.msk.bf16.gmra.mrb[28].mxu0 %vm462_vm1, %v2608_v50  ;;  %v2918_v50 = vor.u32 %v2917_v46, %v2914_v40  ;;  %v2953_v46 = vrot.slane %v2951_v35, 3  ;;  %v2993_v35 = vshrl.u32 %v5692_v37, 16 }
  0xc8   : > { %4734 = vmatprep.mubr.msk.bf16.mxu0 %vm462_vm1, %v2610_v57  ;;  %v947_v57 = vsel %vm920_vm4, %v944_v14, %v946_v6  ;;  %v2936_v28 = vor.u32 %v2935_v45, %v2932_v55  ;;  %v2960_v14 = vshll.u32 %v5655_v51, 16  ;;  %v954_v6 = vrot.slane %v5471_v54, 1  ;;  %v5186_v45 = vld [vmem:[%s5253_s25 + $0x10] sm:$0xff]  }
  0xc9   : > { %v2919_v13 = vsel %vm2893_vm5, %v2909_v27, %v2918_v50  ;;  %v2928_v61 = vsel %vm2893_vm5, %v2918_v50, %v2927_v62  ;;  %v2948_v27 = vshrl.u32 %v5651_v49, 16  ;;  %v2966_v50 = vshrl.u32 %v5669_v10, 16 }
  0xca   : > { %v2962_v31 = vrot.slane %v2960_v14, 3  ;;  %v2975_v54 = vshrl.u32 %v5674_v5, 16  ;;  %v1364_v55 = vrot.slane %v5280_v16, 1  ;;  %v2987_v16 = vshll.u32 %v5687_v2, 16 }
  0xcb   : > { %v2950_v40 = vrot.slane %v2948_v27, 2  ;;  %v2968_v1 = vrot.slane %v2966_v50, 2  ;;  %v1367_v14 = vrot.slane %v5187_v15, 1 }
  0xcc   : > { %4567 = vmatmul.mubr.msk.bf16.gmra.mrb[16].mxu1 %vm462_vm1, %v941_v21  ;;  %v950_v21 = vrot.slane %v5451_v33, 1  ;;  %v2963_v29 = vor.u32 %v2962_v31, %v2959_v47  ;;  %v2995_v47 = vrot.slane %v2993_v35, 2  ;;  %v3032_v35 = vshll.u32 %v5735_v20, 16 }
  0xcd   : > { %4570 = vmatprep.mubr.msk.bf16.mxu1 %vm462_vm1, %v943_v19  ;;  %v2941_v19 = vrot.slane %v2939_v0, 2  ;;  %v956_v0 = vrot.slane %v5494_v17, 1 }
  0xce   : > { %v951_v25 = vsel %vm920_vm4, %v948_v63, %v950_v21 }
  0xcf   : > { %4735 = vmatmul.mubr.msk.bf16.gmra.mrb[32].mxu0 %vm462_vm1, %v2612_v18  ;;  %v2945_v33 = vor.u32 %v2944_v26, %v2941_v19  ;;  %v2937_v18 = vsel %vm2893_vm5, %v2927_v62, %v2936_v28  ;;  %v2978_v62 = vshll.u32 %v5674_v5, 16  ;;  %v2977_v19 = vrot.slane %v2975_v54, 2 }
  0xd0   : > { %4740 = vmatprep.mubr.msk.bf16.mxu0 %vm462_vm1, %v2910_v59  ;;  %v3011_v54 = vshrl.u32 %v5717_v44, 16 }
  0xd1   : > { %v2946_v59 = vsel %vm2893_vm5, %v2936_v28, %v2945_v33  ;;  %v2980_v26 = vrot.slane %v2978_v62, 3  ;;  %v3014_v62 = vshll.u32 %v5717_v44, 16 }
  0xd3   : > { %v2981_v27 = vor.u32 %v2980_v26, %v2977_v19  ;;  %v3013_v19 = vrot.slane %v3011_v54, 2  ;;  %v3016_v26 = vrot.slane %v3014_v62, 3  ;;  %v3050_v54 = vshll.u32 %v5752_v38, 16  ;;  %v5193_v62 = vld [vmem:[%s5253_s25 + $0x48] sm:$0xff]  }
  0xd4   : > { %4571 = vmatmul.mubr.msk.bf16.gmra.mrb[20].mxu1 %vm462_vm1, %v945_v4 }
  0xd5   : > { %4574 = vmatprep.mubr.msk.bf16.mxu1 %vm462_vm1, %v947_v57 }
  0xd7   : > { %4741 = vmatmul.mubr.msk.bf16.vlgmr.msra.gmra.mrb[0].mxu0 %vm462_vm1, %v2919_v13  ;;  %v2971_v13 = vrot.slane %v2969_v52, 3  ;;  %v3005_v52 = vshll.u32 %v5706_v43, 16 }
  0xd8   : > { %4777 = vmatpush3.bf16.msra.mxu0 %v5637_v58  ;;  %4744 = vmatprep.mubr.msk.bf16.mxu0 %vm462_vm1, %v2928_v61  ;;  %v952_v58 = vrot.slane %v5466_v48, 1  ;;  %v2954_v48 = vor.u32 %v2953_v46, %v2950_v40  ;;  %v2989_v40 = vrot.slane %v2987_v16, 3  ;;  %v5188_v46 = vld [vmem:[%s5253_s25 + $0x20] sm:$0xff]   ;;  %v3017_v16 = vor.u32 %v3016_v26, %v3013_v19 }
  0xd9   : > { %v2972_v17 = vor.u32 %v2971_v13, %v2968_v1  ;;  %v3052_v26 = vrot.slane %v3050_v54, 3  ;;  %v3350_v54 = vrot.slane %v5616_v36, 3  ;;  %v3352_v36 = vrot.slane %v5628_v39, 3 }
  0xda   : > { %v953_v4 = vsel %vm920_vm4, %v950_v21, %v952_v58  ;;  %v955_v57 = vsel %vm920_vm4, %v952_v58, %v954_v6  ;;  %v2955_v63 = vsel %vm2893_vm5, %v2945_v33, %v2954_v48  ;;  %v1365_v21 = vrot.slane %v5186_v45, 1  ;;  %v5190_v45 = vld [vmem:[%s5253_s25 + $0x30] sm:$0xff]  }
  0xdb   : > { %v2964_v61 = vsel %vm2893_vm5, %v2954_v48, %v2963_v29  ;;  %v2996_v33 = vshll.u32 %v5692_v37, 16  ;;  %v2973_v58 = vsel %vm2893_vm5, %v2963_v29, %v2972_v17 }
  0xdc   : > { %4575 = vmatmul.mubr.msk.bf16.gmra.mrb[24].mxu1 %vm462_vm1, %v949_v7  ;;  %v957_v7 = vsel %vm920_vm4, %v954_v6, %v956_v0  ;;  %v1366_v28 = vsel %vm920_vm4, %v1364_v55, %v1365_v21  ;;  %v1369_v6 = vrot.slane %v5188_v46, 1  ;;  %v5189_v0 = vld [vmem:[%s5253_s25 + $0x28] sm:$0xff]   ;;  %v3007_v55 = vrot.slane %v3005_v52, 3 }
  0xdd   : > { %4578 = vmatprep.mubr.msk.bf16.mxu1 %vm462_vm1, %v951_v25  ;;  %v2984_v25 = vshrl.u32 %v5687_v2, 16  ;;  %v2998_v31 = vrot.slane %v2996_v33, 3  ;;  %v1371_v1 = vrot.slane %v5189_v0, 1  ;;  %v5191_v33 = vld [vmem:[%s5253_s25 + $0x38] sm:$0xff]   ;;  %v1379_v0 = vrot.slane %v5193_v62, 1 }
  0xde   : > { %v1370_v48 = vsel %vm920_vm4, %v1367_v14, %v1369_v6  ;;  %v1375_v15 = vrot.slane %v5191_v33, 1  ;;  %v1391_v62 = vrot.slane %v5556_v53, 1 }
  0xdf   : > { %4745 = vmatmul.mubr.msk.bf16.gmra.mrb[4].mxu0 %vm462_vm1, %v2937_v18  ;;  %v2986_v18 = vrot.slane %v2984_v25, 2  ;;  %v2999_v29 = vor.u32 %v2998_v31, %v2995_v47  ;;  %v3023_v25 = vshll.u32 %v5730_v12, 16  ;;  %v3034_v47 = vrot.slane %v3032_v35, 3  ;;  %v5195_v35 = vld [vmem:[%s5253_s25 + $0x58] sm:$0xff]  }
  0xe0   : > { %4748 = vmatprep.mubr.msk.bf16.mxu0 %vm462_vm1, %v2946_v59  ;;  %v2982_v59 = vsel %vm2893_vm5, %v2972_v17, %v2981_v27  ;;  %v1383_v33 = vrot.slane %v5195_v35, 1  ;;  %v1790_v35 = vshrl.u32 %v5539_v22, 16 }
  0xe1   : > { %v2990_v50 = vor.u32 %v2989_v40, %v2986_v18  ;;  %v3025_v18 = vrot.slane %v3023_v25, 3  ;;  %v5192_v40 = vld [vmem:[%s5253_s25 + $0x40] sm:$0xff]  }
  0xe2   : > { %v1377_v46 = vrot.slane %v5192_v40, 1 }
  0xe4   : > { %4579 = vmatmul.mubr.msk.bf16.gmra.mrb[28].mxu1 %vm462_vm1, %v953_v4  ;;  %v1368_v4 = vsel %vm920_vm4, %v1365_v21, %v1367_v14  ;;  %v1373_v21 = vrot.slane %v5190_v45, 1 }
  0xe5   : > { %4582 = vmatprep.mubr.msk.bf16.mxu1 %vm462_vm1, %v955_v57  ;;  %v3002_v57 = vshrl.u32 %v5706_v43, 16 }
  0xe6   : > { %v1376_v31 = vsel %vm920_vm4, %v1373_v21, %v1375_v15 }
  0xe7   : > { %4749 = vmatmul.mubr.msk.bf16.gmra.mrb[8].mxu0 %vm462_vm1, %v2955_v63  ;;  %v2991_v63 = vsel %vm2893_vm5, %v2981_v27, %v2990_v50  ;;  %v3004_v13 = vrot.slane %v3002_v57, 2  ;;  %v3029_v27 = vshrl.u32 %v5735_v20, 16  ;;  %v3041_v57 = vshll.u32 %v5748_v32, 16 }
  0xe8   : > { %4752 = vmatprep.mubr.msk.bf16.mxu0 %vm462_vm1, %v2964_v61  ;;  %v3000_v61 = vsel %vm2893_vm5, %v2990_v50, %v2999_v29  ;;  %v1378_v50 = vsel %vm920_vm4, %v1375_v15, %v1377_v46 }
  0xe9   : > { %v3008_v17 = vor.u32 %v3007_v55, %v3004_v13  ;;  %v3043_v13 = vrot.slane %v3041_v57, 3  ;;  %v5194_v55 = vld [vmem:[%s5253_s25 + $0x50] sm:$0xff]  }
  0xea   : > { %v1381_v45 = vrot.slane %v5194_v55, 1  ;;  %v3354_v55 = vrot.slane %v5632_v41, 3 }
  0xeb   : > { %v3009_v14 = vsel %vm2893_vm5, %v2999_v29, %v3008_v17  ;;  %v3047_v29 = vshrl.u32 %v5752_v38, 16 }
  0xec   : > { %4583 = vmatmul.mubr.msk.bf16.gmra.mrb[32].mxu1 %vm462_vm1, %v957_v7  ;;  %v1372_v7 = vsel %vm920_vm4, %v1369_v6, %v1371_v1  ;;  %v3018_v6 = vsel %vm2893_vm5, %v3008_v17, %v3017_v16  ;;  %v3355_v39 = vsel %vm3344_vm6, %v3352_v36, %v3354_v55 }
  0xed   : > { %4588 = vmatprep.mubr.msk.bf16.mxu1 %vm462_vm1, %v1366_v28  ;;  %v3020_v28 = vshrl.u32 %v5730_v12, 16  ;;  %v3049_v19 = vrot.slane %v3047_v29, 2 }
  0xef   : > { %4753 = vmatmul.mubr.msk.bf16.gmra.mrb[12].mxu0 %vm462_vm1, %v2973_v58  ;;  %v3022_v58 = vrot.slane %v3020_v28, 2 }
  0xf0   : > { %4756 = vmatprep.mubr.msk.bf16.mxu0 %vm462_vm1, %v2982_v59  ;;  %v3031_v59 = vrot.slane %v3029_v27, 2  ;;  %v3337_v27 = vld [vmem:[%s5253_s25 + $0x10] sm:$0x8] }
  0xf2   : > { %v3035_v52 = vor.u32 %v3034_v47, %v3031_v59 }
  0xf4   : > { %4589 = vmatmul.mubr.msk.bf16.vlgmr.msra.gmra.mrb[0].mxu1 %vm462_vm1, %v1368_v4  ;;  %v3026_v4 = vor.u32 %v3025_v18, %v3022_v58  ;;  %v1385_v18 = vrot.slane %v5521_v42, 1 }
  0xf5   : > { %4592 = vmatprep.mubr.msk.bf16.mxu1 %vm462_vm1, %v1370_v48  ;;  %4815 = vmatpush3.bf16.msra.mxu1 %v5712_v30  ;;  %v1374_v30 = vsel %vm920_vm4, %v1371_v1, %v1373_v21  ;;  %v3038_v48 = vshrl.u32 %v5748_v32, 16  ;;  %v5887_v21 = vld [vmem:[%s5253_s25 + $0xa0] ss:$0 sps:$4 sm:$0x77]  }
  0xf6   : > { %v3027_v1 = vsel %vm2893_vm5, %v3017_v16, %v3026_v4  ;;  %v3056_v28 = vshrl.u32 %v5887_v21, 16  ;;  %v3059_v25 = vshll.u32 %v5887_v21, 16  ;;  %v3053_v16 = vor.u32 %v3052_v26, %v3049_v19 }
  0xf7   : > { %4757 = vmatmul.mubr.msk.bf16.gmra.mrb[16].mxu0 %vm462_vm1, %v2991_v63  ;;  %v3040_v63 = vrot.slane %v3038_v48, 2  ;;  %v1386_v47 = vsel %vm920_vm4, %v1383_v33, %v1385_v18  ;;  %v1389_v48 = vrot.slane %v5544_v24, 1  ;;  %v1397_v19 = vrot.slane %v5576_v11, 1 }
  0xf8   : > { %4760 = vmatprep.mubr.msk.bf16.mxu0 %vm462_vm1, %v3000_v61  ;;  %v3036_v61 = vsel %vm2893_vm5, %v3026_v4, %v3035_v52  ;;  %v3061_v58 = vrot.slane %v3059_v25, 3  ;;  %v3346_v4 = vrot.slane %v5599_v23, 3  ;;  %v3348_v23 = vrot.slane %v5612_v34, 3 }
  0xf9   : > { %v3044_v17 = vor.u32 %v3043_v13, %v3040_v63  ;;  %v1392_v34 = vsel %vm920_vm4, %v1389_v48, %v1391_v62  ;;  %v1781_v26 = vshrl.u32 %v5521_v42, 16 }
  0xfa   : > { %v3351_v63 = vsel %vm3344_vm6, %v3348_v23, %v3350_v54 }
  0xfb   : > { %v3045_v15 = vsel %vm2893_vm5, %v3035_v52, %v3044_v17  ;;  %v3054_v40 = vsel %vm2893_vm5, %v3044_v17, %v3053_v16  ;;  %v5184_v17 = vld [vmem:[%s5253_s25 + $0x98] ss:$0 sps:$4 sm:$0x11]   ;;  %v1783_v25 = vrot.slane %v1781_v26, 1 }
  0xfc   : > { %4593 = vmatmul.mubr.msk.bf16.gmra.mrb[4].mxu1 %vm462_vm1, %v1372_v7  ;;  %v1380_v7 = vsel %vm920_vm4, %v1377_v46, %v1379_v0  ;;  %v4206_v46 = vcombine.low %v3337_v27, %v5586_v56  ;;  %v3358_v27 = vrot.slane %v5655_v51, 3 }
  0xfd   : > { %4596 = vmatprep.mubr.msk.bf16.mxu1 %vm462_vm1, %v1374_v30  ;;  %v1382_v30 = vsel %vm920_vm4, %v1379_v0, %v1381_v45  ;;  %v3349_v0 = vsel %vm3344_vm6, %v3346_v4, %v3348_v23 }
  0xff   : > { %4761 = vmatmul.mubr.msk.bf16.gmra.mrb[20].mxu0 %vm462_vm1, %v3009_v14  ;;  %v3058_v14 = vrot.slane %v3056_v28, 2 }
 0x100   : > { %4764 = vmatprep.mubr.msk.bf16.mxu0 %vm462_vm1, %v3018_v6  ;;  %v1384_v6 = vsel %vm920_vm4, %v1381_v45, %v1383_v33  ;;  %v1395_v45 = vrot.slane %v5572_v3, 1  ;;  %v1793_v33 = vshll.u32 %v5539_v22, 16 }
 0x101   : > { %v3062_v59 = vor.u32 %v3061_v58, %v3058_v14  ;;  %v1802_v58 = vshll.u32 %v5544_v24, 16 }
 0x102   : > { %v1398_v28 = vsel %vm920_vm4, %v1395_v45, %v1397_v19 }
 0x103   : > { %v3063_v56 = vsel %vm2893_vm5, %v3053_v16, %v3062_v59 }
 0x104   : > { %4597 = vmatmul.mubr.msk.bf16.gmra.mrb[8].mxu1 %vm462_vm1, %v1376_v31  ;;  %v3345_v31 = vrot.slane %v4206_v46, 3  ;;  %v1795_v46 = vrot.slane %v1793_v33, 2 }
 0x105   : > { %4600 = vmatprep.mubr.msk.bf16.mxu1 %vm462_vm1, %v1378_v50  ;;  %v1387_v50 = vrot.slane %v5539_v22, 1 }
 0x106   : > { %v3347_v57 = vsel %vm3344_vm6, %v3345_v31, %v3346_v4  ;;  %v3362_v31 = vrot.slane %v5674_v5, 3  ;;  %v1808_v4 = vshrl.u32 %v5556_v53, 16 }
 0x107   : > { %4765 = vmatmul.mubr.msk.bf16.gmra.mrb[24].mxu0 %vm462_vm1, %v3027_v1  ;;  %v1388_v52 = vsel %vm920_vm4, %v1385_v18, %v1387_v50  ;;  %v1390_v29 = vsel %vm920_vm4, %v1387_v50, %v1389_v48  ;;  %v1393_v1 = vrot.slane %v5560_v60, 1  ;;  %v1811_v50 = vshll.u32 %v5556_v53, 16 }
 0x108   : > { %4768 = vmatprep.mubr.msk.bf16.mxu0 %vm462_vm1, %v3036_v61  ;;  %v3353_v61 = vsel %vm3344_vm6, %v3350_v54, %v3352_v36 }
 0x109   : > { %v1394_v13 = vsel %vm920_vm4, %v1391_v62, %v1393_v1  ;;  %v1396_v41 = vsel %vm920_vm4, %v1393_v1, %v1395_v45  ;;  %v1813_v23 = vrot.slane %v1811_v50, 2  ;;  %v1826_v1 = vshrl.u32 %v5572_v3, 16 }
 0x10b   : > { %v1828_v45 = vrot.slane %v1826_v1, 1 }
 0x10c   : > { %4601 = vmatmul.mubr.msk.bf16.gmra.mrb[12].mxu1 %vm462_vm1, %v1380_v7  ;;  %v1784_v7 = vshll.u32 %v5521_v42, 16  ;;  %v1399_v42 = vrot.slane %v5184_v17, 1  ;;  %v1847_v17 = vshll.u32 %v5592_v9, 16 }
 0x10d   : > { %4604 = vmatprep.mubr.msk.bf16.mxu1 %vm462_vm1, %v1382_v30  ;;  %v3356_v30 = vrot.slane %v5651_v49, 3  ;;  %v1799_v49 = vshrl.u32 %v5544_v24, 16 }
 0x10e   : > { %v1786_v16 = vrot.slane %v1784_v7, 2  ;;  %v1400_v51 = vsel %vm920_vm4, %v1397_v19, %v1399_v42  ;;  %v3368_v19 = vrot.slane %v5706_v43, 3 }
 0x10f   : > { %4769 = vmatmul.mubr.msk.bf16.gmra.mrb[28].mxu0 %vm462_vm1, %v3045_v15  ;;  %v3357_v15 = vsel %vm3344_vm6, %v3354_v55, %v3356_v30  ;;  %v3359_v18 = vsel %vm3344_vm6, %v3356_v30, %v3358_v27  ;;  %v1801_v59 = vrot.slane %v1799_v49, 1  ;;  %v3378_v49 = vrot.slane %v5752_v38, 3 }
 0x110   : > { %4772 = vmatprep.mubr.msk.bf16.mxu0 %vm462_vm1, %v3054_v40  ;;  %v1787_v14 = vor.u32 %v1786_v16, %v1783_v25  ;;  %v1792_v40 = vrot.slane %v1790_v35, 1  ;;  %v3374_v35 = vrot.slane %v5735_v20, 3 }
 0x112   : > { %v1788_v22 = vsel %vm1681_vm2, %v5437_v8, %v1787_v14  ;;  %v1796_v24 = vor.u32 %v1795_v46, %v1792_v40  ;;  %v1820_v8 = vshll.u32 %v5560_v60, 16 }
 0x114   : > { %4605 = vmatmul.mubr.msk.bf16.gmra.mrb[16].mxu1 %vm462_vm1, %v1384_v6  ;;  %v3360_v6 = vrot.slane %v5669_v10, 3  ;;  %v1817_v10 = vshrl.u32 %v5560_v60, 16  ;;  %v1797_v5 = vsel %vm1681_vm2, %v1787_v14, %v1796_v24  ;;  %v1822_v62 = vrot.slane %v1820_v8, 2 }
 0x115   : > { %4608 = vmatprep.mubr.msk.bf16.mxu1 %vm462_vm1, %v1386_v47  ;;  %v1804_v47 = vrot.slane %v1802_v58, 2 }
 0x116   : > { %v1819_v54 = vrot.slane %v1817_v10, 1 }
 0x117   : > { %4773 = vmatmul.mubr.msk.bf16.gmra.mrb[32].mxu0 %vm462_vm1, %v3063_v56  ;;  %v3361_v56 = vsel %vm3344_vm6, %v3358_v27, %v3360_v6  ;;  %v1805_v48 = vor.u32 %v1804_v47, %v1801_v59  ;;  %v3372_v27 = vrot.slane %v5730_v12, 3  ;;  %v3376_v12 = vrot.slane %v5748_v32, 3 }
 0x118   : > { %4778 = vmatprep.mubr.msk.bf16.mxu0 %vm462_vm1, %v3347_v57  ;;  %v3363_v57 = vsel %vm3344_vm6, %v3360_v6, %v3362_v31  ;;  %v1823_v36 = vor.u32 %v1822_v62, %v1819_v54 }
 0x119   : > { %v1806_v53 = vsel %vm1681_vm2, %v1796_v24, %v1805_v48  ;;  %v3377_v20 = vsel %vm3344_vm6, %v3374_v35, %v3376_v12  ;;  %v3379_v58 = vsel %vm3344_vm6, %v3376_v12, %v3378_v49 }
 0x11c   : > { %4609 = vmatmul.mubr.msk.bf16.gmra.mrb[20].mxu1 %vm462_vm1, %v1388_v52  ;;  %v1810_v52 = vrot.slane %v1808_v4, 1 }
 0x11d   : > { %4612 = vmatprep.mubr.msk.bf16.mxu1 %vm462_vm1, %v1390_v29  ;;  %v3364_v29 = vrot.slane %v5687_v2, 3  ;;  %v1835_v2 = vshrl.u32 %v5576_v11, 16 }
 0x11e   : > { %v1814_v60 = vor.u32 %v1813_v23, %v1810_v52 }
 0x11f   : > { %4779 = vmatmul.mubr.msk.bf16.vlgmr.msra.gmra.mrb[0].mxu0 %vm462_vm1, %v3349_v0  ;;  %v3366_v0 = vrot.slane %v5692_v37, 3  ;;  %v1837_v26 = vrot.slane %v1835_v2, 1 }
 0x120   : > { %4782 = vmatprep.mubr.msk.bf16.mxu0 %vm462_vm1, %v3351_v63  ;;  %v1829_v63 = vshll.u32 %v5572_v3, 16  ;;  %v1815_v37 = vsel %vm1681_vm2, %v1805_v48, %v1814_v60  ;;  %v1824_v3 = vsel %vm1681_vm2, %v1814_v60, %v1823_v36 }
 0x121   : > { %v3367_v55 = vsel %vm3344_vm6, %v3364_v29, %v3366_v0  ;;  %v3369_v30 = vsel %vm3344_vm6, %v3366_v0, %v3368_v19 }
 0x124   : > { %4613 = vmatmul.mubr.msk.bf16.gmra.mrb[24].mxu1 %vm462_vm1, %v1392_v34  ;;  %v3365_v34 = vsel %vm3344_vm6, %v3362_v31, %v3364_v29  ;;  %v6045_v29 = vld [vmem:[%s6177_s2] ss:$0 sm:$0xff] }
 0x125   : > { %4616 = vmatprep.mubr.msk.bf16.mxu1 %vm462_vm1, %v1394_v13  ;;  %v1838_v13 = vshll.u32 %v5576_v11, 16 }
 0x127   : > { %4783 = vmatmul.mubr.msk.bf16.gmra.mrb[4].mxu0 %vm462_vm1, %v3353_v61  ;;  %v1831_v61 = vrot.slane %v1829_v63, 2  ;;  %v1840_v7 = vrot.slane %v1838_v13, 2 }
 0x128   : > { %4786 = vmatprep.mubr.msk.bf16.mxu0 %vm462_vm1, %v3355_v39  ;;  %v3370_v39 = vrot.slane %v5717_v44, 3  ;;  %v1849_v44 = vrot.slane %v1847_v17, 2 }
 0x129   : > { %v1832_v11 = vor.u32 %v1831_v61, %v1828_v45 }
 0x12a   : > { %v3371_v43 = vsel %vm3344_vm6, %v3368_v19, %v3370_v39  ;;  %v3373_v33 = vsel %vm3344_vm6, %v3370_v39, %v3372_v27 }
 0x12b   : > { %v1833_v25 = vsel %vm1681_vm2, %v1823_v36, %v1832_v11 }
 0x12c   : > { %4617 = vmatmul.mubr.msk.bf16.gmra.mrb[28].mxu1 %vm462_vm1, %v1396_v41  ;;  %v1844_v41 = vshrl.u32 %v5592_v9, 16 }
 0x12d   : > { %4620 = vmatprep.mubr.msk.bf16.mxu1 %vm462_vm1, %v1398_v28  ;;  %v1841_v28 = vor.u32 %v1840_v7, %v1837_v26 }
 0x12e   : > { %v1846_v16 = vrot.slane %v1844_v41, 1 }
 0x12f   : > { %4787 = vmatmul.mubr.msk.bf16.gmra.mrb[8].mxu0 %vm462_vm1, %v3357_v15  ;;  %v1842_v42 = vsel %vm1681_vm2, %v1832_v11, %v1841_v28  ;;  %v3375_v15 = vsel %vm3344_vm6, %v3372_v27, %v3374_v35 }
 0x130   : > { %4790 = vmatprep.mubr.msk.bf16.mxu0 %vm462_vm1, %v3359_v18  ;;  %v1850_v9 = vor.u32 %v1849_v44, %v1846_v16  ;;  %v3380_v18 = vrot.slane %v5887_v21, 3 }
 0x132   : > { %v1851_v14 = vsel %vm1681_vm2, %v1841_v28, %v1850_v9 }
 0x134   : > { %4621 = vmatmul.mubr.msk.bf16.gmra.mrb[32].mxu1 %vm462_vm1, %v1400_v51  ;;  %v3381_v51 = vsel %vm3344_vm6, %v3378_v49, %v3380_v18 }
 0x135   : > { %4646 = vmatprep.mubr.msk.bf16.mxu1 %vm462_vm1, %v1788_v22 }
 0x137   : > { %4791 = vmatmul.mubr.msk.bf16.gmra.mrb[12].mxu0 %vm462_vm1, %v3361_v56 }
 0x138   : > { %4794 = vmatprep.mubr.msk.bf16.mxu0 %vm462_vm1, %v3363_v57 }
 0x13c   : > { %4647 = vmatmul.mubr.msk.bf16.vlgmr.msra.gmra.mrb[20].mxu1 %vm462_vm1, %v1797_v5 }
 0x13d   : > { %4650 = vmatprep.mubr.msk.bf16.mxu1 %vm462_vm1, %v1806_v53 }
 0x13f   : > { %4795 = vmatmul.mubr.msk.bf16.gmra.mrb[16].mxu0 %vm462_vm1, %v3365_v34 }
 0x140   : > { %4798 = vmatprep.mubr.msk.bf16.mxu0 %vm462_vm1, %v3367_v55 }
 0x144   : > { %4651 = vmatmul.mubr.msk.bf16.gmra.mrb[24].mxu1 %vm462_vm1, %v1815_v37 }
 0x145   : > { %4654 = vmatprep.mubr.msk.bf16.mxu1 %vm462_vm1, %v1824_v3 }
 0x147   : > { %4799 = vmatmul.mubr.msk.bf16.gmra.mrb[20].mxu0 %vm462_vm1, %v3369_v30 }
 0x148   : > { %4802 = vmatprep.mubr.msk.bf16.mxu0 %vm462_vm1, %v3371_v43 }
 0x14c   : > { %4655 = vmatmul.mubr.msk.bf16.gmra.mrb[28].mxu1 %vm462_vm1, %v1833_v25 }
 0x14d   : > { %4658 = vmatprep.mubr.msk.bf16.mxu1 %vm462_vm1, %v1842_v42 }
 0x14f   : > { %4803 = vmatmul.mubr.msk.bf16.gmra.mrb[24].mxu0 %vm462_vm1, %v3373_v33 }
 0x150   : > { %4806 = vmatprep.mubr.msk.bf16.mxu0 %vm462_vm1, %v3375_v15 }
 0x154   : > { %4659 = vmatmul.mubr.msk.bf16.gmra.mrb[32].mxu1 %vm462_vm1, %v1851_v14 }
 0x157   : > { %4807 = vmatmul.mubr.msk.bf16.gmra.mrb[28].mxu0 %vm462_vm1, %v3377_v20 }
 0x158   : > { %4810 = vmatprep.mubr.msk.bf16.mxu0 %vm462_vm1, %v3379_v58 }
 0x15f   : > { %4811 = vmatmul.mubr.msk.bf16.gmra.mrb[32].mxu0 %vm462_vm1, %v3381_v51 }
 0x1c7   : > { %v4590_v40 = vpop.f32.mrb[0].mxu1 }
 0x1c8   : > { %v1495_v32 = vpop.f32.mrb[1].mxu1 }
 0x1c9   : > { %v4591_v46 = vpop.f32.mrb[2].mxu1 }
 0x1ca   : > { %v1498_v38 = vpop.f32.mrb[3].mxu1 }
 0x1cf   : > { %v4594_v6 = vpop.f32.mrb[4].mxu1 }
 0x1d0   : > { %v1511_v22 = vpop.f32.mrb[5].mxu1 }
 0x1d1   : > { %v4595_v59 = vpop.f32.mrb[6].mxu1 }
 0x1d2   : > { %v1514_v47 = vpop.f32.mrb[7].mxu1 }
 0x1d7   : > { %v4598_v31 = vpop.f32.mrb[8].mxu1 }
 0x1d8   : > { %v6020_v24 = vpop.f32.mrb[9].mxu1 }
 0x1d9   : > { %v6022_v4 = vpop.f32.mrb[10].mxu1 }
 0x1da   : > { %v6024_v50 = vpop.f32.mrb[11].mxu1 }
 0x1df   : > { %v6026_v21 = vpop.f32.mrb[12].mxu1 }
 0x1e0   : > { %v6028_v56 = vpop.f32.mrb[13].mxu1 }
 0x1e1   : > { %v6030_v48 = vpop.f32.mrb[14].mxu1 }
 0x1e2   : > { %v6032_v10 = vpop.f32.mrb[15].mxu1 }
 0x1e7   : > { %v6034_v8 = vpop.f32.mrb[16].mxu1 }
 0x1e8   : > { %v6036_v57 = vpop.f32.mrb[17].mxu1 }
 0x1e9   : > { %v6038_v5 = vpop.f32.mrb[18].mxu1 }
 0x1ea   : > { %v6040_v52 = vpop.f32.mrb[19].mxu1 }
 0x1f2   : > { %v4780_v23 = vpop.f32.mrb[0].mxu0 }
 0x1f3   : > { %v4816_v53 = vadd.f32 %v4780_v23, %v4590_v40  ;;  %v3476_v54 = vpop.f32.mrb[1].mxu0 }
 0x1f4   : > { %v4817_v62 = vadd.f32 %v3476_v54, %v1495_v32  ;;  %v4781_v0 = vpop.f32.mrb[2].mxu0 }
 0x1f5   : > { %v3664_v60 = vadd.f32 %v4816_v53, %v6045_v29  ;;  %v4818_v1 = vadd.f32 %v4781_v0, %v4591_v46  ;;  %v3479_v63 = vpop.f32.mrb[3].mxu0 }
 0x1f6   : > { %v3662_v34 = vadd.f32 %v4817_v62, %v6045_v29  ;;  %v4819_v36 = vadd.f32 %v3479_v63, %v1498_v38 }
 0x1f7   : > { %v3700_v2 = vmax.f32 %v3664_v60, 0.0  ;;  %v3665_v13 = vadd.f32 %v4818_v1, %v6045_v29 }
 0x1f8   : > { %v3698_v55 = vmax.f32 %v3662_v34, 0.0  ;;  %v3663_v37 = vadd.f32 %v4819_v36, %v6045_v29 }
 0x1f9   : > { %v4267_v45 = vpack.c.bf16 %v3700_v2, %v3700_v2  ;;  %v3701_v61 = vmax.f32 %v3665_v13, 0.0 }
 0x1fa   : > { %v4265_v19 = vpack.c.bf16 %v3698_v55, %v3698_v55  ;;  %v3699_v3 = vmax.f32 %v3663_v37, 0.0  ;;  %v4784_v26 = vpop.f32.mrb[4].mxu0 }
 0x1fb   : > { %3881 = vst.msk [vmem:[%s6054_s18 + $0x8] sm:$0xf] %vm3878_vm7, %v4267_v45  ;;  %v4268_v7 = vpack.c.bf16 %v3701_v61, %v3701_v61  ;;  %v4820_v39 = vadd.f32 %v4784_v26, %v4594_v6  ;;  %v3492_v11 = vpop.f32.mrb[5].mxu0 }
 0x1fc   : > { %3879 = vst.msk [vmem:[%s6054_s18] sm:$0xf] %vm3878_vm7, %v4265_v19  ;;  %v4266_v41 = vpack.c.bf16 %v3699_v3, %v3699_v3  ;;  %v4821_v17 = vadd.f32 %v3492_v11, %v1511_v22  ;;  %v4785_v30 = vpop.f32.mrb[6].mxu0 }
 0x1fd   : > { %3882 = vst.msk [vmem:[%s6054_s18 + $0xc] sm:$0xf] %vm3878_vm7, %v4268_v7  ;;  %v3668_v28 = vadd.f32 %v4820_v39, %v6045_v29  ;;  %v4822_v43 = vadd.f32 %v4785_v30, %v4595_v59  ;;  %v3495_v25 = vpop.f32.mrb[7].mxu0 }
 0x1fe   : > { %3880 = vst.msk [vmem:[%s6054_s18 + $0x4] sm:$0xf] %vm3878_vm7, %v4266_v41  ;;  %v3666_v16 = vadd.f32 %v4821_v17, %v6045_v29  ;;  %v4823_v44 = vadd.f32 %v3495_v25, %v1514_v47 }
 0x1ff   : > { %v3704_v27 = vmax.f32 %v3668_v28, 0.0  ;;  %v3669_v42 = vadd.f32 %v4822_v43, %v6045_v29 }
 0x200   : > { %v3702_v35 = vmax.f32 %v3666_v16, 0.0  ;;  %v3667_v9 = vadd.f32 %v4823_v44, %v6045_v29 }
 0x201   : > { %v4271_v33 = vpack.c.bf16 %v3704_v27, %v3704_v27  ;;  %v3705_v15 = vmax.f32 %v3669_v42, 0.0 }
 0x202   : > { %v4269_v14 = vpack.c.bf16 %v3702_v35, %v3702_v35  ;;  %v3703_v12 = vmax.f32 %v3667_v9, 0.0  ;;  %v4788_v49 = vpop.f32.mrb[8].mxu0 }
 0x203   : > { %3885 = vst.msk [vmem:[%s6054_s18 + $0x18] sm:$0xf] %vm3878_vm7, %v4271_v33  ;;  %v4272_v20 = vpack.c.bf16 %v3705_v15, %v3705_v15  ;;  %v4824_v58 = vadd.f32 %v4788_v49, %v4598_v31  ;;  %v3508_v18 = vpop.f32.mrb[9].mxu0 }
 0x204   : > { %3883 = vst.msk [vmem:[%s6054_s18 + $0x10] sm:$0xf] %vm3878_vm7, %v4269_v14  ;;  %v4270_v51 = vpack.c.bf16 %v3703_v12, %v3703_v12  ;;  %v4825_v40 = vadd.f32 %v3508_v18, %v6020_v24  ;;  %v4789_v32 = vpop.f32.mrb[10].mxu0 }
 0x205   : > { %3886 = vst.msk [vmem:[%s6054_s18 + $0x1c] sm:$0xf] %vm3878_vm7, %v4272_v20  ;;  %v3672_v46 = vadd.f32 %v4824_v58, %v6045_v29  ;;  %v4826_v38 = vadd.f32 %v4789_v32, %v6022_v4  ;;  %v3511_v6 = vpop.f32.mrb[11].mxu0 }
 0x206   : > { %3884 = vst.msk [vmem:[%s6054_s18 + $0x14] sm:$0xf] %vm3878_vm7, %v4270_v51  ;;  %v3670_v22 = vadd.f32 %v4825_v40, %v6045_v29  ;;  %v4827_v59 = vadd.f32 %v3511_v6, %v6024_v50 }
 0x207   : > { %v3708_v47 = vmax.f32 %v3672_v46, 0.0  ;;  %v3673_v31 = vadd.f32 %v4826_v38, %v6045_v29 }
 0x208   : > { %v3706_v24 = vmax.f32 %v3670_v22, 0.0  ;;  %v3671_v23 = vadd.f32 %v4827_v59, %v6045_v29 }
 0x209   : > { %v4275_v53 = vpack.c.bf16 %v3708_v47, %v3708_v47  ;;  %v3709_v54 = vmax.f32 %v3673_v31, 0.0 }
 0x20a   : > { %v4273_v62 = vpack.c.bf16 %v3706_v24, %v3706_v24  ;;  %v3707_v4 = vmax.f32 %v3671_v23, 0.0  ;;  %v4792_v0 = vpop.f32.mrb[12].mxu0 }
 0x20b   : > { %3889 = vst.msk [vmem:[%s6054_s18 + $0x28] sm:$0xf] %vm3878_vm7, %v4275_v53  ;;  %v4276_v60 = vpack.c.bf16 %v3709_v54, %v3709_v54  ;;  %v4828_v1 = vadd.f32 %v4792_v0, %v6026_v21  ;;  %v3524_v63 = vpop.f32.mrb[13].mxu0 }
 0x20c   : > { %3887 = vst.msk [vmem:[%s6054_s18 + $0x20] sm:$0xf] %vm3878_vm7, %v4273_v62  ;;  %v4274_v50 = vpack.c.bf16 %v3707_v4, %v3707_v4  ;;  %v4829_v34 = vadd.f32 %v3524_v63, %v6028_v56  ;;  %v4793_v36 = vpop.f32.mrb[14].mxu0 }
 0x20d   : > { %3890 = vst.msk [vmem:[%s6054_s18 + $0x2c] sm:$0xf] %vm3878_vm7, %v4276_v60  ;;  %v3676_v2 = vadd.f32 %v4828_v1, %v6045_v29  ;;  %v4830_v13 = vadd.f32 %v4793_v36, %v6030_v48  ;;  %v3527_v55 = vpop.f32.mrb[15].mxu0 }
 0x20e   : > { %3888 = vst.msk [vmem:[%s6054_s18 + $0x24] sm:$0xf] %vm3878_vm7, %v4274_v50  ;;  %v3674_v21 = vadd.f32 %v4829_v34, %v6045_v29  ;;  %v4831_v45 = vadd.f32 %v3527_v55, %v6032_v10 }
 0x20f   : > { %v4648_v37 = vpop.f32.mrb[20].mxu1  ;;  %v3712_v19 = vmax.f32 %v3676_v2, 0.0  ;;  %v3677_v56 = vadd.f32 %v4830_v13, %v6045_v29 }
 0x210   : > { %v2026_v61 = vpop.f32.mrb[21].mxu1  ;;  %v3710_v26 = vmax.f32 %v3674_v21, 0.0  ;;  %v3675_v7 = vadd.f32 %v4831_v45, %v6045_v29 }
 0x211   : > { %v4649_v3 = vpop.f32.mrb[22].mxu1  ;;  %v4279_v39 = vpack.c.bf16 %v3712_v19, %v3712_v19  ;;  %v3713_v11 = vmax.f32 %v3677_v56, 0.0 }
 0x212   : > { %v2029_v48 = vpop.f32.mrb[23].mxu1  ;;  %v4277_v41 = vpack.c.bf16 %v3710_v26, %v3710_v26  ;;  %v3711_v17 = vmax.f32 %v3675_v7, 0.0  ;;  %v4796_v30 = vpop.f32.mrb[16].mxu0 }
 0x213   : > { %3893 = vst.msk [vmem:[%s6054_s18 + $0x38] sm:$0xf] %vm3878_vm7, %v4279_v39  ;;  %v4280_v10 = vpack.c.bf16 %v3713_v11, %v3713_v11  ;;  %v4832_v28 = vadd.f32 %v4796_v30, %v6034_v8  ;;  %v3540_v43 = vpop.f32.mrb[17].mxu0 }
 0x214   : > { %3891 = vst.msk [vmem:[%s6054_s18 + $0x30] sm:$0xf] %vm3878_vm7, %v4277_v41  ;;  %v4278_v25 = vpack.c.bf16 %v3711_v17, %v3711_v17  ;;  %v4833_v16 = vadd.f32 %v3540_v43, %v6036_v57  ;;  %v4797_v44 = vpop.f32.mrb[18].mxu0 }
 0x215   : > { %3894 = vst.msk [vmem:[%s6054_s18 + $0x3c] sm:$0xf] %vm3878_vm7, %v4280_v10  ;;  %v3680_v27 = vadd.f32 %v4832_v28, %v6045_v29  ;;  %v4834_v42 = vadd.f32 %v4797_v44, %v6038_v5  ;;  %v3543_v35 = vpop.f32.mrb[19].mxu0 }
 0x216   : > { %3892 = vst.msk [vmem:[%s6054_s18 + $0x34] sm:$0xf] %vm3878_vm7, %v4278_v25  ;;  %v3678_v8 = vadd.f32 %v4833_v16, %v6045_v29  ;;  %v4835_v33 = vadd.f32 %v3543_v35, %v6040_v52 }
 0x217   : > { %v4652_v9 = vpop.f32.mrb[24].mxu1  ;;  %v3716_v14 = vmax.f32 %v3680_v27, 0.0  ;;  %v3681_v57 = vadd.f32 %v4834_v42, %v6045_v29 }
 0x218   : > { %v2042_v15 = vpop.f32.mrb[25].mxu1  ;;  %v3714_v49 = vmax.f32 %v3678_v8, 0.0  ;;  %v3679_v20 = vadd.f32 %v4835_v33, %v6045_v29 }
 0x219   : > { %v4653_v12 = vpop.f32.mrb[26].mxu1  ;;  %v4283_v58 = vpack.c.bf16 %v3716_v14, %v3716_v14  ;;  %v3717_v18 = vmax.f32 %v3681_v57, 0.0 }
 0x21a   : > { %v2045_v5 = vpop.f32.mrb[27].mxu1  ;;  %v4281_v51 = vpack.c.bf16 %v3714_v49, %v3714_v49  ;;  %v3715_v40 = vmax.f32 %v3679_v20, 0.0  ;;  %v4800_v32 = vpop.f32.mrb[20].mxu0 }
 0x21b   : > { %3897 = vst.msk [vmem:[%s6054_s18 + $0x48] sm:$0xf] %vm3878_vm7, %v4283_v58  ;;  %v4284_v52 = vpack.c.bf16 %v3717_v18, %v3717_v18  ;;  %v4836_v46 = vadd.f32 %v4800_v32, %v4648_v37  ;;  %v3556_v38 = vpop.f32.mrb[21].mxu0 }
 0x21c   : > { %3895 = vst.msk [vmem:[%s6054_s18 + $0x40] sm:$0xf] %vm3878_vm7, %v4281_v51  ;;  %v4282_v6 = vpack.c.bf16 %v3715_v40, %v3715_v40  ;;  %v4837_v22 = vadd.f32 %v3556_v38, %v2026_v61  ;;  %v4801_v59 = vpop.f32.mrb[22].mxu0 }
 0x21d   : > { %3898 = vst.msk [vmem:[%s6054_s18 + $0x4c] sm:$0xf] %vm3878_vm7, %v4284_v52  ;;  %v3684_v47 = vadd.f32 %v4836_v46, %v6045_v29  ;;  %v4838_v31 = vadd.f32 %v4801_v59, %v4649_v3  ;;  %v3559_v24 = vpop.f32.mrb[23].mxu0 }
 0x21e   : > { %3896 = vst.msk [vmem:[%s6054_s18 + $0x44] sm:$0xf] %vm3878_vm7, %v4282_v6  ;;  %v3682_v53 = vadd.f32 %v4837_v22, %v6045_v29  ;;  %v4839_v54 = vadd.f32 %v3559_v24, %v2029_v48 }
 0x21f   : > { %v4656_v23 = vpop.f32.mrb[28].mxu1  ;;  %v3720_v4 = vmax.f32 %v3684_v47, 0.0  ;;  %v3685_v0 = vadd.f32 %v4838_v31, %v6045_v29 }
 0x220   : > { %v2058_v62 = vpop.f32.mrb[29].mxu1  ;;  %v3718_v1 = vmax.f32 %v3682_v53, 0.0  ;;  %v3683_v63 = vadd.f32 %v4839_v54, %v6045_v29 }
 0x221   : > { %v4657_v60 = vpop.f32.mrb[30].mxu1  ;;  %v4287_v34 = vpack.c.bf16 %v3720_v4, %v3720_v4  ;;  %v3721_v36 = vmax.f32 %v3685_v0, 0.0 }
 0x222   : > { %v2061_v50 = vpop.f32.mrb[31].mxu1  ;;  %v4285_v2 = vpack.c.bf16 %v3718_v1, %v3718_v1  ;;  %v3719_v13 = vmax.f32 %v3683_v63, 0.0  ;;  %v4804_v55 = vpop.f32.mrb[24].mxu0 }
 0x223   : > { %3901 = vst.msk [vmem:[%s6054_s18 + $0x58] sm:$0xf] %vm3878_vm7, %v4287_v34  ;;  %v4288_v37 = vpack.c.bf16 %v3721_v36, %v3721_v36  ;;  %v4840_v21 = vadd.f32 %v4804_v55, %v4652_v9  ;;  %v3572_v45 = vpop.f32.mrb[25].mxu0 }
 0x224   : > { %3899 = vst.msk [vmem:[%s6054_s18 + $0x50] sm:$0xf] %vm3878_vm7, %v4285_v2  ;;  %v4286_v61 = vpack.c.bf16 %v3719_v13, %v3719_v13  ;;  %v4841_v19 = vadd.f32 %v3572_v45, %v2042_v15  ;;  %v4805_v56 = vpop.f32.mrb[26].mxu0 }
 0x225   : > { %3902 = vst.msk [vmem:[%s6054_s18 + $0x5c] sm:$0xf] %vm3878_vm7, %v4288_v37  ;;  %v3688_v3 = vadd.f32 %v4840_v21, %v6045_v29  ;;  %v4842_v26 = vadd.f32 %v4805_v56, %v4653_v12  ;;  %v3575_v7 = vpop.f32.mrb[27].mxu0 }
 0x226   : > { %3900 = vst.msk [vmem:[%s6054_s18 + $0x54] sm:$0xf] %vm3878_vm7, %v4286_v61  ;;  %v3686_v39 = vadd.f32 %v4841_v19, %v6045_v29  ;;  %v4843_v11 = vadd.f32 %v3575_v7, %v2045_v5 }
 0x227   : > { %v4660_v48 = vpop.f32.mrb[32].mxu1  ;;  %v3724_v17 = vmax.f32 %v3688_v3, 0.0  ;;  %v3689_v30 = vadd.f32 %v4842_v26, %v6045_v29 }
 0x228   : > { %v2074_v41 = vpop.f32.mrb[33].mxu1  ;;  %v3722_v28 = vmax.f32 %v3686_v39, 0.0  ;;  %v3687_v43 = vadd.f32 %v4843_v11, %v6045_v29 }
 0x229   : > { %v4661_v10 = vpop.f32.mrb[34].mxu1  ;;  %v4291_v16 = vpack.c.bf16 %v3724_v17, %v3724_v17  ;;  %v3725_v44 = vmax.f32 %v3689_v30, 0.0 }
 0x22a   : > { %v2077_v25 = vpop.f32.mrb[35].mxu1  ;;  %v4289_v27 = vpack.c.bf16 %v3722_v28, %v3722_v28  ;;  %v3723_v42 = vmax.f32 %v3687_v43, 0.0  ;;  %v4808_v35 = vpop.f32.mrb[28].mxu0 }
 0x22b   : > { %3905 = vst.msk [vmem:[%s6054_s18 + $0x68] sm:$0xf] %vm3878_vm7, %v4291_v16  ;;  %v4292_v9 = vpack.c.bf16 %v3725_v44, %v3725_v44  ;;  %v4844_v8 = vadd.f32 %v4808_v35, %v4656_v23  ;;  %v3588_v33 = vpop.f32.mrb[29].mxu0 }
 0x22c   : > { %3903 = vst.msk [vmem:[%s6054_s18 + $0x60] sm:$0xf] %vm3878_vm7, %v4289_v27  ;;  %v4290_v15 = vpack.c.bf16 %v3723_v42, %v3723_v42  ;;  %v4845_v14 = vadd.f32 %v3588_v33, %v2058_v62  ;;  %v4809_v57 = vpop.f32.mrb[30].mxu0 }
 0x22d   : > { %3906 = vst.msk [vmem:[%s6054_s18 + $0x6c] sm:$0xf] %vm3878_vm7, %v4292_v9  ;;  %v3692_v12 = vadd.f32 %v4844_v8, %v6045_v29  ;;  %v4846_v49 = vadd.f32 %v4809_v57, %v4657_v60  ;;  %v3591_v20 = vpop.f32.mrb[31].mxu0 }
 0x22e   : > { %3904 = vst.msk [vmem:[%s6054_s18 + $0x64] sm:$0xf] %vm3878_vm7, %v4290_v15  ;;  %v3690_v5 = vadd.f32 %v4845_v14, %v6045_v29  ;;  %v4847_v58 = vadd.f32 %v3591_v20, %v2061_v50 }
 0x22f   : > { %v3728_v18 = vmax.f32 %v3692_v12, 0.0  ;;  %v3693_v51 = vadd.f32 %v4846_v49, %v6045_v29 }
 0x230   : > { %v3726_v40 = vmax.f32 %v3690_v5, 0.0  ;;  %v3691_v32 = vadd.f32 %v4847_v58, %v6045_v29 }
 0x231   : > { %v4295_v52 = vpack.c.bf16 %v3728_v18, %v3728_v18  ;;  %v3729_v46 = vmax.f32 %v3693_v51, 0.0 }
 0x232   : > { %v4293_v38 = vpack.c.bf16 %v3726_v40, %v3726_v40  ;;  %v3727_v6 = vmax.f32 %v3691_v32, 0.0  ;;  %v4812_v22 = vpop.f32.mrb[32].mxu0 }
 0x233   : > { %3909 = vst.msk [vmem:[%s6054_s18 + $0x78] sm:$0xf] %vm3878_vm7, %v4295_v52  ;;  %v4296_v59 = vpack.c.bf16 %v3729_v46, %v3729_v46  ;;  %v4848_v47 = vadd.f32 %v4812_v22, %v4660_v48  ;;  %v3604_v31 = vpop.f32.mrb[33].mxu0 }
 0x234   : > { %3907 = vst.msk [vmem:[%s6054_s18 + $0x70] sm:$0xf] %vm3878_vm7, %v4293_v38  ;;  %v4294_v24 = vpack.c.bf16 %v3727_v6, %v3727_v6  ;;  %v4849_v23 = vadd.f32 %v3604_v31, %v2074_v41  ;;  %v4813_v53 = vpop.f32.mrb[34].mxu0 }
 0x235   : > { %3910 = vst.msk [vmem:[%s6054_s18 + $0x7c] sm:$0xf] %vm3878_vm7, %v4296_v59  ;;  %v3696_v54 = vadd.f32 %v4848_v47, %v6045_v29  ;;  %v4850_v62 = vadd.f32 %v4813_v53, %v4661_v10  ;;  %v3607_v4 = vpop.f32.mrb[35].mxu0 }
 0x236   : > { %3908 = vst.msk [vmem:[%s6054_s18 + $0x74] sm:$0xf] %vm3878_vm7, %v4294_v24  ;;  %v3694_v0 = vadd.f32 %v4849_v23, %v6045_v29  ;;  %v4851_v60 = vadd.f32 %v3607_v4, %v2077_v25 }
 0x237   : > { %v3732_v1 = vmax.f32 %v3696_v54, 0.0  ;;  %v3697_v63 = vadd.f32 %v4850_v62, %v6045_v29 }
 0x238   : > { %v3730_v50 = vmax.f32 %v3694_v0, 0.0  ;;  %v3695_v34 = vadd.f32 %v4851_v60, %v6045_v29 }
 0x239   : > { %v4299_v36 = vpack.c.bf16 %v3732_v1, %v3732_v1  ;;  %v3733_v2 = vmax.f32 %v3697_v63, 0.0 }
 0x23a   : > { %v4297_v13 = vpack.c.bf16 %v3730_v50, %v3730_v50  ;;  %v3731_v55 = vmax.f32 %v3695_v34, 0.0 }
 0x23b   : > { %3913 = vst.msk [vmem:[%s6054_s18 + $0x88] sm:$0xf] %vm3878_vm7, %v4299_v36  ;;  %v4300_v37 = vpack.c.bf16 %v3733_v2, %v3733_v2 }
 0x23c   : > { %3911 = vst.msk [vmem:[%s6054_s18 + $0x80] sm:$0xf] %vm3878_vm7, %v4297_v13  ;;  %v4298_v21 = vpack.c.bf16 %v3731_v55, %v3731_v55 }
 0x23d   : > { %3914 = vst.msk [vmem:[%s6054_s18 + $0x8c] sm:$0xf] %vm3878_vm7, %v4300_v37 }
 0x23e   : > { %3912 = vst.msk [vmem:[%s6054_s18 + $0x84] sm:$0xf] %vm3878_vm7, %v4298_v21 }
 0x23f PF: > { %s13_s12 = sadd.s32 1, %s5202_s12  }
 0x240   : > { %p10_p4 = scmp.ge.s32.totalorder %s13_s12, 4  }
 0x242   :  { %12 = sbr.rel (!%p10_p4) target bundleno = 1 (0x1), region = 70 }

// kernel: perceptual_forward.10
= control target key start
LH: loop header
LB: loop body
LE: loop exit
PB: predicated region body
PF: predicated region fallthrough
CT: control target
= control target key end

     0   :  { %s1982_s12 = smov 0   ;;  %s2391_s0 = inlined_call_operand.vmem [shape: bf16[2,110,16], index: 0, kind: input, shape index: {}]   ;;  %s2392_s1 = inlined_call_operand.vmem [shape: bf16[9,16,32], index: 1, kind: input, shape index: {}]   ;;  %s2393_s2 = inlined_call_operand.vmem [shape: f32[1,32], index: 2, kind: input, shape index: {}]   ;;  %s2394_s3 = inlined_call_operand.vmem [shape: f32[2,80,32], index: 3, kind: output, shape index: {}]  }
   0x1 LB: > { %s1551_s13 = sadd.s32 4294967295, %s1958_s12   ;;  %p1555_p0 = scmp.ge.s32.totalorder %s1958_s12, 1  ;;  %s1958_s12 = sphi %s1982_s12, %s13_s12  }
   0x2   : > { %p137_p1 = scmp.lt.s32.totalorder %s1958_s12, 3 }
   0x4   : > { %p138_p2 = pnand %p1555_p0, %p137_p1 }
   0x5   : > { %v1920_v0 = vld [vmem:[%s2392_s1 + $0x8] sm:$0xff] (!%p138_p2)   ;;  %v1960_v1 = vmov (!%p138_p2), 0.0   ;;  %p161_p3 = scmp.lt.s32.totalorder (!%p138_p2), %s1551_s13, 1  ;;  %vm1961_vm0 = vmmov (!%p138_p2), 0   ;;  %vm216_vm1 = vsmask.f32 (!%p138_p2), 7424 }
   0x6   : > { %141 = sbr.rel (%p138_p2) target bundleno = 424 (0x1a8), region = 32  ;;  %1708 = vmatprep.subr.bf16.mxu0 (!%p138_p2), %v1960_v1  ;;  %1906 = vmatprep.subr.bf16.mxu1 (!%p138_p2), %v1960_v1  ;;  %vm267_vm2 = vcmask (!%p138_p2), 130048   ;;  %v1925_v20 = vld [vmem:[%s2392_s1 + $0x10] sm:$0xff] (!%p138_p2)   ;;  %v1926_v24 = vld [vmem:[%s2392_s1] sm:$0xff] (!%p138_p2)   ;;  %vm452_vm3 = vcmask (!%p138_p2), 1046528   ;;  %v1929_v46 = vld [vmem:[%s2392_s1 + $0x18] sm:$0xff] (!%p138_p2)  }
   0x7   : > { %1709 = vmatpush3.bf16.msra.mxu0 (!%p138_p2), %v1920_v0  ;;  %1907 = vmatpush3.bf16.msra.mxu1 (!%p138_p2), %v1920_v0  ;;  %v1931_v50 = vld [vmem:[%s2392_s1 + $0x20] sm:$0xff] (!%p138_p2)   ;;  %vm732_vm4 = vsmask.f32 (!%p138_p2), 6400  ;;  %vm897_vm5 = vcmask (!%p138_p2), 1045504   ;;  %vm1177_vm6 = vsmask.f32 (!%p138_p2), 5376 }
   0x8   : > { %1710 = vmatprep.mubr.msk.bf16.mxu0 (!%p138_p2), %vm1961_vm0, %v1960_v1  ;;  %1722 = vmatprep.mubr.msk.bf16.mxu1 (!%p138_p2), %vm1961_vm0, %v1960_v1  ;;  %vm1342_vm7 = vcmask (!%p138_p2), 1044480   ;;  %vm1485_vm8 = vcmask (!%p138_p2), 261120  }
   0x9   : > { %1752 = vmatprep.subr.bf16.mxu0 (!%p138_p2), %v1960_v1  ;;  %1730 = vmatprep.subr.bf16.mxu1 (!%p138_p2), %v1960_v1 }
   0xd   : > { %s2396_s13 = smov (!%p161_p3, %s1551_s13), 1 }
   0xe   : > { %s1908_s16 = smul.u32 56, %s2396_s13 }
   0xf   : > { %s1909_s9 = smul.u32 80, %s2396_s13 }
  0x10   : > { %s2007_s19 = scalar_lea.vmem %s2391_s0, %s1908_s16 }
  0x11   : > { %v172_v2 = vld [vmem:[%s2007_s19] sm:$0xf]  ;;  %v173_v3 = vld [vmem:[%s2007_s19 + $0x4] sm:$0xf]  ;;  %v2012_v5 = vld [vmem:[%s2007_s19 + $0x8] sm:$0xff]   ;;  %s2352_s13 = scalar_lea.vmem %s2394_s3, %s1909_s9 }
  0x12   : > { %v1560_v4 = vcombine.low %v172_v2, %v173_v3  ;;  %v225_v8 = vshll.u32 %v2012_v5, 16  ;;  %v2016_v9 = vld [vmem:[%s2007_s19 + $0x18] sm:$0xff]   ;;  %v2019_v10 = vld [vmem:[%s2007_s19 + $0x20] sm:$0xff]   ;;  %v2022_v11 = vld [vmem:[%s2007_s19 + $0x10] sm:$0xff]   ;;  %v229_v21 = vshrl.u32 %v2012_v5, 16  ;;  %v454_v48 = vrot.slane %v2012_v5, 1 }
  0x13   : > { %v241_v14 = vshll.u32 %v2016_v9, 16  ;;  %v245_v15 = vshrl.u32 %v2016_v9, 16  ;;  %v249_v16 = vshll.u32 %v2019_v10, 16  ;;  %v2028_v17 = vld [vmem:[%s2007_s19 + $0x28] ss:$0 sps:$4 sm:$0x11]  }
  0x14   : > { %v218_v6 = vshrl.u32 %v1560_v4, 16  ;;  %v220_v7 = vshll.u32 %v1560_v4, 16  ;;  %v227_v13 = vrot.slane %v225_v8, 1  ;;  %v233_v22 = vshll.u32 %v2022_v11, 16  ;;  %v2053_v36 = vld [vmem:[%s2007_s19 + $0x24] sm:$0xff]   ;;  %v2120_v60 = vld [vmem:[%s2007_s19 + $0xc] sm:$0xff]  }
  0x15   : > { %v243_v19 = vrot.slane %v241_v14, 1  ;;  %v251_v23 = vrot.slane %v249_v16, 1  ;;  %v253_v27 = vshrl.u32 %v2019_v10, 16  ;;  %v257_v28 = vshll.u32 %v2028_v17, 16  ;;  %v445_v40 = vld [vmem:[%s2007_s19] sm:$0xe] }
  0x16   : > { %v222_v12 = vrot.slane %v220_v7, 1  ;;  %v231_v30 = vor.u32 %v229_v21, %v227_v13  ;;  %v235_v31 = vrot.slane %v233_v22, 1  ;;  %v237_v35 = vshrl.u32 %v2022_v11, 16  ;;  %v1939_v37 = vld [vmem:[%s2007_s19 + $0x2c] ss:$0 sps:$4 sm:$0x11]  }
  0x17   : > { %v247_v26 = vor.u32 %v245_v15, %v243_v19  ;;  %v255_v32 = vor.u32 %v253_v27, %v251_v23  ;;  %v259_v33 = vrot.slane %v257_v28, 1  ;;  %v617_v41 = vrot.slane %v2053_v36, 1  ;;  %v568_v56 = vld [vmem:[%s2007_s19 + $0x4] sm:$0xe]  ;;  %v2115_v57 = vld [vmem:[%s2007_s19 + $0x8] sm:$0xf] }
  0x18   : > { %v223_v18 = vor.u32 %v222_v12, %v218_v6  ;;  %v236_v34 = vsel %vm216_vm1, %v231_v30, %v235_v31  ;;  %v239_v39 = vor.u32 %v237_v35, %v235_v31  ;;  %v619_v42 = vrot.slane %v1939_v37, 1  ;;  %v1934_v12 = vld [vmem:[%s2392_s1 + $0x28] sm:$0xff]  }
  0x19   : > { %v252_v29 = vsel %vm216_vm1, %v247_v26, %v251_v23  ;;  %v260_v38 = vsel %vm216_vm1, %v255_v32, %v259_v33  ;;  %v1580_v45 = vcombine.low %v445_v40, %v173_v3  ;;  %v456_v51 = vrot.slane %v2022_v11, 1  ;;  %v2157_v23 = vld [vmem:[%s2007_s19 + $0x1c] sm:$0xff]  }
  0x1a   : > { %v228_v25 = vsel %vm216_vm1, %v223_v18, %v227_v13  ;;  %1723 = vmatmul.mubr.msk.bf16.vlgmr.msra.gmra.mrb[0].mxu1 %vm267_vm2, %v252_v29  ;;  %v2068_v43 = vsel %vm452_vm3, %v617_v41, %v619_v42  ;;  %v244_v44 = vsel %vm216_vm1, %v239_v39, %v243_v19  ;;  %v458_v53 = vrot.slane %v2016_v9, 1  ;;  %v2139_v13 = vld [vmem:[%s2007_s19 + $0x14] sm:$0xff]   ;;  %v2181_v39 = vld [vmem:[%s2007_s19 + $0x2c] ss:$0 sps:$4 sm:$0x33]  }
  0x1b   : > { %1711 = vmatmul.mubr.msk.bf16.vlgmr.msra.gmra.mrb[0].mxu0 %vm267_vm2, %v228_v25  ;;  %1731 = vmatpush3.bf16.msra.mxu1 %v1926_v24  ;;  %v453_v47 = vrot.slane %v1580_v45, 1  ;;  %v457_v52 = vsel %vm452_vm3, %v454_v48, %v456_v51  ;;  %v460_v55 = vrot.slane %v2019_v10, 1  ;;  %v1589_v59 = vcombine.low %v568_v56, %v2115_v57  ;;  %v1936_v19 = vld [vmem:[%s2392_s1 + $0x30] sm:$0xff]  }
  0x1c   : > { %1753 = vmatpush3.bf16.msra.mxu0 %v1925_v20  ;;  %1714 = vmatprep.mubr.msk.bf16.mxu0 %vm1961_vm0, %v1960_v1  ;;  %v459_v54 = vsel %vm452_vm3, %v456_v51, %v458_v53  ;;  %v462_v61 = vrot.slane %v2028_v17, 1  ;;  %v742_v0 = vshrl.u32 %v2120_v60, 16  ;;  %v745_v2 = vshll.u32 %v2120_v60, 16  ;;  %v1013_v51 = vld [vmem:[%s2007_s19 + $0x8] sm:$0xc] }
  0x1d   : > { %1796 = vmatprep.subr.bf16.mxu0 %v1960_v1  ;;  %1726 = vmatprep.mubr.msk.bf16.mxu1 %vm1961_vm0, %v1960_v1  ;;  %v455_v49 = vsel %vm452_vm3, %v453_v47, %v454_v48  ;;  %v461_v58 = vsel %vm452_vm3, %v458_v53, %v460_v55  ;;  %v734_v62 = vshrl.u32 %v1589_v59, 16  ;;  %v737_v63 = vshll.u32 %v1589_v59, 16 }
  0x1e   : > { %1774 = vmatprep.subr.bf16.mxu1 %v1960_v1  ;;  %v610_v3 = vrot.slane %v1589_v59, 1  ;;  %v744_v8 = vrot.slane %v742_v0, 1  ;;  %v751_v15 = vshrl.u32 %v2139_v13, 16  ;;  %v754_v16 = vshll.u32 %v2139_v13, 16  ;;  %v2231_v0 = vld [vmem:[%s2007_s19 + $0x18] sm:$0xff]  }
  0x1f   : > { %v736_v6 = vrot.slane %v734_v62, 1  ;;  %v739_v7 = vrot.slane %v737_v63, 2  ;;  %v613_v17 = vrot.slane %v2139_v13, 1  ;;  %v760_v25 = vshrl.u32 %v2157_v23, 16  ;;  %v1945_v63 = vld [vmem:[%s2392_s1 + $0x40] sm:$0xff]  }
  0x20   : > { %v753_v20 = vrot.slane %v751_v15, 1  ;;  %v756_v21 = vrot.slane %v754_v16, 2  ;;  %v763_v26 = vshll.u32 %v2157_v23, 16  ;;  %v615_v27 = vrot.slane %v2157_v23, 1 }
  0x21   : > { %v762_v29 = vrot.slane %v760_v25, 1  ;;  %v769_v33 = vshrl.u32 %v2053_v36, 16  ;;  %v781_v45 = vshll.u32 %v2181_v39, 16 }
  0x22   : > { %1727 = vmatmul.mubr.msk.bf16.gmra.mrb[4].mxu1 %vm267_vm2, %v260_v38  ;;  %v757_v24 = vor.u32 %v756_v21, %v753_v20  ;;  %v765_v30 = vrot.slane %v763_v26, 2  ;;  %v616_v31 = vsel %vm452_vm3, %v613_v17, %v615_v27  ;;  %v618_v40 = vsel %vm452_vm3, %v615_v27, %v617_v41  ;;  %v1335_v26 = vld [vmem:[%s2007_s19 + $0x8] sm:$0x8] }
  0x23   : > { %1715 = vmatmul.mubr.msk.bf16.gmra.mrb[4].mxu0 %vm267_vm2, %v236_v34  ;;  %1732 = vmatprep.mubr.msk.bf16.mxu1 %vm1961_vm0, %v1960_v1  ;;  %v772_v34 = vshll.u32 %v2053_v36, 16  ;;  %v771_v37 = vrot.slane %v769_v33, 1  ;;  %v783_v48 = vrot.slane %v781_v45, 2 }
  0x24   : > { %1718 = vmatprep.mubr.msk.bf16.mxu0 %vm1961_vm0, %v1960_v1  ;;  %v766_v32 = vor.u32 %v765_v30, %v762_v29  ;;  %v1196_v29 = vshrl.u32 %v2231_v0, 16  ;;  %v1199_v30 = vshll.u32 %v2231_v0, 16 }
  0x25   : > { %v774_v38 = vrot.slane %v772_v34, 2 }
  0x26   : > { %v767_v35 = vsel %vm732_vm4, %v757_v24, %v766_v32  ;;  %v1198_v34 = vrot.slane %v1196_v29, 2 }
  0x27   : > { %v775_v42 = vor.u32 %v774_v38, %v771_v37 }
  0x29   : > { %v776_v41 = vsel %vm732_vm4, %v766_v32, %v775_v42 }
  0x2a   : > { %1733 = vmatmul.mubr.msk.bf16.vlgmr.msra.gmra.mrb[8].mxu1 %vm267_vm2, %v1560_v4  ;;  %v611_v4 = vrot.slane %v2120_v60, 1 }
  0x2b   : > { %1719 = vmatmul.mubr.msk.bf16.gmra.mrb[8].mxu0 %vm267_vm2, %v244_v44  ;;  %1775 = vmatpush3.bf16.msra.mxu1 %v1929_v46  ;;  %v778_v44 = vshrl.u32 %v2181_v39, 16  ;;  %v890_v46 = vld [vmem:[%s2007_s19 + $0x4] sm:$0xc] }
  0x2c   : > { %1754 = vmatprep.mubr.msk.bf16.mxu0 %vm1961_vm0, %v1960_v1  ;;  %1736 = vmatprep.mubr.msk.bf16.mxu1 %vm1961_vm0, %v1960_v1  ;;  %v614_v22 = vsel %vm452_vm3, %v611_v4, %v613_v17 }
  0x2d   : > { %1818 = vmatprep.subr.bf16.mxu1 %v1960_v1  ;;  %v780_v47 = vrot.slane %v778_v44, 1 }
  0x32   : > { %1737 = vmatmul.mubr.msk.bf16.gmra.mrb[12].mxu1 %vm267_vm2, %v2012_v5  ;;  %v463_v5 = vsel %vm452_vm3, %v460_v55, %v462_v61  ;;  %v901_v61 = vrot.slane %v2139_v13, 2 }
  0x33   : > { %1755 = vmatmul.mubr.msk.bf16.vlgmr.msra.gmra.mrb[12].mxu0 %vm267_vm2, %v455_v49  ;;  %1740 = vmatprep.mubr.msk.bf16.mxu1 %vm1961_vm0, %v1960_v1  ;;  %v1612_v49 = vcombine.low %v890_v46, %v2115_v57  ;;  %v2212_v57 = vld [vmem:[%s2007_s19 + $0x10] sm:$0xff]  }
  0x34   : > { %1797 = vmatpush3.bf16.msra.mxu0 %v1931_v50  ;;  %1758 = vmatprep.mubr.msk.bf16.mxu0 %vm1961_vm0, %v1960_v1  ;;  %v784_v50 = vor.u32 %v783_v48, %v780_v47  ;;  %v1187_v16 = vshrl.u32 %v2212_v57, 16  ;;  %v1190_v17 = vshll.u32 %v2212_v57, 16  ;;  %v1344_v38 = vrot.slane %v2212_v57, 3 }
  0x35   : > { %1840 = vmatprep.subr.bf16.mxu0 %v1960_v1  ;;  %v898_v53 = vrot.slane %v1612_v49, 2  ;;  %v1346_v47 = vrot.slane %v2231_v0, 3 }
  0x36   : > { %v785_v55 = vsel %vm732_vm4, %v775_v42, %v784_v50 }
  0x3a   : > { %1741 = vmatmul.mubr.msk.bf16.gmra.mrb[16].mxu1 %vm267_vm2, %v2022_v11  ;;  %v612_v11 = vsel %vm452_vm3, %v610_v3, %v611_v4  ;;  %v1058_v3 = vrot.slane %v2231_v0, 2  ;;  %v903_v4 = vrot.slane %v2157_v23, 2  ;;  %v1189_v23 = vrot.slane %v1187_v16, 2 }
  0x3b   : > { %1759 = vmatmul.mubr.msk.bf16.gmra.mrb[16].mxu0 %vm267_vm2, %v457_v52  ;;  %1744 = vmatprep.mubr.msk.bf16.mxu1 %vm1961_vm0, %v1960_v1  ;;  %v2204_v52 = vld [vmem:[%s2007_s19 + $0xc] sm:$0xf] }
  0x3c   : > { %1762 = vmatprep.mubr.msk.bf16.mxu0 %vm1961_vm0, %v1960_v1  ;;  %v1621_v56 = vcombine.low %v1013_v51, %v2204_v52  ;;  %v1644_v32 = vcombine.low %v1335_v26, %v2204_v52  ;;  %v1347_v51 = vsel %vm1342_vm7, %v1344_v38, %v1346_v47 }
  0x3e   : > { %v1055_v59 = vrot.slane %v1621_v56, 2  ;;  %v1182_v15 = vshll.u32 %v1621_v56, 16  ;;  %v1343_v37 = vrot.slane %v1644_v32, 3 }
  0x40   : > { %v1345_v44 = vsel %vm1342_vm7, %v1343_v37, %v1344_v38 }
  0x42   : > { %1745 = vmatmul.mubr.msk.bf16.gmra.mrb[20].mxu1 %vm267_vm2, %v2016_v9  ;;  %v747_v9 = vrot.slane %v745_v2, 2 }
  0x43   : > { %1763 = vmatmul.mubr.msk.bf16.gmra.mrb[20].mxu0 %vm267_vm2, %v459_v54  ;;  %1748 = vmatprep.mubr.msk.bf16.mxu1 %vm1961_vm0, %v1960_v1  ;;  %v899_v54 = vrot.slane %v2120_v60, 2  ;;  %v1056_v60 = vrot.slane %v2212_v57, 2 }
  0x44   : > { %1766 = vmatprep.mubr.msk.bf16.mxu0 %vm1961_vm0, %v1960_v1  ;;  %v748_v14 = vor.u32 %v747_v9, %v744_v8  ;;  %v905_v9 = vrot.slane %v2053_v36, 2  ;;  %v1179_v36 = vshrl.u32 %v1621_v56, 16 }
  0x45   : > { %v1057_v62 = vsel %vm897_vm5, %v1055_v59, %v1056_v60  ;;  %v902_v2 = vsel %vm897_vm5, %v899_v54, %v901_v61 }
  0x46   : > { %v758_v28 = vsel %vm732_vm4, %v748_v14, %v757_v24  ;;  %v906_v13 = vsel %vm897_vm5, %v903_v4, %v905_v9  ;;  %v1181_v21 = vrot.slane %v1179_v36, 2  ;;  %v1192_v24 = vrot.slane %v1190_v17, 3 }
  0x4a   : > { %1749 = vmatmul.mubr.msk.bf16.gmra.mrb[24].mxu1 %vm267_vm2, %v2019_v10  ;;  %v740_v10 = vor.u32 %v739_v7, %v736_v6  ;;  %v2244_v6 = vld [vmem:[%s2007_s19 + $0x20] sm:$0xff]   ;;  %v904_v7 = vsel %vm897_vm5, %v901_v61, %v903_v4 }
  0x4b   : > { %1767 = vmatmul.mubr.msk.bf16.gmra.mrb[24].mxu0 %vm267_vm2, %v461_v58  ;;  %1776 = vmatprep.mubr.msk.bf16.mxu1 %vm1961_vm0, %v1960_v1  ;;  %v900_v58 = vsel %vm897_vm5, %v898_v53, %v899_v54  ;;  %v1060_v8 = vrot.slane %v2244_v6, 2  ;;  %v1208_v42 = vshll.u32 %v2244_v6, 16  ;;  %v1348_v56 = vrot.slane %v2244_v6, 3 }
  0x4c   : > { %1770 = vmatprep.mubr.msk.bf16.mxu0 %vm1961_vm0, %v1960_v1  ;;  %v749_v18 = vsel %vm732_vm4, %v740_v10, %v748_v14  ;;  %v907_v14 = vrot.slane %v2181_v39, 2 }
  0x4d   : > { %v1349_v59 = vsel %vm1342_vm7, %v1346_v47, %v1348_v56 }
  0x4e   : > { %v908_v20 = vsel %vm897_vm5, %v905_v9, %v907_v14 }
  0x52   : > { %1777 = vmatmul.mubr.msk.bf16.vlgmr.msra.gmra.mrb[28].mxu1 %vm267_vm2, %v612_v11  ;;  %v1061_v11 = vsel %vm897_vm5, %v1058_v3, %v1060_v8 }
  0x53   : > { %1771 = vmatmul.mubr.msk.bf16.gmra.mrb[28].mxu0 %vm267_vm2, %v463_v5  ;;  %1819 = vmatpush3.bf16.msra.mxu1 %v1934_v12  ;;  %v1059_v5 = vsel %vm897_vm5, %v1056_v60, %v1058_v3  ;;  %v2257_v12 = vld [vmem:[%s2007_s19 + $0x28] sm:$0xff]  }
  0x54   : > { %1798 = vmatprep.mubr.msk.bf16.mxu0 %vm1961_vm0, %v1960_v1  ;;  %1780 = vmatprep.mubr.msk.bf16.mxu1 %vm1961_vm0, %v1960_v1  ;;  %v1062_v10 = vrot.slane %v2257_v12, 2  ;;  %v1214_v49 = vshrl.u32 %v2257_v12, 16  ;;  %v1217_v50 = vshll.u32 %v2257_v12, 16 }
  0x55   : > { %1862 = vmatprep.subr.bf16.mxu1 %v1960_v1 }
  0x56   : > { %v1216_v53 = vrot.slane %v1214_v49, 2  ;;  %v1219_v54 = vrot.slane %v1217_v50, 3 }
  0x58   : > { %v1220_v57 = vor.u32 %v1219_v54, %v1216_v53 }
  0x5a   : > { %1781 = vmatmul.mubr.msk.bf16.gmra.mrb[32].mxu1 %vm267_vm2, %v614_v22  ;;  %v1184_v22 = vrot.slane %v1182_v15, 3 }
  0x5b   : > { %1799 = vmatmul.mubr.msk.bf16.vlgmr.msra.gmra.mrb[32].mxu0 %vm267_vm2, %v749_v18  ;;  %1784 = vmatprep.mubr.msk.bf16.mxu1 %vm1961_vm0, %v1960_v1  ;;  %v1063_v18 = vsel %vm897_vm5, %v1060_v8, %v1062_v10 }
  0x5c   : > { %1841 = vmatpush3.bf16.msra.mxu0 %v1936_v19  ;;  %1802 = vmatprep.mubr.msk.bf16.mxu0 %vm1961_vm0, %v1960_v1  ;;  %v1949_v19 = vld [vmem:[%s2007_s19 + $0x30] ss:$0 sps:$4 sm:$0x33]   ;;  %v1185_v27 = vor.u32 %v1184_v22, %v1181_v21 }
  0x5d   : > { %1884 = vmatprep.subr.bf16.mxu0 %v1960_v1  ;;  %v1064_v25 = vrot.slane %v1949_v19, 2 }
  0x62   : > { %1785 = vmatmul.mubr.msk.bf16.gmra.mrb[36].mxu1 %vm267_vm2, %v616_v31  ;;  %v1065_v31 = vsel %vm897_vm5, %v1062_v10, %v1064_v25 }
  0x63   : > { %1803 = vmatmul.mubr.msk.bf16.gmra.mrb[36].mxu0 %vm267_vm2, %v758_v28  ;;  %1788 = vmatprep.mubr.msk.bf16.mxu1 %vm1961_vm0, %v1960_v1  ;;  %v1193_v28 = vor.u32 %v1192_v24, %v1189_v23 }
  0x64   : > { %1806 = vmatprep.mubr.msk.bf16.mxu0 %vm1961_vm0, %v1960_v1 }
  0x65   : > { %v1194_v33 = vsel %vm1177_vm6, %v1185_v27, %v1193_v28 }
  0x6a   : > { %1789 = vmatmul.mubr.msk.bf16.gmra.mrb[40].mxu1 %vm267_vm2, %v618_v40  ;;  %v1205_v40 = vshrl.u32 %v2244_v6, 16 }
  0x6b   : > { %1807 = vmatmul.mubr.msk.bf16.gmra.mrb[40].mxu0 %vm267_vm2, %v767_v35  ;;  %1792 = vmatprep.mubr.msk.bf16.mxu1 %vm1961_vm0, %v1960_v1  ;;  %v1201_v35 = vrot.slane %v1199_v30, 3 }
  0x6c   : > { %1810 = vmatprep.mubr.msk.bf16.mxu0 %vm1961_vm0, %v1960_v1  ;;  %v1207_v46 = vrot.slane %v1205_v40, 2 }
  0x6d   : > { %v1202_v39 = vor.u32 %v1201_v35, %v1198_v34 }
  0x6f   : > { %v1203_v45 = vsel %vm1177_vm6, %v1193_v28, %v1202_v39 }
  0x72   : > { %1793 = vmatmul.mubr.msk.bf16.gmra.mrb[44].mxu1 %vm267_vm2, %v2068_v43  ;;  %v1942_v43 = vld [vmem:[%s2392_s1 + $0x38] sm:$0xff]  }
  0x73   : > { %1811 = vmatmul.mubr.msk.bf16.gmra.mrb[44].mxu0 %vm267_vm2, %v776_v41  ;;  %1820 = vmatprep.mubr.msk.bf16.mxu1 %vm1961_vm0, %v1960_v1  ;;  %v1210_v41 = vrot.slane %v1208_v42, 3 }
  0x74   : > { %1814 = vmatprep.mubr.msk.bf16.mxu0 %vm1961_vm0, %v1960_v1 }
  0x75   : > { %v1211_v48 = vor.u32 %v1210_v41, %v1207_v46 }
  0x77   : > { %v1212_v52 = vsel %vm1177_vm6, %v1202_v39, %v1211_v48  ;;  %v1221_v60 = vsel %vm1177_vm6, %v1211_v48, %v1220_v57 }
  0x7a   : > { %1821 = vmatmul.mubr.msk.bf16.vlgmr.msra.gmra.mrb[48].mxu1 %vm267_vm2, %v900_v58 }
  0x7b   : > { %1815 = vmatmul.mubr.msk.bf16.gmra.mrb[48].mxu0 %vm267_vm2, %v785_v55  ;;  %1863 = vmatpush3.bf16.msra.mxu1 %v1942_v43  ;;  %v1951_v55 = vld [vmem:[%s2007_s19 + $0x30] ss:$0 sps:$4 sm:$0x77]  }
  0x7c   : > { %1842 = vmatprep.mubr.msk.bf16.mxu0 %vm1961_vm0, %v1960_v1  ;;  %1824 = vmatprep.mubr.msk.bf16.mxu1 %vm1961_vm0, %v1960_v1  ;;  %v1223_v58 = vshrl.u32 %v1951_v55, 16  ;;  %v1226_v43 = vshll.u32 %v1951_v55, 16  ;;  %v1352_v4 = vrot.slane %v1951_v55, 3 }
  0x7e   : > { %v1225_v61 = vrot.slane %v1223_v58, 2 }
  0x82   : > { %1825 = vmatmul.mubr.msk.bf16.gmra.mrb[52].mxu1 %vm267_vm2, %v902_v2 }
  0x83   : > { %1843 = vmatmul.mubr.msk.bf16.vlgmr.msra.gmra.mrb[52].mxu0 %vm267_vm2, %v1057_v62  ;;  %1828 = vmatprep.mubr.msk.bf16.mxu1 %vm1961_vm0, %v1960_v1  ;;  %v1228_v62 = vrot.slane %v1226_v43, 3 }
  0x84   : > { %1885 = vmatpush3.bf16.msra.mxu0 %v1945_v63  ;;  %1846 = vmatprep.mubr.msk.bf16.mxu0 %vm1961_vm0, %v1960_v1  ;;  %v1350_v63 = vrot.slane %v2257_v12, 3 }
  0x85   : > { %v1229_v0 = vor.u32 %v1228_v62, %v1225_v61 }
  0x86   : > { %v1351_v2 = vsel %vm1342_vm7, %v1348_v56, %v1350_v63 }
  0x87   : > { %v1230_v3 = vsel %vm1177_vm6, %v1220_v57, %v1229_v0 }
  0x8a   : > { %1829 = vmatmul.mubr.msk.bf16.gmra.mrb[56].mxu1 %vm267_vm2, %v904_v7 }
  0x8b   : > { %1847 = vmatmul.mubr.msk.bf16.gmra.mrb[56].mxu0 %vm267_vm2, %v1059_v5  ;;  %1832 = vmatprep.mubr.msk.bf16.mxu1 %vm1961_vm0, %v1960_v1  ;;  %v1353_v5 = vsel %vm1342_vm7, %v1350_v63, %v1352_v4 }
  0x8c   : > { %1850 = vmatprep.mubr.msk.bf16.mxu0 %vm1961_vm0, %v1960_v1 }
  0x92   : > { %1833 = vmatmul.mubr.msk.bf16.gmra.mrb[60].mxu1 %vm267_vm2, %v906_v13 }
  0x93   : > { %1851 = vmatmul.mubr.msk.bf16.gmra.mrb[60].mxu0 %vm267_vm2, %v1061_v11  ;;  %1836 = vmatprep.mubr.msk.bf16.mxu1 %vm1961_vm0, %v1960_v1 }
  0x94   : > { %1854 = vmatprep.mubr.msk.bf16.mxu0 %vm1961_vm0, %v1960_v1 }
  0x9a   : > { %1837 = vmatmul.mubr.msk.bf16.gmra.mrb[64].mxu1 %vm267_vm2, %v908_v20 }
  0x9b   : > { %1855 = vmatmul.mubr.msk.bf16.gmra.mrb[64].mxu0 %vm267_vm2, %v1063_v18  ;;  %1864 = vmatprep.mubr.msk.bf16.mxu1 %vm1961_vm0, %v1960_v1 }
  0x9c   : > { %1858 = vmatprep.mubr.msk.bf16.mxu0 %vm1961_vm0, %v1960_v1 }
  0xa2   : > { %1865 = vmatmul.mubr.msk.bf16.vlgmr.msra.gmra.mrb[68].mxu1 %vm267_vm2, %v1194_v33 }
  0xa3   : > { %1859 = vmatmul.mubr.msk.bf16.gmra.mrb[68].mxu0 %vm267_vm2, %v1065_v31  ;;  %1868 = vmatprep.mubr.msk.bf16.mxu1 %vm1961_vm0, %v1960_v1 }
  0xa4   : > { %1886 = vmatprep.mubr.msk.bf16.mxu0 %vm1961_vm0, %v1960_v1 }
  0xaa   : > { %1869 = vmatmul.mubr.msk.bf16.gmra.mrb[72].mxu1 %vm267_vm2, %v1203_v45 }
  0xab   : > { %1887 = vmatmul.mubr.msk.bf16.vlgmr.msra.gmra.mrb[72].mxu0 %vm267_vm2, %v1345_v44  ;;  %1872 = vmatprep.mubr.msk.bf16.mxu1 %vm1961_vm0, %v1960_v1 }
  0xac   : > { %1890 = vmatprep.mubr.msk.bf16.mxu0 %vm1961_vm0, %v1960_v1 }
  0xb2   : > { %1873 = vmatmul.mubr.msk.bf16.gmra.mrb[76].mxu1 %vm267_vm2, %v1212_v52 }
  0xb3   : > { %1891 = vmatmul.mubr.msk.bf16.gmra.mrb[76].mxu0 %vm267_vm2, %v1347_v51  ;;  %1876 = vmatprep.mubr.msk.bf16.mxu1 %vm1961_vm0, %v1960_v1 }
  0xb4   : > { %1894 = vmatprep.mubr.msk.bf16.mxu0 %vm1961_vm0, %v1960_v1 }
  0xba   : > { %1877 = vmatmul.mubr.msk.bf16.gmra.mrb[80].mxu1 %vm267_vm2, %v1221_v60 }
  0xbb   : > { %1895 = vmatmul.mubr.msk.bf16.gmra.mrb[80].mxu0 %vm267_vm2, %v1349_v59  ;;  %1880 = vmatprep.mubr.msk.bf16.mxu1 %vm1961_vm0, %v1960_v1 }
  0xbc   : > { %1898 = vmatprep.mubr.msk.bf16.mxu0 %vm1961_vm0, %v1960_v1 }
  0xc2   : > { %1881 = vmatmul.mubr.msk.bf16.gmra.mrb[84].mxu1 %vm267_vm2, %v1230_v3 }
  0xc3   : > { %1899 = vmatmul.mubr.msk.bf16.gmra.mrb[84].mxu0 %vm267_vm2, %v1351_v2 }
  0xc4   : > { %1902 = vmatprep.mubr.msk.bf16.mxu0 %vm1961_vm0, %v1960_v1 }
  0xcb   : > { %1903 = vmatmul.mubr.msk.bf16.gmra.mrb[88].mxu0 %vm267_vm2, %v1353_v5 }
  0xed   : > { %v341_v9 = vpop.f32.mrb[0].mxu1 }
  0xee   : > { %v317_v6 = vpop.f32.mrb[0].mxu0  ;;  %v1724_v12 = vpop.f32.mrb[1].mxu1 }
  0xef   : > { %v1712_v7 = vpop.f32.mrb[1].mxu0  ;;  %v344_v13 = vpop.f32.mrb[2].mxu1 }
  0xf0   : > { %v320_v8 = vpop.f32.mrb[2].mxu0  ;;  %v1725_v10 = vpop.f32.mrb[3].mxu1 }
  0xf1   : > { %v1713_v11 = vpop.f32.mrb[3].mxu0 }
  0xf5   : > { %v349_v16 = vpop.f32.mrb[4].mxu1 }
  0xf6   : > { %v325_v14 = vpop.f32.mrb[4].mxu0  ;;  %v1728_v17 = vpop.f32.mrb[5].mxu1 }
  0xf7   : > { %v1716_v36 = vpop.f32.mrb[5].mxu0  ;;  %v352_v18 = vpop.f32.mrb[6].mxu1 }
  0xf8   : > { %v328_v15 = vpop.f32.mrb[6].mxu0  ;;  %v1729_v19 = vpop.f32.mrb[7].mxu1 }
  0xf9   : > { %v1717_v1 = vpop.f32.mrb[7].mxu0 }
  0xfd   : > { %v406_v22 = vpop.f32.mrb[8].mxu1 }
  0xfe   : > { %v333_v20 = vpop.f32.mrb[8].mxu0  ;;  %v407_v24 = vadd.f32 %v406_v22, %v317_v6  ;;  %v1734_v25 = vpop.f32.mrb[9].mxu1 }
  0xff   : > { %v1720_v21 = vpop.f32.mrb[9].mxu0  ;;  %v409_v27 = vpop.f32.mrb[10].mxu1 }
 0x100   : > { %v336_v23 = vpop.f32.mrb[10].mxu0  ;;  %v410_v28 = vadd.f32 %v409_v27, %v320_v8  ;;  %v1735_v29 = vpop.f32.mrb[11].mxu1 }
 0x101   : > { %v1721_v26 = vpop.f32.mrb[11].mxu0 }
 0x105   : > { %v414_v33 = vpop.f32.mrb[12].mxu1 }
 0x106   : > { %v519_v30 = vpop.f32.mrb[12].mxu0  ;;  %v415_v35 = vadd.f32 %v414_v33, %v325_v14  ;;  %v1738_v37 = vpop.f32.mrb[13].mxu1 }
 0x107   : > { %v558_v31 = vadd.f32 %v519_v30, %v407_v24  ;;  %v1756_v32 = vpop.f32.mrb[13].mxu0  ;;  %v417_v40 = vpop.f32.mrb[14].mxu1 }
 0x108   : > { %v522_v34 = vpop.f32.mrb[14].mxu0  ;;  %v418_v42 = vadd.f32 %v417_v40, %v328_v15  ;;  %v1739_v44 = vpop.f32.mrb[15].mxu1 }
 0x109   : > { %v559_v38 = vadd.f32 %v522_v34, %v410_v28  ;;  %v1757_v39 = vpop.f32.mrb[15].mxu0 }
 0x10d   : > { %v422_v47 = vpop.f32.mrb[16].mxu1 }
 0x10e   : > { %v527_v45 = vpop.f32.mrb[16].mxu0  ;;  %v423_v49 = vadd.f32 %v422_v47, %v333_v20  ;;  %v1742_v50 = vpop.f32.mrb[17].mxu1 }
 0x10f   : > { %v560_v46 = vadd.f32 %v527_v45, %v415_v35  ;;  %v1760_v41 = vpop.f32.mrb[17].mxu0  ;;  %v425_v53 = vpop.f32.mrb[18].mxu1 }
 0x110   : > { %v530_v48 = vpop.f32.mrb[18].mxu0  ;;  %v426_v54 = vadd.f32 %v425_v53, %v336_v23  ;;  %v1743_v55 = vpop.f32.mrb[19].mxu1 }
 0x111   : > { %v561_v51 = vadd.f32 %v530_v48, %v418_v42  ;;  %v1761_v52 = vpop.f32.mrb[19].mxu0 }
 0x115   : > { %v430_v43 = vpop.f32.mrb[20].mxu1 }
 0x116   : > { %v535_v56 = vpop.f32.mrb[20].mxu0  ;;  %v431_v60 = vadd.f32 %v430_v43, %v341_v9  ;;  %v1746_v61 = vpop.f32.mrb[21].mxu1 }
 0x117   : > { %v562_v57 = vadd.f32 %v535_v56, %v423_v49  ;;  %v1764_v58 = vpop.f32.mrb[21].mxu0  ;;  %v433_v0 = vpop.f32.mrb[22].mxu1 }
 0x118   : > { %v538_v59 = vpop.f32.mrb[22].mxu0  ;;  %v434_v2 = vadd.f32 %v433_v0, %v344_v13  ;;  %v1747_v3 = vpop.f32.mrb[23].mxu1 }
 0x119   : > { %v563_v62 = vadd.f32 %v538_v59, %v426_v54  ;;  %v1765_v63 = vpop.f32.mrb[23].mxu0 }
 0x11d   : > { %v438_v7 = vpop.f32.mrb[24].mxu1 }
 0x11e   : > { %v543_v4 = vpop.f32.mrb[24].mxu0  ;;  %v439_v11 = vadd.f32 %v438_v7, %v349_v16  ;;  %v1750_v12 = vpop.f32.mrb[25].mxu1 }
 0x11f   : > { %v564_v5 = vadd.f32 %v543_v4, %v431_v60  ;;  %v1768_v6 = vpop.f32.mrb[25].mxu0  ;;  %v441_v36 = vpop.f32.mrb[26].mxu1 }
 0x120   : > { %v546_v8 = vpop.f32.mrb[26].mxu0  ;;  %v442_v15 = vadd.f32 %v441_v36, %v352_v18  ;;  %v1751_v1 = vpop.f32.mrb[27].mxu1 }
 0x121   : > { %v565_v10 = vadd.f32 %v546_v8, %v434_v2  ;;  %v1769_v14 = vpop.f32.mrb[27].mxu0 }
 0x125   : > { %v676_v20 = vpop.f32.mrb[28].mxu1 }
 0x126   : > { %v551_v17 = vpop.f32.mrb[28].mxu0  ;;  %v715_v22 = vadd.f32 %v676_v20, %v558_v31  ;;  %v1778_v13 = vpop.f32.mrb[29].mxu1 }
 0x127   : > { %v566_v9 = vadd.f32 %v551_v17, %v439_v11  ;;  %v1772_v19 = vpop.f32.mrb[29].mxu0  ;;  %v679_v25 = vpop.f32.mrb[30].mxu1 }
 0x128   : > { %v554_v21 = vpop.f32.mrb[30].mxu0  ;;  %v716_v26 = vadd.f32 %v679_v25, %v559_v38  ;;  %v1779_v27 = vpop.f32.mrb[31].mxu1 }
 0x129   : > { %v567_v23 = vadd.f32 %v554_v21, %v442_v15  ;;  %v1773_v24 = vpop.f32.mrb[31].mxu0 }
 0x12d   : > { %v684_v30 = vpop.f32.mrb[32].mxu1 }
 0x12e   : > { %v841_v28 = vpop.f32.mrb[32].mxu0  ;;  %v717_v33 = vadd.f32 %v684_v30, %v560_v46  ;;  %v1782_v18 = vpop.f32.mrb[33].mxu1 }
 0x12f   : > { %v880_v16 = vadd.f32 %v841_v28, %v715_v22  ;;  %v1800_v29 = vpop.f32.mrb[33].mxu0  ;;  %v687_v37 = vpop.f32.mrb[34].mxu1 }
 0x130   : > { %v844_v32 = vpop.f32.mrb[34].mxu0  ;;  %v718_v39 = vadd.f32 %v687_v37, %v561_v51  ;;  %v1783_v40 = vpop.f32.mrb[35].mxu1 }
 0x131   : > { %v881_v34 = vadd.f32 %v844_v32, %v716_v26  ;;  %v1801_v35 = vpop.f32.mrb[35].mxu0 }
 0x135   : > { %v692_v45 = vpop.f32.mrb[36].mxu1 }
 0x136   : > { %v849_v42 = vpop.f32.mrb[36].mxu0  ;;  %v719_v47 = vadd.f32 %v692_v45, %v562_v57  ;;  %v1786_v38 = vpop.f32.mrb[37].mxu1 }
 0x137   : > { %v882_v31 = vadd.f32 %v849_v42, %v717_v33  ;;  %v1804_v44 = vpop.f32.mrb[37].mxu0  ;;  %v695_v50 = vpop.f32.mrb[38].mxu1 }
 0x138   : > { %v852_v41 = vpop.f32.mrb[38].mxu0  ;;  %v720_v52 = vadd.f32 %v695_v50, %v563_v62  ;;  %v1787_v53 = vpop.f32.mrb[39].mxu1 }
 0x139   : > { %v883_v48 = vadd.f32 %v852_v41, %v718_v39  ;;  %v1805_v49 = vpop.f32.mrb[39].mxu0 }
 0x13d   : > { %v700_v56 = vpop.f32.mrb[40].mxu1 }
 0x13e   : > { %v857_v54 = vpop.f32.mrb[40].mxu0  ;;  %v721_v43 = vadd.f32 %v700_v56, %v564_v5  ;;  %v1790_v51 = vpop.f32.mrb[41].mxu1 }
 0x13f   : > { %v884_v46 = vadd.f32 %v857_v54, %v719_v47  ;;  %v1808_v55 = vpop.f32.mrb[41].mxu0  ;;  %v703_v61 = vpop.f32.mrb[42].mxu1 }
 0x140   : > { %v860_v58 = vpop.f32.mrb[42].mxu0  ;;  %v722_v63 = vadd.f32 %v703_v61, %v565_v10  ;;  %v1791_v0 = vpop.f32.mrb[43].mxu1 }
 0x141   : > { %v885_v59 = vadd.f32 %v860_v58, %v720_v52  ;;  %v1809_v60 = vpop.f32.mrb[43].mxu0 }
 0x145   : > { %v708_v4 = vpop.f32.mrb[44].mxu1 }
 0x146   : > { %v865_v2 = vpop.f32.mrb[44].mxu0  ;;  %v723_v7 = vadd.f32 %v708_v4, %v566_v9  ;;  %v1794_v62 = vpop.f32.mrb[45].mxu1 }
 0x147   : > { %v886_v57 = vadd.f32 %v865_v2, %v721_v43  ;;  %v1812_v3 = vpop.f32.mrb[45].mxu0  ;;  %v711_v12 = vpop.f32.mrb[46].mxu1 }
 0x148   : > { %v868_v6 = vpop.f32.mrb[46].mxu0  ;;  %v724_v14 = vadd.f32 %v711_v12, %v567_v23  ;;  %v1795_v36 = vpop.f32.mrb[47].mxu1 }
 0x149   : > { %v887_v8 = vadd.f32 %v868_v6, %v722_v63  ;;  %v1813_v11 = vpop.f32.mrb[47].mxu0 }
 0x14d   : > { %v964_v17 = vpop.f32.mrb[48].mxu1 }
 0x14e   : > { %v873_v15 = vpop.f32.mrb[48].mxu0  ;;  %v1003_v20 = vadd.f32 %v964_v17, %v880_v16  ;;  %v1822_v10 = vpop.f32.mrb[49].mxu1 }
 0x14f   : > { %v888_v5 = vadd.f32 %v873_v15, %v723_v7  ;;  %v1816_v1 = vpop.f32.mrb[49].mxu0  ;;  %v967_v13 = vpop.f32.mrb[50].mxu1 }
 0x150   : > { %v876_v19 = vpop.f32.mrb[50].mxu0  ;;  %v1004_v24 = vadd.f32 %v967_v13, %v881_v34  ;;  %v1823_v25 = vpop.f32.mrb[51].mxu1 }
 0x151   : > { %v889_v21 = vadd.f32 %v876_v19, %v724_v14  ;;  %v1817_v22 = vpop.f32.mrb[51].mxu0 }
 0x155   : > { %v972_v28 = vpop.f32.mrb[52].mxu1 }
 0x156   : > { %v1121_v26 = vpop.f32.mrb[52].mxu0  ;;  %v1005_v30 = vadd.f32 %v972_v28, %v882_v31  ;;  %v1826_v23 = vpop.f32.mrb[53].mxu1 }
 0x157   : > { %v1160_v9 = vadd.f32 %v1121_v26, %v1003_v20  ;;  %v1844_v27 = vpop.f32.mrb[53].mxu0  ;;  %v975_v18 = vpop.f32.mrb[54].mxu1 }
 0x158   : > { %v1124_v29 = vpop.f32.mrb[54].mxu0  ;;  %v1006_v35 = vadd.f32 %v975_v18, %v883_v48  ;;  %v1827_v37 = vpop.f32.mrb[55].mxu1 }
 0x159   : > { %v1161_v32 = vadd.f32 %v1124_v29, %v1004_v24  ;;  %v1845_v33 = vpop.f32.mrb[55].mxu0 }
 0x15d   : > { %v980_v42 = vpop.f32.mrb[56].mxu1 }
 0x15e   : > { %v1129_v39 = vpop.f32.mrb[56].mxu0  ;;  %v1007_v45 = vadd.f32 %v980_v42, %v884_v46  ;;  %v1830_v34 = vpop.f32.mrb[57].mxu1 }
 0x15f   : > { %v1162_v16 = vadd.f32 %v1129_v39, %v1005_v30  ;;  %v1848_v40 = vpop.f32.mrb[57].mxu0  ;;  %v983_v38 = vpop.f32.mrb[58].mxu1 }
 0x160   : > { %v1132_v44 = vpop.f32.mrb[58].mxu0  ;;  %v1008_v49 = vadd.f32 %v983_v38, %v885_v59  ;;  %v1831_v50 = vpop.f32.mrb[59].mxu1 }
 0x161   : > { %v1163_v41 = vadd.f32 %v1132_v44, %v1006_v35  ;;  %v1849_v47 = vpop.f32.mrb[59].mxu0 }
 0x165   : > { %v988_v54 = vpop.f32.mrb[60].mxu1 }
 0x166   : > { %v1137_v52 = vpop.f32.mrb[60].mxu0  ;;  %v1009_v56 = vadd.f32 %v988_v54, %v886_v57  ;;  %v1834_v48 = vpop.f32.mrb[61].mxu1 }
 0x167   : > { %v1164_v31 = vadd.f32 %v1137_v52, %v1007_v45  ;;  %v1852_v53 = vpop.f32.mrb[61].mxu0  ;;  %v991_v51 = vpop.f32.mrb[62].mxu1 }
 0x168   : > { %v1140_v55 = vpop.f32.mrb[62].mxu0  ;;  %v1010_v60 = vadd.f32 %v991_v51, %v887_v8  ;;  %v1835_v61 = vpop.f32.mrb[63].mxu1 }
 0x169   : > { %v2332_v58 = vadd.f32 %v1140_v55, %v1008_v49  ;;  %v1853_v43 = vpop.f32.mrb[63].mxu0 }
 0x16d   : > { %v996_v2 = vpop.f32.mrb[64].mxu1 }
 0x16e   : > { %v1145_v46 = vpop.f32.mrb[64].mxu0  ;;  %v1011_v3 = vadd.f32 %v996_v2, %v888_v5  ;;  %v1838_v4 = vpop.f32.mrb[65].mxu1 }
 0x16f   : > { %v2334_v63 = vadd.f32 %v1145_v46, %v1009_v56  ;;  %v1856_v0 = vpop.f32.mrb[65].mxu0  ;;  %v999_v57 = vpop.f32.mrb[66].mxu1 }
 0x170   : > { %v1148_v59 = vpop.f32.mrb[66].mxu0  ;;  %v1012_v62 = vadd.f32 %v999_v57, %v889_v21  ;;  %v1839_v11 = vpop.f32.mrb[67].mxu1  ;;  %v2346_v21 = vld [vmem:[%s2393_s2] ss:$0 sm:$0xff] }
 0x171   : > { %v2336_v6 = vadd.f32 %v1148_v59, %v1010_v60  ;;  %v1857_v7 = vpop.f32.mrb[67].mxu0 }
 0x175   : > { %v1286_v36 = vpop.f32.mrb[68].mxu1 }
 0x176   : > { %v1153_v12 = vpop.f32.mrb[68].mxu0  ;;  %v1325_v1 = vadd.f32 %v1286_v36, %v1160_v9  ;;  %v1866_v17 = vpop.f32.mrb[69].mxu1 }
 0x177   : > { %v2338_v14 = vadd.f32 %v1153_v12, %v1011_v3  ;;  %v1860_v8 = vpop.f32.mrb[69].mxu0  ;;  %v1289_v5 = vpop.f32.mrb[70].mxu1 }
 0x178   : > { %v1156_v15 = vpop.f32.mrb[70].mxu0  ;;  %v1326_v10 = vadd.f32 %v1289_v5, %v1161_v32  ;;  %v1867_v22 = vpop.f32.mrb[71].mxu1 }
 0x179   : > { %v2340_v19 = vadd.f32 %v1156_v15, %v1012_v62  ;;  %v1861_v20 = vpop.f32.mrb[71].mxu0 }
 0x17d   : > { %v1294_v26 = vpop.f32.mrb[72].mxu1 }
 0x17e   : > { %v1409_v13 = vpop.f32.mrb[72].mxu0  ;;  %v1327_v28 = vadd.f32 %v1294_v26, %v1162_v16  ;;  %v1870_v29 = vpop.f32.mrb[73].mxu1 }
 0x17f   : > { %v1448_v24 = vadd.f32 %v1409_v13, %v1325_v1  ;;  %v1888_v25 = vpop.f32.mrb[73].mxu0  ;;  %v1297_v32 = vpop.f32.mrb[74].mxu1 }
 0x180   : > { %v1412_v27 = vpop.f32.mrb[74].mxu0  ;;  %v1328_v18 = vadd.f32 %v1297_v32, %v1163_v41  ;;  %v1871_v37 = vpop.f32.mrb[75].mxu1 }
 0x181   : > { %v1465_v9 = vadd.f32 %v2346_v21, %v1448_v24  ;;  %v1449_v30 = vadd.f32 %v1412_v27, %v1326_v10  ;;  %v1889_v23 = vpop.f32.mrb[75].mxu0 }
 0x183   : > { %v1475_v33 = vmax.f32 %v1465_v9, 0.0  ;;  %v1466_v35 = vadd.f32 %v2346_v21, %v1449_v30 }
 0x185   : > { %1486 = vst.msk [vmem:[%s2352_s13] sm:$0xff] %vm1485_vm8, %v1475_v33  ;;  %v1476_v39 = vmax.f32 %v1466_v35, 0.0  ;;  %v1302_v44 = vpop.f32.mrb[76].mxu1 }
 0x186   : > { %v1417_v16 = vpop.f32.mrb[76].mxu0  ;;  %v1329_v34 = vadd.f32 %v1302_v44, %v1164_v31  ;;  %v1874_v38 = vpop.f32.mrb[77].mxu1 }
 0x187   : > { %1487 = vst.msk [vmem:[%s2352_s13 + $0x8] sm:$0xff] %vm1485_vm8, %v1476_v39  ;;  %v1450_v40 = vadd.f32 %v1417_v16, %v1327_v28  ;;  %v1892_v42 = vpop.f32.mrb[77].mxu0  ;;  %v1305_v50 = vpop.f32.mrb[78].mxu1 }
 0x188   : > { %v1420_v45 = vpop.f32.mrb[78].mxu0  ;;  %v1330_v53 = vadd.f32 %v1305_v50, %v2332_v58  ;;  %v1875_v55 = vpop.f32.mrb[79].mxu1 }
 0x189   : > { %v1467_v47 = vadd.f32 %v2346_v21, %v1450_v40  ;;  %v1451_v41 = vadd.f32 %v1420_v45, %v1328_v18  ;;  %v1893_v49 = vpop.f32.mrb[79].mxu0 }
 0x18b   : > { %v1477_v52 = vmax.f32 %v1467_v47, 0.0  ;;  %v1468_v54 = vadd.f32 %v2346_v21, %v1451_v41 }
 0x18d   : > { %1488 = vst.msk [vmem:[%s2352_s13 + $0x10] sm:$0xff] %vm1485_vm8, %v1477_v52  ;;  %v1478_v56 = vmax.f32 %v1468_v54, 0.0  ;;  %v1310_v51 = vpop.f32.mrb[80].mxu1 }
 0x18e   : > { %v1425_v48 = vpop.f32.mrb[80].mxu0  ;;  %v1331_v61 = vadd.f32 %v1310_v51, %v2334_v63  ;;  %v1878_v58 = vpop.f32.mrb[81].mxu1 }
 0x18f   : > { %1489 = vst.msk [vmem:[%s2352_s13 + $0x18] sm:$0xff] %vm1485_vm8, %v1478_v56  ;;  %v1452_v31 = vadd.f32 %v1425_v48, %v1329_v34  ;;  %v1896_v43 = vpop.f32.mrb[81].mxu0  ;;  %v1313_v59 = vpop.f32.mrb[82].mxu1 }
 0x190   : > { %v1428_v60 = vpop.f32.mrb[82].mxu0  ;;  %v1332_v4 = vadd.f32 %v1313_v59, %v2336_v6  ;;  %v1879_v57 = vpop.f32.mrb[83].mxu1 }
 0x191   : > { %v1469_v46 = vadd.f32 %v2346_v21, %v1452_v31  ;;  %v1453_v0 = vadd.f32 %v1428_v60, %v1330_v53  ;;  %v1897_v2 = vpop.f32.mrb[83].mxu0 }
 0x193   : > { %v1479_v3 = vmax.f32 %v1469_v46, 0.0  ;;  %v1470_v7 = vadd.f32 %v2346_v21, %v1453_v0 }
 0x195   : > { %1490 = vst.msk [vmem:[%s2352_s13 + $0x20] sm:$0xff] %vm1485_vm8, %v1479_v3  ;;  %v1480_v62 = vmax.f32 %v1470_v7, 0.0  ;;  %v1318_v8 = vpop.f32.mrb[84].mxu1 }
 0x196   : > { %v1433_v11 = vpop.f32.mrb[84].mxu0  ;;  %v1333_v15 = vadd.f32 %v1318_v8, %v2338_v14  ;;  %v1882_v6 = vpop.f32.mrb[85].mxu1 }
 0x197   : > { %1491 = vst.msk [vmem:[%s2352_s13 + $0x28] sm:$0xff] %vm1485_vm8, %v1480_v62  ;;  %v1454_v63 = vadd.f32 %v1433_v11, %v1331_v61  ;;  %v1900_v12 = vpop.f32.mrb[85].mxu0  ;;  %v1321_v5 = vpop.f32.mrb[86].mxu1 }
 0x198   : > { %v1436_v36 = vpop.f32.mrb[86].mxu0  ;;  %v1334_v22 = vadd.f32 %v1321_v5, %v2340_v19  ;;  %v1883_v24 = vpop.f32.mrb[87].mxu1 }
 0x199   : > { %v1471_v1 = vadd.f32 %v2346_v21, %v1454_v63  ;;  %v1455_v17 = vadd.f32 %v1436_v36, %v1332_v4  ;;  %v1901_v20 = vpop.f32.mrb[87].mxu0 }
 0x19b   : > { %v1481_v10 = vmax.f32 %v1471_v1, 0.0  ;;  %v1472_v13 = vadd.f32 %v2346_v21, %v1455_v17 }
 0x19d   : > { %1492 = vst.msk [vmem:[%s2352_s13 + $0x30] sm:$0xff] %vm1485_vm8, %v1481_v10  ;;  %v1482_v25 = vmax.f32 %v1472_v13, 0.0 }
 0x19e   : > { %v1441_v26 = vpop.f32.mrb[88].mxu0 }
 0x19f   : > { %1493 = vst.msk [vmem:[%s2352_s13 + $0x38] sm:$0xff] %vm1485_vm8, %v1482_v25  ;;  %v1456_v14 = vadd.f32 %v1441_v26, %v1333_v15  ;;  %v1904_v27 = vpop.f32.mrb[89].mxu0 }
 0x1a0   : > { %v1444_v28 = vpop.f32.mrb[90].mxu0 }
 0x1a1   : > { %v1473_v9 = vadd.f32 %v2346_v21, %v1456_v14  ;;  %v1457_v29 = vadd.f32 %v1444_v28, %v1334_v22  ;;  %v1905_v30 = vpop.f32.mrb[91].mxu0 }
 0x1a3   : > { %v1483_v23 = vmax.f32 %v1473_v9, 0.0  ;;  %v1474_v19 = vadd.f32 %v2346_v21, %v1457_v29 }
 0x1a5   : > { %1494 = vst.msk [vmem:[%s2352_s13 + $0x40] sm:$0xff] %vm1485_vm8, %v1483_v23  ;;  %v1484_v32 = vmax.f32 %v1474_v19, 0.0 }
 0x1a7   : > { %1495 = vst.msk [vmem:[%s2352_s13 + $0x48] sm:$0xff] %vm1485_vm8, %v1484_v32 }
 0x1a8 PF: > { %s13_s12 = sadd.s32 1, %s1958_s12  }
 0x1a9   : > { %p10_p4 = scmp.ge.s32.totalorder %s13_s12, 4  }
 0x1ab   :  { %12 = sbr.rel (!%p10_p4) target bundleno = 1 (0x1), region = 70 }

// kernel: perceptual_forward.12
= control target key start
LH: loop header
LB: loop body
LE: loop exit
PB: predicated region body
PF: predicated region fallthrough
CT: control target
= control target key end

     0   :  { %s359_s6 = smov 0   ;;  %s361_s7 = smov 0   ;;  %s392_s0 = inlined_call_operand.vmem [shape: bf16[2,4,2,4,64], index: 0, kind: input, shape index: {}]   ;;  %s393_s1 = inlined_call_operand.vmem [shape: bf16[2,4,4,32], index: 1, kind: output, shape index: {}]  }
   0x1   :  { %s363_s8 = smov 0  }
   0x2 LB: > { %s23_s9 = sadd.s32 1, %s342_s7  ;;  %p290_p0 = scmp.ge.s32.totalorder %s346_s8, 1  ;;  %s346_s8 = sphi %s363_s8, %s11_s8   ;;  %s342_s7 = sphi %s361_s7, %s395_s7   ;;  %s338_s6 = sphi %s359_s6, %s394_s6  }
   0x3   : > { %p25_p1 = scmp.ge.s32.totalorder %s23_s9, 2  ;;  %p109_p2 = scmp.lt.s32.totalorder %s346_s8, 3 }
   0x5   : > { %s397_s9 = smov (%p25_p1, %s23_s9), 0  ;;  %p110_p3 = pnand %p290_p0, %p109_p2 }
   0x6   : > { %p139_p4 = scmp.lt.s32.totalorder (!%p110_p3), %s338_s6, 1  ;;  %s348_s14 = smov (!%p110_p3), 96   ;;  %vm191_vm0 = vcmask (!%p110_p3), 254976  }
   0x7   : > { %113 = sbr.rel (%p110_p3) target bundleno = 143 (0x8f), region = 24 }
   0xe   : > { %s399_s6 = smov (!%p139_p4, %s338_s6), 1 }
   0xf   : > { %s297_s10 = sshll.u32 %s399_s6, 4  ;;  %s298_s15 = sshll.u32 %s399_s6, 3 }
  0x10   : > { %s147_s13 = scalar_lea.vmem %s392_s0, %s297_s10  ;;  %s157_s18 = scalar_lea.vmem %s393_s1, %s298_s15 }
  0x11   : > { %v163_v0 = vld [vmem:[%s147_s13 + $0x8] sm:$0x3]  ;;  %v164_v1 = vld [vmem:[%s147_s13 + $0xa] sm:$0x3]  ;;  %v159_v2 = vld [vmem:[%s147_s13] sm:$0x3] }
  0x12   : > { %v169_v3 = vmax.bf16 %v164_v1, %v163_v0  ;;  %v160_v4 = vld [vmem:[%s147_s13 + $0x2] sm:$0x3]  ;;  %v165_v5 = vld [vmem:[%s147_s13 + $0xc] sm:$0x3]  ;;  %v166_v6 = vld [vmem:[%s147_s13 + $0xe] sm:$0x3] }
  0x13   : > { %v167_v7 = vmax.bf16 %v160_v4, %v159_v2  ;;  %v161_v8 = vld [vmem:[%s147_s13 + $0x4] sm:$0x3]  ;;  %v162_v9 = vld [vmem:[%s147_s13 + $0x6] sm:$0x3]  ;;  %v170_v10 = vmax.bf16 %v166_v6, %v165_v5 }
  0x14   : > { %179 = vrot.lane.b32.xlu1 %v169_v3, %s348_s14  ;;  %v168_v11 = vmax.bf16 %v162_v9, %v161_v8 }
  0x15   : > { %175 = vrot.lane.b32.xlu0 %v167_v7, %s348_s14 }
  0x18   : > { %181 = vrot.lane.b32.xlu1 %v170_v10, %s348_s14 }
  0x19   : > { %177 = vrot.lane.b32.xlu0 %v168_v11, %s348_s14 }
  0x86   : > { %v180_v12 = vpop.permute.xlu1 %179 }
  0x87   : > { %v189_v13 = vmax.bf16 %v180_v12, %v169_v3  ;;  %v176_v14 = vpop.permute.xlu0 %175 }
  0x88   : > { %v187_v15 = vmax.bf16 %v176_v14, %v167_v7 }
  0x89   : > { %194 = vst.msk [vmem:[%s157_s18 + $0x4] sm:$0x3] %vm191_vm0, %v189_v13 }
  0x8a   : > { %192 = vst.msk [vmem:[%s157_s18] sm:$0x3] %vm191_vm0, %v187_v15  ;;  %v182_v16 = vpop.permute.xlu1 %181 }
  0x8b   : > { %v190_v17 = vmax.bf16 %v182_v16, %v170_v10  ;;  %v178_v18 = vpop.permute.xlu0 %177 }
  0x8c   : > { %v188_v19 = vmax.bf16 %v178_v18, %v168_v11 }
  0x8d   : > { %195 = vst.msk [vmem:[%s157_s18 + $0x6] sm:$0x3] %vm191_vm0, %v190_v17 }
  0x8e   : > { %193 = vst.msk [vmem:[%s157_s18 + $0x2] sm:$0x3] %vm191_vm0, %v188_v19 }
  0x8f PF: > { %s11_s8 = sadd.s32 1, %s346_s8   ;;  %s394_s6 = smov %s342_s7 }
  0x90   : > { %p8_p5 = scmp.ge.s32.totalorder %s11_s8, 4   ;;  %s395_s7 = smov %s397_s9 }
  0x92   :  { %10 = sbr.rel (!%p8_p5) target bundleno = 2 (0x2), region = 54 }

// kernel: perceptual_forward.11
= control target key start
LH: loop header
LB: loop body
LE: loop exit
PB: predicated region body
PF: predicated region fallthrough
CT: control target
= control target key end

     0   :  { %s2177_s12 = smov 0   ;;  %s2635_s0 = inlined_call_operand.vmem [shape: bf16[2,110,32], index: 0, kind: input, shape index: {}]   ;;  %s2636_s1 = inlined_call_operand.vmem [shape: bf16[9,32,32], index: 1, kind: input, shape index: {}]   ;;  %s2637_s2 = inlined_call_operand.vmem [shape: f32[1,32], index: 2, kind: input, shape index: {}]   ;;  %s2638_s3 = inlined_call_operand.vmem [shape: bf16[2,80,32], index: 3, kind: output, shape index: {}]  }
   0x1 LB: > { %s1663_s13 = sadd.s32 4294967295, %s2153_s12   ;;  %p1667_p0 = scmp.ge.s32.totalorder %s2153_s12, 1  ;;  %s2153_s12 = sphi %s2177_s12, %s13_s12  }
   0x2   : > { %p137_p1 = scmp.lt.s32.totalorder %s2153_s12, 3 }
   0x4   : > { %p138_p2 = pnand %p1667_p0, %p137_p1 }
   0x5   : > { %v2106_v0 = vld [vmem:[%s2636_s1 + $0x10] sm:$0xff] (!%p138_p2)   ;;  %v2155_v1 = vmov (!%p138_p2), 0.0   ;;  %v2107_v2 = vld [vmem:[%s2636_s1 + $0x18] sm:$0xff] (!%p138_p2)   ;;  %p161_p3 = scmp.lt.s32.totalorder (!%p138_p2), %s1663_s13, 1  ;;  %vm2156_vm0 = vmmov (!%p138_p2), 0   ;;  %vm277_vm2 = vcmask (!%p138_p2), 261120  }
   0x6   : > { %141 = sbr.rel (%p138_p2) target bundleno = 426 (0x1aa), region = 32  ;;  %1874 = vmatprep.subr.bf16.mxu0 (!%p138_p2), %v2155_v1  ;;  %2090 = vmatprep.subr.bf16.mxu1 (!%p138_p2), %v2155_v1  ;;  %vm220_vm1 = vsmask.f32 (!%p138_p2), 7424  ;;  %v2112_v21 = vld [vmem:[%s2636_s1 + $0x20] sm:$0xff] (!%p138_p2)   ;;  %v2116_v33 = vld [vmem:[%s2636_s1 + $0x28] sm:$0xff] (!%p138_p2)   ;;  %v2118_v48 = vld [vmem:[%s2636_s1 + $0x30] sm:$0xff] (!%p138_p2)  }
   0x7   : > { %1875 = vmatpush3.bf16.msra.mxu0 (!%p138_p2), %v2106_v0  ;;  %2092 = vmatpush3.bf16.msra.mxu1 (!%p138_p2), %v2106_v0  ;;  %v2113_v27 = vld [vmem:[%s2636_s1] sm:$0xff] (!%p138_p2)   ;;  %v2117_v36 = vld [vmem:[%s2636_s1 + $0x8] sm:$0xff] (!%p138_p2)   ;;  %vm470_vm3 = vcmask (!%p138_p2), 1046528   ;;  %v2121_v52 = vld [vmem:[%s2636_s1 + $0x38] sm:$0xff] (!%p138_p2)   ;;  %vm766_vm4 = vsmask.f32 (!%p138_p2), 6400 }
   0x8   : > { %1876 = vmatprep.subr.bf16.mxu0 (!%p138_p2), %v2155_v1  ;;  %2091 = vmatprep.subr.bf16.mxu1 (!%p138_p2), %v2155_v1  ;;  %v2120_v54 = vld [vmem:[%s2636_s1 + $0x40] sm:$0xff] (!%p138_p2)   ;;  %v2122_v56 = vld [vmem:[%s2636_s1 + $0x48] sm:$0xff] (!%p138_p2)   ;;  %vm939_vm5 = vcmask (!%p138_p2), 1045504   ;;  %vm1235_vm6 = vsmask.f32 (!%p138_p2), 5376  ;;  %vm1408_vm7 = vcmask (!%p138_p2), 1044480  }
   0x9   : > { %1878 = vmatprep.mubr.msk.bf16.mxu0 (!%p138_p2), %vm2156_vm0, %v2155_v1  ;;  %1890 = vmatprep.mubr.msk.bf16.mxu1 (!%p138_p2), %vm2156_vm0, %v2155_v1  ;;  %vm1597_vm8 = vcmask (!%p138_p2), 257024  }
   0xb   : > { %1877 = vmatpush3.bf16.msra.mxu0 (!%p138_p2), %v2107_v2  ;;  %2093 = vmatpush3.bf16.msra.mxu1 (!%p138_p2), %v2107_v2 }
   0xc   : > { %1922 = vmatprep.subr.bf16.mxu0 (!%p138_p2), %v2155_v1  ;;  %1898 = vmatprep.subr.bf16.mxu1 (!%p138_p2), %v2155_v1 }
   0xd   : > { %s2640_s13 = smov (!%p161_p3, %s1663_s13), 1 }
   0xe   : > { %s2094_s18 = smul.u32 56, %s2640_s13 }
   0xf   : > { %s2095_s4 = smul.u32 40, %s2640_s13 }
  0x10   : > { %s2207_s21 = scalar_lea.vmem %s2635_s0, %s2094_s18 }
  0x11   : > { %v172_v3 = vld [vmem:[%s2207_s21] sm:$0xf]  ;;  %v2211_v4 = vld [vmem:[%s2207_s21 + $0x4] sm:$0xf]  ;;  %v2217_v6 = vld [vmem:[%s2207_s21 + $0x8] sm:$0xff]   ;;  %s2596_s7 = scalar_lea.vmem %s2638_s3, %s2095_s4 }
  0x12   : > { %v2214_v5 = vcombine.low %v172_v3, %v2211_v4  ;;  %v229_v9 = vshll.u32 %v2217_v6, 16  ;;  %v2223_v10 = vld [vmem:[%s2207_s21 + $0x18] sm:$0xff]   ;;  %v2226_v11 = vld [vmem:[%s2207_s21 + $0x20] sm:$0xff]   ;;  %v2229_v12 = vld [vmem:[%s2207_s21 + $0x10] sm:$0xff]   ;;  %v233_v22 = vshrl.u32 %v2217_v6, 16  ;;  %v472_v51 = vrot.slane %v2217_v6, 1 }
  0x13   : > { %v245_v15 = vshll.u32 %v2223_v10, 16  ;;  %v249_v16 = vshrl.u32 %v2223_v10, 16  ;;  %v253_v17 = vshll.u32 %v2226_v11, 16  ;;  %v2235_v18 = vld [vmem:[%s2207_s21 + $0x28] ss:$0 sps:$4 sm:$0x11]  }
  0x14   : > { %v222_v7 = vshrl.u32 %v2214_v5, 16  ;;  %v224_v8 = vshll.u32 %v2214_v5, 16  ;;  %v231_v14 = vrot.slane %v229_v9, 1  ;;  %v237_v23 = vshll.u32 %v2229_v12, 16  ;;  %v461_v41 = vld [vmem:[%s2207_s21] sm:$0xe] }
  0x15   : > { %v247_v20 = vrot.slane %v245_v15, 1  ;;  %v255_v24 = vrot.slane %v253_v17, 1  ;;  %v257_v28 = vshrl.u32 %v2226_v11, 16  ;;  %v261_v29 = vshll.u32 %v2235_v18, 16  ;;  %v2274_v42 = vld [vmem:[%s2207_s21 + $0x24] sm:$0xff]   ;;  %v2345_v2 = vld [vmem:[%s2207_s21 + $0xc] sm:$0xff]  }
  0x16   : > { %v226_v13 = vrot.slane %v224_v8, 1  ;;  %v235_v31 = vor.u32 %v233_v22, %v231_v14  ;;  %v239_v32 = vrot.slane %v237_v23, 1  ;;  %v241_v38 = vshrl.u32 %v2229_v12, 16  ;;  %v2132_v43 = vld [vmem:[%s2207_s21 + $0x2c] ss:$0 sps:$4 sm:$0x11]  }
  0x17   : > { %v251_v26 = vor.u32 %v249_v16, %v247_v20  ;;  %v259_v34 = vor.u32 %v257_v28, %v255_v24  ;;  %v263_v35 = vrot.slane %v261_v29, 1  ;;  %v1698_v45 = vcombine.low %v461_v41, %v2211_v4  ;;  %v592_v61 = vld [vmem:[%s2207_s21 + $0x4] sm:$0xe]  ;;  %v2340_v62 = vld [vmem:[%s2207_s21 + $0x8] sm:$0xf]  ;;  %v2125_v17 = vld [vmem:[%s2636_s1 + $0x50] sm:$0xff]  }
  0x18   : > { %v227_v19 = vor.u32 %v226_v13, %v222_v7  ;;  %v240_v37 = vsel %vm220_vm1, %v235_v31, %v239_v32  ;;  %v243_v40 = vor.u32 %v241_v38, %v239_v32  ;;  %v643_v46 = vrot.slane %v2274_v42, 1  ;;  %v2130_v23 = vld [vmem:[%s2636_s1 + $0x58] sm:$0xff]  }
  0x19   : > { %v256_v30 = vsel %vm220_vm1, %v251_v26, %v255_v24  ;;  %v264_v39 = vsel %vm220_vm1, %v259_v34, %v263_v35  ;;  %v645_v47 = vrot.slane %v2132_v43, 1  ;;  %v471_v50 = vrot.slane %v1698_v45, 1  ;;  %v2385_v29 = vld [vmem:[%s2207_s21 + $0x1c] sm:$0xff]  }
  0x1a   : > { %v232_v25 = vsel %vm220_vm1, %v227_v19, %v231_v14  ;;  %1891 = vmatmul.mubr.msk.bf16.vlgmr.msra.gmra.mrb[0].mxu1 %vm277_vm2, %v256_v30  ;;  %v248_v44 = vsel %vm220_vm1, %v243_v40, %v247_v20  ;;  %v474_v55 = vrot.slane %v2229_v12, 1  ;;  %v476_v58 = vrot.slane %v2223_v10, 1 }
  0x1b   : > { %1879 = vmatmul.mubr.msk.bf16.vlgmr.msra.gmra.mrb[0].mxu0 %vm277_vm2, %v232_v25  ;;  %1899 = vmatpush3.bf16.msra.mxu1 %v2113_v27  ;;  %v2289_v49 = vsel %vm470_vm3, %v643_v46, %v645_v47  ;;  %v473_v53 = vsel %vm470_vm3, %v471_v50, %v472_v51  ;;  %v478_v60 = vrot.slane %v2226_v11, 1  ;;  %v1710_v0 = vcombine.low %v592_v61, %v2340_v62  ;;  %v2127_v25 = vld [vmem:[%s2636_s1 + $0x60] sm:$0xff]   ;;  %v2414_v47 = vld [vmem:[%s2207_s21 + $0x2c] ss:$0 sps:$4 sm:$0x33]  }
  0x1c   : > { %1923 = vmatpush3.bf16.msra.mxu0 %v2112_v21  ;;  %1882 = vmatprep.mubr.msk.bf16.mxu0 %vm2156_vm0, %v2155_v1  ;;  %v475_v57 = vsel %vm470_vm3, %v472_v51, %v474_v55  ;;  %v477_v59 = vsel %vm470_vm3, %v474_v55, %v476_v58  ;;  %v480_v3 = vrot.slane %v2235_v18, 1  ;;  %v779_v7 = vshll.u32 %v2345_v2, 16  ;;  %v2364_v18 = vld [vmem:[%s2207_s21 + $0x14] sm:$0xff]  }
  0x1d   : > { %1924 = vmatprep.subr.bf16.mxu0 %v2155_v1  ;;  %1894 = vmatprep.mubr.msk.bf16.mxu1 %vm2156_vm0, %v2155_v1  ;;  %v479_v63 = vsel %vm470_vm3, %v476_v58, %v478_v60  ;;  %v768_v4 = vshrl.u32 %v1710_v0, 16  ;;  %v636_v8 = vrot.slane %v1710_v0, 1  ;;  %v637_v9 = vrot.slane %v2345_v2, 1  ;;  %v1061_v58 = vld [vmem:[%s2207_s21 + $0x8] sm:$0xc] }
  0x1e   : > { %1900 = vmatprep.subr.bf16.mxu1 %v2155_v1  ;;  %v781_v15 = vrot.slane %v779_v7, 2  ;;  %v785_v20 = vshrl.u32 %v2364_v18, 16  ;;  %v788_v21 = vshll.u32 %v2364_v18, 16  ;;  %v639_v22 = vrot.slane %v2364_v18, 1 }
  0x1f   : > { %1901 = vmatpush3.bf16.msra.mxu1 %v2117_v36  ;;  %v638_v16 = vsel %vm470_vm3, %v636_v8, %v637_v9  ;;  %v794_v31 = vshrl.u32 %v2385_v29, 16  ;;  %v797_v32 = vshll.u32 %v2385_v29, 16  ;;  %v641_v34 = vrot.slane %v2385_v29, 1  ;;  %v2138_v8 = vld [vmem:[%s2636_s1 + $0x80] sm:$0xff]  }
  0x20   : > { %1925 = vmatpush3.bf16.msra.mxu0 %v2116_v33  ;;  %1946 = vmatprep.subr.bf16.mxu1 %v2155_v1  ;;  %v787_v26 = vrot.slane %v785_v20, 1  ;;  %v790_v27 = vrot.slane %v788_v21, 2  ;;  %v640_v28 = vsel %vm470_vm3, %v637_v9, %v639_v22  ;;  %v2131_v33 = vld [vmem:[%s2636_s1 + $0x68] sm:$0xff]   ;;  %v803_v40 = vshrl.u32 %v2274_v42, 16  ;;  %v2468_v9 = vld [vmem:[%s2207_s21 + $0x18] sm:$0xff]  }
  0x21   : > { %1970 = vmatprep.subr.bf16.mxu0 %v2155_v1  ;;  %v796_v36 = vrot.slane %v794_v31, 1  ;;  %v642_v38 = vsel %vm470_vm3, %v639_v22, %v641_v34  ;;  %v806_v41 = vshll.u32 %v2274_v42, 16  ;;  %v812_v51 = vshrl.u32 %v2414_v47, 16  ;;  %v2498_v20 = vld [vmem:[%s2207_s21 + $0x28] sm:$0xff]  }
  0x22   : > { %1895 = vmatmul.mubr.msk.bf16.gmra.mrb[4].mxu1 %vm277_vm2, %v264_v39  ;;  %v791_v30 = vor.u32 %v790_v27, %v787_v26  ;;  %v941_v61 = vrot.slane %v2345_v2, 2  ;;  %v1112_v22 = vrot.slane %v2498_v20, 2 }
  0x23   : > { %1883 = vmatmul.mubr.msk.bf16.gmra.mrb[4].mxu0 %vm277_vm2, %v240_v37  ;;  %1902 = vmatprep.mubr.msk.bf16.mxu1 %vm2156_vm0, %v2155_v1  ;;  %v799_v37 = vrot.slane %v797_v32, 2  ;;  %v808_v45 = vrot.slane %v806_v41, 2 }
  0x24   : > { %1886 = vmatprep.mubr.msk.bf16.mxu0 %vm2156_vm0, %v2155_v1 }
  0x25   : > { %v800_v39 = vor.u32 %v799_v37, %v796_v36 }
  0x27   : > { %v801_v43 = vsel %vm766_vm4, %v791_v30, %v800_v39 }
  0x2a   : > { %1903 = vmatmul.mubr.msk.bf16.vlgmr.msra.gmra.mrb[8].mxu1 %vm277_vm2, %v2214_v5  ;;  %v771_v5 = vshll.u32 %v1710_v0, 16  ;;  %v2445_v0 = vld [vmem:[%s2207_s21 + $0x10] sm:$0xff]  }
  0x2b   : > { %1887 = vmatmul.mubr.msk.bf16.gmra.mrb[8].mxu0 %vm277_vm2, %v248_v44  ;;  %1947 = vmatpush3.bf16.msra.mxu1 %v2118_v48  ;;  %v805_v44 = vrot.slane %v803_v40, 1  ;;  %v644_v48 = vsel %vm470_vm3, %v641_v34, %v643_v46  ;;  %v1248_v26 = vshll.u32 %v2445_v0, 16 }
  0x2c   : > { %1926 = vmatprep.mubr.msk.bf16.mxu0 %vm2156_vm0, %v2155_v1  ;;  %1906 = vmatprep.mubr.msk.bf16.mxu1 %vm2156_vm0, %v2155_v1  ;;  %v773_v13 = vrot.slane %v771_v5, 2  ;;  %v943_v5 = vrot.slane %v2364_v18, 2 }
  0x2d   : > { %1948 = vmatprep.subr.bf16.mxu1 %v2155_v1  ;;  %v809_v50 = vor.u32 %v808_v45, %v805_v44 }
  0x2f   : > { %1949 = vmatpush3.bf16.msra.mxu1 %v2121_v52  ;;  %v815_v52 = vshll.u32 %v2414_v47, 16  ;;  %v810_v46 = vsel %vm766_vm4, %v800_v39, %v809_v50  ;;  %v1257_v39 = vshll.u32 %v2468_v9, 16 }
  0x30   : > { %1994 = vmatprep.subr.bf16.mxu1 %v2155_v1 }
  0x31   : > { %v817_v55 = vrot.slane %v815_v52, 2  ;;  %v1259_v45 = vrot.slane %v1257_v39, 3 }
  0x32   : > { %1907 = vmatmul.mubr.msk.bf16.gmra.mrb[12].mxu1 %vm277_vm2, %v2217_v6  ;;  %v776_v6 = vshrl.u32 %v2345_v2, 16 }
  0x33   : > { %1927 = vmatmul.mubr.msk.bf16.vlgmr.msra.gmra.mrb[12].mxu0 %vm277_vm2, %v473_v53  ;;  %1910 = vmatprep.mubr.msk.bf16.mxu1 %vm2156_vm0, %v2155_v1  ;;  %v930_v53 = vld [vmem:[%s2207_s21 + $0x4] sm:$0xc] }
  0x34   : > { %1971 = vmatpush3.bf16.msra.mxu0 %v2120_v54  ;;  %1930 = vmatprep.mubr.msk.bf16.mxu0 %vm2156_vm0, %v2155_v1  ;;  %v778_v14 = vrot.slane %v776_v6, 1  ;;  %v814_v54 = vrot.slane %v812_v51, 1  ;;  %v2141_v6 = vld [vmem:[%s2636_s1 + $0x78] sm:$0xff]  }
  0x35   : > { %1972 = vmatprep.subr.bf16.mxu0 %v2155_v1 }
  0x36   : > { %v782_v19 = vor.u32 %v781_v15, %v778_v14  ;;  %v945_v14 = vrot.slane %v2385_v29, 2 }
  0x38   : > { %1973 = vmatpush3.bf16.msra.mxu0 %v2122_v56  ;;  %v792_v35 = vsel %vm766_vm4, %v782_v19, %v791_v30  ;;  %v1739_v56 = vcombine.low %v930_v53, %v2340_v62 }
  0x39   : > { %2018 = vmatprep.subr.bf16.mxu0 %v2155_v1 }
  0x3a   : > { %1911 = vmatmul.mubr.msk.bf16.gmra.mrb[16].mxu1 %vm277_vm2, %v2229_v12  ;;  %v770_v12 = vrot.slane %v768_v4, 1  ;;  %v1106_v4 = vrot.slane %v2445_v0, 2 }
  0x3b   : > { %1931 = vmatmul.mubr.msk.bf16.gmra.mrb[16].mxu0 %vm277_vm2, %v475_v57  ;;  %1914 = vmatprep.mubr.msk.bf16.mxu1 %vm2156_vm0, %v2155_v1  ;;  %v818_v57 = vor.u32 %v817_v55, %v814_v54 }
  0x3c   : > { %1934 = vmatprep.mubr.msk.bf16.mxu0 %vm2156_vm0, %v2155_v1 }
  0x3d   : > { %v819_v62 = vsel %vm766_vm4, %v809_v50, %v818_v57 }
  0x42   : > { %1915 = vmatmul.mubr.msk.bf16.gmra.mrb[20].mxu1 %vm277_vm2, %v2223_v10  ;;  %v481_v10 = vsel %vm470_vm3, %v478_v60, %v480_v3  ;;  %v940_v60 = vrot.slane %v1739_v56, 2  ;;  %v1412_v56 = vrot.slane %v2468_v9, 3 }
  0x43   : > { %1935 = vmatmul.mubr.msk.bf16.gmra.mrb[20].mxu0 %vm277_vm2, %v477_v59  ;;  %1918 = vmatprep.mubr.msk.bf16.mxu1 %vm2156_vm0, %v2155_v1  ;;  %v2437_v59 = vld [vmem:[%s2207_s21 + $0xc] sm:$0xf] }
  0x44   : > { %1938 = vmatprep.mubr.msk.bf16.mxu0 %vm2156_vm0, %v2155_v1  ;;  %v942_v3 = vsel %vm939_vm5, %v940_v60, %v941_v61 }
  0x4a   : > { %1919 = vmatmul.mubr.msk.bf16.gmra.mrb[24].mxu1 %vm277_vm2, %v2226_v11  ;;  %v774_v11 = vor.u32 %v773_v13, %v770_v12  ;;  %v1108_v12 = vrot.slane %v2468_v9, 2  ;;  %v2142_v13 = vld [vmem:[%s2636_s1 + $0x88] sm:$0xff]  }
  0x4b   : > { %1939 = vmatmul.mubr.msk.bf16.gmra.mrb[24].mxu0 %vm277_vm2, %v479_v63  ;;  %1950 = vmatprep.mubr.msk.bf16.mxu1 %vm2156_vm0, %v2155_v1  ;;  %v1751_v63 = vcombine.low %v1061_v58, %v2437_v59  ;;  %v1272_v58 = vshrl.u32 %v2498_v20, 16 }
  0x4c   : > { %1942 = vmatprep.mubr.msk.bf16.mxu0 %vm2156_vm0, %v2155_v1  ;;  %v783_v24 = vsel %vm766_vm4, %v774_v11, %v782_v19  ;;  %v1109_v15 = vsel %vm939_vm5, %v1106_v4, %v1108_v12  ;;  %v947_v11 = vrot.slane %v2274_v42, 2 }
  0x4d   : > { %v1105_v2 = vrot.slane %v1751_v63, 2  ;;  %v1237_v42 = vshrl.u32 %v1751_v63, 16 }
  0x4e   : > { %v948_v21 = vsel %vm939_vm5, %v945_v14, %v947_v11 }
  0x4f   : > { %v1107_v7 = vsel %vm939_vm5, %v1105_v2, %v1106_v4  ;;  %v1239_v30 = vrot.slane %v1237_v42, 2 }
  0x52   : > { %1951 = vmatmul.mubr.msk.bf16.vlgmr.msra.gmra.mrb[28].mxu1 %vm277_vm2, %v638_v16  ;;  %v2485_v16 = vld [vmem:[%s2207_s21 + $0x20] sm:$0xff]  }
  0x53   : > { %1943 = vmatmul.mubr.msk.bf16.gmra.mrb[28].mxu0 %vm277_vm2, %v481_v10  ;;  %1995 = vmatpush3.bf16.msra.mxu1 %v2125_v17  ;;  %v944_v10 = vsel %vm939_vm5, %v941_v61, %v943_v5  ;;  %v946_v17 = vsel %vm939_vm5, %v943_v5, %v945_v14  ;;  %v1110_v18 = vrot.slane %v2485_v16, 2  ;;  %v1263_v51 = vshrl.u32 %v2485_v16, 16 }
  0x54   : > { %1974 = vmatprep.mubr.msk.bf16.mxu0 %vm2156_vm0, %v2155_v1  ;;  %1954 = vmatprep.mubr.msk.bf16.mxu1 %vm2156_vm0, %v2155_v1  ;;  %v1266_v52 = vshll.u32 %v2485_v16, 16 }
  0x55   : > { %1996 = vmatprep.subr.bf16.mxu1 %v2155_v1  ;;  %v1111_v19 = vsel %vm939_vm5, %v1108_v12, %v1110_v18  ;;  %v1113_v27 = vsel %vm939_vm5, %v1110_v18, %v1112_v22  ;;  %v1265_v54 = vrot.slane %v1263_v51, 2 }
  0x56   : > { %v1268_v55 = vrot.slane %v1266_v52, 3 }
  0x57   : > { %1997 = vmatpush3.bf16.msra.mxu1 %v2130_v23  ;;  %v949_v23 = vrot.slane %v2414_v47, 2 }
  0x58   : > { %2042 = vmatprep.subr.bf16.mxu1 %v2155_v1  ;;  %v1269_v57 = vor.u32 %v1268_v55, %v1265_v54 }
  0x59   : > { %v950_v29 = vsel %vm939_vm5, %v947_v11, %v949_v23 }
  0x5a   : > { %1955 = vmatmul.mubr.msk.bf16.gmra.mrb[32].mxu1 %vm277_vm2, %v640_v28  ;;  %v2144_v28 = vld [vmem:[%s2207_s21 + $0x30] ss:$0 sps:$4 sm:$0x33]  }
  0x5b   : > { %1975 = vmatmul.mubr.msk.bf16.vlgmr.msra.gmra.mrb[32].mxu0 %vm277_vm2, %v783_v24  ;;  %1958 = vmatprep.mubr.msk.bf16.mxu1 %vm2156_vm0, %v2155_v1  ;;  %v1240_v24 = vshll.u32 %v1751_v63, 16  ;;  %v1114_v34 = vrot.slane %v2144_v28, 2 }
  0x5c   : > { %2019 = vmatpush3.bf16.msra.mxu0 %v2127_v25  ;;  %1978 = vmatprep.mubr.msk.bf16.mxu0 %vm2156_vm0, %v2155_v1  ;;  %v1245_v25 = vshrl.u32 %v2445_v0, 16 }
  0x5d   : > { %2020 = vmatprep.subr.bf16.mxu0 %v2155_v1  ;;  %v1242_v31 = vrot.slane %v1240_v24, 3  ;;  %v1115_v40 = vsel %vm939_vm5, %v1112_v22, %v1114_v34 }
  0x5e   : > { %v1247_v32 = vrot.slane %v1245_v25, 2 }
  0x5f   : > { %v1243_v36 = vor.u32 %v1242_v31, %v1239_v30 }
  0x60   : > { %2021 = vmatpush3.bf16.msra.mxu0 %v2131_v33  ;;  %v1250_v33 = vrot.slane %v1248_v26, 3 }
  0x61   : > { %2066 = vmatprep.subr.bf16.mxu0 %v2155_v1 }
  0x62   : > { %1959 = vmatmul.mubr.msk.bf16.gmra.mrb[36].mxu1 %vm277_vm2, %v642_v38  ;;  %v1251_v37 = vor.u32 %v1250_v33, %v1247_v32  ;;  %v1254_v38 = vshrl.u32 %v2468_v9, 16  ;;  %v1416_v9 = vrot.slane %v2498_v20, 3 }
  0x63   : > { %1979 = vmatmul.mubr.msk.bf16.gmra.mrb[36].mxu0 %vm277_vm2, %v792_v35  ;;  %1962 = vmatprep.mubr.msk.bf16.mxu1 %vm2156_vm0, %v2155_v1  ;;  %v1399_v35 = vld [vmem:[%s2207_s21 + $0x8] sm:$0x8] }
  0x64   : > { %1982 = vmatprep.mubr.msk.bf16.mxu0 %vm2156_vm0, %v2155_v1  ;;  %v1780_v41 = vcombine.low %v1399_v35, %v2437_v59  ;;  %v1256_v44 = vrot.slane %v1254_v38, 2  ;;  %v1275_v59 = vshll.u32 %v2498_v20, 16 }
  0x66   : > { %v1409_v47 = vrot.slane %v1780_v41, 3  ;;  %v1260_v50 = vor.u32 %v1259_v45, %v1256_v44  ;;  %v1277_v63 = vrot.slane %v1275_v59, 3 }
  0x68   : > { %v1270_v61 = vsel %vm1235_vm6, %v1260_v50, %v1269_v57 }
  0x6a   : > { %1963 = vmatmul.mubr.msk.bf16.gmra.mrb[40].mxu1 %vm277_vm2, %v644_v48  ;;  %v1410_v48 = vrot.slane %v2445_v0, 3  ;;  %v2146_v0 = vld [vmem:[%s2207_s21 + $0x30] ss:$0 sps:$4 sm:$0x77]  }
  0x6b   : > { %1983 = vmatmul.mubr.msk.bf16.gmra.mrb[40].mxu0 %vm277_vm2, %v801_v43  ;;  %1966 = vmatprep.mubr.msk.bf16.mxu1 %vm2156_vm0, %v2155_v1  ;;  %v1252_v43 = vsel %vm1235_vm6, %v1243_v36, %v1251_v37  ;;  %v1281_v2 = vshrl.u32 %v2146_v0, 16  ;;  %v1284_v4 = vshll.u32 %v2146_v0, 16  ;;  %v1418_v14 = vrot.slane %v2146_v0, 3 }
  0x6c   : > { %1986 = vmatprep.mubr.msk.bf16.mxu0 %vm2156_vm0, %v2155_v1  ;;  %v1411_v53 = vsel %vm1408_vm7, %v1409_v47, %v1410_v48  ;;  %v1413_v60 = vsel %vm1408_vm7, %v1410_v48, %v1412_v56 }
  0x72   : > { %1967 = vmatmul.mubr.msk.bf16.gmra.mrb[44].mxu1 %vm277_vm2, %v2289_v49  ;;  %v2135_v49 = vld [vmem:[%s2636_s1 + $0x70] sm:$0xff]  }
  0x73   : > { %1987 = vmatmul.mubr.msk.bf16.gmra.mrb[44].mxu0 %vm277_vm2, %v810_v46  ;;  %1998 = vmatprep.mubr.msk.bf16.mxu1 %vm2156_vm0, %v2155_v1  ;;  %v1261_v46 = vsel %vm1235_vm6, %v1251_v37, %v1260_v50 }
  0x74   : > { %1990 = vmatprep.mubr.msk.bf16.mxu0 %vm2156_vm0, %v2155_v1 }
  0x7a   : > { %1999 = vmatmul.mubr.msk.bf16.vlgmr.msra.gmra.mrb[48].mxu1 %vm277_vm2, %v942_v3  ;;  %v1414_v3 = vrot.slane %v2485_v16, 3 }
  0x7b   : > { %1991 = vmatmul.mubr.msk.bf16.gmra.mrb[48].mxu0 %vm277_vm2, %v819_v62  ;;  %2043 = vmatpush3.bf16.msra.mxu1 %v2135_v49  ;;  %v1274_v62 = vrot.slane %v1272_v58, 2 }
  0x7c   : > { %2022 = vmatprep.mubr.msk.bf16.mxu0 %vm2156_vm0, %v2155_v1  ;;  %2002 = vmatprep.mubr.msk.bf16.mxu1 %vm2156_vm0, %v2155_v1  ;;  %v1415_v5 = vsel %vm1408_vm7, %v1412_v56, %v1414_v3  ;;  %v1417_v12 = vsel %vm1408_vm7, %v1414_v3, %v1416_v9 }
  0x7d   : > { %2044 = vmatprep.subr.bf16.mxu1 %v2155_v1  ;;  %v1278_v49 = vor.u32 %v1277_v63, %v1274_v62 }
  0x7f   : > { %2045 = vmatpush3.bf16.msra.mxu1 %v2141_v6  ;;  %v1279_v6 = vsel %vm1235_vm6, %v1269_v57, %v1278_v49 }
  0x82   : > { %2003 = vmatmul.mubr.msk.bf16.gmra.mrb[52].mxu1 %vm277_vm2, %v944_v10 }
  0x83   : > { %2023 = vmatmul.mubr.msk.bf16.vlgmr.msra.gmra.mrb[52].mxu0 %vm277_vm2, %v1107_v7  ;;  %2006 = vmatprep.mubr.msk.bf16.mxu1 %vm2156_vm0, %v2155_v1  ;;  %v1283_v7 = vrot.slane %v1281_v2, 2 }
  0x84   : > { %2067 = vmatpush3.bf16.msra.mxu0 %v2138_v8  ;;  %2026 = vmatprep.mubr.msk.bf16.mxu0 %vm2156_vm0, %v2155_v1  ;;  %v1286_v8 = vrot.slane %v1284_v4, 3 }
  0x85   : > { %2068 = vmatprep.subr.bf16.mxu0 %v2155_v1 }
  0x86   : > { %v1287_v10 = vor.u32 %v1286_v8, %v1283_v7 }
  0x88   : > { %2069 = vmatpush3.bf16.msra.mxu0 %v2142_v13  ;;  %v1288_v13 = vsel %vm1235_vm6, %v1278_v49, %v1287_v10 }
  0x8a   : > { %2007 = vmatmul.mubr.msk.bf16.gmra.mrb[56].mxu1 %vm277_vm2, %v946_v17 }
  0x8b   : > { %2027 = vmatmul.mubr.msk.bf16.gmra.mrb[56].mxu0 %vm277_vm2, %v1109_v15  ;;  %2010 = vmatprep.mubr.msk.bf16.mxu1 %vm2156_vm0, %v2155_v1  ;;  %v1419_v15 = vsel %vm1408_vm7, %v1416_v9, %v1418_v14 }
  0x8c   : > { %2030 = vmatprep.mubr.msk.bf16.mxu0 %vm2156_vm0, %v2155_v1 }
  0x92   : > { %2011 = vmatmul.mubr.msk.bf16.gmra.mrb[60].mxu1 %vm277_vm2, %v948_v21 }
  0x93   : > { %2031 = vmatmul.mubr.msk.bf16.gmra.mrb[60].mxu0 %vm277_vm2, %v1111_v19  ;;  %2014 = vmatprep.mubr.msk.bf16.mxu1 %vm2156_vm0, %v2155_v1 }
  0x94   : > { %2034 = vmatprep.mubr.msk.bf16.mxu0 %vm2156_vm0, %v2155_v1 }
  0x9a   : > { %2015 = vmatmul.mubr.msk.bf16.gmra.mrb[64].mxu1 %vm277_vm2, %v950_v29 }
  0x9b   : > { %2035 = vmatmul.mubr.msk.bf16.gmra.mrb[64].mxu0 %vm277_vm2, %v1113_v27  ;;  %2046 = vmatprep.mubr.msk.bf16.mxu1 %vm2156_vm0, %v2155_v1 }
  0x9c   : > { %2038 = vmatprep.mubr.msk.bf16.mxu0 %vm2156_vm0, %v2155_v1 }
  0xa2   : > { %2047 = vmatmul.mubr.msk.bf16.vlgmr.msra.gmra.mrb[68].mxu1 %vm277_vm2, %v1252_v43 }
  0xa3   : > { %2039 = vmatmul.mubr.msk.bf16.gmra.mrb[68].mxu0 %vm277_vm2, %v1115_v40  ;;  %2050 = vmatprep.mubr.msk.bf16.mxu1 %vm2156_vm0, %v2155_v1 }
  0xa4   : > { %2070 = vmatprep.mubr.msk.bf16.mxu0 %vm2156_vm0, %v2155_v1 }
  0xaa   : > { %2051 = vmatmul.mubr.msk.bf16.gmra.mrb[72].mxu1 %vm277_vm2, %v1261_v46 }
  0xab   : > { %2071 = vmatmul.mubr.msk.bf16.vlgmr.msra.gmra.mrb[72].mxu0 %vm277_vm2, %v1411_v53  ;;  %2054 = vmatprep.mubr.msk.bf16.mxu1 %vm2156_vm0, %v2155_v1 }
  0xac   : > { %2074 = vmatprep.mubr.msk.bf16.mxu0 %vm2156_vm0, %v2155_v1 }
  0xb2   : > { %2055 = vmatmul.mubr.msk.bf16.gmra.mrb[76].mxu1 %vm277_vm2, %v1270_v61 }
  0xb3   : > { %2075 = vmatmul.mubr.msk.bf16.gmra.mrb[76].mxu0 %vm277_vm2, %v1413_v60  ;;  %2058 = vmatprep.mubr.msk.bf16.mxu1 %vm2156_vm0, %v2155_v1 }
  0xb4   : > { %2078 = vmatprep.mubr.msk.bf16.mxu0 %vm2156_vm0, %v2155_v1 }
  0xba   : > { %2059 = vmatmul.mubr.msk.bf16.gmra.mrb[80].mxu1 %vm277_vm2, %v1279_v6 }
  0xbb   : > { %2079 = vmatmul.mubr.msk.bf16.gmra.mrb[80].mxu0 %vm277_vm2, %v1415_v5  ;;  %2062 = vmatprep.mubr.msk.bf16.mxu1 %vm2156_vm0, %v2155_v1 }
  0xbc   : > { %2082 = vmatprep.mubr.msk.bf16.mxu0 %vm2156_vm0, %v2155_v1 }
  0xc2   : > { %2063 = vmatmul.mubr.msk.bf16.gmra.mrb[84].mxu1 %vm277_vm2, %v1288_v13 }
  0xc3   : > { %2083 = vmatmul.mubr.msk.bf16.gmra.mrb[84].mxu0 %vm277_vm2, %v1417_v12 }
  0xc4   : > { %2086 = vmatprep.mubr.msk.bf16.mxu0 %vm2156_vm0, %v2155_v1 }
  0xcb   : > { %2087 = vmatmul.mubr.msk.bf16.gmra.mrb[88].mxu0 %vm277_vm2, %v1419_v15 }
  0xed   : > { %v351_v11 = vpop.f32.mrb[0].mxu1 }
  0xee   : > { %v327_v16 = vpop.f32.mrb[0].mxu0  ;;  %v1892_v20 = vpop.f32.mrb[1].mxu1 }
  0xef   : > { %v1880_v17 = vpop.f32.mrb[1].mxu0  ;;  %v354_v21 = vpop.f32.mrb[2].mxu1 }
  0xf0   : > { %v330_v18 = vpop.f32.mrb[2].mxu0  ;;  %v1893_v22 = vpop.f32.mrb[3].mxu1 }
  0xf1   : > { %v1881_v19 = vpop.f32.mrb[3].mxu0 }
  0xf5   : > { %v359_v25 = vpop.f32.mrb[4].mxu1 }
  0xf6   : > { %v335_v23 = vpop.f32.mrb[4].mxu0  ;;  %v1896_v26 = vpop.f32.mrb[5].mxu1 }
  0xf7   : > { %v1884_v42 = vpop.f32.mrb[5].mxu0  ;;  %v362_v27 = vpop.f32.mrb[6].mxu1 }
  0xf8   : > { %v338_v24 = vpop.f32.mrb[6].mxu0  ;;  %v1897_v28 = vpop.f32.mrb[7].mxu1 }
  0xf9   : > { %v1885_v1 = vpop.f32.mrb[7].mxu0 }
  0xfd   : > { %v422_v31 = vpop.f32.mrb[8].mxu1 }
  0xfe   : > { %v343_v29 = vpop.f32.mrb[8].mxu0  ;;  %v423_v33 = vadd.f32 %v422_v31, %v327_v16  ;;  %v1904_v34 = vpop.f32.mrb[9].mxu1 }
  0xff   : > { %v1888_v30 = vpop.f32.mrb[9].mxu0  ;;  %v425_v36 = vpop.f32.mrb[10].mxu1 }
 0x100   : > { %v346_v32 = vpop.f32.mrb[10].mxu0  ;;  %v426_v37 = vadd.f32 %v425_v36, %v330_v18  ;;  %v1905_v38 = vpop.f32.mrb[11].mxu1 }
 0x101   : > { %v1889_v35 = vpop.f32.mrb[11].mxu0 }
 0x105   : > { %v430_v43 = vpop.f32.mrb[12].mxu1 }
 0x106   : > { %v543_v39 = vpop.f32.mrb[12].mxu0  ;;  %v431_v45 = vadd.f32 %v430_v43, %v335_v23  ;;  %v1908_v47 = vpop.f32.mrb[13].mxu1 }
 0x107   : > { %v582_v40 = vadd.f32 %v543_v39, %v423_v33  ;;  %v1928_v41 = vpop.f32.mrb[13].mxu0  ;;  %v433_v51 = vpop.f32.mrb[14].mxu1 }
 0x108   : > { %v546_v44 = vpop.f32.mrb[14].mxu0  ;;  %v434_v52 = vadd.f32 %v433_v51, %v338_v24  ;;  %v1909_v53 = vpop.f32.mrb[15].mxu1 }
 0x109   : > { %v583_v48 = vadd.f32 %v546_v44, %v426_v37  ;;  %v1929_v50 = vpop.f32.mrb[15].mxu0 }
 0x10d   : > { %v438_v56 = vpop.f32.mrb[16].mxu1 }
 0x10e   : > { %v551_v46 = vpop.f32.mrb[16].mxu0  ;;  %v439_v58 = vadd.f32 %v438_v56, %v343_v29  ;;  %v1912_v59 = vpop.f32.mrb[17].mxu1 }
 0x10f   : > { %v584_v54 = vadd.f32 %v551_v46, %v431_v45  ;;  %v1932_v55 = vpop.f32.mrb[17].mxu0  ;;  %v441_v62 = vpop.f32.mrb[18].mxu1 }
 0x110   : > { %v554_v57 = vpop.f32.mrb[18].mxu0  ;;  %v442_v63 = vadd.f32 %v441_v62, %v346_v32  ;;  %v1913_v0 = vpop.f32.mrb[19].mxu1 }
 0x111   : > { %v585_v60 = vadd.f32 %v554_v57, %v434_v52  ;;  %v1933_v61 = vpop.f32.mrb[19].mxu0 }
 0x115   : > { %v446_v4 = vpop.f32.mrb[20].mxu1 }
 0x116   : > { %v559_v3 = vpop.f32.mrb[20].mxu0  ;;  %v447_v6 = vadd.f32 %v446_v4, %v351_v11  ;;  %v1916_v7 = vpop.f32.mrb[21].mxu1 }
 0x117   : > { %v586_v49 = vadd.f32 %v559_v3, %v439_v58  ;;  %v1936_v2 = vpop.f32.mrb[21].mxu0  ;;  %v449_v10 = vpop.f32.mrb[22].mxu1 }
 0x118   : > { %v562_v5 = vpop.f32.mrb[22].mxu0  ;;  %v450_v12 = vadd.f32 %v449_v10, %v354_v21  ;;  %v1917_v13 = vpop.f32.mrb[23].mxu1 }
 0x119   : > { %v587_v8 = vadd.f32 %v562_v5, %v442_v63  ;;  %v1937_v9 = vpop.f32.mrb[23].mxu0 }
 0x11d   : > { %v454_v17 = vpop.f32.mrb[24].mxu1 }
 0x11e   : > { %v567_v14 = vpop.f32.mrb[24].mxu0  ;;  %v455_v19 = vadd.f32 %v454_v17, %v359_v25  ;;  %v1920_v20 = vpop.f32.mrb[25].mxu1 }
 0x11f   : > { %v588_v15 = vadd.f32 %v567_v14, %v447_v6  ;;  %v1940_v16 = vpop.f32.mrb[25].mxu0  ;;  %v457_v42 = vpop.f32.mrb[26].mxu1 }
 0x120   : > { %v570_v18 = vpop.f32.mrb[26].mxu0  ;;  %v458_v24 = vadd.f32 %v457_v42, %v362_v27  ;;  %v1921_v1 = vpop.f32.mrb[27].mxu1 }
 0x121   : > { %v589_v22 = vadd.f32 %v570_v18, %v450_v12  ;;  %v1941_v23 = vpop.f32.mrb[27].mxu0 }
 0x125   : > { %v708_v29 = vpop.f32.mrb[28].mxu1 }
 0x126   : > { %v575_v26 = vpop.f32.mrb[28].mxu0  ;;  %v747_v31 = vadd.f32 %v708_v29, %v582_v40  ;;  %v1952_v21 = vpop.f32.mrb[29].mxu1 }
 0x127   : > { %v590_v11 = vadd.f32 %v575_v26, %v455_v19  ;;  %v1944_v28 = vpop.f32.mrb[29].mxu0  ;;  %v711_v34 = vpop.f32.mrb[30].mxu1 }
 0x128   : > { %v578_v30 = vpop.f32.mrb[30].mxu0  ;;  %v748_v35 = vadd.f32 %v711_v34, %v583_v48  ;;  %v1953_v36 = vpop.f32.mrb[31].mxu1 }
 0x129   : > { %v591_v32 = vadd.f32 %v578_v30, %v458_v24  ;;  %v1945_v33 = vpop.f32.mrb[31].mxu0 }
 0x12d   : > { %v716_v39 = vpop.f32.mrb[32].mxu1 }
 0x12e   : > { %v881_v37 = vpop.f32.mrb[32].mxu0  ;;  %v749_v43 = vadd.f32 %v716_v39, %v584_v54  ;;  %v1956_v27 = vpop.f32.mrb[33].mxu1 }
 0x12f   : > { %v920_v25 = vadd.f32 %v881_v37, %v747_v31  ;;  %v1976_v38 = vpop.f32.mrb[33].mxu0  ;;  %v719_v47 = vpop.f32.mrb[34].mxu1 }
 0x130   : > { %v884_v41 = vpop.f32.mrb[34].mxu0  ;;  %v750_v50 = vadd.f32 %v719_v47, %v585_v60  ;;  %v1957_v51 = vpop.f32.mrb[35].mxu1 }
 0x131   : > { %v921_v44 = vadd.f32 %v884_v41, %v748_v35  ;;  %v1977_v45 = vpop.f32.mrb[35].mxu0 }
 0x135   : > { %v724_v46 = vpop.f32.mrb[36].mxu1 }
 0x136   : > { %v889_v52 = vpop.f32.mrb[36].mxu0  ;;  %v751_v56 = vadd.f32 %v724_v46, %v586_v49  ;;  %v1960_v48 = vpop.f32.mrb[37].mxu1 }
 0x137   : > { %v922_v40 = vadd.f32 %v889_v52, %v749_v43  ;;  %v1980_v53 = vpop.f32.mrb[37].mxu0  ;;  %v727_v59 = vpop.f32.mrb[38].mxu1 }
 0x138   : > { %v892_v55 = vpop.f32.mrb[38].mxu0  ;;  %v752_v61 = vadd.f32 %v727_v59, %v587_v8  ;;  %v1961_v62 = vpop.f32.mrb[39].mxu1 }
 0x139   : > { %v923_v57 = vadd.f32 %v892_v55, %v750_v50  ;;  %v1981_v58 = vpop.f32.mrb[39].mxu0 }
 0x13d   : > { %v732_v3 = vpop.f32.mrb[40].mxu1 }
 0x13e   : > { %v897_v63 = vpop.f32.mrb[40].mxu0  ;;  %v753_v4 = vadd.f32 %v732_v3, %v588_v15  ;;  %v1964_v60 = vpop.f32.mrb[41].mxu1 }
 0x13f   : > { %v924_v54 = vadd.f32 %v897_v63, %v751_v56  ;;  %v1984_v0 = vpop.f32.mrb[41].mxu0  ;;  %v735_v7 = vpop.f32.mrb[42].mxu1 }
 0x140   : > { %v900_v2 = vpop.f32.mrb[42].mxu0  ;;  %v754_v9 = vadd.f32 %v735_v7, %v589_v22  ;;  %v1965_v10 = vpop.f32.mrb[43].mxu1 }
 0x141   : > { %v925_v5 = vadd.f32 %v900_v2, %v752_v61  ;;  %v1985_v6 = vpop.f32.mrb[43].mxu0 }
 0x145   : > { %v740_v14 = vpop.f32.mrb[44].mxu1 }
 0x146   : > { %v905_v12 = vpop.f32.mrb[44].mxu0  ;;  %v755_v17 = vadd.f32 %v740_v14, %v590_v11  ;;  %v1968_v8 = vpop.f32.mrb[45].mxu1 }
 0x147   : > { %v926_v49 = vadd.f32 %v905_v12, %v753_v4  ;;  %v1988_v13 = vpop.f32.mrb[45].mxu0  ;;  %v743_v20 = vpop.f32.mrb[46].mxu1 }
 0x148   : > { %v908_v16 = vpop.f32.mrb[46].mxu0  ;;  %v756_v23 = vadd.f32 %v743_v20, %v591_v32  ;;  %v1969_v42 = vpop.f32.mrb[47].mxu1 }
 0x149   : > { %v927_v18 = vadd.f32 %v908_v16, %v754_v9  ;;  %v1989_v19 = vpop.f32.mrb[47].mxu0 }
 0x14d   : > { %v1012_v26 = vpop.f32.mrb[48].mxu1 }
 0x14e   : > { %v913_v24 = vpop.f32.mrb[48].mxu0  ;;  %v1051_v29 = vadd.f32 %v1012_v26, %v920_v25  ;;  %v2000_v22 = vpop.f32.mrb[49].mxu1 }
 0x14f   : > { %v928_v15 = vadd.f32 %v913_v24, %v755_v17  ;;  %v1992_v1 = vpop.f32.mrb[49].mxu0  ;;  %v1015_v21 = vpop.f32.mrb[50].mxu1 }
 0x150   : > { %v916_v28 = vpop.f32.mrb[50].mxu0  ;;  %v1052_v33 = vadd.f32 %v1015_v21, %v921_v44  ;;  %v2001_v34 = vpop.f32.mrb[51].mxu1 }
 0x151   : > { %v929_v30 = vadd.f32 %v916_v28, %v756_v23  ;;  %v1993_v31 = vpop.f32.mrb[51].mxu0 }
 0x155   : > { %v1020_v37 = vpop.f32.mrb[52].mxu1 }
 0x156   : > { %v1177_v35 = vpop.f32.mrb[52].mxu0  ;;  %v1053_v39 = vadd.f32 %v1020_v37, %v922_v40  ;;  %v2004_v32 = vpop.f32.mrb[53].mxu1 }
 0x157   : > { %v1216_v11 = vadd.f32 %v1177_v35, %v1051_v29  ;;  %v2024_v36 = vpop.f32.mrb[53].mxu0  ;;  %v1023_v27 = vpop.f32.mrb[54].mxu1 }
 0x158   : > { %v1180_v38 = vpop.f32.mrb[54].mxu0  ;;  %v1054_v45 = vadd.f32 %v1023_v27, %v923_v57  ;;  %v2005_v47 = vpop.f32.mrb[55].mxu1 }
 0x159   : > { %v1217_v41 = vadd.f32 %v1180_v38, %v1052_v33  ;;  %v2025_v43 = vpop.f32.mrb[55].mxu0 }
 0x15d   : > { %v1028_v52 = vpop.f32.mrb[56].mxu1 }
 0x15e   : > { %v1185_v50 = vpop.f32.mrb[56].mxu0  ;;  %v1055_v46 = vadd.f32 %v1028_v52, %v924_v54  ;;  %v2008_v44 = vpop.f32.mrb[57].mxu1 }
 0x15f   : > { %v1218_v25 = vadd.f32 %v1185_v50, %v1053_v39  ;;  %v2028_v51 = vpop.f32.mrb[57].mxu0  ;;  %v1031_v48 = vpop.f32.mrb[58].mxu1 }
 0x160   : > { %v1188_v53 = vpop.f32.mrb[58].mxu0  ;;  %v1056_v58 = vadd.f32 %v1031_v48, %v925_v5  ;;  %v2009_v59 = vpop.f32.mrb[59].mxu1 }
 0x161   : > { %v1219_v55 = vadd.f32 %v1188_v53, %v1054_v45  ;;  %v2029_v56 = vpop.f32.mrb[59].mxu0 }
 0x165   : > { %v1036_v63 = vpop.f32.mrb[60].mxu1 }
 0x166   : > { %v1193_v61 = vpop.f32.mrb[60].mxu0  ;;  %v1057_v57 = vadd.f32 %v1036_v63, %v926_v49  ;;  %v2012_v3 = vpop.f32.mrb[61].mxu1 }
 0x167   : > { %v2573_v40 = vadd.f32 %v1193_v61, %v1055_v46  ;;  %v2032_v62 = vpop.f32.mrb[61].mxu0  ;;  %v1039_v60 = vpop.f32.mrb[62].mxu1 }
 0x168   : > { %v1196_v0 = vpop.f32.mrb[62].mxu0  ;;  %v1058_v6 = vadd.f32 %v1039_v60, %v927_v18  ;;  %v2013_v54 = vpop.f32.mrb[63].mxu1 }
 0x169   : > { %v2575_v2 = vadd.f32 %v1196_v0, %v1056_v58  ;;  %v2033_v4 = vpop.f32.mrb[63].mxu0 }
 0x16d   : > { %v1044_v5 = vpop.f32.mrb[64].mxu1 }
 0x16e   : > { %v1201_v7 = vpop.f32.mrb[64].mxu0  ;;  %v1059_v13 = vadd.f32 %v1044_v5, %v928_v15  ;;  %v2016_v14 = vpop.f32.mrb[65].mxu1 }
 0x16f   : > { %v2577_v9 = vadd.f32 %v1201_v7, %v1057_v57  ;;  %v2036_v10 = vpop.f32.mrb[65].mxu0  ;;  %v1047_v8 = vpop.f32.mrb[66].mxu1 }
 0x170   : > { %v1204_v12 = vpop.f32.mrb[66].mxu0  ;;  %v1060_v49 = vadd.f32 %v1047_v8, %v929_v30  ;;  %v2017_v19 = vpop.f32.mrb[67].mxu1  ;;  %v2588_v30 = vld [vmem:[%s2637_s2] ss:$0 sm:$0xff] }
 0x171   : > { %v2579_v16 = vadd.f32 %v1204_v12, %v1058_v6  ;;  %v2037_v17 = vpop.f32.mrb[67].mxu0 }
 0x175   : > { %v1350_v42 = vpop.f32.mrb[68].mxu1 }
 0x176   : > { %v1209_v20 = vpop.f32.mrb[68].mxu0  ;;  %v1389_v1 = vadd.f32 %v1350_v42, %v1216_v11  ;;  %v2048_v26 = vpop.f32.mrb[69].mxu1 }
 0x177   : > { %v2581_v23 = vadd.f32 %v1209_v20, %v1059_v13  ;;  %v2040_v18 = vpop.f32.mrb[69].mxu0  ;;  %v1353_v15 = vpop.f32.mrb[70].mxu1 }
 0x178   : > { %v1212_v24 = vpop.f32.mrb[70].mxu0  ;;  %v1390_v22 = vadd.f32 %v1353_v15, %v1217_v41  ;;  %v2049_v31 = vpop.f32.mrb[71].mxu1 }
 0x179   : > { %v2583_v28 = vadd.f32 %v1212_v24, %v1060_v49  ;;  %v2041_v29 = vpop.f32.mrb[71].mxu0 }
 0x17d   : > { %v1358_v35 = vpop.f32.mrb[72].mxu1 }
 0x17e   : > { %v1481_v21 = vpop.f32.mrb[72].mxu0  ;;  %v1391_v37 = vadd.f32 %v1358_v35, %v1218_v25  ;;  %v2052_v38 = vpop.f32.mrb[73].mxu1 }
 0x17f   : > { %v1520_v33 = vadd.f32 %v1481_v21, %v1389_v1  ;;  %v2072_v34 = vpop.f32.mrb[73].mxu0  ;;  %v1361_v43 = vpop.f32.mrb[74].mxu1 }
 0x180   : > { %v1484_v36 = vpop.f32.mrb[74].mxu0  ;;  %v1392_v27 = vadd.f32 %v1361_v43, %v1219_v55  ;;  %v2053_v47 = vpop.f32.mrb[75].mxu1 }
 0x181   : > { %v1537_v11 = vadd.f32 %v2588_v30, %v1520_v33  ;;  %v1521_v39 = vadd.f32 %v1484_v36, %v1390_v22  ;;  %v2073_v32 = vpop.f32.mrb[75].mxu0 }
 0x183   : > { %v1547_v41 = vmax.f32 %v1537_v11, 0.0  ;;  %v1538_v45 = vadd.f32 %v2588_v30, %v1521_v39 }
 0x185   : > { %v1801_v50 = vpack.c.bf16 %v1547_v41, %v1547_v41  ;;  %v1548_v25 = vmax.f32 %v1538_v45, 0.0  ;;  %v1366_v44 = vpop.f32.mrb[76].mxu1 }
 0x186   : > { %v1489_v51 = vpop.f32.mrb[76].mxu0  ;;  %v1393_v56 = vadd.f32 %v1366_v44, %v2573_v40  ;;  %v2056_v58 = vpop.f32.mrb[77].mxu1 }
 0x187   : > { %1598 = vst.msk [vmem:[%s2596_s7] sm:$0xf] %vm1597_vm8, %v1801_v50  ;;  %v1802_v52 = vpack.c.bf16 %v1548_v25, %v1548_v25  ;;  %v1522_v53 = vadd.f32 %v1489_v51, %v1391_v37  ;;  %v2076_v46 = vpop.f32.mrb[77].mxu0  ;;  %v1369_v62 = vpop.f32.mrb[78].mxu1 }
 0x188   : > { %v1492_v55 = vpop.f32.mrb[78].mxu0  ;;  %v1394_v0 = vadd.f32 %v1369_v62, %v2575_v2  ;;  %v2057_v3 = vpop.f32.mrb[79].mxu1 }
 0x189   : > { %1599 = vst.msk [vmem:[%s2596_s7 + $0x4] sm:$0xf] %vm1597_vm8, %v1802_v52  ;;  %v1539_v48 = vadd.f32 %v2588_v30, %v1522_v53  ;;  %v1523_v59 = vadd.f32 %v1492_v55, %v1392_v27  ;;  %v2077_v61 = vpop.f32.mrb[79].mxu0 }
 0x18b   : > { %v1549_v63 = vmax.f32 %v1539_v48, 0.0  ;;  %v1540_v57 = vadd.f32 %v2588_v30, %v1523_v59 }
 0x18d   : > { %v1803_v4 = vpack.c.bf16 %v1549_v63, %v1549_v63  ;;  %v1550_v60 = vmax.f32 %v1540_v57, 0.0  ;;  %v1374_v10 = vpop.f32.mrb[80].mxu1 }
 0x18e   : > { %v1497_v6 = vpop.f32.mrb[80].mxu0  ;;  %v1395_v12 = vadd.f32 %v1374_v10, %v2577_v9  ;;  %v2060_v13 = vpop.f32.mrb[81].mxu1 }
 0x18f   : > { %1600 = vst.msk [vmem:[%s2596_s7 + $0x8] sm:$0xf] %vm1597_vm8, %v1803_v4  ;;  %v1804_v54 = vpack.c.bf16 %v1550_v60, %v1550_v60  ;;  %v1524_v40 = vadd.f32 %v1497_v6, %v1393_v56  ;;  %v2080_v7 = vpop.f32.mrb[81].mxu0  ;;  %v1377_v8 = vpop.f32.mrb[82].mxu1 }
 0x190   : > { %v1500_v5 = vpop.f32.mrb[82].mxu0  ;;  %v1396_v19 = vadd.f32 %v1377_v8, %v2579_v16  ;;  %v2061_v18 = vpop.f32.mrb[83].mxu1 }
 0x191   : > { %1601 = vst.msk [vmem:[%s2596_s7 + $0xc] sm:$0xf] %vm1597_vm8, %v1804_v54  ;;  %v1541_v2 = vadd.f32 %v2588_v30, %v1524_v40  ;;  %v1525_v14 = vadd.f32 %v1500_v5, %v1394_v0  ;;  %v2081_v17 = vpop.f32.mrb[83].mxu0 }
 0x193   : > { %v1551_v49 = vmax.f32 %v1541_v2, 0.0  ;;  %v1542_v20 = vadd.f32 %v2588_v30, %v1525_v14 }
 0x195   : > { %v1805_v42 = vpack.c.bf16 %v1551_v49, %v1551_v49  ;;  %v1552_v24 = vmax.f32 %v1542_v20, 0.0  ;;  %v1382_v15 = vpop.f32.mrb[84].mxu1 }
 0x196   : > { %v1505_v1 = vpop.f32.mrb[84].mxu0  ;;  %v1397_v31 = vadd.f32 %v1382_v15, %v2581_v23  ;;  %v2064_v21 = vpop.f32.mrb[85].mxu1 }
 0x197   : > { %1602 = vst.msk [vmem:[%s2596_s7 + $0x10] sm:$0xf] %vm1597_vm8, %v1805_v42  ;;  %v1806_v26 = vpack.c.bf16 %v1552_v24, %v1552_v24  ;;  %v1526_v9 = vadd.f32 %v1505_v1, %v1395_v12  ;;  %v2084_v29 = vpop.f32.mrb[85].mxu0  ;;  %v1385_v35 = vpop.f32.mrb[86].mxu1 }
 0x198   : > { %v1508_v22 = vpop.f32.mrb[86].mxu0  ;;  %v1398_v37 = vadd.f32 %v1385_v35, %v2583_v28  ;;  %v2065_v38 = vpop.f32.mrb[87].mxu1 }
 0x199   : > { %1603 = vst.msk [vmem:[%s2596_s7 + $0x14] sm:$0xf] %vm1597_vm8, %v1806_v26  ;;  %v1543_v16 = vadd.f32 %v2588_v30, %v1526_v9  ;;  %v1527_v33 = vadd.f32 %v1508_v22, %v1396_v19  ;;  %v2085_v34 = vpop.f32.mrb[87].mxu0 }
 0x19b   : > { %v1553_v36 = vmax.f32 %v1543_v16, 0.0  ;;  %v1544_v11 = vadd.f32 %v2588_v30, %v1527_v33 }
 0x19d   : > { %v1807_v39 = vpack.c.bf16 %v1553_v36, %v1553_v36  ;;  %v1554_v32 = vmax.f32 %v1544_v11, 0.0 }
 0x19e   : > { %v1513_v43 = vpop.f32.mrb[88].mxu0 }
 0x19f   : > { %1604 = vst.msk [vmem:[%s2596_s7 + $0x18] sm:$0xf] %vm1597_vm8, %v1807_v39  ;;  %v1808_v23 = vpack.c.bf16 %v1554_v32, %v1554_v32  ;;  %v1528_v41 = vadd.f32 %v1513_v43, %v1397_v31  ;;  %v2088_v27 = vpop.f32.mrb[89].mxu0 }
 0x1a0   : > { %v1516_v45 = vpop.f32.mrb[90].mxu0 }
 0x1a1   : > { %1605 = vst.msk [vmem:[%s2596_s7 + $0x1c] sm:$0xf] %vm1597_vm8, %v1808_v23  ;;  %v1545_v47 = vadd.f32 %v2588_v30, %v1528_v41  ;;  %v1529_v50 = vadd.f32 %v1516_v45, %v1398_v37  ;;  %v2089_v28 = vpop.f32.mrb[91].mxu0 }
 0x1a3   : > { %v1555_v25 = vmax.f32 %v1545_v47, 0.0  ;;  %v1546_v51 = vadd.f32 %v2588_v30, %v1529_v50 }
 0x1a5   : > { %v1809_v52 = vpack.c.bf16 %v1555_v25, %v1555_v25  ;;  %v1556_v53 = vmax.f32 %v1546_v51, 0.0 }
 0x1a7   : > { %1606 = vst.msk [vmem:[%s2596_s7 + $0x20] sm:$0xf] %vm1597_vm8, %v1809_v52  ;;  %v1810_v46 = vpack.c.bf16 %v1556_v53, %v1556_v53 }
 0x1a9   : > { %1607 = vst.msk [vmem:[%s2596_s7 + $0x24] sm:$0xf] %vm1597_vm8, %v1810_v46 }
 0x1aa PF: > { %s13_s12 = sadd.s32 1, %s2153_s12  }
 0x1ab   : > { %p10_p4 = scmp.ge.s32.totalorder %s13_s12, 4  }
 0x1ad   :  { %12 = sbr.rel (!%p10_p4) target bundleno = 1 (0x1), region = 70 }

// kernel: perceptual_forward.13
= control target key start
LH: loop header
LB: loop body
LE: loop exit
PB: predicated region body
PF: predicated region fallthrough
CT: control target
= control target key end

     0   :  { %s1292_s12 = smov 0   ;;  %s1435_s0 = inlined_call_operand.vmem [shape: bf16[2,42,32], index: 0, kind: input, shape index: {}]   ;;  %s1436_s1 = inlined_call_operand.vmem [shape: bf16[9,32,64], index: 1, kind: input, shape index: {}]   ;;  %s1437_s2 = inlined_call_operand.vmem [shape: f32[1,64], index: 2, kind: input, shape index: {}]   ;;  %s1438_s3 = inlined_call_operand.vmem [shape: f32[2,24,64], index: 3, kind: output, shape index: {}]  }
   0x1 LB: > { %s1025_s13 = sadd.s32 4294967295, %s1270_s12   ;;  %p1029_p0 = scmp.ge.s32.totalorder %s1270_s12, 1  ;;  %s1270_s12 = sphi %s1292_s12, %s13_s12  }
   0x2   : > { %p137_p1 = scmp.lt.s32.totalorder %s1270_s12, 3 }
   0x4   : > { %p138_p2 = pnand %p1029_p0, %p137_p1 }
   0x5   : > { %v1233_v0 = vld [vmem:[%s1436_s1 + $0x10] sm:$0xff] (!%p138_p2)   ;;  %p161_p3 = scmp.lt.s32.totalorder (!%p138_p2), %s1025_s13, 1  ;;  %v1234_v1 = vld [vmem:[%s1436_s1] sm:$0xff] (!%p138_p2)   ;;  %v1235_v2 = vld [vmem:[%s1436_s1 + $0x18] sm:$0xff] (!%p138_p2)   ;;  %vm223_vm0 = vcmask (!%p138_p2), 261120   ;;  %vm353_vm2 = vcmask (!%p138_p2), 1046528  }
   0x6   : > { %141 = sbr.rel (%p138_p2) target bundleno = 282 (0x11a), region = 32  ;;  %1152 = vmatprep.subr.bf16.mxu0 (!%p138_p2), %v1233_v0  ;;  %1160 = vmatprep.subr.bf16.mxu1 (!%p138_p2), %v1234_v1  ;;  %v1236_v3 = vld [vmem:[%s1436_s1 + $0x8] sm:$0xff] (!%p138_p2)   ;;  %v1239_v4 = vld [vmem:[%s1436_s1 + $0x20] sm:$0xff] (!%p138_p2)   ;;  %v1241_v5 = vld [vmem:[%s1436_s1 + $0x30] sm:$0xff] (!%p138_p2)   ;;  %vm195_vm1 = vsmask.f32 (!%p138_p2), 7424 }
   0x7   : > { %1153 = vmatpush3.bf16.msra.mxu0 (!%p138_p2), %v1233_v0  ;;  %1161 = vmatpush3.bf16.msra.mxu1 (!%p138_p2), %v1234_v1  ;;  %v1243_v13 = vld [vmem:[%s1436_s1 + $0x38] sm:$0xff] (!%p138_p2)   ;;  %v1248_v28 = vld [vmem:[%s1436_s1 + $0x50] sm:$0xff] (!%p138_p2)   ;;  %vm439_vm3 = vcmask (!%p138_p2), 1044480   ;;  %v1242_v36 = vld [vmem:[%s1436_s1 + $0x28] sm:$0xff] (!%p138_p2)   ;;  %vm521_vm4 = vsmask.f32 (!%p138_p2), 4352 }
   0x8   : > { %1154 = vmatprep.subr.bf16.mxu0 (!%p138_p2), %v1235_v2  ;;  %1162 = vmatprep.subr.bf16.mxu1 (!%p138_p2), %v1236_v3  ;;  %v1250_v42 = vld [vmem:[%s1436_s1 + $0x58] sm:$0xff] (!%p138_p2)   ;;  %v1245_v46 = vld [vmem:[%s1436_s1 + $0x40] sm:$0xff] (!%p138_p2)   ;;  %v1255_v50 = vld [vmem:[%s1436_s1 + $0x70] sm:$0xff] (!%p138_p2)   ;;  %vm785_vm5 = vsmask.f32 (!%p138_p2), 5376  ;;  %vm703_vm6 = vcmask (!%p138_p2), 1045504  }
   0x9   : > { %v1249_v61 = vld [vmem:[%s1436_s1 + $0x48] sm:$0xff] (!%p138_p2)   ;;  %vm966_vm7 = vcmask (!%p138_p2), 523264  }
   0xb   : > { %1155 = vmatpush3.bf16.msra.mxu0 (!%p138_p2), %v1235_v2  ;;  %1163 = vmatpush3.bf16.msra.mxu1 (!%p138_p2), %v1236_v3 }
   0xc   : > { %1168 = vmatprep.subr.bf16.mxu0 (!%p138_p2), %v1239_v4  ;;  %1176 = vmatprep.subr.bf16.mxu1 (!%p138_p2), %v1241_v5 }
   0xd   : > { %s1440_s13 = smov (!%p161_p3, %s1025_s13), 1 }
   0xe   : > { %s1224_s22 = smul.u32 24, %s1440_s13 }
  0x10   : > { %s1323_s27 = scalar_lea.vmem %s1435_s0, %s1224_s22  ;;  %s170_s7 = scalar_lea.vmem %s1438_s3, %s1224_s22 }
  0x11   : > { %v172_v6 = vld [vmem:[%s1323_s27] sm:$0xf]  ;;  %v1330_v7 = vld [vmem:[%s1323_s27 + $0x4] sm:$0xf]  ;;  %v1333_v8 = vld [vmem:[%s1323_s27 + $0x8] sm:$0xf] }
  0x12   : > { %v179_v9 = vld [vmem:[%s1323_s27 + $0xc] sm:$0x1]  ;;  %v1036_v10 = vcombine.low %v172_v6, %v1330_v7  ;;  %v1042_v11 = vcombine.low %v1333_v8, %v1333_v8  ;;  %v344_v14 = vld [vmem:[%s1323_s27] sm:$0xe]  ;;  %v1079_v41 = vcombine.low %v1330_v7, %v1333_v8  ;;  %v684_v52 = vld [vmem:[%s1323_s27 + $0x4] sm:$0xc] }
  0x13   : > { %v1340_v12 = vcombine.low %v1333_v8, %v179_v9  ;;  %v1051_v17 = vcombine.low %v344_v14, %v1330_v7  ;;  %v426_v21 = vld [vmem:[%s1323_s27] sm:$0x8]  ;;  %v427_v24 = vld [vmem:[%s1323_s27 + $0xc] sm:$0x7]  ;;  %v685_v53 = vld [vmem:[%s1323_s27 + $0x8] sm:$0xf] }
  0x14   : > { %v197_v15 = vshrl.u32 %v1036_v10, 16  ;;  %v199_v16 = vshll.u32 %v1036_v10, 16  ;;  %1164 = vmatprep.mubr.msk.bf16.mxu1 %vm223_vm0, %v1036_v10  ;;  %v1060_v25 = vcombine.low %v426_v21, %v1330_v7  ;;  %v1061_v27 = vcombine.low %v1333_v8, %v427_v24  ;;  %v512_v34 = vld [vmem:[%s1323_s27 + $0xc] sm:$0xf]  ;;  %v687_v56 = vld [vmem:[%s1323_s27 + $0x10] sm:$0x3] }
  0x15   : > { %v204_v18 = vshll.u32 %v1340_v12, 16  ;;  %v208_v19 = vshrl.u32 %v1340_v12, 16  ;;  %1165 = vmatmul.mubr.msk.bf16.vlgmr.msra.gmra.mrb[0].mxu1 %vm223_vm0, %v1042_v11  ;;  %v355_v20 = vrot.slane %v1340_v12, 1  ;;  %v354_v23 = vrot.slane %v1051_v17, 1  ;;  %v686_v54 = vld [vmem:[%s1323_s27 + $0xc] sm:$0xf] }
  0x16   : > { %v201_v22 = vrot.slane %v199_v16, 1  ;;  %1177 = vmatpush3.bf16.msra.mxu1 %v1241_v5  ;;  %v440_v30 = vrot.slane %v1060_v25, 3  ;;  %v441_v33 = vrot.slane %v1061_v27, 3  ;;  %v1070_v37 = vcombine.low %v1333_v8, %v512_v34  ;;  %v776_v58 = vld [vmem:[%s1323_s27 + $0x10] sm:$0x7]  ;;  %v1252_v9 = vld [vmem:[%s1436_s1 + $0x60] sm:$0xff]  }
  0x17   : > { %v206_v26 = vrot.slane %v204_v18, 1  ;;  %1178 = vmatprep.subr.bf16.mxu1 %v1243_v13  ;;  %v356_v32 = vsel %vm353_vm2, %v354_v23, %v355_v20  ;;  %v523_v38 = vshrl.u32 %v1060_v25, 16  ;;  %v526_v40 = vshll.u32 %v1060_v25, 16  ;;  %v872_v14 = vld [vmem:[%s1323_s27 + $0x4] sm:$0x8]  ;;  %v1256_v16 = vld [vmem:[%s1436_s1 + $0x68] sm:$0xff]  }
  0x18   : > { %v202_v29 = vor.u32 %v201_v22, %v197_v15  ;;  %v442_v39 = vsel %vm439_vm3, %v440_v30, %v441_v33  ;;  %v531_v44 = vshrl.u32 %v1070_v37, 16  ;;  %v534_v45 = vshll.u32 %v1070_v37, 16  ;;  %v1262_v22 = vld [vmem:[%s1436_s1 + $0x88] sm:$0xff]  }
  0x19   : > { %v210_v31 = vor.u32 %v208_v19, %v206_v26  ;;  %1180 = vmatprep.mubr.msk.bf16.mxu1 %vm223_vm0, %v442_v39  ;;  %v525_v43 = vrot.slane %v523_v38, 3  ;;  %v528_v47 = vrot.slane %v526_v40, 4  ;;  %v1089_v57 = vcombine.low %v684_v52, %v685_v53  ;;  %v1261_v19 = vld [vmem:[%s1436_s1 + $0x80] sm:$0xff]  }
  0x1a   : > { %v207_v35 = vsel %vm195_vm1, %v202_v29, %v206_v26  ;;  %1179 = vmatpush3.bf16.msra.mxu1 %v1243_v13  ;;  %v533_v48 = vrot.slane %v531_v44, 3  ;;  %v536_v49 = vrot.slane %v534_v45, 4  ;;  %v1080_v59 = vcombine.low %v512_v34, %v512_v34 }
  0x1b   : > { %1156 = vmatprep.mubr.msk.bf16.mxu0 %vm223_vm0, %v207_v35  ;;  %1192 = vmatprep.subr.bf16.mxu1 %v1248_v28  ;;  %v529_v51 = vor.u32 %v528_v47, %v525_v43  ;;  %v1099_v60 = vcombine.low %v686_v54, %v776_v58  ;;  %v1090_v63 = vcombine.low %v686_v54, %v687_v56  ;;  %v787_v0 = vshrl.u32 %v1089_v57, 16 }
  0x1c   : > { %1157 = vmatmul.mubr.msk.bf16.vlgmr.msra.gmra.mrb[0].mxu0 %vm223_vm0, %v210_v31  ;;  %v537_v55 = vor.u32 %v536_v49, %v533_v48  ;;  %v790_v1 = vshll.u32 %v1089_v57, 16  ;;  %v704_v10 = vrot.slane %v1089_v57, 2  ;;  %v1108_v18 = vcombine.low %v872_v14, %v685_v53  ;;  %v1113_v14 = vld [vmem:[%s1437_s2] ss:$0 sm:$0xff] }
  0x1d   : > { %1169 = vmatpush3.bf16.msra.mxu0 %v1239_v4  ;;  %1172 = vmatprep.mubr.msk.bf16.mxu0 %vm223_vm0, %v356_v32  ;;  %v795_v2 = vshrl.u32 %v1099_v60, 16  ;;  %v798_v3 = vshll.u32 %v1099_v60, 16  ;;  %v1257_v4 = vld [vmem:[%s1436_s1 + $0x78] sm:$0xff]   ;;  %v789_v5 = vrot.slane %v787_v0, 2  ;;  %v705_v11 = vrot.slane %v1090_v63, 2 }
  0x1e   : > { %1170 = vmatprep.subr.bf16.mxu0 %v1242_v36  ;;  %1181 = vmatmul.mubr.msk.bf16.vlgmr.msra.gmra.mrb[4].mxu1 %vm223_vm0, %v441_v33  ;;  %v538_v62 = vsel %vm521_vm4, %v529_v51, %v537_v55  ;;  %v792_v6 = vrot.slane %v790_v1, 3  ;;  %v882_v21 = vrot.slane %v1099_v60, 3 }
  0x1f   : > { %1193 = vmatpush3.bf16.msra.mxu1 %v1248_v28  ;;  %1196 = vmatprep.mubr.msk.bf16.mxu1 %vm223_vm0, %v1079_v41  ;;  %v797_v7 = vrot.slane %v795_v2, 2  ;;  %v800_v8 = vrot.slane %v798_v3, 3  ;;  %v706_v17 = vsel %vm703_vm6, %v704_v10, %v705_v11 }
  0x20   : > { %1194 = vmatprep.subr.bf16.mxu1 %v1250_v42  ;;  %v793_v12 = vor.u32 %v792_v6, %v789_v5 }
  0x21   : > { %1171 = vmatpush3.bf16.msra.mxu0 %v1242_v36  ;;  %v801_v13 = vor.u32 %v800_v8, %v797_v7 }
  0x22   : > { %1184 = vmatprep.subr.bf16.mxu0 %v1245_v46 }
  0x23   : > { %1195 = vmatpush3.bf16.msra.mxu1 %v1250_v42  ;;  %v802_v15 = vsel %vm785_vm5, %v793_v12, %v801_v13 }
  0x24   : > { %1173 = vmatmul.mubr.msk.bf16.vlgmr.msra.gmra.mrb[4].mxu0 %vm223_vm0, %v355_v20  ;;  %1208 = vmatprep.subr.bf16.mxu1 %v1255_v50  ;;  %v881_v20 = vrot.slane %v1108_v18, 3 }
  0x25   : > { %1185 = vmatpush3.bf16.msra.mxu0 %v1245_v46  ;;  %1188 = vmatprep.mubr.msk.bf16.mxu0 %vm223_vm0, %v538_v62 }
  0x26   : > { %1186 = vmatprep.subr.bf16.mxu0 %v1249_v61  ;;  %1197 = vmatmul.mubr.msk.bf16.vlgmr.msra.gmra.mrb[8].mxu1 %vm223_vm0, %v1080_v59  ;;  %v883_v23 = vsel %vm439_vm3, %v881_v20, %v882_v21 }
  0x27   : > { %1209 = vmatpush3.bf16.msra.mxu1 %v1255_v50  ;;  %1212 = vmatprep.mubr.msk.bf16.mxu1 %vm223_vm0, %v802_v15 }
  0x28   : > { %1210 = vmatprep.subr.bf16.mxu1 %v1257_v4 }
  0x29   : > { %1187 = vmatpush3.bf16.msra.mxu0 %v1249_v61 }
  0x2a   : > { %1200 = vmatprep.subr.bf16.mxu0 %v1252_v9 }
  0x2b   : > { %1211 = vmatpush3.bf16.msra.mxu1 %v1257_v4 }
  0x2c   : > { %1189 = vmatmul.mubr.msk.bf16.vlgmr.msra.gmra.mrb[8].mxu0 %vm223_vm0, %v537_v55 }
  0x2d   : > { %1201 = vmatpush3.bf16.msra.mxu0 %v1252_v9  ;;  %1204 = vmatprep.mubr.msk.bf16.mxu0 %vm223_vm0, %v706_v17 }
  0x2e   : > { %1202 = vmatprep.subr.bf16.mxu0 %v1256_v16  ;;  %1213 = vmatmul.mubr.msk.bf16.vlgmr.msra.gmra.mrb[12].mxu1 %vm223_vm0, %v801_v13 }
  0x31   : > { %1203 = vmatpush3.bf16.msra.mxu0 %v1256_v16 }
  0x32   : > { %1216 = vmatprep.subr.bf16.mxu0 %v1261_v19 }
  0x34   : > { %1205 = vmatmul.mubr.msk.bf16.vlgmr.msra.gmra.mrb[12].mxu0 %vm223_vm0, %v705_v11 }
  0x35   : > { %1217 = vmatpush3.bf16.msra.mxu0 %v1261_v19  ;;  %1220 = vmatprep.mubr.msk.bf16.mxu0 %vm223_vm0, %v883_v23 }
  0x36   : > { %1218 = vmatprep.subr.bf16.mxu0 %v1262_v22 }
  0x39   : > { %1219 = vmatpush3.bf16.msra.mxu0 %v1262_v22 }
  0x3c   : > { %1221 = vmatmul.mubr.msk.bf16.vlgmr.msra.gmra.mrb[16].mxu0 %vm223_vm0, %v882_v21 }
  0xe8   : > { %v1166_v24 = vpop.f32.mrb[0].mxu1 }
  0xe9   : > { %v330_v25 = vpop.f32.mrb[1].mxu1 }
  0xea   : > { %v1167_v26 = vpop.f32.mrb[2].mxu1 }
  0xeb   : > { %v333_v27 = vpop.f32.mrb[3].mxu1 }
  0xef   : > { %v1158_v28 = vpop.f32.mrb[0].mxu0 }
  0xf0   : > { %v339_v29 = vadd.f32 %v1166_v24, %v1158_v28  ;;  %v264_v30 = vpop.f32.mrb[1].mxu0 }
  0xf1   : > { %v331_v31 = vadd.f32 %v330_v25, %v264_v30  ;;  %v1159_v32 = vpop.f32.mrb[2].mxu0  ;;  %v1182_v33 = vpop.f32.mrb[4].mxu1 }
  0xf2   : > { %v267_v34 = vpop.f32.mrb[3].mxu0  ;;  %v495_v35 = vpop.f32.mrb[5].mxu1 }
  0xf3   : > { %v334_v36 = vadd.f32 %v333_v27, %v267_v34  ;;  %v1183_v37 = vpop.f32.mrb[6].mxu1 }
  0xf4   : > { %v498_v38 = vpop.f32.mrb[7].mxu1 }
  0xf7   : > { %v1174_v39 = vpop.f32.mrb[4].mxu0 }
  0xf8   : > { %v425_v40 = vadd.f32 %v1174_v39, %v339_v29  ;;  %v409_v41 = vpop.f32.mrb[5].mxu0 }
  0xf9   : > { %v423_v42 = vadd.f32 %v409_v41, %v331_v31  ;;  %v1175_v43 = vpop.f32.mrb[6].mxu0  ;;  %v1198_v44 = vpop.f32.mrb[8].mxu1 }
  0xfa   : > { %v511_v45 = vadd.f32 %v1182_v33, %v425_v40  ;;  %v412_v46 = vpop.f32.mrb[7].mxu0  ;;  %v667_v47 = vpop.f32.mrb[9].mxu1 }
  0xfb   : > { %v424_v48 = vadd.f32 %v412_v46, %v334_v36  ;;  %v509_v49 = vadd.f32 %v495_v35, %v423_v42  ;;  %v1199_v50 = vpop.f32.mrb[10].mxu1 }
  0xfc   : > { %v670_v51 = vpop.f32.mrb[11].mxu1 }
  0xfd   : > { %v510_v52 = vadd.f32 %v498_v38, %v424_v48 }
  0xff   : > { %v1190_v53 = vpop.f32.mrb[8].mxu0 }
 0x100   : > { %v607_v54 = vadd.f32 %v1190_v53, %v511_v45  ;;  %v591_v55 = vpop.f32.mrb[9].mxu0 }
 0x101   : > { %v605_v56 = vadd.f32 %v591_v55, %v509_v49  ;;  %v1191_v57 = vpop.f32.mrb[10].mxu0  ;;  %v1214_v58 = vpop.f32.mrb[12].mxu1 }
 0x102   : > { %v683_v59 = vadd.f32 %v1198_v44, %v607_v54  ;;  %v594_v60 = vpop.f32.mrb[11].mxu0  ;;  %v855_v61 = vpop.f32.mrb[13].mxu1 }
 0x103   : > { %v606_v62 = vadd.f32 %v594_v60, %v510_v52  ;;  %v681_v63 = vadd.f32 %v667_v47, %v605_v56  ;;  %v1215_v0 = vpop.f32.mrb[14].mxu1 }
 0x104   : > { %v858_v1 = vpop.f32.mrb[15].mxu1 }
 0x105   : > { %v682_v2 = vadd.f32 %v670_v51, %v606_v62 }
 0x107   : > { %v1206_v3 = vpop.f32.mrb[12].mxu0 }
 0x108   : > { %v775_v4 = vadd.f32 %v1206_v3, %v683_v59  ;;  %v759_v5 = vpop.f32.mrb[13].mxu0 }
 0x109   : > { %v773_v6 = vadd.f32 %v759_v5, %v681_v63  ;;  %v1207_v7 = vpop.f32.mrb[14].mxu0 }
 0x10a   : > { %v871_v8 = vadd.f32 %v1214_v58, %v775_v4  ;;  %v762_v9 = vpop.f32.mrb[15].mxu0 }
 0x10b   : > { %v774_v10 = vadd.f32 %v762_v9, %v682_v2  ;;  %v869_v11 = vadd.f32 %v855_v61, %v773_v6 }
 0x10d   : > { %v870_v12 = vadd.f32 %v858_v1, %v774_v10 }
 0x10f   : > { %v1222_v13 = vpop.f32.mrb[16].mxu0 }
 0x110   : > { %v952_v15 = vadd.f32 %v1222_v13, %v871_v8  ;;  %v936_v16 = vpop.f32.mrb[17].mxu0 }
 0x111   : > { %v950_v17 = vadd.f32 %v936_v16, %v869_v11  ;;  %v1223_v18 = vpop.f32.mrb[18].mxu0 }
 0x112   : > { %v962_v19 = vadd.f32 %v1113_v14, %v952_v15  ;;  %v939_v20 = vpop.f32.mrb[19].mxu0 }
 0x113   : > { %v960_v21 = vadd.f32 %v1113_v14, %v950_v17  ;;  %v951_v22 = vadd.f32 %v939_v20, %v870_v12 }
 0x114   : > { %v965_v23 = vmax.f32 %v962_v19, 0.0 }
 0x115   : > { %v963_v24 = vmax.f32 %v960_v21, 0.0  ;;  %v961_v25 = vadd.f32 %v1113_v14, %v951_v22 }
 0x116   : > { %969 = vst.msk [vmem:[%s170_s7 + $0x10] sm:$0xff] %vm966_vm7, %v965_v23 }
 0x117   : > { %967 = vst.msk [vmem:[%s170_s7] sm:$0xff] %vm966_vm7, %v963_v24  ;;  %v964_v26 = vmax.f32 %v961_v25, 0.0 }
 0x119   : > { %968 = vst.msk [vmem:[%s170_s7 + $0x8] sm:$0xff] %vm966_vm7, %v964_v26 }
 0x11a PF: > { %s13_s12 = sadd.s32 1, %s1270_s12  }
 0x11b   : > { %p10_p4 = scmp.ge.s32.totalorder %s13_s12, 4  }
 0x11d   :  { %12 = sbr.rel (!%p10_p4) target bundleno = 1 (0x1), region = 70 }

</bundles_post_ra>
